<compile_context>
chip_gen: v7x
topology: tpu7x:2x2x1
jax: 0.10.0
libtpu: 0.0.40
codegen_flags: <defaults>
</compile_context>

<pallas_src>
import math
import jax
import jax.numpy as jnp
from jax.experimental import pallas as pl
from jax.experimental.pallas import tpu as pltpu


def _round_up(x, m):
    return (x + m - 1) // m * m


# ---------------------------------------------------------------------------
# Kernel
# ---------------------------------------------------------------------------
def _vae_kernel(x_ref, eps_ref,
                we1_ref, be1_ref, we2_ref, be2_ref,
                wh_ref, bh_ref,
                wd1_ref, bd1_ref, wd2_ref, bd2_ref, wd3_ref, bd3_ref,
                recon_ref, mu_ref, logvar_ref):
    f32 = jnp.float32
    bf16 = jnp.bfloat16

    def mm(a, w_ref):  # bf16 x bf16 MXU matmul, f32 accumulate
        return jnp.dot(a.astype(bf16), w_ref[...], preferred_element_type=f32)

    x = x_ref[...]                                    # (tm, 896) bf16, zero-padded lanes

    # ---- encoder: 784(->896) -> 512 -> 256, ReLU ----
    h = jnp.maximum(mm(x, we1_ref) + be1_ref[...], 0.0)
    h = jnp.maximum(mm(h, we2_ref) + be2_ref[...], 0.0)

    # ---- fused latent heads: single (256, 2L) matmul, then static lane split ----
    L = mu_ref.shape[-1]
    heads = mm(h, wh_ref) + bh_ref[...]               # (tm, 2L) = mu || logvar
    mu = heads[:, :L]
    logvar = jnp.clip(heads[:, L:], -10.0, 10.0)

    # ---- reparameterize: z = mu + eps * exp(0.5*logvar); eps==0 => eval path (z = mu) ----
    z = mu + eps_ref[...] * jnp.exp(0.5 * logvar)

    # ---- decoder: 32 -> 256 -> 512 -> 784(->896), ReLU, ReLU, Sigmoid ----
    d = jnp.maximum(mm(z, wd1_ref) + bd1_ref[...], 0.0)
    d = jnp.maximum(mm(d, wd2_ref) + bd2_ref[...], 0.0)
    logits = mm(d, wd3_ref) + bd3_ref[...]

    recon_ref[...] = jax.nn.sigmoid(logits)
    mu_ref[...] = mu
    logvar_ref[...] = logvar


# ---------------------------------------------------------------------------
# pallas_call wrapper
# ---------------------------------------------------------------------------
def choose_tm(batch):
    """Batch tile (rows per grid step).  Multiple of 16 (bf16 sublane packing).

    * small batch: single step.
    * 17..512: force exactly 2 steps so the "parallel" axis shards across v7x's two
      TensorCores (costs nothing on single-TC v5e/v6e at these sizes).
    * large batch: 256 rows fills the 256-wide MXU M dim on v6e/v7x (v5e simply takes
      two MXU passes per step, same bytes moved).
    """
    if batch <= 16:
        return _round_up(max(batch, 1), 16)
    if batch <= 512:
        return min(256, _round_up((batch + 1) // 2, 16))
    return 256


def _call(xp, ep, packed, tm, single_buffer_weights, vmem_limit_bytes):
    (we1, be1, we2, be2, wh, bh, wd1, bd1, wd2, bd2, wd3, bd3) = packed
    B_pad, in_pad = xp.shape
    latent = wh.shape[1] // 2
    out_pad = wd3.shape[1]
    nb = B_pad // tm

    def row_spec(n):
        return pl.BlockSpec((tm, n), lambda i: (i, 0))

    if single_buffer_weights:
        # Same block every step -> DMA'd once, stays VMEM-resident; single-buffer it.
        def const_spec(a):
            return pl.BlockSpec(a.shape, lambda i: (0, 0), pipeline_mode=pl.Buffered(1))
    else:
        def const_spec(a):
            return pl.BlockSpec(a.shape, lambda i: (0, 0))

    return pl.pallas_call(
        _vae_kernel,
        out_shape=(
            jax.ShapeDtypeStruct((B_pad, out_pad), jnp.float32),
            jax.ShapeDtypeStruct((B_pad, latent), jnp.float32),
            jax.ShapeDtypeStruct((B_pad, latent), jnp.float32),
        ),
        grid=(nb,),
        in_specs=[
            row_spec(in_pad), row_spec(latent),
            const_spec(we1), const_spec(be1), const_spec(we2), const_spec(be2),
            const_spec(wh), const_spec(bh),
            const_spec(wd1), const_spec(bd1), const_spec(wd2), const_spec(bd2),
            const_spec(wd3), const_spec(bd3),
        ],
        out_specs=(row_spec(out_pad), row_spec(latent), row_spec(latent)),
        compiler_params=pltpu.CompilerParams(
            dimension_semantics=("parallel",),      # shards batch across v7x's 2 TensorCores
            vmem_limit_bytes=vmem_limit_bytes,
        ),
    )(xp, ep, we1, be1, we2, be2, wh, bh, wd1, bd1, wd2, bd2, wd3, bd3)


_SINGLE_BUFFER_OK = {"ok": True}   # cached capability flag for pipeline_mode=pl.Buffered(1)


def vae_apply(xp, ep, packed, tm, vmem_limit_bytes=32 << 20):
    """Raw kernel call on pre-padded bf16 inputs; returns padded (B_pad, 896) recon + mu/logvar.

    Keeping the padded lane-dense layout here avoids extra wrapper-side HBM passes; slice in
    the consumer (or use vae_forward for torch-parity shapes).
    """
    if _SINGLE_BUFFER_OK["ok"]:
        try:
            return jax.block_until_ready(_call(xp, ep, packed, tm, True, vmem_limit_bytes))
        except Exception:
            # pipeline_mode=pl.Buffered(1) unsupported on this jax version; fall back.
            _SINGLE_BUFFER_OK["ok"] = False
    return _call(xp, ep, packed, tm, False, vmem_limit_bytes)


def prepare_inputs(x, eps, latent, in_pad, tm):
    """One-time data-pipeline step: flatten, lane-pad 784->896, cast x to bf16, batch-pad to tm."""
    B = x.shape[0]
    B_pad = _round_up(B, tm)
    xf = x.reshape(B, -1).astype(jnp.float32)
    xf = jnp.pad(xf, ((0, B_pad - B), (0, in_pad - xf.shape[1])))
    xp = xf.astype(jnp.bfloat16)            # kernel feeds bf16 to the MXU anyway -> half the DMA
    if eps is None:
        ep = jnp.zeros((B_pad, latent), jnp.float32)     # eval mode: z = mu
    else:
        ep = jnp.pad(eps.astype(jnp.float32), ((0, B_pad - B), (0, 0)))
    return xp, ep


def vae_forward(x, packed, eps=None, image_shape=(1, 28, 28)):
    """Torch-parity convenience wrapper: x (B, *image_shape) -> (recon, mu, logvar)."""
    B = x.shape[0]
    in_pad = packed[0].shape[0]                    # 896
    latent = packed[6].shape[1] // 2               # 32
    out_dim = image_shape[0] * image_shape[1] * image_shape[2]

    tm = choose_tm(B)
    xp, ep = prepare_inputs(x, eps, latent, in_pad, tm)
    recon_p, mu_p, lv_p = vae_apply(xp, ep, packed, tm)
    recon = recon_p[:B, :out_dim].reshape(B, *image_shape)
    return recon, mu_p[:B], lv_p[:B]


# ---------------------------------------------------------------------------
# Parameters
# ---------------------------------------------------------------------------
def init_params(key, input_dim=784, hidden_dims=(512, 256), latent_dim=32):
    """Matches the torch module's init: xavier_normal_ weights (mu/logvar heads gain=0.01),
    zero biases except logvar bias = -5.  Weights stored as (in_features, out_features)."""
    def xavier(k, fan_in, fan_out, gain=1.0):
        std = gain * math.sqrt(2.0 / (fan_in + fan_out))
        return std * jax.random.normal(k, (fan_in, fan_out), dtype=jnp.float32)

    ks = jax.random.split(key, 7)
    we1 = xavier(ks[0], input_dim, hidden_dims[0])
    be1 = jnp.zeros((1, hidden_dims[0]), jnp.float32)
    we2 = xavier(ks[1], hidden_dims[0], hidden_dims[1])
    be2 = jnp.zeros((1, hidden_dims[1]), jnp.float32)
    wmu = xavier(ks[2], hidden_dims[1], latent_dim, gain=0.01)
    bmu = jnp.zeros((1, latent_dim), jnp.float32)
    wlv = xavier(ks[3], hidden_dims[1], latent_dim, gain=0.01)
    blv = jnp.full((1, latent_dim), -5.0, jnp.float32)
    # decoder uses reversed hidden dims: 32 -> 256 -> 512 -> 784
    wd1 = xavier(ks[4], latent_dim, hidden_dims[1])
    bd1 = jnp.zeros((1, hidden_dims[1]), jnp.float32)
    wd2 = xavier(ks[5], hidden_dims[1], hidden_dims[0])
    bd2 = jnp.zeros((1, hidden_dims[0]), jnp.float32)
    wd3 = xavier(ks[6], hidden_dims[0], input_dim)
    bd3 = jnp.zeros((1, input_dim), jnp.float32)
    return (we1, be1, we2, be2, wmu, bmu, wlv, blv, wd1, bd1, wd2, bd2, wd3, bd3)


def pack_params(params, lane=128):
    """Cast weights to bf16 (halves weight HBM traffic), zero-pad the 784-wide dims to a
    multiple of 128 lanes (lane-dense DMAs / stores), and fuse the mu/logvar heads into a
    single (hidden, 2*latent) weight + (1, 2*latent) bias."""
    (we1, be1, we2, be2, wmu, bmu, wlv, blv,
     wd1, bd1, wd2, bd2, wd3, bd3) = params
    in_pad = _round_up(we1.shape[0], lane)
    out_pad = _round_up(wd3.shape[1], lane)
    we1 = jnp.pad(we1, ((0, in_pad - we1.shape[0]), (0, 0)))     # zero rows: no-op in matmul
    wd3 = jnp.pad(wd3, ((0, 0), (0, out_pad - wd3.shape[1])))    # zero cols: sliced off later
    bd3 = jnp.pad(bd3, ((0, 0), (0, out_pad - bd3.shape[1])))
    wh = jnp.concatenate([wmu, wlv], axis=1)                     # fused mu || logvar head
    bh = jnp.concatenate([bmu, blv], axis=1)
    bf = lambda w: w.astype(jnp.bfloat16)
    return (bf(we1), be1, bf(we2), be2, bf(wh), bh,
            bf(wd1), bd1, bf(wd2), bd2, bf(wd3), bd3)


# ---------------------------------------------------------------------------
# References
# ---------------------------------------------------------------------------
def _reference_forward_bf16(x, packed, eps, image_shape=(1, 28, 28)):
    """Pure-JAX reference mirroring the kernel's numerics (bf16 operands, f32 accumulate)."""
    (we1, be1, we2, be2, wh, bh, wd1, bd1, wd2, bd2, wd3, bd3) = packed
    B = x.shape[0]
    out_dim = image_shape[0] * image_shape[1] * image_shape[2]
    L = wh.shape[1] // 2
    xf = x.reshape(B, -1).astype(jnp.float32)
    xf = jnp.pad(xf, ((0, 0), (0, we1.shape[0] - xf.shape[1]))).astype(jnp.bfloat16)

    def mm(a, w):
        return jnp.dot(a.astype(jnp.bfloat16), w, preferred_element_type=jnp.float32)

    h = jnp.maximum(mm(xf, we1) + be1, 0.0)
    h = jnp.maximum(mm(h, we2) + be2, 0.0)
    heads = mm(h, wh) + bh
    mu = heads[:, :L]
    logvar = jnp.clip(heads[:, L:], -10.0, 10.0)
    z = mu + eps * jnp.exp(0.5 * logvar)
    d = jnp.maximum(mm(z, wd1) + bd1, 0.0)
    d = jnp.maximum(mm(d, wd2) + bd2, 0.0)
    recon = jax.nn.sigmoid(mm(d, wd3) + bd3)[:, :out_dim]
    return recon.reshape(B, *image_shape), mu, logvar


def _reference_forward_f32(x, params, eps, image_shape=(1, 28, 28)):
    """True f32 forward, equivalent to the PyTorch module (training-mode reparameterize)."""
    (we1, be1, we2, be2, wmu, bmu, wlv, blv,
     wd1, bd1, wd2, bd2, wd3, bd3) = params
    B = x.shape[0]
    xf = x.reshape(B, -1).astype(jnp.float32)
    h = jnp.maximum(xf @ we1 + be1, 0.0)
    h = jnp.maximum(h @ we2 + be2, 0.0)
    mu = h @ wmu + bmu
    logvar = jnp.clip(h @ wlv + blv, -10.0, 10.0)
    z = mu + eps * jnp.exp(0.5 * logvar)
    d = jnp.maximum(z @ wd1 + bd1, 0.0)
    d = jnp.maximum(d @ wd2 + bd2, 0.0)
    recon = jax.nn.sigmoid(d @ wd3 + bd3)
    return recon.reshape(B, *image_shape), mu, logvar


# ---------------------------------------------------------------------------
# Demo / self-test
# ---------------------------------------------------------------------------
if __name__ == "__main__":
    image_shape = (1, 28, 28)
    latent_dim = 32
    batch = 8

    key = jax.random.PRNGKey(0)
    kx, ke, kp = jax.random.split(key, 3)
    x = jax.random.uniform(kx, (batch, *image_shape), dtype=jnp.float32)
    # Deterministic reparameterize noise (training-mode path); pass eps=None for eval (z = mu).
    eps = jax.random.normal(ke, (batch, latent_dim), dtype=jnp.float32)

    params = init_params(kp, input_dim=784, hidden_dims=(512, 256), latent_dim=latent_dim)
    packed = pack_params(params)

    recon, mu, logvar = vae_forward(x, packed, eps=eps, image_shape=image_shape)
    recon, mu, logvar = jax.block_until_ready((recon, mu, logvar))

    assert recon.shape == (batch, *image_shape), recon.shape
    assert mu.shape == (batch, latent_dim) and logvar.shape == (batch, latent_dim)

    # 1) bf16-matched reference (same numerics as the kernel).
    r_b, m_b, l_b = _reference_forward_bf16(x, packed, eps, image_shape)
    assert jnp.allclose(recon, r_b, atol=2e-3, rtol=0), float(jnp.max(jnp.abs(recon - r_b)))
    assert jnp.allclose(mu, m_b, atol=2e-3, rtol=0), float(jnp.max(jnp.abs(mu - m_b)))
    assert jnp.allclose(logvar, l_b, atol=2e-3, rtol=0), float(jnp.max(jnp.abs(logvar - l_b)))

    # 2) full-f32 (PyTorch-equivalent) reference: bounds the bf16 truncation error.
    r_f, m_f, l_f = _reference_forward_f32(x, params, eps, image_shape)
    assert jnp.allclose(recon, r_f, atol=3e-2, rtol=0), float(jnp.max(jnp.abs(recon - r_f)))
    assert jnp.allclose(mu, m_f, atol=3e-2, rtol=0), float(jnp.max(jnp.abs(mu - m_f)))
    assert jnp.allclose(logvar, l_f, atol=3e-2, rtol=0), float(jnp.max(jnp.abs(logvar - l_f)))

    print("KERNEL_OK")
</pallas_src>

<mosaic_0001>
module attributes {stable_mosaic.version = 11 : i64} {
  func.func @_vae_kernel(%arg0: i32, %arg1: memref<16x896xbf16, #tpu.memory_space<vmem>>, %arg2: memref<16x32xf32, #tpu.memory_space<vmem>>, %arg3: memref<896x512xbf16, #tpu.memory_space<vmem>>, %arg4: memref<1x512xf32, #tpu.memory_space<vmem>>, %arg5: memref<512x256xbf16, #tpu.memory_space<vmem>>, %arg6: memref<1x256xf32, #tpu.memory_space<vmem>>, %arg7: memref<256x64xbf16, #tpu.memory_space<vmem>>, %arg8: memref<1x64xf32, #tpu.memory_space<vmem>>, %arg9: memref<32x256xbf16, #tpu.memory_space<vmem>>, %arg10: memref<1x256xf32, #tpu.memory_space<vmem>>, %arg11: memref<256x512xbf16, #tpu.memory_space<vmem>>, %arg12: memref<1x512xf32, #tpu.memory_space<vmem>>, %arg13: memref<512x896xbf16, #tpu.memory_space<vmem>>, %arg14: memref<1x896xf32, #tpu.memory_space<vmem>>, %arg15: memref<16x896xf32, #tpu.memory_space<vmem>>, %arg16: memref<16x32xf32, #tpu.memory_space<vmem>>, %arg17: memref<16x32xf32, #tpu.memory_space<vmem>>) attributes {dimension_semantics = [#tpu.dimension_semantics<parallel>], iteration_bounds = array<i64: 1>, scalar_prefetch = 0 : i64, scratch_operands = 0 : i64, tpu.core_type = #tpu.core_type<tc>, window_params = [{transform_indices = @transform_0, window_bounds = array<i64: 16, 896>}, {transform_indices = @transform_1, window_bounds = array<i64: 16, 32>}, {pipeline_mode = #tpu.pipeline_mode<synchronous>, transform_indices = @transform_2, window_bounds = array<i64: 896, 512>}, {pipeline_mode = #tpu.pipeline_mode<synchronous>, transform_indices = @transform_3, window_bounds = array<i64: 1, 512>}, {pipeline_mode = #tpu.pipeline_mode<synchronous>, transform_indices = @transform_4, window_bounds = array<i64: 512, 256>}, {pipeline_mode = #tpu.pipeline_mode<synchronous>, transform_indices = @transform_5, window_bounds = array<i64: 1, 256>}, {pipeline_mode = #tpu.pipeline_mode<synchronous>, transform_indices = @transform_6, window_bounds = array<i64: 256, 64>}, {pipeline_mode = #tpu.pipeline_mode<synchronous>, transform_indices = @transform_7, window_bounds = array<i64: 1, 64>}, {pipeline_mode = #tpu.pipeline_mode<synchronous>, transform_indices = @transform_8, window_bounds = array<i64: 32, 256>}, {pipeline_mode = #tpu.pipeline_mode<synchronous>, transform_indices = @transform_9, window_bounds = array<i64: 1, 256>}, {pipeline_mode = #tpu.pipeline_mode<synchronous>, transform_indices = @transform_10, window_bounds = array<i64: 256, 512>}, {pipeline_mode = #tpu.pipeline_mode<synchronous>, transform_indices = @transform_11, window_bounds = array<i64: 1, 512>}, {pipeline_mode = #tpu.pipeline_mode<synchronous>, transform_indices = @transform_12, window_bounds = array<i64: 512, 896>}, {pipeline_mode = #tpu.pipeline_mode<synchronous>, transform_indices = @transform_13, window_bounds = array<i64: 1, 896>}, {transform_indices = @transform_14, window_bounds = array<i64: 16, 896>}, {transform_indices = @transform_15, window_bounds = array<i64: 16, 32>}, {transform_indices = @transform_16, window_bounds = array<i64: 16, 32>}]} {
    %c0 = arith.constant 0 : index
    %c0_0 = arith.constant 0 : index
    %0 = vector.load %arg1[%c0, %c0_0] : memref<16x896xbf16, #tpu.memory_space<vmem>>, vector<16x896xbf16>
    %c0_1 = arith.constant 0 : index
    %c0_2 = arith.constant 0 : index
    %1 = vector.load %arg3[%c0_1, %c0_2] : memref<896x512xbf16, #tpu.memory_space<vmem>>, vector<896x512xbf16>
    %cst = arith.constant dense<0.000000e+00> : vector<16x512xf32>
    %2 = tpu.matmul %0, %1, %cst {dimension_numbers = #tpu.dot_dimension_numbers<[1], [0], [0], [1], [0, 0, 1, 1], [], []>} : vector<16x896xbf16>, vector<896x512xbf16>, vector<16x512xf32> -> vector<16x512xf32>
    %c0_3 = arith.constant 0 : index
    %c0_4 = arith.constant 0 : index
    %3 = vector.load %arg4[%c0_3, %c0_4] : memref<1x512xf32, #tpu.memory_space<vmem>>, vector<1x512xf32>
    %4 = vector.broadcast %3 : vector<1x512xf32> to vector<16x512xf32>
    %5 = arith.addf %2, %4 : vector<16x512xf32>
    %cst_5 = arith.constant 0.000000e+00 : f32
    %6 = vector.broadcast %cst_5 : f32 to vector<16x512xf32>
    %7 = arith.maximumf %5, %6 : vector<16x512xf32>
    %8 = arith.truncf %7 : vector<16x512xf32> to vector<16x512xbf16>
    %c0_6 = arith.constant 0 : index
    %c0_7 = arith.constant 0 : index
    %9 = vector.load %arg5[%c0_6, %c0_7] : memref<512x256xbf16, #tpu.memory_space<vmem>>, vector<512x256xbf16>
    %cst_8 = arith.constant dense<0.000000e+00> : vector<16x256xf32>
    %10 = tpu.matmul %8, %9, %cst_8 {dimension_numbers = #tpu.dot_dimension_numbers<[1], [0], [0], [1], [0, 0, 1, 1], [], []>} : vector<16x512xbf16>, vector<512x256xbf16>, vector<16x256xf32> -> vector<16x256xf32>
    %c0_9 = arith.constant 0 : index
    %c0_10 = arith.constant 0 : index
    %11 = vector.load %arg6[%c0_9, %c0_10] : memref<1x256xf32, #tpu.memory_space<vmem>>, vector<1x256xf32>
    %12 = vector.broadcast %11 : vector<1x256xf32> to vector<16x256xf32>
    %13 = arith.addf %10, %12 : vector<16x256xf32>
    %cst_11 = arith.constant 0.000000e+00 : f32
    %14 = vector.broadcast %cst_11 : f32 to vector<16x256xf32>
    %15 = arith.maximumf %13, %14 : vector<16x256xf32>
    %16 = arith.truncf %15 : vector<16x256xf32> to vector<16x256xbf16>
    %c0_12 = arith.constant 0 : index
    %c0_13 = arith.constant 0 : index
    %17 = vector.load %arg7[%c0_12, %c0_13] : memref<256x64xbf16, #tpu.memory_space<vmem>>, vector<256x64xbf16>
    %cst_14 = arith.constant dense<0.000000e+00> : vector<16x64xf32>
    %18 = tpu.matmul %16, %17, %cst_14 {dimension_numbers = #tpu.dot_dimension_numbers<[1], [0], [0], [1], [0, 0, 1, 1], [], []>} : vector<16x256xbf16>, vector<256x64xbf16>, vector<16x64xf32> -> vector<16x64xf32>
    %c0_15 = arith.constant 0 : index
    %c0_16 = arith.constant 0 : index
    %19 = vector.load %arg8[%c0_15, %c0_16] : memref<1x64xf32, #tpu.memory_space<vmem>>, vector<1x64xf32>
    %20 = vector.broadcast %19 : vector<1x64xf32> to vector<16x64xf32>
    %21 = arith.addf %18, %20 : vector<16x64xf32>
    %22 = vector.extract_strided_slice %21 {offsets = [0, 0], sizes = [16, 32], strides = [1, 1]} : vector<16x64xf32> to vector<16x32xf32>
    %23 = vector.extract_strided_slice %21 {offsets = [0, 32], sizes = [16, 32], strides = [1, 1]} : vector<16x64xf32> to vector<16x32xf32>
    %cst_17 = arith.constant -1.000000e+01 : f32
    %cst_18 = arith.constant 1.000000e+01 : f32
    %24 = vector.broadcast %cst_17 : f32 to vector<16x32xf32>
    %25 = arith.maximumf %24, %23 : vector<16x32xf32>
    %26 = vector.broadcast %cst_18 : f32 to vector<16x32xf32>
    %27 = arith.minimumf %26, %25 : vector<16x32xf32>
    %c0_19 = arith.constant 0 : index
    %c0_20 = arith.constant 0 : index
    %28 = vector.load %arg2[%c0_19, %c0_20] : memref<16x32xf32, #tpu.memory_space<vmem>>, vector<16x32xf32>
    %cst_21 = arith.constant 5.000000e-01 : f32
    %29 = vector.broadcast %cst_21 : f32 to vector<16x32xf32>
    %30 = arith.mulf %29, %27 : vector<16x32xf32>
    %31 = math.exp %30 : vector<16x32xf32>
    %32 = arith.mulf %28, %31 : vector<16x32xf32>
    %33 = arith.addf %22, %32 : vector<16x32xf32>
    %34 = arith.truncf %33 : vector<16x32xf32> to vector<16x32xbf16>
    %c0_22 = arith.constant 0 : index
    %c0_23 = arith.constant 0 : index
    %35 = vector.load %arg9[%c0_22, %c0_23] : memref<32x256xbf16, #tpu.memory_space<vmem>>, vector<32x256xbf16>
    %cst_24 = arith.constant dense<0.000000e+00> : vector<16x256xf32>
    %36 = tpu.matmul %34, %35, %cst_24 {dimension_numbers = #tpu.dot_dimension_numbers<[1], [0], [0], [1], [0, 0, 1, 1], [], []>} : vector<16x32xbf16>, vector<32x256xbf16>, vector<16x256xf32> -> vector<16x256xf32>
    %c0_25 = arith.constant 0 : index
    %c0_26 = arith.constant 0 : index
    %37 = vector.load %arg10[%c0_25, %c0_26] : memref<1x256xf32, #tpu.memory_space<vmem>>, vector<1x256xf32>
    %38 = vector.broadcast %37 : vector<1x256xf32> to vector<16x256xf32>
    %39 = arith.addf %36, %38 : vector<16x256xf32>
    %cst_27 = arith.constant 0.000000e+00 : f32
    %40 = vector.broadcast %cst_27 : f32 to vector<16x256xf32>
    %41 = arith.maximumf %39, %40 : vector<16x256xf32>
    %42 = arith.truncf %41 : vector<16x256xf32> to vector<16x256xbf16>
    %c0_28 = arith.constant 0 : index
    %c0_29 = arith.constant 0 : index
    %43 = vector.load %arg11[%c0_28, %c0_29] : memref<256x512xbf16, #tpu.memory_space<vmem>>, vector<256x512xbf16>
    %cst_30 = arith.constant dense<0.000000e+00> : vector<16x512xf32>
    %44 = tpu.matmul %42, %43, %cst_30 {dimension_numbers = #tpu.dot_dimension_numbers<[1], [0], [0], [1], [0, 0, 1, 1], [], []>} : vector<16x256xbf16>, vector<256x512xbf16>, vector<16x512xf32> -> vector<16x512xf32>
    %c0_31 = arith.constant 0 : index
    %c0_32 = arith.constant 0 : index
    %45 = vector.load %arg12[%c0_31, %c0_32] : memref<1x512xf32, #tpu.memory_space<vmem>>, vector<1x512xf32>
    %46 = vector.broadcast %45 : vector<1x512xf32> to vector<16x512xf32>
    %47 = arith.addf %44, %46 : vector<16x512xf32>
    %cst_33 = arith.constant 0.000000e+00 : f32
    %48 = vector.broadcast %cst_33 : f32 to vector<16x512xf32>
    %49 = arith.maximumf %47, %48 : vector<16x512xf32>
    %50 = arith.truncf %49 : vector<16x512xf32> to vector<16x512xbf16>
    %c0_34 = arith.constant 0 : index
    %c0_35 = arith.constant 0 : index
    %51 = vector.load %arg13[%c0_34, %c0_35] : memref<512x896xbf16, #tpu.memory_space<vmem>>, vector<512x896xbf16>
    %cst_36 = arith.constant dense<0.000000e+00> : vector<16x896xf32>
    %52 = tpu.matmul %50, %51, %cst_36 {dimension_numbers = #tpu.dot_dimension_numbers<[1], [0], [0], [1], [0, 0, 1, 1], [], []>} : vector<16x512xbf16>, vector<512x896xbf16>, vector<16x896xf32> -> vector<16x896xf32>
    %c0_37 = arith.constant 0 : index
    %c0_38 = arith.constant 0 : index
    %53 = vector.load %arg14[%c0_37, %c0_38] : memref<1x896xf32, #tpu.memory_space<vmem>>, vector<1x896xf32>
    %54 = vector.broadcast %53 : vector<1x896xf32> to vector<16x896xf32>
    %55 = arith.addf %52, %54 : vector<16x896xf32>
    %56 = arith.negf %55 : vector<16x896xf32>
    %57 = math.exp %56 : vector<16x896xf32>
    %cst_39 = arith.constant 1.000000e+00 : f32
    %58 = vector.broadcast %cst_39 : f32 to vector<16x896xf32>
    %59 = arith.addf %58, %57 : vector<16x896xf32>
    %60 = arith.divf %58, %59 : vector<16x896xf32>
    %c0_40 = arith.constant 0 : index
    %c0_41 = arith.constant 0 : index
    %61 = vector.load %arg15[%c0_40, %c0_41] : memref<16x896xf32, #tpu.memory_space<vmem>>, vector<16x896xf32>
    tpu.vector_store %arg15[%c0_40, %c0_41], %60 {strides = array<i32>} : memref<16x896xf32, #tpu.memory_space<vmem>>, vector<16x896xf32>,
    %c0_42 = arith.constant 0 : index
    %c0_43 = arith.constant 0 : index
    %62 = vector.load %arg16[%c0_42, %c0_43] : memref<16x32xf32, #tpu.memory_space<vmem>>, vector<16x32xf32>
    tpu.vector_store %arg16[%c0_42, %c0_43], %22 {strides = array<i32>} : memref<16x32xf32, #tpu.memory_space<vmem>>, vector<16x32xf32>,
    %c0_44 = arith.constant 0 : index
    %c0_45 = arith.constant 0 : index
    %63 = vector.load %arg17[%c0_44, %c0_45] : memref<16x32xf32, #tpu.memory_space<vmem>>, vector<16x32xf32>
    tpu.vector_store %arg17[%c0_44, %c0_45], %27 {strides = array<i32>} : memref<16x32xf32, #tpu.memory_space<vmem>>, vector<16x32xf32>,
    return
  }
  func.func @transform_0(%arg0: i32) -> (i32, i32) {
    %c0_i32 = arith.constant 0 : i32
    %c0_i32_0 = arith.constant 0 : i32
    return %arg0, %c0_i32 : i32, i32
  }
  func.func @transform_1(%arg0: i32) -> (i32, i32) {
    %c0_i32 = arith.constant 0 : i32
    %c0_i32_0 = arith.constant 0 : i32
    return %arg0, %c0_i32 : i32, i32
  }
  func.func @transform_2(%arg0: i32) -> (i32, i32) {
    %c0_i32 = arith.constant 0 : i32
    %c0_i32_0 = arith.constant 0 : i32
    %c0_i32_1 = arith.constant 0 : i32
    return %c0_i32, %c0_i32_0 : i32, i32
  }
  func.func @transform_3(%arg0: i32) -> (i32, i32) {
    %c0_i32 = arith.constant 0 : i32
    %c0_i32_0 = arith.constant 0 : i32
    %c0_i32_1 = arith.constant 0 : i32
    return %c0_i32, %c0_i32_0 : i32, i32
  }
  func.func @transform_4(%arg0: i32) -> (i32, i32) {
    %c0_i32 = arith.constant 0 : i32
    %c0_i32_0 = arith.constant 0 : i32
    %c0_i32_1 = arith.constant 0 : i32
    return %c0_i32, %c0_i32_0 : i32, i32
  }
  func.func @transform_5(%arg0: i32) -> (i32, i32) {
    %c0_i32 = arith.constant 0 : i32
    %c0_i32_0 = arith.constant 0 : i32
    %c0_i32_1 = arith.constant 0 : i32
    return %c0_i32, %c0_i32_0 : i32, i32
  }
  func.func @transform_6(%arg0: i32) -> (i32, i32) {
    %c0_i32 = arith.constant 0 : i32
    %c0_i32_0 = arith.constant 0 : i32
    %c0_i32_1 = arith.constant 0 : i32
    return %c0_i32, %c0_i32_0 : i32, i32
  }
  func.func @transform_7(%arg0: i32) -> (i32, i32) {
    %c0_i32 = arith.constant 0 : i32
    %c0_i32_0 = arith.constant 0 : i32
    %c0_i32_1 = arith.constant 0 : i32
    return %c0_i32, %c0_i32_0 : i32, i32
  }
  func.func @transform_8(%arg0: i32) -> (i32, i32) {
    %c0_i32 = arith.constant 0 : i32
    %c0_i32_0 = arith.constant 0 : i32
    %c0_i32_1 = arith.constant 0 : i32
    return %c0_i32, %c0_i32_0 : i32, i32
  }
  func.func @transform_9(%arg0: i32) -> (i32, i32) {
    %c0_i32 = arith.constant 0 : i32
    %c0_i32_0 = arith.constant 0 : i32
    %c0_i32_1 = arith.constant 0 : i32
    return %c0_i32, %c0_i32_0 : i32, i32
  }
  func.func @transform_10(%arg0: i32) -> (i32, i32) {
    %c0_i32 = arith.constant 0 : i32
    %c0_i32_0 = arith.constant 0 : i32
    %c0_i32_1 = arith.constant 0 : i32
    return %c0_i32, %c0_i32_0 : i32, i32
  }
  func.func @transform_11(%arg0: i32) -> (i32, i32) {
    %c0_i32 = arith.constant 0 : i32
    %c0_i32_0 = arith.constant 0 : i32
    %c0_i32_1 = arith.constant 0 : i32
    return %c0_i32, %c0_i32_0 : i32, i32
  }
  func.func @transform_12(%arg0: i32) -> (i32, i32) {
    %c0_i32 = arith.constant 0 : i32
    %c0_i32_0 = arith.constant 0 : i32
    %c0_i32_1 = arith.constant 0 : i32
    return %c0_i32, %c0_i32_0 : i32, i32
  }
  func.func @transform_13(%arg0: i32) -> (i32, i32) {
    %c0_i32 = arith.constant 0 : i32
    %c0_i32_0 = arith.constant 0 : i32
    %c0_i32_1 = arith.constant 0 : i32
    return %c0_i32, %c0_i32_0 : i32, i32
  }
  func.func @transform_14(%arg0: i32) -> (i32, i32) {
    %c0_i32 = arith.constant 0 : i32
    %c0_i32_0 = arith.constant 0 : i32
    return %arg0, %c0_i32 : i32, i32
  }
  func.func @transform_15(%arg0: i32) -> (i32, i32) {
    %c0_i32 = arith.constant 0 : i32
    %c0_i32_0 = arith.constant 0 : i32
    return %arg0, %c0_i32 : i32, i32
  }
  func.func @transform_16(%arg0: i32) -> (i32, i32) {
    %c0_i32 = arith.constant 0 : i32
    %c0_i32_0 = arith.constant 0 : i32
    return %arg0, %c0_i32 : i32, i32
  }
}

module attributes {stable_mosaic.version = 11 : i64} {
  func.func @_vae_kernel(%arg0: i32, %arg1: memref<16x896xbf16, #tpu.memory_space<vmem>>, %arg2: memref<16x32xf32, #tpu.memory_space<vmem>>, %arg3: memref<896x512xbf16, #tpu.memory_space<vmem>>, %arg4: memref<1x512xf32, #tpu.memory_space<vmem>>, %arg5: memref<512x256xbf16, #tpu.memory_space<vmem>>, %arg6: memref<1x256xf32, #tpu.memory_space<vmem>>, %arg7: memref<256x64xbf16, #tpu.memory_space<vmem>>, %arg8: memref<1x64xf32, #tpu.memory_space<vmem>>, %arg9: memref<32x256xbf16, #tpu.memory_space<vmem>>, %arg10: memref<1x256xf32, #tpu.memory_space<vmem>>, %arg11: memref<256x512xbf16, #tpu.memory_space<vmem>>, %arg12: memref<1x512xf32, #tpu.memory_space<vmem>>, %arg13: memref<512x896xbf16, #tpu.memory_space<vmem>>, %arg14: memref<1x896xf32, #tpu.memory_space<vmem>>, %arg15: memref<16x896xf32, #tpu.memory_space<vmem>>, %arg16: memref<16x32xf32, #tpu.memory_space<vmem>>, %arg17: memref<16x32xf32, #tpu.memory_space<vmem>>) attributes {dimension_semantics = [#tpu.dimension_semantics<parallel>], iteration_bounds = array<i64: 1>, scalar_prefetch = 0 : i64, scratch_operands = 0 : i64, tpu.core_type = #tpu.core_type<tc>, window_params = [{transform_indices = @transform_0, window_bounds = array<i64: 16, 896>}, {transform_indices = @transform_1, window_bounds = array<i64: 16, 32>}, {pipeline_mode = #tpu.pipeline_mode<synchronous>, transform_indices = @transform_2, window_bounds = array<i64: 896, 512>}, {pipeline_mode = #tpu.pipeline_mode<synchronous>, transform_indices = @transform_3, window_bounds = array<i64: 1, 512>}, {pipeline_mode = #tpu.pipeline_mode<synchronous>, transform_indices = @transform_4, window_bounds = array<i64: 512, 256>}, {pipeline_mode = #tpu.pipeline_mode<synchronous>, transform_indices = @transform_5, window_bounds = array<i64: 1, 256>}, {pipeline_mode = #tpu.pipeline_mode<synchronous>, transform_indices = @transform_6, window_bounds = array<i64: 256, 64>}, {pipeline_mode = #tpu.pipeline_mode<synchronous>, transform_indices = @transform_7, window_bounds = array<i64: 1, 64>}, {pipeline_mode = #tpu.pipeline_mode<synchronous>, transform_indices = @transform_8, window_bounds = array<i64: 32, 256>}, {pipeline_mode = #tpu.pipeline_mode<synchronous>, transform_indices = @transform_9, window_bounds = array<i64: 1, 256>}, {pipeline_mode = #tpu.pipeline_mode<synchronous>, transform_indices = @transform_10, window_bounds = array<i64: 256, 512>}, {pipeline_mode = #tpu.pipeline_mode<synchronous>, transform_indices = @transform_11, window_bounds = array<i64: 1, 512>}, {pipeline_mode = #tpu.pipeline_mode<synchronous>, transform_indices = @transform_12, window_bounds = array<i64: 512, 896>}, {pipeline_mode = #tpu.pipeline_mode<synchronous>, transform_indices = @transform_13, window_bounds = array<i64: 1, 896>}, {transform_indices = @transform_14, window_bounds = array<i64: 16, 896>}, {transform_indices = @transform_15, window_bounds = array<i64: 16, 32>}, {transform_indices = @transform_16, window_bounds = array<i64: 16, 32>}]} {
    %c0 = arith.constant 0 : index
    %c0_0 = arith.constant 0 : index
    %0 = vector.load %arg1[%c0, %c0_0] : memref<16x896xbf16, #tpu.memory_space<vmem>>, vector<16x896xbf16>
    %c0_1 = arith.constant 0 : index
    %c0_2 = arith.constant 0 : index
    %1 = vector.load %arg3[%c0_1, %c0_2] : memref<896x512xbf16, #tpu.memory_space<vmem>>, vector<896x512xbf16>
    %cst = arith.constant dense<0.000000e+00> : vector<16x512xf32>
    %2 = tpu.matmul %0, %1, %cst {dimension_numbers = #tpu.dot_dimension_numbers<[1], [0], [0], [1], [0, 0, 1, 1], [], []>} : vector<16x896xbf16>, vector<896x512xbf16>, vector<16x512xf32> -> vector<16x512xf32>
    %c0_3 = arith.constant 0 : index
    %c0_4 = arith.constant 0 : index
    %3 = vector.load %arg4[%c0_3, %c0_4] : memref<1x512xf32, #tpu.memory_space<vmem>>, vector<1x512xf32>
    %4 = vector.broadcast %3 : vector<1x512xf32> to vector<16x512xf32>
    %5 = arith.addf %2, %4 : vector<16x512xf32>
    %cst_5 = arith.constant 0.000000e+00 : f32
    %6 = vector.broadcast %cst_5 : f32 to vector<16x512xf32>
    %7 = arith.maximumf %5, %6 : vector<16x512xf32>
    %8 = arith.truncf %7 : vector<16x512xf32> to vector<16x512xbf16>
    %c0_6 = arith.constant 0 : index
    %c0_7 = arith.constant 0 : index
    %9 = vector.load %arg5[%c0_6, %c0_7] : memref<512x256xbf16, #tpu.memory_space<vmem>>, vector<512x256xbf16>
    %cst_8 = arith.constant dense<0.000000e+00> : vector<16x256xf32>
    %10 = tpu.matmul %8, %9, %cst_8 {dimension_numbers = #tpu.dot_dimension_numbers<[1], [0], [0], [1], [0, 0, 1, 1], [], []>} : vector<16x512xbf16>, vector<512x256xbf16>, vector<16x256xf32> -> vector<16x256xf32>
    %c0_9 = arith.constant 0 : index
    %c0_10 = arith.constant 0 : index
    %11 = vector.load %arg6[%c0_9, %c0_10] : memref<1x256xf32, #tpu.memory_space<vmem>>, vector<1x256xf32>
    %12 = vector.broadcast %11 : vector<1x256xf32> to vector<16x256xf32>
    %13 = arith.addf %10, %12 : vector<16x256xf32>
    %cst_11 = arith.constant 0.000000e+00 : f32
    %14 = vector.broadcast %cst_11 : f32 to vector<16x256xf32>
    %15 = arith.maximumf %13, %14 : vector<16x256xf32>
    %16 = arith.truncf %15 : vector<16x256xf32> to vector<16x256xbf16>
    %c0_12 = arith.constant 0 : index
    %c0_13 = arith.constant 0 : index
    %17 = vector.load %arg7[%c0_12, %c0_13] : memref<256x64xbf16, #tpu.memory_space<vmem>>, vector<256x64xbf16>
    %cst_14 = arith.constant dense<0.000000e+00> : vector<16x64xf32>
    %18 = tpu.matmul %16, %17, %cst_14 {dimension_numbers = #tpu.dot_dimension_numbers<[1], [0], [0], [1], [0, 0, 1, 1], [], []>} : vector<16x256xbf16>, vector<256x64xbf16>, vector<16x64xf32> -> vector<16x64xf32>
    %c0_15 = arith.constant 0 : index
    %c0_16 = arith.constant 0 : index
    %19 = vector.load %arg8[%c0_15, %c0_16] : memref<1x64xf32, #tpu.memory_space<vmem>>, vector<1x64xf32>
    %20 = vector.broadcast %19 : vector<1x64xf32> to vector<16x64xf32>
    %21 = arith.addf %18, %20 : vector<16x64xf32>
    %22 = vector.extract_strided_slice %21 {offsets = [0, 0], sizes = [16, 32], strides = [1, 1]} : vector<16x64xf32> to vector<16x32xf32>
    %23 = vector.extract_strided_slice %21 {offsets = [0, 32], sizes = [16, 32], strides = [1, 1]} : vector<16x64xf32> to vector<16x32xf32>
    %cst_17 = arith.constant -1.000000e+01 : f32
    %cst_18 = arith.constant 1.000000e+01 : f32
    %24 = vector.broadcast %cst_17 : f32 to vector<16x32xf32>
    %25 = arith.maximumf %24, %23 : vector<16x32xf32>
    %26 = vector.broadcast %cst_18 : f32 to vector<16x32xf32>
    %27 = arith.minimumf %26, %25 : vector<16x32xf32>
    %c0_19 = arith.constant 0 : index
    %c0_20 = arith.constant 0 : index
    %28 = vector.load %arg2[%c0_19, %c0_20] : memref<16x32xf32, #tpu.memory_space<vmem>>, vector<16x32xf32>
    %cst_21 = arith.constant 5.000000e-01 : f32
    %29 = vector.broadcast %cst_21 : f32 to vector<16x32xf32>
    %30 = arith.mulf %29, %27 : vector<16x32xf32>
    %31 = math.exp %30 : vector<16x32xf32>
    %32 = arith.mulf %28, %31 : vector<16x32xf32>
    %33 = arith.addf %22, %32 : vector<16x32xf32>
    %34 = arith.truncf %33 : vector<16x32xf32> to vector<16x32xbf16>
    %c0_22 = arith.constant 0 : index
    %c0_23 = arith.constant 0 : index
    %35 = vector.load %arg9[%c0_22, %c0_23] : memref<32x256xbf16, #tpu.memory_space<vmem>>, vector<32x256xbf16>
    %cst_24 = arith.constant dense<0.000000e+00> : vector<16x256xf32>
    %36 = tpu.matmul %34, %35, %cst_24 {dimension_numbers = #tpu.dot_dimension_numbers<[1], [0], [0], [1], [0, 0, 1, 1], [], []>} : vector<16x32xbf16>, vector<32x256xbf16>, vector<16x256xf32> -> vector<16x256xf32>
    %c0_25 = arith.constant 0 : index
    %c0_26 = arith.constant 0 : index
    %37 = vector.load %arg10[%c0_25, %c0_26] : memref<1x256xf32, #tpu.memory_space<vmem>>, vector<1x256xf32>
    %38 = vector.broadcast %37 : vector<1x256xf32> to vector<16x256xf32>
    %39 = arith.addf %36, %38 : vector<16x256xf32>
    %cst_27 = arith.constant 0.000000e+00 : f32
    %40 = vector.broadcast %cst_27 : f32 to vector<16x256xf32>
    %41 = arith.maximumf %39, %40 : vector<16x256xf32>
    %42 = arith.truncf %41 : vector<16x256xf32> to vector<16x256xbf16>
    %c0_28 = arith.constant 0 : index
    %c0_29 = arith.constant 0 : index
    %43 = vector.load %arg11[%c0_28, %c0_29] : memref<256x512xbf16, #tpu.memory_space<vmem>>, vector<256x512xbf16>
    %cst_30 = arith.constant dense<0.000000e+00> : vector<16x512xf32>
    %44 = tpu.matmul %42, %43, %cst_30 {dimension_numbers = #tpu.dot_dimension_numbers<[1], [0], [0], [1], [0, 0, 1, 1], [], []>} : vector<16x256xbf16>, vector<256x512xbf16>, vector<16x512xf32> -> vector<16x512xf32>
    %c0_31 = arith.constant 0 : index
    %c0_32 = arith.constant 0 : index
    %45 = vector.load %arg12[%c0_31, %c0_32] : memref<1x512xf32, #tpu.memory_space<vmem>>, vector<1x512xf32>
    %46 = vector.broadcast %45 : vector<1x512xf32> to vector<16x512xf32>
    %47 = arith.addf %44, %46 : vector<16x512xf32>
    %cst_33 = arith.constant 0.000000e+00 : f32
    %48 = vector.broadcast %cst_33 : f32 to vector<16x512xf32>
    %49 = arith.maximumf %47, %48 : vector<16x512xf32>
    %50 = arith.truncf %49 : vector<16x512xf32> to vector<16x512xbf16>
    %c0_34 = arith.constant 0 : index
    %c0_35 = arith.constant 0 : index
    %51 = vector.load %arg13[%c0_34, %c0_35] : memref<512x896xbf16, #tpu.memory_space<vmem>>, vector<512x896xbf16>
    %cst_36 = arith.constant dense<0.000000e+00> : vector<16x896xf32>
    %52 = tpu.matmul %50, %51, %cst_36 {dimension_numbers = #tpu.dot_dimension_numbers<[1], [0], [0], [1], [0, 0, 1, 1], [], []>} : vector<16x512xbf16>, vector<512x896xbf16>, vector<16x896xf32> -> vector<16x896xf32>
    %c0_37 = arith.constant 0 : index
    %c0_38 = arith.constant 0 : index
    %53 = vector.load %arg14[%c0_37, %c0_38] : memref<1x896xf32, #tpu.memory_space<vmem>>, vector<1x896xf32>
    %54 = vector.broadcast %53 : vector<1x896xf32> to vector<16x896xf32>
    %55 = arith.addf %52, %54 : vector<16x896xf32>
    %56 = arith.negf %55 : vector<16x896xf32>
    %57 = math.exp %56 : vector<16x896xf32>
    %cst_39 = arith.constant 1.000000e+00 : f32
    %58 = vector.broadcast %cst_39 : f32 to vector<16x896xf32>
    %59 = arith.addf %58, %57 : vector<16x896xf32>
    %60 = arith.divf %58, %59 : vector<16x896xf32>
    %c0_40 = arith.constant 0 : index
    %c0_41 = arith.constant 0 : index
    %61 = vector.load %arg15[%c0_40, %c0_41] : memref<16x896xf32, #tpu.memory_space<vmem>>, vector<16x896xf32>
    tpu.vector_store %arg15[%c0_40, %c0_41], %60 {strides = array<i32>} : memref<16x896xf32, #tpu.memory_space<vmem>>, vector<16x896xf32>,
    %c0_42 = arith.constant 0 : index
    %c0_43 = arith.constant 0 : index
    %62 = vector.load %arg16[%c0_42, %c0_43] : memref<16x32xf32, #tpu.memory_space<vmem>>, vector<16x32xf32>
    tpu.vector_store %arg16[%c0_42, %c0_43], %22 {strides = array<i32>} : memref<16x32xf32, #tpu.memory_space<vmem>>, vector<16x32xf32>,
    %c0_44 = arith.constant 0 : index
    %c0_45 = arith.constant 0 : index
    %63 = vector.load %arg17[%c0_44, %c0_45] : memref<16x32xf32, #tpu.memory_space<vmem>>, vector<16x32xf32>
    tpu.vector_store %arg17[%c0_44, %c0_45], %27 {strides = array<i32>} : memref<16x32xf32, #tpu.memory_space<vmem>>, vector<16x32xf32>,
    return
  }
  func.func @transform_0(%arg0: i32) -> (i32, i32) {
    %c0_i32 = arith.constant 0 : i32
    %c0_i32_0 = arith.constant 0 : i32
    return %arg0, %c0_i32 : i32, i32
  }
  func.func @transform_1(%arg0: i32) -> (i32, i32) {
    %c0_i32 = arith.constant 0 : i32
    %c0_i32_0 = arith.constant 0 : i32
    return %arg0, %c0_i32 : i32, i32
  }
  func.func @transform_2(%arg0: i32) -> (i32, i32) {
    %c0_i32 = arith.constant 0 : i32
    %c0_i32_0 = arith.constant 0 : i32
    %c0_i32_1 = arith.constant 0 : i32
    return %c0_i32, %c0_i32_0 : i32, i32
  }
  func.func @transform_3(%arg0: i32) -> (i32, i32) {
    %c0_i32 = arith.constant 0 : i32
    %c0_i32_0 = arith.constant 0 : i32
    %c0_i32_1 = arith.constant 0 : i32
    return %c0_i32, %c0_i32_0 : i32, i32
  }
  func.func @transform_4(%arg0: i32) -> (i32, i32) {
    %c0_i32 = arith.constant 0 : i32
    %c0_i32_0 = arith.constant 0 : i32
    %c0_i32_1 = arith.constant 0 : i32
    return %c0_i32, %c0_i32_0 : i32, i32
  }
  func.func @transform_5(%arg0: i32) -> (i32, i32) {
    %c0_i32 = arith.constant 0 : i32
    %c0_i32_0 = arith.constant 0 : i32
    %c0_i32_1 = arith.constant 0 : i32
    return %c0_i32, %c0_i32_0 : i32, i32
  }
  func.func @transform_6(%arg0: i32) -> (i32, i32) {
    %c0_i32 = arith.constant 0 : i32
    %c0_i32_0 = arith.constant 0 : i32
    %c0_i32_1 = arith.constant 0 : i32
    return %c0_i32, %c0_i32_0 : i32, i32
  }
  func.func @transform_7(%arg0: i32) -> (i32, i32) {
    %c0_i32 = arith.constant 0 : i32
    %c0_i32_0 = arith.constant 0 : i32
    %c0_i32_1 = arith.constant 0 : i32
    return %c0_i32, %c0_i32_0 : i32, i32
  }
  func.func @transform_8(%arg0: i32) -> (i32, i32) {
    %c0_i32 = arith.constant 0 : i32
    %c0_i32_0 = arith.constant 0 : i32
    %c0_i32_1 = arith.constant 0 : i32
    return %c0_i32, %c0_i32_0 : i32, i32
  }
  func.func @transform_9(%arg0: i32) -> (i32, i32) {
    %c0_i32 = arith.constant 0 : i32
    %c0_i32_0 = arith.constant 0 : i32
    %c0_i32_1 = arith.constant 0 : i32
    return %c0_i32, %c0_i32_0 : i32, i32
  }
  func.func @transform_10(%arg0: i32) -> (i32, i32) {
    %c0_i32 = arith.constant 0 : i32
    %c0_i32_0 = arith.constant 0 : i32
    %c0_i32_1 = arith.constant 0 : i32
    return %c0_i32, %c0_i32_0 : i32, i32
  }
  func.func @transform_11(%arg0: i32) -> (i32, i32) {
    %c0_i32 = arith.constant 0 : i32
    %c0_i32_0 = arith.constant 0 : i32
    %c0_i32_1 = arith.constant 0 : i32
    return %c0_i32, %c0_i32_0 : i32, i32
  }
  func.func @transform_12(%arg0: i32) -> (i32, i32) {
    %c0_i32 = arith.constant 0 : i32
    %c0_i32_0 = arith.constant 0 : i32
    %c0_i32_1 = arith.constant 0 : i32
    return %c0_i32, %c0_i32_0 : i32, i32
  }
  func.func @transform_13(%arg0: i32) -> (i32, i32) {
    %c0_i32 = arith.constant 0 : i32
    %c0_i32_0 = arith.constant 0 : i32
    %c0_i32_1 = arith.constant 0 : i32
    return %c0_i32, %c0_i32_0 : i32, i32
  }
  func.func @transform_14(%arg0: i32) -> (i32, i32) {
    %c0_i32 = arith.constant 0 : i32
    %c0_i32_0 = arith.constant 0 : i32
    return %arg0, %c0_i32 : i32, i32
  }
  func.func @transform_15(%arg0: i32) -> (i32, i32) {
    %c0_i32 = arith.constant 0 : i32
    %c0_i32_0 = arith.constant 0 : i32
    return %arg0, %c0_i32 : i32, i32
  }
  func.func @transform_16(%arg0: i32) -> (i32, i32) {
    %c0_i32 = arith.constant 0 : i32
    %c0_i32_0 = arith.constant 0 : i32
    return %arg0, %c0_i32 : i32, i32
  }
}

</mosaic_0001>

<bundles_post_ra>
// kernel: tpu_custom_call.1
= control target key start
LH: loop header
LB: loop body
LE: loop exit
PB: predicated region body
PF: predicated region fallthrough
CT: control target
= control target key end

     0   :  { %s7367_s0 = inlined_call_operand.vmem [shape: bf16[16,896], index: 0, kind: input, shape index: {}]   ;;  %s7368_s1 = inlined_call_operand.vmem [shape: f32[16,32], index: 1, kind: input, shape index: {}]   ;;  %s7369_s2 = inlined_call_operand.hbm [shape: bf16[896,512], index: 2, kind: input, shape index: {}]   ;;  %s7370_s3 = inlined_call_operand.vmem [shape: f32[1,512], index: 3, kind: input, shape index: {}]   ;;  %s7371_s4 = inlined_call_operand.hbm [shape: bf16[512,256], index: 4, kind: input, shape index: {}]   ;;  %s7372_s5 = inlined_call_operand.vmem [shape: f32[1,256], index: 5, kind: input, shape index: {}]   ;;  %s7373_s6 = inlined_call_operand.vmem [shape: bf16[256,64], index: 6, kind: input, shape index: {}]   ;;  %s7374_s7 = inlined_call_operand.vmem [shape: f32[1,64], index: 7, kind: input, shape index: {}]   ;;  %s7375_s8 = inlined_call_operand.vmem [shape: bf16[32,256], index: 8, kind: input, shape index: {}]   ;;  %s7376_s9 = inlined_call_operand.vmem [shape: f32[1,256], index: 9, kind: input, shape index: {}]   ;;  %s7377_s10 = inlined_call_operand.hbm [shape: bf16[256,512], index: 10, kind: input, shape index: {}]   ;;  %s7378_s11 = inlined_call_operand.vmem [shape: f32[1,512], index: 11, kind: input, shape index: {}]   ;;  %s7379_s12 = inlined_call_operand.hbm [shape: bf16[512,896], index: 12, kind: input, shape index: {}]   ;;  %s7380_s13 = inlined_call_operand.vmem [shape: f32[1,896], index: 13, kind: input, shape index: {}]   ;;  %s7381_s14 = inlined_call_operand.hbm [shape: f32[16,896], index: 14, kind: output, shape index: {0}]   ;;  %s7382_s15 = inlined_call_operand.hbm [shape: f32[16,32], index: 15, kind: output, shape index: {1}]   ;;  %s7383_s16 = inlined_call_operand.hbm [shape: f32[16,32], index: 16, kind: output, shape index: {2}]  }
   0x1   :  { %7389 = sst [smem:[#allocation19_spill]] %s7367_s0 }
   0x2   :  { %22 = vsyncpa [#allocation3], 0 }
   0x3   :  { %23 = vsyncpa [#allocation6], 0 }
   0x4   :  { %24 = vsyncpa [#allocation9], 0 }
   0x5   :  { %25 = vsyncpa [#allocation4], 0 }
   0x6   :  { %26 = vsyncpa [#allocation12], 0  ;;  %s6973_s21 = smov [#allocation5]   ;;  %s6809_s25 = scalar_lea.hbm %s7371_s4, 8192 }
   0x7   :  { %s50_s22 = sshll.u32 %s6973_s21, 4  ;;  %p6810_p0 = scmp.ne.s32.totalorder %s7371_s4, %s6809_s25  ;;  %s51_s22 = int_to_ptr.vmem [resolvable:$true] %s50_s22 }
   0x8   :  { %p6813_p1 = scmp.lt.u32.totalorder %s6809_s25, %s7371_s4 }
   0xa   :  { %p6815_p2 = pnand %p6813_p1, %p6810_p0 }
   0xc   :  { %6818 = shalt.err (!%p6815_p2)
}
   0xd   :  { %s6819_s30 = scalar_lea.vmem %s51_s22, 8192  ;;  %p6824_p4 = scmp.lt.s32.totalorder %s51_s22, %s51_s22 }
   0xe   :  { %p6820_p3 = scmp.ne.s32.totalorder %s51_s22, %s6819_s30  ;;  %p6825_p5 = scmp.lt.s32.totalorder %s6819_s30, %s6819_s30 }
  0x10   :  { %p6826_p6 = por %p6825_p5, %p6824_p4 }
  0x12   :  { %p6827_p7 = pnand %p6826_p6, %p6820_p3 }
  0x14   :  { %6830 = shalt.err (!%p6827_p7)
}
  0x15   :  { %s7385_s0 = smov 128   ;;  %s7387_s17 = smov 8  }
  0x16   :  { %56 = dma.hbm_to_vmem [thread:$0]  %s7371_s4, 8192, %s51_s22, [#allocation6], %s7385_s0, %s7385_s0, %s7387_s17  }
  0x17   :  { %s6976_s20 = smov [#allocation2]   ;;  %s6831_s25 = scalar_lea.hbm %s7369_s2, 28672 }
  0x18   :  { %s36_s21 = sshll.u32 %s6976_s20, 4  ;;  %p6832_p8 = scmp.ne.s32.totalorder %s7369_s2, %s6831_s25  ;;  %s37_s21 = int_to_ptr.vmem [resolvable:$true] %s36_s21 }
  0x19   :  { %p6835_p9 = scmp.lt.u32.totalorder %s6831_s25, %s7369_s2 }
  0x1b   :  { %p6837_p10 = pnand %p6835_p9, %p6832_p8 }
  0x1d   :  { %6840 = shalt.err (!%p6837_p10)
}
  0x1e   :  { %s6841_s30 = scalar_lea.vmem %s37_s21, 28672  ;;  %p6846_p12 = scmp.lt.s32.totalorder %s37_s21, %s37_s21 }
  0x1f   :  { %p6842_p11 = scmp.ne.s32.totalorder %s37_s21, %s6841_s30  ;;  %p6847_p13 = scmp.lt.s32.totalorder %s6841_s30, %s6841_s30 }
  0x21   :  { %p6848_p0 = por %p6847_p13, %p6846_p12 }
  0x23   :  { %p6849_p1 = pnand %p6848_p0, %p6842_p11 }
  0x25   :  { %6852 = shalt.err (!%p6849_p1)
}
  0x26   :  { %s6977_s4 = smov 256   ;;  %s6978_s22 = smov 16  }
  0x27   :  { %42 = dma.hbm_to_vmem [thread:$0]  %s7369_s2, 28672, %s37_s21, [#allocation3], %s6977_s4, %s6977_s4, %s6978_s22  }
  0x28   :  { %s6979_s20 = smov [#allocation7]   ;;  %s6980_s24 = smov [#allocation8]  }
  0x29   :  { %s72_s23 = sshll.u32 %s6979_s20, 4  ;;  %s86_s26 = sshll.u32 %s6980_s24, 4  ;;  %s73_s23 = int_to_ptr.vmem [resolvable:$true] %s72_s23  ;;  %s7102_s26 = int_to_ptr.vmem [resolvable:$true] %s86_s26 }
  0x2a   :  { %s6853_s28 = scalar_lea.hbm %s7377_s10, 8192 }
  0x2b   :  { %p6854_p2 = scmp.ne.s32.totalorder %s7377_s10, %s6853_s28  ;;  %p6857_p3 = scmp.lt.u32.totalorder %s6853_s28, %s7377_s10 }
  0x2d   :  { %p6859_p4 = pnand %p6857_p3, %p6854_p2 }
  0x2f   :  { %6862 = shalt.err (!%p6859_p4)
}
  0x30   :  { %s6863_s2 = scalar_lea.vmem %s73_s23, 8192  ;;  %p6868_p6 = scmp.lt.s32.totalorder %s73_s23, %s73_s23 }
  0x31   :  { %p6864_p5 = scmp.ne.s32.totalorder %s73_s23, %s6863_s2  ;;  %p6869_p7 = scmp.lt.s32.totalorder %s6863_s2, %s6863_s2 }
  0x33   :  { %p6870_p8 = por %p6869_p7, %p6868_p6 }
  0x35   :  { %p6871_p9 = pnand %p6870_p8, %p6864_p5 }
  0x37   :  { %6874 = shalt.err (!%p6871_p9)
}
  0x38   :  { %78 = dma.hbm_to_vmem [thread:$0]  %s7377_s10, 8192, %s73_s23, [#allocation6], %s6977_s4, %s6977_s4, %s6978_s22  }
  0x39   :  { %s6875_s24 = scalar_lea.hbm %s7379_s12, 28672 }
  0x3a   :  { %p6876_p10 = scmp.ne.s32.totalorder %s7379_s12, %s6875_s24  ;;  %p6879_p11 = scmp.lt.u32.totalorder %s6875_s24, %s7379_s12 }
  0x3c   :  { %p6881_p12 = pnand %p6879_p11, %p6876_p10 }
  0x3e   :  { %6884 = shalt.err (!%p6881_p12)
}
  0x3f   :  { %s6885_s28 = scalar_lea.vmem %s7102_s26, 28672  ;;  %p6890_p0 = scmp.lt.s32.totalorder %s7102_s26, %s7102_s26 }
  0x40   :  { %p6886_p13 = scmp.ne.s32.totalorder %s7102_s26, %s6885_s28  ;;  %p6891_p1 = scmp.lt.s32.totalorder %s6885_s28, %s6885_s28 }
  0x42   :  { %p6892_p2 = por %p6891_p1, %p6890_p0 }
  0x44   :  { %p6893_p3 = pnand %p6892_p2, %p6886_p13 }
  0x46   :  { %6896 = shalt.err (!%p6893_p3)
}
  0x47   :  { %s6981_s10 = smov 448   ;;  %s6982_s4 = smov 28  }
  0x48   :  { %92 = dma.hbm_to_vmem [thread:$0]  %s7379_s12, 28672, %s7102_s26, [#allocation9], %s6981_s10, %s6981_s10, %s6982_s4  }
  0x49   :  { %6963 = dma.done.wait [#allocation3], 28672  }
  0x4a   :  { %6964 = vsyncadd [#allocation3], 4294938624 }
  0x4b   :  { %6965 = dma.done.wait [#allocation6], 16384  }
  0x4c   :  { %6966 = vsyncadd [#allocation6], 4294950912 }
  0x4d   :  { %6967 = dma.done.wait [#allocation9], 28672  }
  0x4e   :  { %6968 = vsyncadd [#allocation9], 4294938624  ;;  %v5869_v0 = vld [vmem:[#allocation2 + $0x4] ss:$16 sps:$4 sm:$0xff]   ;;  %v5871_v1 = vld [vmem:[#allocation2 + $0xc] ss:$16 sps:$4 sm:$0xff]  }
  0x4f   :  { %1518 = vmatprep.subr.bf16.mxu0 %v5869_v0  ;;  %v5873_v2 = vld [vmem:[#allocation2] ss:$16 sps:$4 sm:$0xff]   ;;  %v5874_v3 = vld [vmem:[#allocation2 + $0x8] ss:$16 sps:$4 sm:$0xff]   ;;  %1690 = vmatprep.subr.bf16.mxu1 %v5871_v1  ;;  %v5875_v4 = vld [vmem:[#allocation2 + $0x24] ss:$16 sps:$4 sm:$0xff]  }
  0x50   :  { %1519 = vmatpush1.bf16.msra.mxu0 %v5873_v2  ;;  %1691 = vmatpush1.bf16.msra.mxu1 %v5874_v3  ;;  %v5877_v5 = vld [vmem:[#allocation2 + $0x2c] ss:$16 sps:$4 sm:$0xff]   ;;  %v5879_v6 = vld [vmem:[#allocation2 + $0x20] ss:$16 sps:$4 sm:$0xff]   ;;  %v5880_v7 = vld [vmem:[#allocation2 + $0x28] ss:$16 sps:$4 sm:$0xff]  }
  0x51   :  { %1520 = vmatprep.subr.bf16.mxu0 %v5875_v4  ;;  %1692 = vmatprep.subr.bf16.mxu1 %v5877_v5  ;;  %v5881_v8 = vld [vmem:[#allocation2 + $0x44] ss:$16 sps:$4 sm:$0xff]   ;;  %v5883_v9 = vld [vmem:[#allocation2 + $0x4c] ss:$16 sps:$4 sm:$0xff]   ;;  %v5885_v10 = vld [vmem:[#allocation2 + $0x40] ss:$16 sps:$4 sm:$0xff]  }
  0x52   :  { %v5886_v11 = vld [vmem:[#allocation2 + $0x48] ss:$16 sps:$4 sm:$0xff]   ;;  %v5887_v12 = vld [vmem:[#allocation2 + $0x64] ss:$16 sps:$4 sm:$0xff]   ;;  %v5889_v13 = vld [vmem:[#allocation2 + $0x6c] ss:$16 sps:$4 sm:$0xff]  }
  0x53   :  { %v5891_v14 = vld [vmem:[#allocation2 + $0x60] ss:$16 sps:$4 sm:$0xff]   ;;  %v5892_v15 = vld [vmem:[#allocation2 + $0x68] ss:$16 sps:$4 sm:$0xff]   ;;  %v5893_v16 = vld [vmem:[#allocation2 + $0x84] ss:$16 sps:$4 sm:$0xff]  }
  0x54   :  { %1521 = vmatpush1.bf16.msra.mxu0 %v5879_v6  ;;  %1693 = vmatpush1.bf16.msra.mxu1 %v5880_v7  ;;  %v5895_v17 = vld [vmem:[#allocation2 + $0x8c] ss:$16 sps:$4 sm:$0xff]   ;;  %v5897_v18 = vld [vmem:[#allocation2 + $0x80] ss:$16 sps:$4 sm:$0xff]   ;;  %v5898_v19 = vld [vmem:[#allocation2 + $0x88] ss:$16 sps:$4 sm:$0xff]  }
  0x55   :  { %1522 = vmatprep.subr.bf16.mxu0 %v5881_v8  ;;  %1694 = vmatprep.subr.bf16.mxu1 %v5883_v9  ;;  %v5899_v20 = vld [vmem:[#allocation2 + $0xa4] ss:$16 sps:$4 sm:$0xff]   ;;  %v5901_v21 = vld [vmem:[#allocation2 + $0xac] ss:$16 sps:$4 sm:$0xff]   ;;  %v5903_v22 = vld [vmem:[#allocation2 + $0xa0] ss:$16 sps:$4 sm:$0xff]  }
  0x56   :  { %v5904_v23 = vld [vmem:[#allocation2 + $0xa8] ss:$16 sps:$4 sm:$0xff]   ;;  %v5905_v24 = vld [vmem:[#allocation2 + $0xc4] ss:$16 sps:$4 sm:$0xff]   ;;  %v5907_v25 = vld [vmem:[#allocation2 + $0xcc] ss:$16 sps:$4 sm:$0xff]  }
  0x57   :  { %v5909_v26 = vld [vmem:[#allocation2 + $0xc0] ss:$16 sps:$4 sm:$0xff]   ;;  %v5910_v27 = vld [vmem:[#allocation2 + $0xc8] ss:$16 sps:$4 sm:$0xff]   ;;  %v5911_v28 = vld [vmem:[#allocation2 + $0xe4] ss:$16 sps:$4 sm:$0xff]  }
  0x58   :  { %1523 = vmatpush1.bf16.msra.mxu0 %v5885_v10  ;;  %1695 = vmatpush1.bf16.msra.mxu1 %v5886_v11  ;;  %v5913_v29 = vld [vmem:[#allocation2 + $0xec] ss:$16 sps:$4 sm:$0xff]   ;;  %v5915_v30 = vld [vmem:[#allocation2 + $0xe0] ss:$16 sps:$4 sm:$0xff]   ;;  %v5916_v31 = vld [vmem:[#allocation2 + $0xe8] ss:$16 sps:$4 sm:$0xff]  }
  0x59   :  { %1524 = vmatprep.subr.bf16.mxu0 %v5887_v12  ;;  %1696 = vmatprep.subr.bf16.mxu1 %v5889_v13  ;;  %v5917_v32 = vld [vmem:[#allocation2 + $0x104] ss:$16 sps:$4 sm:$0xff]   ;;  %v5919_v33 = vld [vmem:[#allocation2 + $0x10c] ss:$16 sps:$4 sm:$0xff]   ;;  %v5921_v34 = vld [vmem:[#allocation2 + $0x100] ss:$16 sps:$4 sm:$0xff]  }
  0x5a   :  { %v5922_v35 = vld [vmem:[#allocation2 + $0x108] ss:$16 sps:$4 sm:$0xff]   ;;  %v5923_v36 = vld [vmem:[#allocation2 + $0x124] ss:$16 sps:$4 sm:$0xff]   ;;  %v5925_v37 = vld [vmem:[#allocation2 + $0x12c] ss:$16 sps:$4 sm:$0xff]  }
  0x5b   :  { %v5927_v38 = vld [vmem:[#allocation2 + $0x120] ss:$16 sps:$4 sm:$0xff]   ;;  %v5928_v39 = vld [vmem:[#allocation2 + $0x128] ss:$16 sps:$4 sm:$0xff]   ;;  %v5929_v40 = vld [vmem:[#allocation2 + $0x144] ss:$16 sps:$4 sm:$0xff]  }
  0x5c   :  { %1525 = vmatpush1.bf16.msra.mxu0 %v5891_v14  ;;  %1697 = vmatpush1.bf16.msra.mxu1 %v5892_v15  ;;  %v5931_v41 = vld [vmem:[#allocation2 + $0x14c] ss:$16 sps:$4 sm:$0xff]   ;;  %v5933_v42 = vld [vmem:[#allocation2 + $0x140] ss:$16 sps:$4 sm:$0xff]   ;;  %v5934_v43 = vld [vmem:[#allocation2 + $0x148] ss:$16 sps:$4 sm:$0xff]  }
  0x5d   :  { %1526 = vmatprep.subr.bf16.mxu0 %v5893_v16  ;;  %1698 = vmatprep.subr.bf16.mxu1 %v5895_v17  ;;  %v5935_v44 = vld [vmem:[#allocation2 + $0x164] ss:$16 sps:$4 sm:$0xff]   ;;  %v5937_v45 = vld [vmem:[#allocation2 + $0x16c] ss:$16 sps:$4 sm:$0xff]   ;;  %v5939_v46 = vld [vmem:[#allocation2 + $0x160] ss:$16 sps:$4 sm:$0xff]  }
  0x5e   :  { %v5940_v47 = vld [vmem:[#allocation2 + $0x168] ss:$16 sps:$4 sm:$0xff]   ;;  %s7390_s29 = sld [smem:[#allocation19_spill]]  ;;  %v5941_v49 = vld [vmem:[#allocation2 + $0x184] ss:$16 sps:$4 sm:$0xff]   ;;  %vm2599_vm0 = vcmask 261120  }
  0x5f   :  { %v5943_v50 = vld [vmem:[#allocation2 + $0x18c] ss:$16 sps:$4 sm:$0xff]   ;;  %v5945_v51 = vld [vmem:[#allocation2 + $0x180] ss:$16 sps:$4 sm:$0xff]   ;;  %v5946_v52 = vld [vmem:[#allocation2 + $0x188] ss:$16 sps:$4 sm:$0xff]  }
  0x60   :  { %1527 = vmatpush1.bf16.msra.mxu0 %v5897_v18  ;;  %1699 = vmatpush1.bf16.msra.mxu1 %v5898_v19  ;;  %v5947_v53 = vld [vmem:[#allocation2 + $0x1a4] ss:$16 sps:$4 sm:$0xff]   ;;  %v5949_v54 = vld [vmem:[#allocation2 + $0x1ac] ss:$16 sps:$4 sm:$0xff]   ;;  %v5951_v55 = vld [vmem:[#allocation2 + $0x1a0] ss:$16 sps:$4 sm:$0xff]  }
  0x61   :  { %1528 = vmatprep.subr.bf16.mxu0 %v5899_v20  ;;  %1700 = vmatprep.subr.bf16.mxu1 %v5901_v21  ;;  %v5952_v56 = vld [vmem:[#allocation2 + $0x1a8] ss:$16 sps:$4 sm:$0xff]   ;;  %v5953_v57 = vld [vmem:[#allocation2 + $0x1c4] ss:$16 sps:$4 sm:$0xff]   ;;  %v5955_v58 = vld [vmem:[#allocation2 + $0x1cc] ss:$16 sps:$4 sm:$0xff]  }
  0x62   :  { %v5957_v59 = vld [vmem:[#allocation2 + $0x1c0] ss:$16 sps:$4 sm:$0xff]   ;;  %v5958_v60 = vld [vmem:[#allocation2 + $0x1c8] ss:$16 sps:$4 sm:$0xff]   ;;  %v5959_v61 = vld [vmem:[#allocation2 + $0x1e4] ss:$16 sps:$4 sm:$0xff]  }
  0x63   :  { %v5961_v62 = vld [vmem:[#allocation2 + $0x1ec] ss:$16 sps:$4 sm:$0xff]   ;;  %v5963_v63 = vld [vmem:[#allocation2 + $0x1e0] ss:$16 sps:$4 sm:$0xff]   ;;  %v5964_v0 = vld [vmem:[#allocation2 + $0x1e8] ss:$16 sps:$4 sm:$0xff]  }
  0x64   :  { %1529 = vmatpush1.bf16.msra.mxu0 %v5903_v22  ;;  %1701 = vmatpush1.bf16.msra.mxu1 %v5904_v23  ;;  %v5967_v48 = vld [vmem:[%s7390_s29 + $0x4] ss:$28 sps:$4 sm:$0xff]   ;;  %v5973_v2 = vld [vmem:[#allocation2 + $0x20c] ss:$16 sps:$4 sm:$0xff]   ;;  %v5971_v5 = vld [vmem:[#allocation2 + $0x208] ss:$16 sps:$4 sm:$0xff]  }
  0x65   :  { %1530 = vmatprep.subr.bf16.mxu0 %v5905_v24  ;;  %1702 = vmatprep.subr.bf16.mxu1 %v5907_v25  ;;  %v5970_v1 = vld [vmem:[#allocation2 + $0x204] ss:$16 sps:$4 sm:$0xff]   ;;  %v5965_v3 = vld [vmem:[%s7390_s29] ss:$28 sps:$4 sm:$0xff]   ;;  %v5977_v9 = vld [vmem:[#allocation2 + $0x228] ss:$16 sps:$4 sm:$0xff]  }
  0x66   :  { %1550 = vmatprep.mubr.bf16.mxu0 %v5967_v48  ;;  %1722 = vmatprep.mubr.bf16.mxu1 %v5967_v48  ;;  %v5968_v4 = vld [vmem:[#allocation2 + $0x200] ss:$16 sps:$4 sm:$0xff]   ;;  %v5976_v6 = vld [vmem:[#allocation2 + $0x224] ss:$16 sps:$4 sm:$0xff]   ;;  %v5979_v7 = vld [vmem:[#allocation2 + $0x22c] ss:$16 sps:$4 sm:$0xff]  }
  0x67   :  { %v5974_v8 = vld [vmem:[#allocation2 + $0x220] ss:$16 sps:$4 sm:$0xff]   ;;  %v5982_v10 = vld [vmem:[#allocation2 + $0x244] ss:$16 sps:$4 sm:$0xff]   ;;  %v5985_v11 = vld [vmem:[#allocation2 + $0x24c] ss:$16 sps:$4 sm:$0xff]  }
  0x68   :  { %1531 = vmatpush1.bf16.msra.mxu0 %v5909_v26  ;;  %1703 = vmatpush1.bf16.msra.mxu1 %v5910_v27  ;;  %v5980_v12 = vld [vmem:[#allocation2 + $0x240] ss:$16 sps:$4 sm:$0xff]   ;;  %v5983_v13 = vld [vmem:[#allocation2 + $0x248] ss:$16 sps:$4 sm:$0xff]   ;;  %v5988_v14 = vld [vmem:[#allocation2 + $0x264] ss:$16 sps:$4 sm:$0xff]  }
  0x69   :  { %1532 = vmatprep.subr.bf16.mxu0 %v5911_v28  ;;  %1704 = vmatprep.subr.bf16.mxu1 %v5913_v29  ;;  %v5991_v15 = vld [vmem:[#allocation2 + $0x26c] ss:$16 sps:$4 sm:$0xff]   ;;  %v5986_v16 = vld [vmem:[#allocation2 + $0x260] ss:$16 sps:$4 sm:$0xff]   ;;  %v5989_v17 = vld [vmem:[#allocation2 + $0x268] ss:$16 sps:$4 sm:$0xff]  }
  0x6a   :  { %v5994_v18 = vld [vmem:[#allocation2 + $0x284] ss:$16 sps:$4 sm:$0xff]   ;;  %v5997_v19 = vld [vmem:[#allocation2 + $0x28c] ss:$16 sps:$4 sm:$0xff]   ;;  %v5992_v20 = vld [vmem:[#allocation2 + $0x280] ss:$16 sps:$4 sm:$0xff]  }
  0x6b   :  { %v5995_v21 = vld [vmem:[#allocation2 + $0x288] ss:$16 sps:$4 sm:$0xff]   ;;  %v6000_v22 = vld [vmem:[#allocation2 + $0x2a4] ss:$16 sps:$4 sm:$0xff]   ;;  %v6003_v23 = vld [vmem:[#allocation2 + $0x2ac] ss:$16 sps:$4 sm:$0xff]  }
  0x6c   :  { %1533 = vmatpush1.bf16.msra.mxu0 %v5915_v30  ;;  %1705 = vmatpush1.bf16.msra.mxu1 %v5916_v31  ;;  %v5998_v24 = vld [vmem:[#allocation2 + $0x2a0] ss:$16 sps:$4 sm:$0xff]   ;;  %v6001_v25 = vld [vmem:[#allocation2 + $0x2a8] ss:$16 sps:$4 sm:$0xff]   ;;  %v6006_v26 = vld [vmem:[#allocation2 + $0x2c4] ss:$16 sps:$4 sm:$0xff]  }
  0x6d   :  { %1534 = vmatprep.subr.bf16.mxu0 %v5917_v32  ;;  %1706 = vmatprep.subr.bf16.mxu1 %v5919_v33  ;;  %v6009_v27 = vld [vmem:[#allocation2 + $0x2cc] ss:$16 sps:$4 sm:$0xff]   ;;  %v6004_v28 = vld [vmem:[#allocation2 + $0x2c0] ss:$16 sps:$4 sm:$0xff]   ;;  %v6007_v29 = vld [vmem:[#allocation2 + $0x2c8] ss:$16 sps:$4 sm:$0xff]  }
  0x6e   :  { %v6066_v30 = vld [vmem:[%s7390_s29 + $0xc] ss:$28 sps:$4 sm:$0xff]   ;;  %v6012_v31 = vld [vmem:[#allocation2 + $0x2e4] ss:$16 sps:$4 sm:$0xff]   ;;  %v6010_v33 = vld [vmem:[#allocation2 + $0x2e0] ss:$16 sps:$4 sm:$0xff]  }
  0x6f   :  { %v6015_v32 = vld [vmem:[#allocation2 + $0x2ec] ss:$16 sps:$4 sm:$0xff]   ;;  %s6984_s17 = smov 96  }
  0x70   :  { %1535 = vmatpush1.bf16.msra.mxu0 %v5921_v34  ;;  %1707 = vmatpush1.bf16.msra.mxu1 %v5922_v35  ;;  %v6013_v34 = vld [vmem:[#allocation2 + $0x2e8] ss:$16 sps:$4 sm:$0xff]   ;;  %v6018_v35 = vld [vmem:[#allocation2 + $0x304] ss:$16 sps:$4 sm:$0xff]   ;;  %v6039_v48 = vld [vmem:[#allocation2 + $0x36c] ss:$16 sps:$4 sm:$0xff]  }
  0x71   :  { %1536 = vmatprep.subr.bf16.mxu0 %v5923_v36  ;;  %1708 = vmatprep.subr.bf16.mxu1 %v5925_v37  ;;  %v6021_v36 = vld [vmem:[#allocation2 + $0x30c] ss:$16 sps:$4 sm:$0xff]   ;;  %v6016_v37 = vld [vmem:[#allocation2 + $0x300] ss:$16 sps:$4 sm:$0xff]  }
  0x74   :  { %1537 = vmatpush1.bf16.msra.mxu0 %v5927_v38  ;;  %1709 = vmatpush1.bf16.msra.mxu1 %v5928_v39  ;;  %v6019_v38 = vld [vmem:[#allocation2 + $0x308] ss:$16 sps:$4 sm:$0xff]   ;;  %v6024_v39 = vld [vmem:[#allocation2 + $0x324] ss:$16 sps:$4 sm:$0xff]  }
  0x75   :  { %1538 = vmatprep.subr.bf16.mxu0 %v5929_v40  ;;  %1710 = vmatprep.subr.bf16.mxu1 %v5931_v41  ;;  %v6027_v40 = vld [vmem:[#allocation2 + $0x32c] ss:$16 sps:$4 sm:$0xff]   ;;  %v6022_v41 = vld [vmem:[#allocation2 + $0x320] ss:$16 sps:$4 sm:$0xff]  }
  0x78   :  { %1539 = vmatpush1.bf16.msra.mxu0 %v5933_v42  ;;  %1711 = vmatpush1.bf16.msra.mxu1 %v5934_v43  ;;  %v6025_v42 = vld [vmem:[#allocation2 + $0x328] ss:$16 sps:$4 sm:$0xff]   ;;  %v6030_v43 = vld [vmem:[#allocation2 + $0x344] ss:$16 sps:$4 sm:$0xff]  }
  0x79   :  { %1540 = vmatprep.subr.bf16.mxu0 %v5935_v44  ;;  %1712 = vmatprep.subr.bf16.mxu1 %v5937_v45  ;;  %v6033_v44 = vld [vmem:[#allocation2 + $0x34c] ss:$16 sps:$4 sm:$0xff]   ;;  %v6028_v45 = vld [vmem:[#allocation2 + $0x340] ss:$16 sps:$4 sm:$0xff]  }
  0x7c   :  { %1541 = vmatpush1.bf16.msra.mxu0 %v5939_v46  ;;  %1713 = vmatpush1.bf16.msra.mxu1 %v5940_v47  ;;  %v6031_v46 = vld [vmem:[#allocation2 + $0x348] ss:$16 sps:$4 sm:$0xff]   ;;  %v6036_v47 = vld [vmem:[#allocation2 + $0x364] ss:$16 sps:$4 sm:$0xff]  }
  0x7d   :  { %1542 = vmatprep.subr.bf16.mxu0 %v5941_v49  ;;  %1714 = vmatprep.subr.bf16.mxu1 %v5943_v50  ;;  %v6034_v49 = vld [vmem:[#allocation2 + $0x360] ss:$16 sps:$4 sm:$0xff]   ;;  %v6037_v50 = vld [vmem:[#allocation2 + $0x368] ss:$16 sps:$4 sm:$0xff]  }
  0x80   :  { %1543 = vmatpush1.bf16.msra.mxu0 %v5945_v51  ;;  %1715 = vmatpush1.bf16.msra.mxu1 %v5946_v52  ;;  %v6042_v51 = vld [vmem:[#allocation2 + $0x384] ss:$16 sps:$4 sm:$0xff]   ;;  %v6045_v52 = vld [vmem:[#allocation2 + $0x38c] ss:$16 sps:$4 sm:$0xff]  }
  0x81   :  { %1544 = vmatprep.subr.bf16.mxu0 %v5947_v53  ;;  %1716 = vmatprep.subr.bf16.mxu1 %v5949_v54  ;;  %v6040_v53 = vld [vmem:[#allocation2 + $0x380] ss:$16 sps:$4 sm:$0xff]   ;;  %v6043_v54 = vld [vmem:[#allocation2 + $0x388] ss:$16 sps:$4 sm:$0xff]  }
  0x84   :  { %1545 = vmatpush1.bf16.msra.mxu0 %v5951_v55  ;;  %1717 = vmatpush1.bf16.msra.mxu1 %v5952_v56  ;;  %v6048_v55 = vld [vmem:[#allocation2 + $0x3a4] ss:$16 sps:$4 sm:$0xff]   ;;  %v6051_v56 = vld [vmem:[#allocation2 + $0x3ac] ss:$16 sps:$4 sm:$0xff]  }
  0x85   :  { %1546 = vmatprep.subr.bf16.mxu0 %v5953_v57  ;;  %1718 = vmatprep.subr.bf16.mxu1 %v5955_v58  ;;  %v6046_v57 = vld [vmem:[#allocation2 + $0x3a0] ss:$16 sps:$4 sm:$0xff]   ;;  %v6049_v58 = vld [vmem:[#allocation2 + $0x3a8] ss:$16 sps:$4 sm:$0xff]  }
  0x88   :  { %1547 = vmatpush1.bf16.msra.mxu0 %v5957_v59  ;;  %1719 = vmatpush1.bf16.msra.mxu1 %v5958_v60  ;;  %v6054_v59 = vld [vmem:[#allocation2 + $0x3c4] ss:$16 sps:$4 sm:$0xff]   ;;  %v6057_v60 = vld [vmem:[#allocation2 + $0x3cc] ss:$16 sps:$4 sm:$0xff]  }
  0x89   :  { %1548 = vmatprep.subr.bf16.mxu0 %v5959_v61  ;;  %1720 = vmatprep.subr.bf16.mxu1 %v5961_v62  ;;  %v6052_v61 = vld [vmem:[#allocation2 + $0x3c0] ss:$16 sps:$4 sm:$0xff]   ;;  %v6055_v62 = vld [vmem:[#allocation2 + $0x3c8] ss:$16 sps:$4 sm:$0xff]  }
  0x8c   :  { %1549 = vmatpush1.bf16.msra.mxu0 %v5963_v63  ;;  %1721 = vmatpush1.bf16.msra.mxu1 %v5964_v0  ;;  %v6060_v63 = vld [vmem:[#allocation2 + $0x3e4] ss:$16 sps:$4 sm:$0xff]   ;;  %v6063_v0 = vld [vmem:[#allocation2 + $0x3ec] ss:$16 sps:$4 sm:$0xff]  }
  0x8d   :  { %1561 = vmatprep.subr.bf16.mxu0 %v5970_v1  ;;  %1733 = vmatprep.subr.bf16.mxu1 %v5973_v2  ;;  %v6058_v1 = vld [vmem:[#allocation2 + $0x3e0] ss:$16 sps:$4 sm:$0xff]   ;;  %v6061_v2 = vld [vmem:[#allocation2 + $0x3e8] ss:$16 sps:$4 sm:$0xff]  }
  0x8f   :  { %1551 = vmatmul.mubr.bf16.vlgmr.msra.gmra.mrb[0].mxu0 %v5965_v3  ;;  %1723 = vmatmul.mubr.bf16.vlgmr.msra.gmra.mrb[0].mxu1 %v5965_v3  ;;  %v6069_v3 = vld [vmem:[#allocation2 + $0x404] ss:$16 sps:$4 sm:$0xff]  }
  0x90   :  { %1562 = vmatpush1.bf16.msra.mxu0 %v5968_v4  ;;  %1734 = vmatpush1.bf16.msra.mxu1 %v5971_v5  ;;  %v6072_v4 = vld [vmem:[#allocation2 + $0x40c] ss:$16 sps:$4 sm:$0xff]   ;;  %v6064_v5 = vld [vmem:[%s7390_s29 + $0x8] ss:$28 sps:$4 sm:$0xff]  }
  0x91   :  { %1563 = vmatprep.subr.bf16.mxu0 %v5976_v6  ;;  %1735 = vmatprep.subr.bf16.mxu1 %v5979_v7  ;;  %v6067_v6 = vld [vmem:[#allocation2 + $0x400] ss:$16 sps:$4 sm:$0xff]   ;;  %v6070_v7 = vld [vmem:[#allocation2 + $0x408] ss:$16 sps:$4 sm:$0xff]  }
  0x92   :  { %1593 = vmatprep.mubr.bf16.mxu0 %v6066_v30  ;;  %1765 = vmatprep.mubr.bf16.mxu1 %v6066_v30  ;;  %v6108_v30 = vld [vmem:[#allocation2 + $0x4cc] ss:$16 sps:$4 sm:$0xff]  }
  0x94   :  { %1564 = vmatpush1.bf16.msra.mxu0 %v5974_v8  ;;  %1736 = vmatpush1.bf16.msra.mxu1 %v5977_v9  ;;  %v6075_v8 = vld [vmem:[#allocation2 + $0x424] ss:$16 sps:$4 sm:$0xff]   ;;  %v6078_v9 = vld [vmem:[#allocation2 + $0x42c] ss:$16 sps:$4 sm:$0xff]  }
  0x95   :  { %1565 = vmatprep.subr.bf16.mxu0 %v5982_v10  ;;  %1737 = vmatprep.subr.bf16.mxu1 %v5985_v11  ;;  %v6073_v10 = vld [vmem:[#allocation2 + $0x420] ss:$16 sps:$4 sm:$0xff]   ;;  %v6076_v11 = vld [vmem:[#allocation2 + $0x428] ss:$16 sps:$4 sm:$0xff]  }
  0x98   :  { %1566 = vmatpush1.bf16.msra.mxu0 %v5980_v12  ;;  %1738 = vmatpush1.bf16.msra.mxu1 %v5983_v13  ;;  %v6165_v12 = vld [vmem:[%s7390_s29 + $0x14] ss:$28 sps:$4 sm:$0xff]  }
  0x99   :  { %1567 = vmatprep.subr.bf16.mxu0 %v5988_v14  ;;  %1739 = vmatprep.subr.bf16.mxu1 %v5991_v15  ;;  %v6081_v13 = vld [vmem:[#allocation2 + $0x444] ss:$16 sps:$4 sm:$0xff]   ;;  %v6084_v14 = vld [vmem:[#allocation2 + $0x44c] ss:$16 sps:$4 sm:$0xff]   ;;  %v6079_v15 = vld [vmem:[#allocation2 + $0x440] ss:$16 sps:$4 sm:$0xff]  }
  0x9c   :  { %1568 = vmatpush1.bf16.msra.mxu0 %v5986_v16  ;;  %1740 = vmatpush1.bf16.msra.mxu1 %v5989_v17  ;;  %v6082_v16 = vld [vmem:[#allocation2 + $0x448] ss:$16 sps:$4 sm:$0xff]   ;;  %v6087_v17 = vld [vmem:[#allocation2 + $0x464] ss:$16 sps:$4 sm:$0xff]  }
  0x9d   :  { %1569 = vmatprep.subr.bf16.mxu0 %v5994_v18  ;;  %1741 = vmatprep.subr.bf16.mxu1 %v5997_v19  ;;  %v6090_v18 = vld [vmem:[#allocation2 + $0x46c] ss:$16 sps:$4 sm:$0xff]   ;;  %v6085_v19 = vld [vmem:[#allocation2 + $0x460] ss:$16 sps:$4 sm:$0xff]  }
  0xa0   :  { %1570 = vmatpush1.bf16.msra.mxu0 %v5992_v20  ;;  %1742 = vmatpush1.bf16.msra.mxu1 %v5995_v21  ;;  %v6088_v20 = vld [vmem:[#allocation2 + $0x468] ss:$16 sps:$4 sm:$0xff]   ;;  %v6093_v21 = vld [vmem:[#allocation2 + $0x484] ss:$16 sps:$4 sm:$0xff]  }
  0xa1   :  { %1571 = vmatprep.subr.bf16.mxu0 %v6000_v22  ;;  %1743 = vmatprep.subr.bf16.mxu1 %v6003_v23  ;;  %v6096_v22 = vld [vmem:[#allocation2 + $0x48c] ss:$16 sps:$4 sm:$0xff]   ;;  %v6091_v23 = vld [vmem:[#allocation2 + $0x480] ss:$16 sps:$4 sm:$0xff]  }
  0xa4   :  { %1572 = vmatpush1.bf16.msra.mxu0 %v5998_v24  ;;  %1744 = vmatpush1.bf16.msra.mxu1 %v6001_v25  ;;  %v6094_v24 = vld [vmem:[#allocation2 + $0x488] ss:$16 sps:$4 sm:$0xff]   ;;  %v6099_v25 = vld [vmem:[#allocation2 + $0x4a4] ss:$16 sps:$4 sm:$0xff]  }
  0xa5   :  { %1573 = vmatprep.subr.bf16.mxu0 %v6006_v26  ;;  %1745 = vmatprep.subr.bf16.mxu1 %v6009_v27  ;;  %v6102_v26 = vld [vmem:[#allocation2 + $0x4ac] ss:$16 sps:$4 sm:$0xff]   ;;  %v6097_v27 = vld [vmem:[#allocation2 + $0x4a0] ss:$16 sps:$4 sm:$0xff]  }
  0xa8   :  { %1574 = vmatpush1.bf16.msra.mxu0 %v6004_v28  ;;  %1746 = vmatpush1.bf16.msra.mxu1 %v6007_v29  ;;  %v6100_v28 = vld [vmem:[#allocation2 + $0x4a8] ss:$16 sps:$4 sm:$0xff]   ;;  %v6105_v29 = vld [vmem:[#allocation2 + $0x4c4] ss:$16 sps:$4 sm:$0xff]  }
  0xa9   :  { %1575 = vmatprep.subr.bf16.mxu0 %v6012_v31  ;;  %1747 = vmatprep.subr.bf16.mxu1 %v6015_v32  ;;  %v6103_v31 = vld [vmem:[#allocation2 + $0x4c0] ss:$16 sps:$4 sm:$0xff]   ;;  %v6106_v32 = vld [vmem:[#allocation2 + $0x4c8] ss:$16 sps:$4 sm:$0xff]  }
  0xac   :  { %1576 = vmatpush1.bf16.msra.mxu0 %v6010_v33  ;;  %1748 = vmatpush1.bf16.msra.mxu1 %v6013_v34  ;;  %v6111_v33 = vld [vmem:[#allocation2 + $0x4e4] ss:$16 sps:$4 sm:$0xff]   ;;  %v6114_v34 = vld [vmem:[#allocation2 + $0x4ec] ss:$16 sps:$4 sm:$0xff]  }
  0xad   :  { %1577 = vmatprep.subr.bf16.mxu0 %v6018_v35  ;;  %1749 = vmatprep.subr.bf16.mxu1 %v6021_v36  ;;  %v6109_v35 = vld [vmem:[#allocation2 + $0x4e0] ss:$16 sps:$4 sm:$0xff]   ;;  %v6112_v36 = vld [vmem:[#allocation2 + $0x4e8] ss:$16 sps:$4 sm:$0xff]  }
  0xb0   :  { %1578 = vmatpush1.bf16.msra.mxu0 %v6016_v37  ;;  %1750 = vmatpush1.bf16.msra.mxu1 %v6019_v38  ;;  %v6117_v37 = vld [vmem:[#allocation2 + $0x504] ss:$16 sps:$4 sm:$0xff]   ;;  %v6120_v38 = vld [vmem:[#allocation2 + $0x50c] ss:$16 sps:$4 sm:$0xff]  }
  0xb1   :  { %1579 = vmatprep.subr.bf16.mxu0 %v6024_v39  ;;  %1751 = vmatprep.subr.bf16.mxu1 %v6027_v40  ;;  %v6115_v39 = vld [vmem:[#allocation2 + $0x500] ss:$16 sps:$4 sm:$0xff]   ;;  %v6118_v40 = vld [vmem:[#allocation2 + $0x508] ss:$16 sps:$4 sm:$0xff]  }
  0xb4   :  { %1580 = vmatpush1.bf16.msra.mxu0 %v6022_v41  ;;  %1752 = vmatpush1.bf16.msra.mxu1 %v6025_v42  ;;  %v6123_v41 = vld [vmem:[#allocation2 + $0x524] ss:$16 sps:$4 sm:$0xff]   ;;  %v6126_v42 = vld [vmem:[#allocation2 + $0x52c] ss:$16 sps:$4 sm:$0xff]  }
  0xb5   :  { %1581 = vmatprep.subr.bf16.mxu0 %v6030_v43  ;;  %1753 = vmatprep.subr.bf16.mxu1 %v6033_v44  ;;  %v6121_v43 = vld [vmem:[#allocation2 + $0x520] ss:$16 sps:$4 sm:$0xff]   ;;  %v6124_v44 = vld [vmem:[#allocation2 + $0x528] ss:$16 sps:$4 sm:$0xff]  }
  0xb8   :  { %1582 = vmatpush1.bf16.msra.mxu0 %v6028_v45  ;;  %1754 = vmatpush1.bf16.msra.mxu1 %v6031_v46  ;;  %v6129_v45 = vld [vmem:[#allocation2 + $0x544] ss:$16 sps:$4 sm:$0xff]   ;;  %v6132_v46 = vld [vmem:[#allocation2 + $0x54c] ss:$16 sps:$4 sm:$0xff]  }
  0xb9   :  { %1583 = vmatprep.subr.bf16.mxu0 %v6036_v47  ;;  %1755 = vmatprep.subr.bf16.mxu1 %v6039_v48  ;;  %v6127_v47 = vld [vmem:[#allocation2 + $0x540] ss:$16 sps:$4 sm:$0xff]   ;;  %v6130_v48 = vld [vmem:[#allocation2 + $0x548] ss:$16 sps:$4 sm:$0xff]  }
  0xbc   :  { %1584 = vmatpush1.bf16.msra.mxu0 %v6034_v49  ;;  %1756 = vmatpush1.bf16.msra.mxu1 %v6037_v50  ;;  %v6135_v49 = vld [vmem:[#allocation2 + $0x564] ss:$16 sps:$4 sm:$0xff]   ;;  %v6138_v50 = vld [vmem:[#allocation2 + $0x56c] ss:$16 sps:$4 sm:$0xff]  }
  0xbd   :  { %1585 = vmatprep.subr.bf16.mxu0 %v6042_v51  ;;  %1757 = vmatprep.subr.bf16.mxu1 %v6045_v52  ;;  %v6133_v51 = vld [vmem:[#allocation2 + $0x560] ss:$16 sps:$4 sm:$0xff]   ;;  %v6136_v52 = vld [vmem:[#allocation2 + $0x568] ss:$16 sps:$4 sm:$0xff]  }
  0xc0   :  { %1586 = vmatpush1.bf16.msra.mxu0 %v6040_v53  ;;  %1758 = vmatpush1.bf16.msra.mxu1 %v6043_v54  ;;  %v6141_v53 = vld [vmem:[#allocation2 + $0x584] ss:$16 sps:$4 sm:$0xff]   ;;  %v6144_v54 = vld [vmem:[#allocation2 + $0x58c] ss:$16 sps:$4 sm:$0xff]  }
  0xc1   :  { %1587 = vmatprep.subr.bf16.mxu0 %v6048_v55  ;;  %1759 = vmatprep.subr.bf16.mxu1 %v6051_v56  ;;  %v6139_v55 = vld [vmem:[#allocation2 + $0x580] ss:$16 sps:$4 sm:$0xff]   ;;  %v6142_v56 = vld [vmem:[#allocation2 + $0x588] ss:$16 sps:$4 sm:$0xff]  }
  0xc4   :  { %1588 = vmatpush1.bf16.msra.mxu0 %v6046_v57  ;;  %1760 = vmatpush1.bf16.msra.mxu1 %v6049_v58  ;;  %v6147_v57 = vld [vmem:[#allocation2 + $0x5a4] ss:$16 sps:$4 sm:$0xff]   ;;  %v6150_v58 = vld [vmem:[#allocation2 + $0x5ac] ss:$16 sps:$4 sm:$0xff]  }
  0xc5   :  { %1589 = vmatprep.subr.bf16.mxu0 %v6054_v59  ;;  %1761 = vmatprep.subr.bf16.mxu1 %v6057_v60  ;;  %v6145_v59 = vld [vmem:[#allocation2 + $0x5a0] ss:$16 sps:$4 sm:$0xff]   ;;  %v6148_v60 = vld [vmem:[#allocation2 + $0x5a8] ss:$16 sps:$4 sm:$0xff]  }
  0xc8   :  { %1590 = vmatpush1.bf16.msra.mxu0 %v6052_v61  ;;  %1762 = vmatpush1.bf16.msra.mxu1 %v6055_v62  ;;  %v6153_v61 = vld [vmem:[#allocation2 + $0x5c4] ss:$16 sps:$4 sm:$0xff]   ;;  %v6156_v62 = vld [vmem:[#allocation2 + $0x5cc] ss:$16 sps:$4 sm:$0xff]  }
  0xc9   :  { %1591 = vmatprep.subr.bf16.mxu0 %v6060_v63  ;;  %1763 = vmatprep.subr.bf16.mxu1 %v6063_v0  ;;  %v6151_v63 = vld [vmem:[#allocation2 + $0x5c0] ss:$16 sps:$4 sm:$0xff]   ;;  %v6154_v0 = vld [vmem:[#allocation2 + $0x5c8] ss:$16 sps:$4 sm:$0xff]  }
  0xcc   :  { %1592 = vmatpush1.bf16.msra.mxu0 %v6058_v1  ;;  %1764 = vmatpush1.bf16.msra.mxu1 %v6061_v2  ;;  %v6159_v1 = vld [vmem:[#allocation2 + $0x5e4] ss:$16 sps:$4 sm:$0xff]   ;;  %v6162_v2 = vld [vmem:[#allocation2 + $0x5ec] ss:$16 sps:$4 sm:$0xff]  }
  0xcd   :  { %1604 = vmatprep.subr.bf16.mxu0 %v6069_v3  ;;  %1776 = vmatprep.subr.bf16.mxu1 %v6072_v4  ;;  %v6157_v3 = vld [vmem:[#allocation2 + $0x5e0] ss:$16 sps:$4 sm:$0xff]   ;;  %v6160_v4 = vld [vmem:[#allocation2 + $0x5e8] ss:$16 sps:$4 sm:$0xff]  }
  0xcf   :  { %1594 = vmatmul.mubr.bf16.vlgmr.msra.gmra.mrb[0].mxu0 %v6064_v5  ;;  %1766 = vmatmul.mubr.bf16.vlgmr.msra.gmra.mrb[0].mxu1 %v6064_v5  ;;  %v6168_v5 = vld [vmem:[#allocation2 + $0x604] ss:$16 sps:$4 sm:$0xff]  }
  0xd0   :  { %1605 = vmatpush1.bf16.msra.mxu0 %v6067_v6  ;;  %1777 = vmatpush1.bf16.msra.mxu1 %v6070_v7  ;;  %v6171_v6 = vld [vmem:[#allocation2 + $0x60c] ss:$16 sps:$4 sm:$0xff]  }
  0xd1   :  { %1606 = vmatprep.subr.bf16.mxu0 %v6075_v8  ;;  %1778 = vmatprep.subr.bf16.mxu1 %v6078_v9  ;;  %v6163_v7 = vld [vmem:[%s7390_s29 + $0x10] ss:$28 sps:$4 sm:$0xff]   ;;  %v6169_v9 = vld [vmem:[#allocation2 + $0x608] ss:$16 sps:$4 sm:$0xff]  }
  0xd2   :  { %1636 = vmatprep.mubr.bf16.mxu0 %v6165_v12  ;;  %1808 = vmatprep.mubr.bf16.mxu1 %v6165_v12  ;;  %v6166_v8 = vld [vmem:[#allocation2 + $0x600] ss:$16 sps:$4 sm:$0xff]  }
  0xd3   :  { %v6172_v12 = vld [vmem:[#allocation2 + $0x620] ss:$16 sps:$4 sm:$0xff]  }
  0xd4   :  { %1607 = vmatpush1.bf16.msra.mxu0 %v6073_v10  ;;  %1779 = vmatpush1.bf16.msra.mxu1 %v6076_v11  ;;  %v6174_v10 = vld [vmem:[#allocation2 + $0x624] ss:$16 sps:$4 sm:$0xff]   ;;  %v6177_v11 = vld [vmem:[#allocation2 + $0x62c] ss:$16 sps:$4 sm:$0xff]  }
  0xd5   :  { %1608 = vmatprep.subr.bf16.mxu0 %v6081_v13  ;;  %1780 = vmatprep.subr.bf16.mxu1 %v6084_v14  ;;  %v6175_v13 = vld [vmem:[#allocation2 + $0x628] ss:$16 sps:$4 sm:$0xff]   ;;  %v6180_v14 = vld [vmem:[#allocation2 + $0x644] ss:$16 sps:$4 sm:$0xff]  }
  0xd8   :  { %1609 = vmatpush1.bf16.msra.mxu0 %v6079_v15  ;;  %1781 = vmatpush1.bf16.msra.mxu1 %v6082_v16  ;;  %v6183_v15 = vld [vmem:[#allocation2 + $0x64c] ss:$16 sps:$4 sm:$0xff]   ;;  %v6178_v16 = vld [vmem:[#allocation2 + $0x640] ss:$16 sps:$4 sm:$0xff]  }
  0xd9   :  { %1610 = vmatprep.subr.bf16.mxu0 %v6087_v17  ;;  %1782 = vmatprep.subr.bf16.mxu1 %v6090_v18  ;;  %v6181_v17 = vld [vmem:[#allocation2 + $0x648] ss:$16 sps:$4 sm:$0xff]   ;;  %v6983_v18 = vmov 0  }
  0xdc   :  { %1611 = vmatpush1.bf16.msra.mxu0 %v6085_v19  ;;  %1783 = vmatpush1.bf16.msra.mxu1 %v6088_v20  ;;  %v6186_v19 = vld [vmem:[#allocation2 + $0x664] ss:$16 sps:$4 sm:$0xff]   ;;  %v6189_v20 = vld [vmem:[#allocation2 + $0x66c] ss:$16 sps:$4 sm:$0xff]  }
  0xdd   :  { %1612 = vmatprep.subr.bf16.mxu0 %v6093_v21  ;;  %1784 = vmatprep.subr.bf16.mxu1 %v6096_v22  ;;  %v6184_v21 = vld [vmem:[#allocation2 + $0x660] ss:$16 sps:$4 sm:$0xff]   ;;  %v6187_v22 = vld [vmem:[#allocation2 + $0x668] ss:$16 sps:$4 sm:$0xff]  }
  0xe0   :  { %1613 = vmatpush1.bf16.msra.mxu0 %v6091_v23  ;;  %1785 = vmatpush1.bf16.msra.mxu1 %v6094_v24  ;;  %v6192_v23 = vld [vmem:[#allocation2 + $0x684] ss:$16 sps:$4 sm:$0xff]   ;;  %v6195_v24 = vld [vmem:[#allocation2 + $0x68c] ss:$16 sps:$4 sm:$0xff]  }
  0xe1   :  { %1614 = vmatprep.subr.bf16.mxu0 %v6099_v25  ;;  %1786 = vmatprep.subr.bf16.mxu1 %v6102_v26  ;;  %v6190_v25 = vld [vmem:[#allocation2 + $0x680] ss:$16 sps:$4 sm:$0xff]   ;;  %v6193_v26 = vld [vmem:[#allocation2 + $0x688] ss:$16 sps:$4 sm:$0xff]  }
  0xe4   :  { %1615 = vmatpush1.bf16.msra.mxu0 %v6097_v27  ;;  %1787 = vmatpush1.bf16.msra.mxu1 %v6100_v28  ;;  %v6198_v27 = vld [vmem:[#allocation2 + $0x6a4] ss:$16 sps:$4 sm:$0xff]   ;;  %v6201_v28 = vld [vmem:[#allocation2 + $0x6ac] ss:$16 sps:$4 sm:$0xff]  }
  0xe5   :  { %1616 = vmatprep.subr.bf16.mxu0 %v6105_v29  ;;  %1788 = vmatprep.subr.bf16.mxu1 %v6108_v30  ;;  %v6196_v29 = vld [vmem:[#allocation2 + $0x6a0] ss:$16 sps:$4 sm:$0xff]   ;;  %v6199_v30 = vld [vmem:[#allocation2 + $0x6a8] ss:$16 sps:$4 sm:$0xff]  }
  0xe8   :  { %1617 = vmatpush1.bf16.msra.mxu0 %v6103_v31  ;;  %1789 = vmatpush1.bf16.msra.mxu1 %v6106_v32  ;;  %v6204_v31 = vld [vmem:[#allocation2 + $0x6c4] ss:$16 sps:$4 sm:$0xff]   ;;  %v6207_v32 = vld [vmem:[#allocation2 + $0x6cc] ss:$16 sps:$4 sm:$0xff]  }
  0xe9   :  { %1618 = vmatprep.subr.bf16.mxu0 %v6111_v33  ;;  %1790 = vmatprep.subr.bf16.mxu1 %v6114_v34  ;;  %v6202_v33 = vld [vmem:[#allocation2 + $0x6c0] ss:$16 sps:$4 sm:$0xff]   ;;  %v6205_v34 = vld [vmem:[#allocation2 + $0x6c8] ss:$16 sps:$4 sm:$0xff]  }
  0xec   :  { %1619 = vmatpush1.bf16.msra.mxu0 %v6109_v35  ;;  %1791 = vmatpush1.bf16.msra.mxu1 %v6112_v36  ;;  %v6210_v35 = vld [vmem:[#allocation2 + $0x6e4] ss:$16 sps:$4 sm:$0xff]   ;;  %v6213_v36 = vld [vmem:[#allocation2 + $0x6ec] ss:$16 sps:$4 sm:$0xff]  }
  0xed   :  { %1620 = vmatprep.subr.bf16.mxu0 %v6117_v37  ;;  %1792 = vmatprep.subr.bf16.mxu1 %v6120_v38  ;;  %v6208_v37 = vld [vmem:[#allocation2 + $0x6e0] ss:$16 sps:$4 sm:$0xff]   ;;  %v6211_v38 = vld [vmem:[#allocation2 + $0x6e8] ss:$16 sps:$4 sm:$0xff]  }
  0xf0   :  { %1621 = vmatpush1.bf16.msra.mxu0 %v6115_v39  ;;  %1793 = vmatpush1.bf16.msra.mxu1 %v6118_v40  ;;  %v6217_v39 = vld [vmem:[#allocation5 + $0x4] ss:$8 sps:$4 sm:$0xff]   ;;  %v6214_v40 = vld [vmem:[%s7390_s29 + $0x18] ss:$28 sps:$4 sm:$0xff]  }
  0xf1   :  { %1622 = vmatprep.subr.bf16.mxu0 %v6123_v41  ;;  %1794 = vmatprep.subr.bf16.mxu1 %v6126_v42  ;;  %v6215_v41 = vld [vmem:[#allocation5] ss:$8 sps:$4 sm:$0xff]   ;;  %v6220_v42 = vld [vmem:[#allocation5 + $0x14] ss:$8 sps:$4 sm:$0xff]  }
  0xf4   :  { %1623 = vmatpush1.bf16.msra.mxu0 %v6121_v43  ;;  %1795 = vmatpush1.bf16.msra.mxu1 %v6124_v44  ;;  %v6218_v43 = vld [vmem:[#allocation5 + $0x10] ss:$8 sps:$4 sm:$0xff]   ;;  %v6223_v44 = vld [vmem:[#allocation5 + $0x24] ss:$8 sps:$4 sm:$0xff]  }
  0xf5   :  { %1624 = vmatprep.subr.bf16.mxu0 %v6129_v45  ;;  %1796 = vmatprep.subr.bf16.mxu1 %v6132_v46  ;;  %v6221_v45 = vld [vmem:[#allocation5 + $0x20] ss:$8 sps:$4 sm:$0xff]   ;;  %v6226_v46 = vld [vmem:[#allocation5 + $0x34] ss:$8 sps:$4 sm:$0xff]  }
  0xf8   :  { %1625 = vmatpush1.bf16.msra.mxu0 %v6127_v47  ;;  %1797 = vmatpush1.bf16.msra.mxu1 %v6130_v48  ;;  %v6224_v47 = vld [vmem:[#allocation5 + $0x30] ss:$8 sps:$4 sm:$0xff]   ;;  %v6229_v48 = vld [vmem:[#allocation5 + $0x44] ss:$8 sps:$4 sm:$0xff]  }
  0xf9   :  { %1626 = vmatprep.subr.bf16.mxu0 %v6135_v49  ;;  %1798 = vmatprep.subr.bf16.mxu1 %v6138_v50  ;;  %v6227_v49 = vld [vmem:[#allocation5 + $0x40] ss:$8 sps:$4 sm:$0xff]   ;;  %v6232_v50 = vld [vmem:[#allocation5 + $0x54] ss:$8 sps:$4 sm:$0xff]  }
  0xfc   :  { %1627 = vmatpush1.bf16.msra.mxu0 %v6133_v51  ;;  %1799 = vmatpush1.bf16.msra.mxu1 %v6136_v52  ;;  %v6230_v51 = vld [vmem:[#allocation5 + $0x50] ss:$8 sps:$4 sm:$0xff]   ;;  %v6235_v52 = vld [vmem:[#allocation5 + $0x64] ss:$8 sps:$4 sm:$0xff]  }
  0xfd   :  { %1628 = vmatprep.subr.bf16.mxu0 %v6141_v53  ;;  %1800 = vmatprep.subr.bf16.mxu1 %v6144_v54  ;;  %v6233_v53 = vld [vmem:[#allocation5 + $0x60] ss:$8 sps:$4 sm:$0xff]   ;;  %v6238_v54 = vld [vmem:[#allocation5 + $0x74] ss:$8 sps:$4 sm:$0xff]  }
 0x100   :  { %1629 = vmatpush1.bf16.msra.mxu0 %v6139_v55  ;;  %1801 = vmatpush1.bf16.msra.mxu1 %v6142_v56  ;;  %v6236_v55 = vld [vmem:[#allocation5 + $0x70] ss:$8 sps:$4 sm:$0xff]   ;;  %v6241_v56 = vld [vmem:[#allocation5 + $0x84] ss:$8 sps:$4 sm:$0xff]  }
 0x101   :  { %1630 = vmatprep.subr.bf16.mxu0 %v6147_v57  ;;  %1802 = vmatprep.subr.bf16.mxu1 %v6150_v58  ;;  %v6239_v57 = vld [vmem:[#allocation5 + $0x80] ss:$8 sps:$4 sm:$0xff]   ;;  %v6244_v58 = vld [vmem:[#allocation5 + $0x94] ss:$8 sps:$4 sm:$0xff]  }
 0x104   :  { %1631 = vmatpush1.bf16.msra.mxu0 %v6145_v59  ;;  %1803 = vmatpush1.bf16.msra.mxu1 %v6148_v60  ;;  %v6242_v59 = vld [vmem:[#allocation5 + $0x90] ss:$8 sps:$4 sm:$0xff]   ;;  %v6247_v60 = vld [vmem:[#allocation5 + $0xa4] ss:$8 sps:$4 sm:$0xff]  }
 0x105   :  { %1632 = vmatprep.subr.bf16.mxu0 %v6153_v61  ;;  %1804 = vmatprep.subr.bf16.mxu1 %v6156_v62  ;;  %v6245_v61 = vld [vmem:[#allocation5 + $0xa0] ss:$8 sps:$4 sm:$0xff]   ;;  %v6250_v62 = vld [vmem:[#allocation5 + $0xb4] ss:$8 sps:$4 sm:$0xff]  }
 0x108   :  { %1633 = vmatpush1.bf16.msra.mxu0 %v6151_v63  ;;  %1805 = vmatpush1.bf16.msra.mxu1 %v6154_v0  ;;  %v6248_v63 = vld [vmem:[#allocation5 + $0xb0] ss:$8 sps:$4 sm:$0xff]   ;;  %v6253_v0 = vld [vmem:[#allocation5 + $0xc4] ss:$8 sps:$4 sm:$0xff]  }
 0x109   :  { %1634 = vmatprep.subr.bf16.mxu0 %v6159_v1  ;;  %1806 = vmatprep.subr.bf16.mxu1 %v6162_v2  ;;  %v6251_v1 = vld [vmem:[#allocation5 + $0xc0] ss:$8 sps:$4 sm:$0xff]   ;;  %v6256_v2 = vld [vmem:[#allocation5 + $0xd4] ss:$8 sps:$4 sm:$0xff]  }
 0x10c   :  { %1635 = vmatpush1.bf16.msra.mxu0 %v6157_v3  ;;  %1807 = vmatpush1.bf16.msra.mxu1 %v6160_v4  ;;  %v6254_v3 = vld [vmem:[#allocation5 + $0xd0] ss:$8 sps:$4 sm:$0xff]   ;;  %v6259_v4 = vld [vmem:[#allocation5 + $0xe4] ss:$8 sps:$4 sm:$0xff]  }
 0x10d   :  { %1647 = vmatprep.subr.bf16.mxu0 %v6168_v5  ;;  %1819 = vmatprep.subr.bf16.mxu1 %v6171_v6  ;;  %v6257_v5 = vld [vmem:[#allocation5 + $0xe0] ss:$8 sps:$4 sm:$0xff]   ;;  %v6262_v6 = vld [vmem:[#allocation5 + $0xf4] ss:$8 sps:$4 sm:$0xff]  }
 0x10f   :  { %1637 = vmatmul.mubr.bf16.vlgmr.msra.gmra.mrb[0].mxu0 %v6163_v7  ;;  %1809 = vmatmul.mubr.bf16.vlgmr.msra.gmra.mrb[0].mxu1 %v6163_v7  ;;  %v6260_v7 = vld [vmem:[#allocation5 + $0xf0] ss:$8 sps:$4 sm:$0xff]  }
 0x110   :  { %1648 = vmatpush1.bf16.msra.mxu0 %v6166_v8  ;;  %1820 = vmatpush1.bf16.msra.mxu1 %v6169_v9  ;;  %v6265_v8 = vld [vmem:[#allocation5 + $0x104] ss:$8 sps:$4 sm:$0xff]  }
 0x111   :  { %1649 = vmatprep.subr.bf16.mxu0 %v6174_v10  ;;  %1821 = vmatprep.subr.bf16.mxu1 %v6177_v11  ;;  %v6311_v9 = vld [vmem:[%s7373_s6 + $0x40] sm:$0xff]   ;;  %v6313_v11 = vld [vmem:[%s7373_s6 + $0x48] sm:$0xff]  }
 0x112   :  { %1679 = vmatprep.mubr.bf16.mxu0 %v6983_v18  ;;  %1851 = vmatprep.mubr.bf16.mxu1 %v6983_v18  ;;  %v6312_v10 = vld [vmem:[%s7373_s6] sm:$0xff]  }
 0x114   :  { %1650 = vmatpush1.bf16.msra.mxu0 %v6172_v12  ;;  %1822 = vmatpush1.bf16.msra.mxu1 %v6175_v13  ;;  %v6314_v12 = vld [vmem:[%s7373_s6 + $0x8] sm:$0xff]   ;;  %v6315_v13 = vld [vmem:[%s7373_s6 + $0x50] sm:$0xff]  }
 0x115   :  { %1651 = vmatprep.subr.bf16.mxu0 %v6180_v14  ;;  %1823 = vmatprep.subr.bf16.mxu1 %v6183_v15  ;;  %v6316_v14 = vld [vmem:[%s7373_s6 + $0x10] sm:$0xff]   ;;  %v6317_v15 = vld [vmem:[%s7373_s6 + $0x58] sm:$0xff]  }
 0x118   :  { %1652 = vmatpush1.bf16.msra.mxu0 %v6178_v16  ;;  %1824 = vmatpush1.bf16.msra.mxu1 %v6181_v17  ;;  %v6318_v16 = vld [vmem:[%s7373_s6 + $0x18] sm:$0xff]   ;;  %v6319_v17 = vld [vmem:[%s7373_s6 + $0x60] sm:$0xff]  }
 0x119   :  { %1653 = vmatprep.subr.bf16.mxu0 %v6186_v19  ;;  %1825 = vmatprep.subr.bf16.mxu1 %v6189_v20  ;;  %v6320_v19 = vld [vmem:[%s7373_s6 + $0x20] sm:$0xff]   ;;  %v6321_v20 = vld [vmem:[%s7373_s6 + $0x68] sm:$0xff]  }
 0x11c   :  { %1654 = vmatpush1.bf16.msra.mxu0 %v6184_v21  ;;  %1826 = vmatpush1.bf16.msra.mxu1 %v6187_v22  ;;  %v342_v21 = vlaneseq }
 0x11d   :  { %1655 = vmatprep.subr.bf16.mxu0 %v6192_v23  ;;  %1827 = vmatprep.subr.bf16.mxu1 %v6195_v24 }
 0x11e   :  { %v7189_v22 = vshrl.u32 %v342_v21, 7  ;;  %v6299_v21 = vld [vmem:[#allocation5 + $0x1c0] ss:$8 sps:$4 sm:$0xff]  }
 0x120   :  { %1656 = vmatpush1.bf16.msra.mxu0 %v6190_v25  ;;  %1828 = vmatpush1.bf16.msra.mxu1 %v6193_v26  ;;  %v7192_v23 = vsub.s32 0, %v7189_v22  ;;  %v7195_v24 = vsub.s32 2, %v7189_v22  ;;  %v340_v25 = vld [vmem:[%s7370_s3] sm:$0xf]  ;;  %v7201_v26 = vsub.s32 1, %v7189_v22 }
 0x121   :  { %1657 = vmatprep.subr.bf16.mxu0 %v6198_v27  ;;  %1829 = vmatprep.subr.bf16.mxu1 %v6201_v28  ;;  %v7204_v27 = vsub.s32 3, %v7189_v22 }
 0x122   :  { %v345_v28 = vrot.slane %v340_v25, %v7192_v23 }
 0x124   :  { %1658 = vmatpush1.bf16.msra.mxu0 %v6196_v29  ;;  %1830 = vmatpush1.bf16.msra.mxu1 %v6199_v30  ;;  %v353_v29 = vrot.slane %v340_v25, %v7195_v24  ;;  %v349_v30 = vrot.slane %v340_v25, %v7201_v26 }
 0x125   :  { %1659 = vmatprep.subr.bf16.mxu0 %v6204_v31  ;;  %1831 = vmatprep.subr.bf16.mxu1 %v6207_v32  ;;  %v357_v31 = vrot.slane %v340_v25, %v7204_v27  ;;  %v6304_v25 = vld [vmem:[#allocation5 + $0x1d4] ss:$8 sps:$4 sm:$0xff]  }
 0x128   :  { %1660 = vmatpush1.bf16.msra.mxu0 %v6202_v33  ;;  %1832 = vmatpush1.bf16.msra.mxu1 %v6205_v34 }
 0x129   :  { %1661 = vmatprep.subr.bf16.mxu0 %v6210_v35  ;;  %1833 = vmatprep.subr.bf16.mxu1 %v6213_v36 }
 0x12c   :  { %1662 = vmatpush1.bf16.msra.mxu0 %v6208_v37  ;;  %1834 = vmatpush1.bf16.msra.mxu1 %v6211_v38 }
 0x12d   :  { %2270 = vmatprep.subr.bf16.mxu0 %v6217_v39  ;;  %5722 = vmatprep.subr.bf16.mxu1 %v6311_v9  ;;  %v6286_v9 = vld [vmem:[#allocation5 + $0x174] ss:$8 sps:$4 sm:$0xff]  }
 0x12f   :  { %1680 = vmatmul.mubr.bf16.vlgmr.msra.gmra.mrb[0].mxu0 %v6214_v40  ;;  %1852 = vmatmul.mubr.bf16.vlgmr.msra.gmra.mrb[0].mxu1 %v6214_v40 }
 0x130   :  { %2271 = vmatpush1.bf16.msra.mxu0 %v6215_v41  ;;  %5723 = vmatpush3.bf16.msra.mxu1 %v6312_v10  ;;  %v6284_v10 = vld [vmem:[#allocation5 + $0x170] ss:$8 sps:$4 sm:$0xff]  }
 0x131   :  { %2272 = vmatprep.subr.bf16.mxu0 %v6220_v42  ;;  %5724 = vmatprep.subr.bf16.mxu1 %v6313_v11  ;;  %v6289_v11 = vld [vmem:[#allocation5 + $0x184] ss:$8 sps:$4 sm:$0xff]  }
 0x134   :  { %2273 = vmatpush1.bf16.msra.mxu0 %v6218_v43  ;;  %5725 = vmatpush3.bf16.msra.mxu1 %v6314_v12  ;;  %v6287_v12 = vld [vmem:[#allocation5 + $0x180] ss:$8 sps:$4 sm:$0xff]  }
 0x135   :  { %2274 = vmatprep.subr.bf16.mxu0 %v6223_v44  ;;  %5726 = vmatprep.subr.bf16.mxu1 %v6315_v13  ;;  %v6292_v13 = vld [vmem:[#allocation5 + $0x194] ss:$8 sps:$4 sm:$0xff]  }
 0x138   :  { %2275 = vmatpush1.bf16.msra.mxu0 %v6221_v45  ;;  %5727 = vmatpush3.bf16.msra.mxu1 %v6316_v14  ;;  %v6290_v14 = vld [vmem:[#allocation5 + $0x190] ss:$8 sps:$4 sm:$0xff]  }
 0x139   :  { %2276 = vmatprep.subr.bf16.mxu0 %v6226_v46  ;;  %5728 = vmatprep.subr.bf16.mxu1 %v6317_v15  ;;  %v6295_v15 = vld [vmem:[#allocation5 + $0x1a4] ss:$8 sps:$4 sm:$0xff]  }
 0x13c   :  { %2277 = vmatpush1.bf16.msra.mxu0 %v6224_v47  ;;  %5729 = vmatpush3.bf16.msra.mxu1 %v6318_v16  ;;  %v6293_v16 = vld [vmem:[#allocation5 + $0x1a0] ss:$8 sps:$4 sm:$0xff]  }
 0x13d   :  { %2278 = vmatprep.subr.bf16.mxu0 %v6229_v48  ;;  %5730 = vmatprep.subr.bf16.mxu1 %v6319_v17  ;;  %v6298_v17 = vld [vmem:[#allocation5 + $0x1b4] ss:$8 sps:$4 sm:$0xff]  }
 0x140   :  { %2279 = vmatpush1.bf16.msra.mxu0 %v6227_v49  ;;  %5731 = vmatpush3.bf16.msra.mxu1 %v6320_v19  ;;  %v6296_v19 = vld [vmem:[#allocation5 + $0x1b0] ss:$8 sps:$4 sm:$0xff]  }
 0x141   :  { %2280 = vmatprep.subr.bf16.mxu0 %v6232_v50  ;;  %5732 = vmatprep.subr.bf16.mxu1 %v6321_v20  ;;  %v6301_v20 = vld [vmem:[#allocation5 + $0x1c4] ss:$8 sps:$4 sm:$0xff]  }
 0x144   :  { %2281 = vmatpush1.bf16.msra.mxu0 %v6230_v51 }
 0x145   :  { %2282 = vmatprep.subr.bf16.mxu0 %v6235_v52 }
 0x148   :  { %2283 = vmatpush1.bf16.msra.mxu0 %v6233_v53 }
 0x149   :  { %2284 = vmatprep.subr.bf16.mxu0 %v6238_v54 }
 0x14c   :  { %2285 = vmatpush1.bf16.msra.mxu0 %v6236_v55 }
 0x14d   :  { %2286 = vmatprep.subr.bf16.mxu0 %v6241_v56 }
 0x150   :  { %2287 = vmatpush1.bf16.msra.mxu0 %v6239_v57 }
 0x151   :  { %2288 = vmatprep.subr.bf16.mxu0 %v6244_v58 }
 0x154   :  { %2289 = vmatpush1.bf16.msra.mxu0 %v6242_v59 }
 0x155   :  { %2290 = vmatprep.subr.bf16.mxu0 %v6247_v60  ;;  %v6263_v60 = vld [vmem:[#allocation5 + $0x100] ss:$8 sps:$4 sm:$0xff]  }
 0x158   :  { %2291 = vmatpush1.bf16.msra.mxu0 %v6245_v61  ;;  %v6268_v61 = vld [vmem:[#allocation5 + $0x114] ss:$8 sps:$4 sm:$0xff]  }
 0x159   :  { %2292 = vmatprep.subr.bf16.mxu0 %v6250_v62  ;;  %v6266_v62 = vld [vmem:[#allocation5 + $0x110] ss:$8 sps:$4 sm:$0xff]  }
 0x15c   :  { %2293 = vmatpush1.bf16.msra.mxu0 %v6248_v63  ;;  %v6271_v63 = vld [vmem:[#allocation5 + $0x124] ss:$8 sps:$4 sm:$0xff]  }
 0x15d   :  { %2294 = vmatprep.subr.bf16.mxu0 %v6253_v0  ;;  %v6269_v0 = vld [vmem:[#allocation5 + $0x120] ss:$8 sps:$4 sm:$0xff]  }
 0x160   :  { %2295 = vmatpush1.bf16.msra.mxu0 %v6251_v1  ;;  %v6274_v1 = vld [vmem:[#allocation5 + $0x134] ss:$8 sps:$4 sm:$0xff]  }
 0x161   :  { %2296 = vmatprep.subr.bf16.mxu0 %v6256_v2  ;;  %v6272_v2 = vld [vmem:[#allocation5 + $0x130] ss:$8 sps:$4 sm:$0xff]  }
 0x164   :  { %2297 = vmatpush1.bf16.msra.mxu0 %v6254_v3  ;;  %v6277_v3 = vld [vmem:[#allocation5 + $0x144] ss:$8 sps:$4 sm:$0xff]  }
 0x165   :  { %2298 = vmatprep.subr.bf16.mxu0 %v6259_v4  ;;  %v6275_v4 = vld [vmem:[#allocation5 + $0x140] ss:$8 sps:$4 sm:$0xff]  }
 0x168   :  { %2299 = vmatpush1.bf16.msra.mxu0 %v6257_v5  ;;  %v6280_v5 = vld [vmem:[#allocation5 + $0x154] ss:$8 sps:$4 sm:$0xff]  }
 0x169   :  { %2300 = vmatprep.subr.bf16.mxu0 %v6262_v6  ;;  %v6278_v6 = vld [vmem:[#allocation5 + $0x150] ss:$8 sps:$4 sm:$0xff]  }
 0x16c   :  { %2301 = vmatpush1.bf16.msra.mxu0 %v6260_v7  ;;  %v6283_v7 = vld [vmem:[#allocation5 + $0x164] ss:$8 sps:$4 sm:$0xff]  }
 0x16d   :  { %2313 = vmatprep.subr.bf16.mxu0 %v6265_v8  ;;  %v6281_v8 = vld [vmem:[#allocation5 + $0x160] ss:$8 sps:$4 sm:$0xff]  }
 0x202   :  { %v1681_v32 = vpop.f32.mrb[0].mxu0  ;;  %v1853_v33 = vpop.f32.mrb[0].mxu1 }
 0x203   :  { %v5788_v34 = vadd.f32 %v1681_v32, %v345_v28  ;;  %v5792_v35 = vadd.f32 %v1853_v33, %v353_v29  ;;  %v1683_v36 = vpop.f32.mrb[1].mxu0  ;;  %v1855_v37 = vpop.f32.mrb[1].mxu1  ;;  %v6308_v32 = vld [vmem:[#allocation5 + $0x1f0] ss:$8 sps:$4 sm:$0xff]   ;;  %v6322_v33 = vld [vmem:[%s7373_s6 + $0x28] sm:$0xff]  }
 0x204   :  { %v5789_v38 = vadd.f32 %v1683_v36, %v349_v30  ;;  %v5793_v39 = vadd.f32 %v1855_v37, %v357_v31  ;;  %v1685_v40 = vpop.f32.mrb[2].mxu0  ;;  %v1857_v41 = vpop.f32.mrb[2].mxu1  ;;  %5733 = vmatpush3.bf16.msra.mxu1 %v6322_v33  ;;  %v6325_v36 = vld [vmem:[%s7373_s6 + $0x78] sm:$0xff]   ;;  %v6339_v33 = vld [vmem:[#allocation7 + $0x40] ss:$16 sps:$4 sm:$0xff]  }
 0x205   :  { %v5790_v42 = vadd.f32 %v1685_v40, %v345_v28  ;;  %v5794_v43 = vadd.f32 %v1857_v41, %v353_v29  ;;  %v1687_v44 = vpop.f32.mrb[3].mxu0  ;;  %v1859_v45 = vpop.f32.mrb[3].mxu1  ;;  %v1862_v48 = vmax.f32 %v5788_v34, 0.0  ;;  %v1864_v49 = vmax.f32 %v5792_v35, 0.0  ;;  %v6302_v28 = vld [vmem:[#allocation5 + $0x1d0] ss:$8 sps:$4 sm:$0xff]  }
 0x206   :  { %v5791_v46 = vadd.f32 %v1687_v44, %v349_v30  ;;  %v5795_v47 = vadd.f32 %v1859_v45, %v357_v31  ;;  %v1863_v52 = vmax.f32 %v5789_v38, 0.0  ;;  %v1865_v53 = vmax.f32 %v5793_v39, 0.0  ;;  %v6307_v29 = vld [vmem:[#allocation5 + $0x1e4] ss:$8 sps:$4 sm:$0xff]   ;;  %v6305_v30 = vld [vmem:[#allocation5 + $0x1e0] ss:$8 sps:$4 sm:$0xff]  }
 0x207   :  { %v1866_v50 = vmax.f32 %v5790_v42, 0.0  ;;  %v1868_v51 = vmax.f32 %v5794_v43, 0.0  ;;  %v6310_v31 = vld [vmem:[#allocation5 + $0x1f4] ss:$8 sps:$4 sm:$0xff]   ;;  %v1938_v38 = vld [vmem:[%s7372_s5] sm:$0x3] }
 0x208   :  { %v1867_v54 = vmax.f32 %v5791_v46, 0.0  ;;  %v1869_v55 = vmax.f32 %v5795_v47, 0.0  ;;  %v6323_v34 = vld [vmem:[%s7373_s6 + $0x70] sm:$0xff]   ;;  %v6326_v37 = vld [vmem:[%s7373_s6 + $0x38] sm:$0xff]   ;;  %v1943_v39 = vrot.slane %v1938_v38, %v7192_v23  ;;  %v1947_v40 = vrot.slane %v1938_v38, %v7201_v26 }
 0x209   :  { %v1870_v56 = vpack.c.bf16 %v1866_v50, %v1862_v48  ;;  %v7210_v57 = vpack.c.bf16 %v1868_v51, %v1864_v49  ;;  %v6324_v35 = vld [vmem:[%s7373_s6 + $0x30] sm:$0xff]   ;;  %5734 = vmatprep.subr.bf16.mxu1 %v6323_v34 }
 0x20a   :  { %v1871_v58 = vpack.c.bf16 %v1867_v54, %v1863_v52  ;;  %v1873_v59 = vpack.c.bf16 %v1869_v55, %v1865_v53  ;;  %5735 = vmatpush3.bf16.msra.mxu1 %v6324_v35  ;;  %v6344_v34 = vld [vmem:[#allocation7 + $0x64] ss:$16 sps:$4 sm:$0xff]   ;;  %v6342_v35 = vld [vmem:[#allocation7 + $0x60] ss:$16 sps:$4 sm:$0xff]  }
 0x20b   :  { %5736 = vmatprep.subr.bf16.mxu1 %v6325_v36  ;;  %v6347_v36 = vld [vmem:[#allocation7 + $0x84] ss:$16 sps:$4 sm:$0xff]  }
 0x20c   :  { %2302 = vmatprep.mubr.bf16.mxu0 %v1871_v58  ;;  %v6350_v38 = vld [vmem:[#allocation7 + $0xa4] ss:$16 sps:$4 sm:$0xff]  }
 0x20d   :  { %2303 = vmatmul.mubr.bf16.vlgmr.msra.gmra.mrb[4].mxu0 %v1870_v56  ;;  %v5396_v56 = vld [vmem:[%s7374_s7] ss:$0 sm:$0xff] }
 0x20e   :  { %2314 = vmatpush1.bf16.msra.mxu0 %v6263_v60  ;;  %2345 = vmatprep.mubr.bf16.mxu0 %v1873_v59 }
 0x20f   :  { %2315 = vmatprep.subr.bf16.mxu0 %v6268_v61  ;;  %5737 = vmatpush3.bf16.msra.mxu1 %v6326_v37  ;;  %v6345_v37 = vld [vmem:[#allocation7 + $0x80] ss:$16 sps:$4 sm:$0xff]  }
 0x212   :  { %2316 = vmatpush1.bf16.msra.mxu0 %v6266_v62 }
 0x213   :  { %2317 = vmatprep.subr.bf16.mxu0 %v6271_v63 }
 0x216   :  { %2318 = vmatpush1.bf16.msra.mxu0 %v6269_v0 }
 0x217   :  { %2319 = vmatprep.subr.bf16.mxu0 %v6274_v1 }
 0x21a   :  { %2320 = vmatpush1.bf16.msra.mxu0 %v6272_v2 }
 0x21b   :  { %2321 = vmatprep.subr.bf16.mxu0 %v6277_v3 }
 0x21e   :  { %2322 = vmatpush1.bf16.msra.mxu0 %v6275_v4  ;;  %v6329_v4 = vld [vmem:[%s7375_s8 + $0x4] ss:$8 sps:$4 sm:$0xff]  }
 0x21f   :  { %2323 = vmatprep.subr.bf16.mxu0 %v6280_v5  ;;  %v6327_v5 = vld [vmem:[%s7375_s8] ss:$8 sps:$4 sm:$0xff]   ;;  %2603 = vmatprep.subr.bf16.mxu1 %v6329_v4 }
 0x220   :  { %v6455_v4 = vld [vmem:[#allocation8 + $0xe4] ss:$28 sps:$4 sm:$0xff]  }
 0x222   :  { %2324 = vmatpush1.bf16.msra.mxu0 %v6278_v6 }
 0x223   :  { %2325 = vmatprep.subr.bf16.mxu0 %v6283_v7  ;;  %v6332_v7 = vld [vmem:[%s7375_s8 + $0x14] ss:$8 sps:$4 sm:$0xff]  }
 0x226   :  { %2326 = vmatpush1.bf16.msra.mxu0 %v6281_v8  ;;  %v6330_v8 = vld [vmem:[%s7375_s8 + $0x10] ss:$8 sps:$4 sm:$0xff]  }
 0x227   :  { %2327 = vmatprep.subr.bf16.mxu0 %v6286_v9  ;;  %v6335_v9 = vld [vmem:[#allocation7 + $0x4] ss:$16 sps:$4 sm:$0xff]  }
 0x22a   :  { %2328 = vmatpush1.bf16.msra.mxu0 %v6284_v10 }
 0x22b   :  { %2329 = vmatprep.subr.bf16.mxu0 %v6289_v11 }
 0x22e   :  { %2330 = vmatpush1.bf16.msra.mxu0 %v6287_v12 }
 0x22f   :  { %2331 = vmatprep.subr.bf16.mxu0 %v6292_v13 }
 0x232   :  { %2332 = vmatpush1.bf16.msra.mxu0 %v6290_v14  ;;  %v2542_v14 = vld [vmem:[%s7368_s1] sm:$0xff] }
 0x233   :  { %2333 = vmatprep.subr.bf16.mxu0 %v6295_v15 }
 0x236   :  { %2334 = vmatpush1.bf16.msra.mxu0 %v6293_v16  ;;  %v2543_v16 = vld [vmem:[%s7368_s1 + $0x8] sm:$0xff] }
 0x237   :  { %2335 = vmatprep.subr.bf16.mxu0 %v6298_v17 }
 0x23a   :  { %2336 = vmatpush1.bf16.msra.mxu0 %v6296_v19 }
 0x23b   :  { %2337 = vmatprep.subr.bf16.mxu0 %v6301_v20 }
 0x23e   :  { %2338 = vmatpush1.bf16.msra.mxu0 %v6299_v21 }
 0x23f   :  { %2339 = vmatprep.subr.bf16.mxu0 %v6304_v25 }
 0x242   :  { %2340 = vmatpush1.bf16.msra.mxu0 %v6302_v28  ;;  %v6333_v28 = vld [vmem:[#allocation7] ss:$16 sps:$4 sm:$0xff]  }
 0x243   :  { %2341 = vmatprep.subr.bf16.mxu0 %v6307_v29 }
 0x246   :  { %2342 = vmatpush1.bf16.msra.mxu0 %v6305_v30  ;;  %v6338_v30 = vld [vmem:[#allocation7 + $0x24] ss:$16 sps:$4 sm:$0xff]  }
 0x247   :  { %2343 = vmatprep.subr.bf16.mxu0 %v6310_v31  ;;  %v6336_v31 = vld [vmem:[#allocation7 + $0x20] ss:$16 sps:$4 sm:$0xff]  }
 0x24a   :  { %2344 = vmatpush1.bf16.msra.mxu0 %v6308_v32  ;;  %v6341_v32 = vld [vmem:[#allocation7 + $0x44] ss:$16 sps:$4 sm:$0xff]  }
 0x24d   :  { %2346 = vmatmul.mubr.bf16.vlgmr.msra.gmra.mrb[4].mxu0 %v7210_v57 }
 0x320   :  { %v2347_v41 = vpop.f32.mrb[4].mxu0 }
 0x321   :  { %v5796_v42 = vadd.f32 %v2347_v41, %v1943_v39  ;;  %v2349_v43 = vpop.f32.mrb[5].mxu0  ;;  %v6351_v41 = vld [vmem:[#allocation7 + $0xc0] ss:$16 sps:$4 sm:$0xff]  }
 0x322   :  { %v5797_v44 = vadd.f32 %v2349_v43, %v1947_v40  ;;  %v2351_v45 = vpop.f32.mrb[6].mxu0  ;;  %v6354_v43 = vld [vmem:[#allocation7 + $0xe0] ss:$16 sps:$4 sm:$0xff]  }
 0x323   :  { %v5798_v46 = vadd.f32 %v2351_v45, %v1943_v39  ;;  %v2353_v47 = vpop.f32.mrb[7].mxu0  ;;  %v2356_v49 = vmax.f32 %v5796_v42, 0.0  ;;  %v6348_v39 = vld [vmem:[#allocation7 + $0xa0] ss:$16 sps:$4 sm:$0xff]   ;;  %v6356_v42 = vld [vmem:[#allocation7 + $0xe4] ss:$16 sps:$4 sm:$0xff]  }
 0x324   :  { %v5799_v48 = vadd.f32 %v2353_v47, %v1947_v40  ;;  %v2357_v51 = vmax.f32 %v5797_v44, 0.0  ;;  %v6353_v40 = vld [vmem:[#allocation7 + $0xc4] ss:$16 sps:$4 sm:$0xff]   ;;  %v6357_v45 = vld [vmem:[#allocation7 + $0x100] ss:$16 sps:$4 sm:$0xff]  }
 0x325   :  { %v2358_v50 = vmax.f32 %v5798_v46, 0.0  ;;  %v6359_v44 = vld [vmem:[#allocation7 + $0x104] ss:$16 sps:$4 sm:$0xff]   ;;  %v6360_v47 = vld [vmem:[#allocation7 + $0x120] ss:$16 sps:$4 sm:$0xff]  }
 0x326   :  { %v2359_v52 = vmax.f32 %v5799_v48, 0.0  ;;  %v6362_v46 = vld [vmem:[#allocation7 + $0x124] ss:$16 sps:$4 sm:$0xff]  }
 0x327   :  { %v2360_v53 = vpack.c.bf16 %v2358_v50, %v2356_v49  ;;  %v6365_v48 = vld [vmem:[#allocation7 + $0x144] ss:$16 sps:$4 sm:$0xff]   ;;  %v6363_v49 = vld [vmem:[#allocation7 + $0x140] ss:$16 sps:$4 sm:$0xff]  }
 0x328   :  { %v2361_v54 = vpack.c.bf16 %v2359_v52, %v2357_v51  ;;  %v6368_v50 = vld [vmem:[#allocation7 + $0x164] ss:$16 sps:$4 sm:$0xff]   ;;  %v6366_v51 = vld [vmem:[#allocation7 + $0x160] ss:$16 sps:$4 sm:$0xff]  }
 0x329   :  { %v6371_v52 = vld [vmem:[#allocation7 + $0x184] ss:$16 sps:$4 sm:$0xff]  }
 0x32a   :  { %2529 = vmatprep.mubr.bf16.mxu1 %v2361_v54  ;;  %v6374_v54 = vld [vmem:[#allocation7 + $0x1a4] ss:$16 sps:$4 sm:$0xff]  }
 0x32b   :  { %2530 = vmatmul.mubr.bf16.vlgmr.msra.gmra.mrb[4].mxu1 %v2360_v53  ;;  %v6369_v53 = vld [vmem:[#allocation7 + $0x180] ss:$16 sps:$4 sm:$0xff]  }
 0x32c   :  { %2635 = vmatprep.mubr.bf16.mxu1 %v6983_v18  ;;  %2604 = vmatpush1.bf16.msra.mxu1 %v6327_v5  ;;  %v6453_v5 = vld [vmem:[#allocation8 + $0xe0] ss:$28 sps:$4 sm:$0xff]  }
 0x32d   :  { %2605 = vmatprep.subr.bf16.mxu1 %v6332_v7  ;;  %v6459_v7 = vld [vmem:[#allocation8 + $0x118] ss:$28 sps:$4 sm:$0xff]  }
 0x330   :  { %2606 = vmatpush1.bf16.msra.mxu1 %v6330_v8  ;;  %v6467_v8 = vld [vmem:[#allocation8 + $0x154] ss:$28 sps:$4 sm:$0xff]  }
 0x331   :  { %3058 = vmatprep.subr.bf16.mxu1 %v6335_v9  ;;  %v6465_v9 = vld [vmem:[#allocation8 + $0x150] ss:$28 sps:$4 sm:$0xff]  }
 0x3fe   :  { %v5738_v55 = vpop.f32.mrb[4].mxu1 }
 0x3ff   :  { %v5739_v57 = vpop.f32.mrb[5].mxu1 }
 0x400   :  { %v5740_v58 = vadd.f32 %v5739_v57, %v5738_v55  ;;  %v5741_v59 = vpop.f32.mrb[6].mxu1  ;;  %v6372_v55 = vld [vmem:[#allocation7 + $0x1a0] ss:$16 sps:$4 sm:$0xff]  }
 0x401   :  { %v5742_v60 = vpop.f32.mrb[7].mxu1  ;;  %v6375_v57 = vld [vmem:[#allocation7 + $0x1c0] ss:$16 sps:$4 sm:$0xff]  }
 0x402   :  { %v2532_v61 = vadd.f32 %v5740_v58, %v5396_v56  ;;  %v5743_v62 = vadd.f32 %v5742_v60, %v5741_v59  ;;  %v6380_v58 = vld [vmem:[#allocation7 + $0x1e4] ss:$16 sps:$4 sm:$0xff]   ;;  %v6378_v59 = vld [vmem:[#allocation7 + $0x1e0] ss:$16 sps:$4 sm:$0xff]   ;;  %v6383_v60 = vld [vmem:[#allocation7 + $0xc] ss:$16 sps:$4 sm:$0xff]  }
 0x404   :  { %v2535_v63 = vadd.f32 %v5743_v62, %v5396_v56  ;;  %v5413_v0 = vclamps-f32 %v2532_v61, 10.0  ;;  %5039 = vst.msk [vmem:[#allocation11] sm:$0xff] %vm2599_vm0, %v2532_v61  ;;  %v6377_v56 = vld [vmem:[#allocation7 + $0x1c4] ss:$16 sps:$4 sm:$0xff]  }
 0x405   :  { %v6431_v62 = vld [vmem:[#allocation8 + $0x4] ss:$28 sps:$4 sm:$0xff]  }
 0x406   :  { %5043 = vrot.lane.b32.xlu1 %v5413_v0, %s6984_s17  ;;  %v2544_v1 = vmul.f32 0.5, %v5413_v0  ;;  %v5414_v18 = vclamps-f32 %v2535_v63, 10.0  ;;  %5040 = vst.msk [vmem:[#allocation11 + $0x8] sm:$0xff] %vm2599_vm0, %v2535_v63  ;;  %4601 = vmatprep.subr.bf16.mxu0 %v6431_v62  ;;  %v6435_v0 = vld [vmem:[#allocation8 + $0x38] ss:$28 sps:$4 sm:$0xff]  }
 0x407   :  { %v6407_v62 = vld [vmem:[#allocation7 + $0x10c] ss:$16 sps:$4 sm:$0xff]  }
 0x408   :  { %v2546_v2 = vmul.f32 1.442695, %v2544_v1  ;;  %v2545_v3 = vmul.f32 0.5, %v5414_v18  ;;  %v6443_v1 = vld [vmem:[#allocation8 + $0x74] ss:$28 sps:$4 sm:$0xff]  }
 0x40a   :  { %6749 = vpow2.f32 %v2546_v2  ;;  %v2548_v6 = vmul.f32 1.442695, %v2545_v3  ;;  %5045 = vrot.lane.b32.xlu1 %v5414_v18, %s6984_s17  ;;  %v6441_v18 = vld [vmem:[#allocation8 + $0x70] ss:$28 sps:$4 sm:$0xff]   ;;  %v6447_v3 = vld [vmem:[#allocation8 + $0xa8] ss:$28 sps:$4 sm:$0xff]  }
 0x40b   :  { %v6449_v2 = vld [vmem:[#allocation8 + $0xac] ss:$28 sps:$4 sm:$0xff]  }
 0x40c   :  { %6751 = vpow2.f32 %v2548_v6  ;;  %v6461_v6 = vld [vmem:[#allocation8 + $0x11c] ss:$28 sps:$4 sm:$0xff]  }
 0x414   :  { %v6750_v10 = vpop.eup %6749 }
 0x415   :  { %2552 = vrot.lane.b32.xlu0 %v6750_v10, %s6984_s17  ;;  %v6473_v10 = vld [vmem:[#allocation8 + $0x18c] ss:$28 sps:$4 sm:$0xff]  }
 0x416   :  { %v6752_v11 = vpop.eup %6751 }
 0x419   :  { %2554 = vrot.lane.b32.xlu0 %v6752_v11, %s6984_s17  ;;  %v6471_v11 = vld [vmem:[#allocation8 + $0x188] ss:$28 sps:$4 sm:$0xff]  }
 0x478   :  { %v5044_v12 = vpop.permute.xlu1 %5043 }
 0x479   :  { %5049 = vst.msk [vmem:[#allocation13] sm:$0xff] %vm2599_vm0, %v5044_v12  ;;  %v6479_v12 = vld [vmem:[#allocation8 + $0x1c4] ss:$28 sps:$4 sm:$0xff]  }
 0x47c   :  { %v5046_v13 = vpop.permute.xlu1 %5045 }
 0x47d   :  { %5050 = vst.msk [vmem:[#allocation13 + $0x8] sm:$0xff] %vm2599_vm0, %v5046_v13  ;;  %v6477_v13 = vld [vmem:[#allocation8 + $0x1c0] ss:$28 sps:$4 sm:$0xff]  }
 0x487   :  { %v2553_v15 = vpop.permute.xlu0 %2552 }
 0x488   :  { %v2558_v17 = vmul.f32 %v2553_v15, %v2542_v14  ;;  %v6485_v14 = vld [vmem:[#allocation8 + $0x1fc] ss:$28 sps:$4 sm:$0xff]  }
 0x489   :  { %v6483_v15 = vld [vmem:[#allocation8 + $0x1f8] ss:$28 sps:$4 sm:$0xff]  }
 0x48a   :  { %v2560_v21 = vadd.f32 %v2558_v17, %v2532_v61  ;;  %v6429_v61 = vld [vmem:[#allocation8] ss:$28 sps:$4 sm:$0xff]   ;;  %v6489_v17 = vld [vmem:[#allocation8 + $0x230] ss:$28 sps:$4 sm:$0xff]  }
 0x48b   :  { %v2555_v19 = vpop.permute.xlu0 %2554  ;;  %4602 = vmatpush1.bf16.msra.mxu0 %v6429_v61  ;;  %v6402_v61 = vld [vmem:[#allocation7 + $0xe8] ss:$16 sps:$4 sm:$0xff]  }
 0x48c   :  { %v2559_v20 = vmul.f32 %v2555_v19, %v2543_v16  ;;  %v6491_v16 = vld [vmem:[#allocation8 + $0x234] ss:$28 sps:$4 sm:$0xff]   ;;  %v6497_v19 = vld [vmem:[#allocation8 + $0x26c] ss:$28 sps:$4 sm:$0xff]  }
 0x48e   :  { %v2561_v25 = vadd.f32 %v2559_v20, %v2535_v63  ;;  %v6437_v63 = vld [vmem:[#allocation8 + $0x3c] ss:$28 sps:$4 sm:$0xff]   ;;  %v6495_v20 = vld [vmem:[#allocation8 + $0x268] ss:$28 sps:$4 sm:$0xff]  }
 0x48f   :  { %4603 = vmatprep.subr.bf16.mxu0 %v6437_v63  ;;  %v6405_v63 = vld [vmem:[#allocation7 + $0x108] ss:$16 sps:$4 sm:$0xff]  }
 0x490   :  { %v2562_v29 = vpack.c.bf16 %v2561_v25, %v2560_v21  ;;  %4604 = vmatpush1.bf16.msra.mxu0 %v6435_v0  ;;  %v6503_v21 = vld [vmem:[#allocation8 + $0x2a4] ss:$28 sps:$4 sm:$0xff]   ;;  %v6410_v0 = vld [vmem:[#allocation7 + $0x12c] ss:$16 sps:$4 sm:$0xff]  }
 0x491   :  { %4605 = vmatprep.subr.bf16.mxu0 %v6443_v1  ;;  %v2567_v25 = vld [vmem:[%s7376_s9] sm:$0x3]  ;;  %v6408_v1 = vld [vmem:[#allocation7 + $0x128] ss:$16 sps:$4 sm:$0xff]  }
 0x492   :  { %5419 = vmatmul.mubr.msk.bf16.vlgmr.msra.gmra.mrb[8].mxu1 %vm2599_vm0, %v2562_v29  ;;  %v6509_v29 = vld [vmem:[#allocation8 + $0x2dc] ss:$28 sps:$4 sm:$0xff]  }
 0x493   :  { %3059 = vmatpush1.bf16.msra.mxu1 %v6333_v28  ;;  %v6501_v28 = vld [vmem:[#allocation8 + $0x2a0] ss:$28 sps:$4 sm:$0xff]  }
 0x494   :  { %3060 = vmatprep.subr.bf16.mxu1 %v6338_v30  ;;  %4606 = vmatpush1.bf16.msra.mxu0 %v6441_v18  ;;  %v2572_v30 = vrot.slane %v2567_v25, %v7192_v23  ;;  %v6413_v18 = vld [vmem:[#allocation7 + $0x14c] ss:$16 sps:$4 sm:$0xff]  }
 0x495   :  { %4607 = vmatprep.subr.bf16.mxu0 %v6449_v2  ;;  %v6411_v2 = vld [vmem:[#allocation7 + $0x148] ss:$16 sps:$4 sm:$0xff]  }
 0x497   :  { %3061 = vmatpush1.bf16.msra.mxu1 %v6336_v31  ;;  %v2576_v31 = vrot.slane %v2567_v25, %v7201_v26  ;;  %v6458_v25 = vld [vmem:[#allocation8 + $0xec] ss:$28 sps:$4 sm:$0xff]  }
 0x498   :  { %3062 = vmatprep.subr.bf16.mxu1 %v6341_v32  ;;  %4608 = vmatpush1.bf16.msra.mxu0 %v6447_v3  ;;  %v6507_v32 = vld [vmem:[#allocation8 + $0x2d8] ss:$28 sps:$4 sm:$0xff]   ;;  %v6416_v3 = vld [vmem:[#allocation7 + $0x16c] ss:$16 sps:$4 sm:$0xff]  }
 0x499   :  { %4609 = vmatprep.subr.bf16.mxu0 %v6455_v4  ;;  %v6414_v4 = vld [vmem:[#allocation7 + $0x168] ss:$16 sps:$4 sm:$0xff]  }
 0x49b   :  { %3063 = vmatpush1.bf16.msra.mxu1 %v6339_v33 }
 0x49c   :  { %3064 = vmatprep.subr.bf16.mxu1 %v6344_v34  ;;  %4610 = vmatpush1.bf16.msra.mxu0 %v6453_v5  ;;  %v6419_v5 = vld [vmem:[#allocation7 + $0x18c] ss:$16 sps:$4 sm:$0xff]  }
 0x49d   :  { %4611 = vmatprep.subr.bf16.mxu0 %v6461_v6  ;;  %v6417_v6 = vld [vmem:[#allocation7 + $0x188] ss:$16 sps:$4 sm:$0xff]  }
 0x49f   :  { %3065 = vmatpush1.bf16.msra.mxu1 %v6342_v35 }
 0x4a0   :  { %3066 = vmatprep.subr.bf16.mxu1 %v6347_v36  ;;  %4612 = vmatpush1.bf16.msra.mxu0 %v6459_v7  ;;  %v6422_v7 = vld [vmem:[#allocation7 + $0x1ac] ss:$16 sps:$4 sm:$0xff]  }
 0x4a1   :  { %4613 = vmatprep.subr.bf16.mxu0 %v6467_v8  ;;  %v6420_v8 = vld [vmem:[#allocation7 + $0x1a8] ss:$16 sps:$4 sm:$0xff]  }
 0x4a3   :  { %3067 = vmatpush1.bf16.msra.mxu1 %v6345_v37 }
 0x4a4   :  { %3068 = vmatprep.subr.bf16.mxu1 %v6350_v38  ;;  %4614 = vmatpush1.bf16.msra.mxu0 %v6465_v9  ;;  %v6425_v9 = vld [vmem:[#allocation7 + $0x1cc] ss:$16 sps:$4 sm:$0xff]  }
 0x4a5   :  { %4615 = vmatprep.subr.bf16.mxu0 %v6473_v10  ;;  %v6423_v10 = vld [vmem:[#allocation7 + $0x1c8] ss:$16 sps:$4 sm:$0xff]  }
 0x4a7   :  { %3069 = vmatpush1.bf16.msra.mxu1 %v6348_v39 }
 0x4a8   :  { %3070 = vmatprep.subr.bf16.mxu1 %v6353_v40  ;;  %4616 = vmatpush1.bf16.msra.mxu0 %v6471_v11  ;;  %v6428_v11 = vld [vmem:[#allocation7 + $0x1ec] ss:$16 sps:$4 sm:$0xff]  }
 0x4a9   :  { %4617 = vmatprep.subr.bf16.mxu0 %v6479_v12  ;;  %v6426_v12 = vld [vmem:[#allocation7 + $0x1e8] ss:$16 sps:$4 sm:$0xff]  }
 0x4ab   :  { %3071 = vmatpush1.bf16.msra.mxu1 %v6351_v41 }
 0x4ac   :  { %3072 = vmatprep.subr.bf16.mxu1 %v6356_v42  ;;  %4618 = vmatpush1.bf16.msra.mxu0 %v6477_v13  ;;  %v6434_v13 = vld [vmem:[#allocation8 + $0xc] ss:$28 sps:$4 sm:$0xff]  }
 0x4ad   :  { %4619 = vmatprep.subr.bf16.mxu0 %v6485_v14  ;;  %v6432_v14 = vld [vmem:[#allocation8 + $0x8] ss:$28 sps:$4 sm:$0xff]  }
 0x4af   :  { %3073 = vmatpush1.bf16.msra.mxu1 %v6354_v43 }
 0x4b0   :  { %3074 = vmatprep.subr.bf16.mxu1 %v6359_v44  ;;  %4620 = vmatpush1.bf16.msra.mxu0 %v6483_v15  ;;  %v6440_v15 = vld [vmem:[#allocation8 + $0x44] ss:$28 sps:$4 sm:$0xff]  }
 0x4b1   :  { %4621 = vmatprep.subr.bf16.mxu0 %v6491_v16  ;;  %v6438_v16 = vld [vmem:[#allocation8 + $0x40] ss:$28 sps:$4 sm:$0xff]  }
 0x4b3   :  { %3075 = vmatpush1.bf16.msra.mxu1 %v6357_v45 }
 0x4b4   :  { %3076 = vmatprep.subr.bf16.mxu1 %v6362_v46  ;;  %4622 = vmatpush1.bf16.msra.mxu0 %v6489_v17  ;;  %v6446_v17 = vld [vmem:[#allocation8 + $0x7c] ss:$28 sps:$4 sm:$0xff]  }
 0x4b5   :  { %4623 = vmatprep.subr.bf16.mxu0 %v6497_v19  ;;  %v6444_v19 = vld [vmem:[#allocation8 + $0x78] ss:$28 sps:$4 sm:$0xff]  }
 0x4b7   :  { %3077 = vmatpush1.bf16.msra.mxu1 %v6360_v47  ;;  %v6381_v47 = vld [vmem:[#allocation7 + $0x8] ss:$16 sps:$4 sm:$0xff]  }
 0x4b8   :  { %3078 = vmatprep.subr.bf16.mxu1 %v6365_v48  ;;  %4624 = vmatpush1.bf16.msra.mxu0 %v6495_v20  ;;  %v6386_v48 = vld [vmem:[#allocation7 + $0x2c] ss:$16 sps:$4 sm:$0xff]   ;;  %v6452_v20 = vld [vmem:[#allocation8 + $0xb4] ss:$28 sps:$4 sm:$0xff]  }
 0x4b9   :  { %4625 = vmatprep.subr.bf16.mxu0 %v6503_v21  ;;  %v6450_v21 = vld [vmem:[#allocation8 + $0xb0] ss:$28 sps:$4 sm:$0xff]  }
 0x4bb   :  { %3079 = vmatpush1.bf16.msra.mxu1 %v6363_v49  ;;  %v6384_v49 = vld [vmem:[#allocation7 + $0x28] ss:$16 sps:$4 sm:$0xff]  }
 0x4bc   :  { %3080 = vmatprep.subr.bf16.mxu1 %v6368_v50  ;;  %4626 = vmatpush1.bf16.msra.mxu0 %v6501_v28  ;;  %v6389_v50 = vld [vmem:[#allocation7 + $0x4c] ss:$16 sps:$4 sm:$0xff]   ;;  %v6456_v28 = vld [vmem:[#allocation8 + $0xe8] ss:$28 sps:$4 sm:$0xff]  }
 0x4bd   :  { %4627 = vmatprep.subr.bf16.mxu0 %v6509_v29  ;;  %v6464_v29 = vld [vmem:[#allocation8 + $0x124] ss:$28 sps:$4 sm:$0xff]  }
 0x4bf   :  { %3081 = vmatpush1.bf16.msra.mxu1 %v6366_v51  ;;  %v6387_v51 = vld [vmem:[#allocation7 + $0x48] ss:$16 sps:$4 sm:$0xff]  }
 0x4c0   :  { %3082 = vmatprep.subr.bf16.mxu1 %v6371_v52  ;;  %4628 = vmatpush1.bf16.msra.mxu0 %v6507_v32  ;;  %v6392_v52 = vld [vmem:[#allocation7 + $0x6c] ss:$16 sps:$4 sm:$0xff]   ;;  %v6515_v32 = vld [vmem:[#allocation8 + $0x314] ss:$28 sps:$4 sm:$0xff]  }
 0x4c1   :  { %4629 = vmatprep.subr.bf16.mxu0 %v6515_v32  ;;  %v6552_v32 = vld [vmem:[#allocation8 + $0x468] ss:$28 sps:$4 sm:$0xff]  }
 0x4c3   :  { %3083 = vmatpush1.bf16.msra.mxu1 %v6369_v53  ;;  %v6390_v53 = vld [vmem:[#allocation7 + $0x68] ss:$16 sps:$4 sm:$0xff]  }
 0x4c4   :  { %3084 = vmatprep.subr.bf16.mxu1 %v6374_v54  ;;  %v6395_v54 = vld [vmem:[#allocation7 + $0x8c] ss:$16 sps:$4 sm:$0xff]  }
 0x4c7   :  { %3085 = vmatpush1.bf16.msra.mxu1 %v6372_v55  ;;  %v6393_v55 = vld [vmem:[#allocation7 + $0x88] ss:$16 sps:$4 sm:$0xff]  }
 0x4c8   :  { %3086 = vmatprep.subr.bf16.mxu1 %v6377_v56  ;;  %v6398_v56 = vld [vmem:[#allocation7 + $0xac] ss:$16 sps:$4 sm:$0xff]  }
 0x4cb   :  { %3087 = vmatpush1.bf16.msra.mxu1 %v6375_v57  ;;  %v6396_v57 = vld [vmem:[#allocation7 + $0xa8] ss:$16 sps:$4 sm:$0xff]  }
 0x4cc   :  { %3088 = vmatprep.subr.bf16.mxu1 %v6380_v58  ;;  %v6401_v58 = vld [vmem:[#allocation7 + $0xcc] ss:$16 sps:$4 sm:$0xff]  }
 0x4cf   :  { %3089 = vmatpush1.bf16.msra.mxu1 %v6378_v59  ;;  %v6399_v59 = vld [vmem:[#allocation7 + $0xc8] ss:$16 sps:$4 sm:$0xff]  }
 0x4d0   :  { %3101 = vmatprep.subr.bf16.mxu1 %v6383_v60  ;;  %v6404_v60 = vld [vmem:[#allocation7 + $0xec] ss:$16 sps:$4 sm:$0xff]  }
 0x565   :  { %v2637_v33 = vpop.f32.mrb[8].mxu1 }
 0x566   :  { %v2638_v34 = vadd.f32 %v2637_v33, %v2572_v30  ;;  %v2639_v35 = vpop.f32.mrb[9].mxu1  ;;  %v6468_v33 = vld [vmem:[#allocation8 + $0x158] ss:$28 sps:$4 sm:$0xff]  }
 0x567   :  { %v2640_v36 = vadd.f32 %v2639_v35, %v2576_v31  ;;  %v2641_v37 = vpop.f32.mrb[10].mxu1  ;;  %v6476_v35 = vld [vmem:[#allocation8 + $0x194] ss:$28 sps:$4 sm:$0xff]  }
 0x568   :  { %v2642_v38 = vadd.f32 %v2641_v37, %v2572_v30  ;;  %v2643_v39 = vpop.f32.mrb[11].mxu1  ;;  %v2646_v41 = vmax.f32 %v2638_v34, 0.0  ;;  %v6462_v30 = vld [vmem:[#allocation8 + $0x120] ss:$28 sps:$4 sm:$0xff]   ;;  %v6513_v34 = vld [vmem:[#allocation8 + $0x310] ss:$28 sps:$4 sm:$0xff]  }
 0x569   :  { %v2644_v40 = vadd.f32 %v2643_v39, %v2576_v31  ;;  %v2647_v43 = vmax.f32 %v2640_v36, 0.0  ;;  %v6470_v31 = vld [vmem:[#allocation8 + $0x15c] ss:$28 sps:$4 sm:$0xff]   ;;  %4630 = vmatpush1.bf16.msra.mxu0 %v6513_v34  ;;  %v6521_v36 = vld [vmem:[#allocation8 + $0x34c] ss:$28 sps:$4 sm:$0xff]  }
 0x56a   :  { %v2648_v42 = vmax.f32 %v2642_v38, 0.0  ;;  %v6474_v37 = vld [vmem:[#allocation8 + $0x190] ss:$28 sps:$4 sm:$0xff]   ;;  %v6519_v38 = vld [vmem:[#allocation8 + $0x348] ss:$28 sps:$4 sm:$0xff]   ;;  %4631 = vmatprep.subr.bf16.mxu0 %v6521_v36 }
 0x56b   :  { %v2649_v44 = vmax.f32 %v2644_v40, 0.0  ;;  %v6482_v39 = vld [vmem:[#allocation8 + $0x1cc] ss:$28 sps:$4 sm:$0xff]   ;;  %v6527_v40 = vld [vmem:[#allocation8 + $0x384] ss:$28 sps:$4 sm:$0xff]  }
 0x56c   :  { %v7265_v45 = vpack.c.bf16 %v2648_v42, %v2646_v41  ;;  %v6480_v41 = vld [vmem:[#allocation8 + $0x1c8] ss:$28 sps:$4 sm:$0xff]   ;;  %v6558_v36 = vld [vmem:[#allocation8 + $0x4a0] ss:$28 sps:$4 sm:$0xff]  }
 0x56d   :  { %v2651_v46 = vpack.c.bf16 %v2649_v44, %v2647_v43  ;;  %4632 = vmatpush1.bf16.msra.mxu0 %v6519_v38  ;;  %v6488_v42 = vld [vmem:[#allocation8 + $0x204] ss:$28 sps:$4 sm:$0xff]   ;;  %v6494_v44 = vld [vmem:[#allocation8 + $0x23c] ss:$28 sps:$4 sm:$0xff]  }
 0x56e   :  { %4644 = vmatprep.subr.bf16.mxu0 %v6527_v40  ;;  %v6486_v43 = vld [vmem:[#allocation8 + $0x200] ss:$28 sps:$4 sm:$0xff]   ;;  %v6564_v40 = vld [vmem:[#allocation8 + $0x4d8] ss:$28 sps:$4 sm:$0xff]  }
 0x56f   :  { %3090 = vmatprep.mubr.bf16.mxu1 %v2651_v46  ;;  %v6560_v34 = vld [vmem:[#allocation8 + $0x4a4] ss:$28 sps:$4 sm:$0xff]   ;;  %v6566_v38 = vld [vmem:[#allocation8 + $0x4dc] ss:$28 sps:$4 sm:$0xff]  }
 0x570   :  { %3091 = vmatmul.mubr.bf16.vlgmr.msra.gmra.mrb[12].mxu1 %v7265_v45 }
 0x571   :  { %3102 = vmatpush1.bf16.msra.mxu1 %v6381_v47  ;;  %3133 = vmatprep.mubr.bf16.mxu1 %v2651_v46  ;;  %v6500_v46 = vld [vmem:[#allocation8 + $0x274] ss:$28 sps:$4 sm:$0xff]  }
 0x572   :  { %3103 = vmatprep.subr.bf16.mxu1 %v6386_v48  ;;  %v6498_v47 = vld [vmem:[#allocation8 + $0x270] ss:$28 sps:$4 sm:$0xff]  }
 0x573   :  { %v6506_v48 = vld [vmem:[#allocation8 + $0x2ac] ss:$28 sps:$4 sm:$0xff]  }
 0x575   :  { %3104 = vmatpush1.bf16.msra.mxu1 %v6384_v49  ;;  %v6504_v49 = vld [vmem:[#allocation8 + $0x2a8] ss:$28 sps:$4 sm:$0xff]  }
 0x576   :  { %3105 = vmatprep.subr.bf16.mxu1 %v6389_v50  ;;  %v6512_v50 = vld [vmem:[#allocation8 + $0x2e4] ss:$28 sps:$4 sm:$0xff]  }
 0x579   :  { %3106 = vmatpush1.bf16.msra.mxu1 %v6387_v51  ;;  %v6510_v51 = vld [vmem:[#allocation8 + $0x2e0] ss:$28 sps:$4 sm:$0xff]  }
 0x57a   :  { %3107 = vmatprep.subr.bf16.mxu1 %v6392_v52  ;;  %v6518_v52 = vld [vmem:[#allocation8 + $0x31c] ss:$28 sps:$4 sm:$0xff]  }
 0x57d   :  { %3108 = vmatpush1.bf16.msra.mxu1 %v6390_v53  ;;  %v6516_v53 = vld [vmem:[#allocation8 + $0x318] ss:$28 sps:$4 sm:$0xff]  }
 0x57e   :  { %3109 = vmatprep.subr.bf16.mxu1 %v6395_v54  ;;  %v6524_v54 = vld [vmem:[#allocation8 + $0x354] ss:$28 sps:$4 sm:$0xff]  }
 0x581   :  { %3110 = vmatpush1.bf16.msra.mxu1 %v6393_v55  ;;  %v6522_v55 = vld [vmem:[#allocation8 + $0x350] ss:$28 sps:$4 sm:$0xff]  }
 0x582   :  { %3111 = vmatprep.subr.bf16.mxu1 %v6398_v56  ;;  %v6530_v56 = vld [vmem:[#allocation8 + $0x38c] ss:$28 sps:$4 sm:$0xff]  }
 0x585   :  { %3112 = vmatpush1.bf16.msra.mxu1 %v6396_v57  ;;  %v7272_v57 = vld [vmem:[%s7378_s11] sm:$0xf] }
 0x586   :  { %3113 = vmatprep.subr.bf16.mxu1 %v6401_v58  ;;  %v2721_v58 = vrot.slane %v7272_v57, %v7192_v23 }
 0x589   :  { %3114 = vmatpush1.bf16.msra.mxu1 %v6399_v59  ;;  %v2725_v59 = vrot.slane %v7272_v57, %v7201_v26 }
 0x58a   :  { %3115 = vmatprep.subr.bf16.mxu1 %v6404_v60 }
 0x58d   :  { %3116 = vmatpush1.bf16.msra.mxu1 %v6402_v61 }
 0x58e   :  { %3117 = vmatprep.subr.bf16.mxu1 %v6407_v62 }
 0x591   :  { %3118 = vmatpush1.bf16.msra.mxu1 %v6405_v63 }
 0x592   :  { %3119 = vmatprep.subr.bf16.mxu1 %v6410_v0 }
 0x595   :  { %3120 = vmatpush1.bf16.msra.mxu1 %v6408_v1 }
 0x596   :  { %3121 = vmatprep.subr.bf16.mxu1 %v6413_v18 }
 0x599   :  { %3122 = vmatpush1.bf16.msra.mxu1 %v6411_v2 }
 0x59a   :  { %3123 = vmatprep.subr.bf16.mxu1 %v6416_v3 }
 0x59d   :  { %3124 = vmatpush1.bf16.msra.mxu1 %v6414_v4 }
 0x59e   :  { %3125 = vmatprep.subr.bf16.mxu1 %v6419_v5 }
 0x5a1   :  { %3126 = vmatpush1.bf16.msra.mxu1 %v6417_v6 }
 0x5a2   :  { %3127 = vmatprep.subr.bf16.mxu1 %v6422_v7 }
 0x5a5   :  { %3128 = vmatpush1.bf16.msra.mxu1 %v6420_v8 }
 0x5a6   :  { %3129 = vmatprep.subr.bf16.mxu1 %v6425_v9  ;;  %v6525_v9 = vld [vmem:[#allocation8 + $0x380] ss:$28 sps:$4 sm:$0xff]  }
 0x5a9   :  { %3130 = vmatpush1.bf16.msra.mxu1 %v6423_v10  ;;  %v6528_v10 = vld [vmem:[#allocation8 + $0x388] ss:$28 sps:$4 sm:$0xff]  }
 0x5aa   :  { %3131 = vmatprep.subr.bf16.mxu1 %v6428_v11  ;;  %v6533_v11 = vld [vmem:[#allocation8 + $0x3bc] ss:$28 sps:$4 sm:$0xff]  }
 0x5ad   :  { %3132 = vmatpush1.bf16.msra.mxu1 %v6426_v12  ;;  %v6536_v12 = vld [vmem:[#allocation8 + $0x3c4] ss:$28 sps:$4 sm:$0xff]  }
 0x5ae   :  { %4687 = vmatprep.subr.bf16.mxu1 %v6434_v13  ;;  %v6531_v13 = vld [vmem:[#allocation8 + $0x3b8] ss:$28 sps:$4 sm:$0xff]  }
 0x5b0   :  { %3134 = vmatmul.mubr.bf16.vlgmr.msra.gmra.mrb[16].mxu1 %v7265_v45  ;;  %v6492_v45 = vld [vmem:[#allocation8 + $0x238] ss:$28 sps:$4 sm:$0xff]  }
 0x5b1   :  { %4688 = vmatpush1.bf16.msra.mxu1 %v6432_v14  ;;  %v6534_v14 = vld [vmem:[#allocation8 + $0x3c0] ss:$28 sps:$4 sm:$0xff]  }
 0x5b2   :  { %4689 = vmatprep.subr.bf16.mxu1 %v6440_v15  ;;  %v6539_v15 = vld [vmem:[#allocation8 + $0x3f4] ss:$28 sps:$4 sm:$0xff]  }
 0x5b5   :  { %4690 = vmatpush1.bf16.msra.mxu1 %v6438_v16  ;;  %v6542_v16 = vld [vmem:[#allocation8 + $0x3fc] ss:$28 sps:$4 sm:$0xff]  }
 0x5b6   :  { %4691 = vmatprep.subr.bf16.mxu1 %v6446_v17  ;;  %v6537_v17 = vld [vmem:[#allocation8 + $0x3f0] ss:$28 sps:$4 sm:$0xff]  }
 0x5b9   :  { %4692 = vmatpush1.bf16.msra.mxu1 %v6444_v19  ;;  %v6540_v19 = vld [vmem:[#allocation8 + $0x3f8] ss:$28 sps:$4 sm:$0xff]  }
 0x5ba   :  { %4693 = vmatprep.subr.bf16.mxu1 %v6452_v20  ;;  %v6545_v20 = vld [vmem:[#allocation8 + $0x42c] ss:$28 sps:$4 sm:$0xff]  }
 0x5bd   :  { %4694 = vmatpush1.bf16.msra.mxu1 %v6450_v21  ;;  %v6548_v21 = vld [vmem:[#allocation8 + $0x434] ss:$28 sps:$4 sm:$0xff]  }
 0x5be   :  { %4695 = vmatprep.subr.bf16.mxu1 %v6458_v25  ;;  %v6543_v25 = vld [vmem:[#allocation8 + $0x428] ss:$28 sps:$4 sm:$0xff]  }
 0x5c1   :  { %4696 = vmatpush1.bf16.msra.mxu1 %v6456_v28  ;;  %v6546_v28 = vld [vmem:[#allocation8 + $0x430] ss:$28 sps:$4 sm:$0xff]  }
 0x5c2   :  { %4697 = vmatprep.subr.bf16.mxu1 %v6464_v29  ;;  %v6551_v29 = vld [vmem:[#allocation8 + $0x464] ss:$28 sps:$4 sm:$0xff]  }
 0x5c5   :  { %4698 = vmatpush1.bf16.msra.mxu1 %v6462_v30  ;;  %v6554_v30 = vld [vmem:[#allocation8 + $0x46c] ss:$28 sps:$4 sm:$0xff]  }
 0x5c6   :  { %4699 = vmatprep.subr.bf16.mxu1 %v6470_v31  ;;  %v6549_v31 = vld [vmem:[#allocation8 + $0x460] ss:$28 sps:$4 sm:$0xff]  }
 0x5c9   :  { %4700 = vmatpush1.bf16.msra.mxu1 %v6468_v33  ;;  %v6557_v33 = vld [vmem:[#allocation8 + $0x49c] ss:$28 sps:$4 sm:$0xff]  }
 0x5ca   :  { %4701 = vmatprep.subr.bf16.mxu1 %v6476_v35  ;;  %v6555_v35 = vld [vmem:[#allocation8 + $0x498] ss:$28 sps:$4 sm:$0xff]  }
 0x5cd   :  { %4702 = vmatpush1.bf16.msra.mxu1 %v6474_v37  ;;  %v6563_v37 = vld [vmem:[#allocation8 + $0x4d4] ss:$28 sps:$4 sm:$0xff]  }
 0x5ce   :  { %4703 = vmatprep.subr.bf16.mxu1 %v6482_v39  ;;  %v6561_v39 = vld [vmem:[#allocation8 + $0x4d0] ss:$28 sps:$4 sm:$0xff]  }
 0x5d1   :  { %4704 = vmatpush1.bf16.msra.mxu1 %v6480_v41  ;;  %v6569_v41 = vld [vmem:[#allocation8 + $0x50c] ss:$28 sps:$4 sm:$0xff]  }
 0x5d2   :  { %4705 = vmatprep.subr.bf16.mxu1 %v6488_v42  ;;  %v6572_v42 = vld [vmem:[#allocation8 + $0x514] ss:$28 sps:$4 sm:$0xff]  }
 0x5d5   :  { %4706 = vmatpush1.bf16.msra.mxu1 %v6486_v43  ;;  %v6567_v43 = vld [vmem:[#allocation8 + $0x508] ss:$28 sps:$4 sm:$0xff]  }
 0x5d6   :  { %4707 = vmatprep.subr.bf16.mxu1 %v6494_v44  ;;  %v6570_v44 = vld [vmem:[#allocation8 + $0x510] ss:$28 sps:$4 sm:$0xff]  }
 0x5d9   :  { %4708 = vmatpush1.bf16.msra.mxu1 %v6492_v45  ;;  %v6575_v45 = vld [vmem:[#allocation8 + $0x544] ss:$28 sps:$4 sm:$0xff]  }
 0x5da   :  { %4709 = vmatprep.subr.bf16.mxu1 %v6500_v46  ;;  %v6578_v46 = vld [vmem:[#allocation8 + $0x54c] ss:$28 sps:$4 sm:$0xff]  }
 0x5dd   :  { %4710 = vmatpush1.bf16.msra.mxu1 %v6498_v47  ;;  %v6573_v47 = vld [vmem:[#allocation8 + $0x540] ss:$28 sps:$4 sm:$0xff]  }
 0x5de   :  { %4711 = vmatprep.subr.bf16.mxu1 %v6506_v48  ;;  %v6576_v48 = vld [vmem:[#allocation8 + $0x548] ss:$28 sps:$4 sm:$0xff]  }
 0x5e1   :  { %4712 = vmatpush1.bf16.msra.mxu1 %v6504_v49  ;;  %v6581_v49 = vld [vmem:[#allocation8 + $0x57c] ss:$28 sps:$4 sm:$0xff]  }
 0x5e2   :  { %4713 = vmatprep.subr.bf16.mxu1 %v6512_v50  ;;  %v6584_v50 = vld [vmem:[#allocation8 + $0x584] ss:$28 sps:$4 sm:$0xff]  }
 0x5e5   :  { %4714 = vmatpush1.bf16.msra.mxu1 %v6510_v51  ;;  %v6579_v51 = vld [vmem:[#allocation8 + $0x578] ss:$28 sps:$4 sm:$0xff]  }
 0x5e6   :  { %4715 = vmatprep.subr.bf16.mxu1 %v6518_v52  ;;  %v6582_v52 = vld [vmem:[#allocation8 + $0x580] ss:$28 sps:$4 sm:$0xff]  }
 0x5e9   :  { %4716 = vmatpush1.bf16.msra.mxu1 %v6516_v53  ;;  %v6587_v53 = vld [vmem:[#allocation8 + $0x5b4] ss:$28 sps:$4 sm:$0xff]  }
 0x5ea   :  { %4717 = vmatprep.subr.bf16.mxu1 %v6524_v54  ;;  %v6590_v54 = vld [vmem:[#allocation8 + $0x5bc] ss:$28 sps:$4 sm:$0xff]  }
 0x5ed   :  { %4718 = vmatpush1.bf16.msra.mxu1 %v6522_v55  ;;  %v6585_v55 = vld [vmem:[#allocation8 + $0x5b0] ss:$28 sps:$4 sm:$0xff]  }
 0x5ee   :  { %4730 = vmatprep.subr.bf16.mxu1 %v6530_v56  ;;  %v6588_v56 = vld [vmem:[#allocation8 + $0x5b8] ss:$28 sps:$4 sm:$0xff]  }
 0x643   :  { %v3092_v60 = vpop.f32.mrb[12].mxu1 }
 0x644   :  { %v3093_v61 = vadd.f32 %v3092_v60, %v2721_v58  ;;  %v3094_v62 = vpop.f32.mrb[13].mxu1  ;;  %v6591_v60 = vld [vmem:[#allocation8 + $0x5e8] ss:$28 sps:$4 sm:$0xff]  }
 0x645   :  { %v3095_v63 = vadd.f32 %v3094_v62, %v2725_v59  ;;  %v3096_v0 = vpop.f32.mrb[14].mxu1  ;;  %v6599_v62 = vld [vmem:[#allocation8 + $0x624] ss:$28 sps:$4 sm:$0xff]  }
 0x646   :  { %v3097_v1 = vadd.f32 %v3096_v0, %v2721_v58  ;;  %v3098_v18 = vpop.f32.mrb[15].mxu1  ;;  %v3144_v3 = vmax.f32 %v3093_v61, 0.0  ;;  %v6593_v58 = vld [vmem:[#allocation8 + $0x5ec] ss:$28 sps:$4 sm:$0xff]   ;;  %v6597_v0 = vld [vmem:[#allocation8 + $0x620] ss:$28 sps:$4 sm:$0xff]  }
 0x647   :  { %v3099_v2 = vadd.f32 %v3098_v18, %v2725_v59  ;;  %v3145_v5 = vmax.f32 %v3095_v63, 0.0  ;;  %v6596_v59 = vld [vmem:[#allocation8 + $0x5f4] ss:$28 sps:$4 sm:$0xff]   ;;  %v6602_v63 = vld [vmem:[#allocation8 + $0x62c] ss:$28 sps:$4 sm:$0xff]  }
 0x648   :  { %v3148_v4 = vmax.f32 %v3097_v1, 0.0  ;;  %v6594_v61 = vld [vmem:[#allocation8 + $0x5f0] ss:$28 sps:$4 sm:$0xff]   ;;  %v6600_v1 = vld [vmem:[#allocation8 + $0x628] ss:$28 sps:$4 sm:$0xff]  }
 0x649   :  { %v3149_v6 = vmax.f32 %v3099_v2, 0.0  ;;  %v6605_v18 = vld [vmem:[#allocation8 + $0x65c] ss:$28 sps:$4 sm:$0xff]   ;;  %v6608_v2 = vld [vmem:[#allocation8 + $0x664] ss:$28 sps:$4 sm:$0xff]  }
 0x64a   :  { %v7278_v7 = vpack.c.bf16 %v3148_v4, %v3144_v3  ;;  %v6603_v3 = vld [vmem:[#allocation8 + $0x658] ss:$28 sps:$4 sm:$0xff]   ;;  %v6606_v4 = vld [vmem:[#allocation8 + $0x660] ss:$28 sps:$4 sm:$0xff]  }
 0x64b   :  { %v7280_v8 = vpack.c.bf16 %v3149_v6, %v3145_v5  ;;  %v2729_v5 = vrot.slane %v7272_v57, %v7195_v24  ;;  %v6611_v6 = vld [vmem:[#allocation8 + $0x694] ss:$28 sps:$4 sm:$0xff]  }
 0x64d   :  { %4633 = vmatprep.mubr.bf16.mxu0 %v7280_v8  ;;  %4719 = vmatprep.mubr.bf16.mxu1 %v7280_v8 }
 0x64e   :  { %4634 = vmatmul.mubr.bf16.vlgmr.msra.gmra.mrb[8].mxu0 %v7278_v7  ;;  %4720 = vmatmul.mubr.bf16.vlgmr.msra.gmra.mrb[20].mxu1 %v7278_v7 }
 0x64f   :  { %4645 = vmatpush1.bf16.msra.mxu0 %v6525_v9  ;;  %4731 = vmatpush1.bf16.msra.mxu1 %v6528_v10  ;;  %v6614_v9 = vld [vmem:[#allocation8 + $0x69c] ss:$28 sps:$4 sm:$0xff]   ;;  %v2733_v10 = vrot.slane %v7272_v57, %v7204_v27  ;;  %v6618_v57 = vld [vmem:[#allocation8 + $0x6d0] ss:$28 sps:$4 sm:$0xff]  }
 0x650   :  { %4646 = vmatprep.subr.bf16.mxu0 %v6533_v11  ;;  %4732 = vmatprep.subr.bf16.mxu1 %v6536_v12  ;;  %v6609_v12 = vld [vmem:[#allocation8 + $0x690] ss:$28 sps:$4 sm:$0xff]  }
 0x653   :  { %4647 = vmatpush1.bf16.msra.mxu0 %v6531_v13  ;;  %4733 = vmatpush1.bf16.msra.mxu1 %v6534_v14  ;;  %v6612_v13 = vld [vmem:[#allocation8 + $0x698] ss:$28 sps:$4 sm:$0xff]  }
 0x654   :  { %4648 = vmatprep.subr.bf16.mxu0 %v6539_v15  ;;  %4734 = vmatprep.subr.bf16.mxu1 %v6542_v16  ;;  %v6617_v16 = vld [vmem:[#allocation8 + $0x6cc] ss:$28 sps:$4 sm:$0xff]  }
 0x657   :  { %4649 = vmatpush1.bf16.msra.mxu0 %v6537_v17  ;;  %4735 = vmatpush1.bf16.msra.mxu1 %v6540_v19  ;;  %v6620_v17 = vld [vmem:[#allocation8 + $0x6d4] ss:$28 sps:$4 sm:$0xff]  }
 0x658   :  { %4650 = vmatprep.subr.bf16.mxu0 %v6545_v20  ;;  %4736 = vmatprep.subr.bf16.mxu1 %v6548_v21 }
 0x65b   :  { %4651 = vmatpush1.bf16.msra.mxu0 %v6543_v25  ;;  %4737 = vmatpush1.bf16.msra.mxu1 %v6546_v28 }
 0x65c   :  { %4652 = vmatprep.subr.bf16.mxu0 %v6551_v29  ;;  %4738 = vmatprep.subr.bf16.mxu1 %v6554_v30  ;;  %v6615_v29 = vld [vmem:[#allocation8 + $0x6c8] ss:$28 sps:$4 sm:$0xff]  }
 0x65f   :  { %4653 = vmatpush1.bf16.msra.mxu0 %v6549_v31  ;;  %4739 = vmatpush1.bf16.msra.mxu1 %v6552_v32  ;;  %v6623_v32 = vld [vmem:[#allocation8 + $0x14] ss:$28 sps:$4 sm:$0xff]  }
 0x660   :  { %4654 = vmatprep.subr.bf16.mxu0 %v6557_v33  ;;  %4740 = vmatprep.subr.bf16.mxu1 %v6560_v34  ;;  %v6624_v33 = vld [vmem:[#allocation8 + $0x1d8] ss:$28 sps:$4 sm:$0xff]  }
 0x663   :  { %4655 = vmatpush1.bf16.msra.mxu0 %v6555_v35  ;;  %4741 = vmatpush1.bf16.msra.mxu1 %v6558_v36 }
 0x664   :  { %4656 = vmatprep.subr.bf16.mxu0 %v6563_v37  ;;  %4742 = vmatprep.subr.bf16.mxu1 %v6566_v38  ;;  %v6621_v38 = vld [vmem:[#allocation8 + $0x10] ss:$28 sps:$4 sm:$0xff]  }
 0x667   :  { %4657 = vmatpush1.bf16.msra.mxu0 %v6561_v39  ;;  %4743 = vmatpush1.bf16.msra.mxu1 %v6564_v40  ;;  %v6625_v39 = vld [vmem:[#allocation8 + $0x18] ss:$28 sps:$4 sm:$0xff]   ;;  %v6628_v40 = vld [vmem:[#allocation8 + $0x4c] ss:$28 sps:$4 sm:$0xff]  }
 0x668   :  { %4658 = vmatprep.subr.bf16.mxu0 %v6569_v41  ;;  %4744 = vmatprep.subr.bf16.mxu1 %v6572_v42  ;;  %v6629_v41 = vld [vmem:[#allocation8 + $0x210] ss:$28 sps:$4 sm:$0xff]   ;;  %v6626_v42 = vld [vmem:[#allocation8 + $0x48] ss:$28 sps:$4 sm:$0xff]  }
 0x66b   :  { %4659 = vmatpush1.bf16.msra.mxu0 %v6567_v43  ;;  %4745 = vmatpush1.bf16.msra.mxu1 %v6570_v44  ;;  %v6630_v43 = vld [vmem:[#allocation8 + $0x50] ss:$28 sps:$4 sm:$0xff]   ;;  %v6633_v44 = vld [vmem:[#allocation8 + $0x84] ss:$28 sps:$4 sm:$0xff]  }
 0x66c   :  { %4660 = vmatprep.subr.bf16.mxu0 %v6575_v45  ;;  %4746 = vmatprep.subr.bf16.mxu1 %v6578_v46  ;;  %v6634_v45 = vld [vmem:[#allocation8 + $0x248] ss:$28 sps:$4 sm:$0xff]   ;;  %v6631_v46 = vld [vmem:[#allocation8 + $0x80] ss:$28 sps:$4 sm:$0xff]  }
 0x66f   :  { %4661 = vmatpush1.bf16.msra.mxu0 %v6573_v47  ;;  %4747 = vmatpush1.bf16.msra.mxu1 %v6576_v48  ;;  %v6635_v47 = vld [vmem:[#allocation8 + $0x88] ss:$28 sps:$4 sm:$0xff]   ;;  %v6638_v48 = vld [vmem:[#allocation8 + $0xbc] ss:$28 sps:$4 sm:$0xff]  }
 0x670   :  { %4662 = vmatprep.subr.bf16.mxu0 %v6581_v49  ;;  %4748 = vmatprep.subr.bf16.mxu1 %v6584_v50  ;;  %v6639_v49 = vld [vmem:[#allocation8 + $0x280] ss:$28 sps:$4 sm:$0xff]   ;;  %v6636_v50 = vld [vmem:[#allocation8 + $0xb8] ss:$28 sps:$4 sm:$0xff]  }
 0x673   :  { %4663 = vmatpush1.bf16.msra.mxu0 %v6579_v51  ;;  %4749 = vmatpush1.bf16.msra.mxu1 %v6582_v52  ;;  %v6640_v51 = vld [vmem:[#allocation8 + $0xc0] ss:$28 sps:$4 sm:$0xff]   ;;  %v6643_v52 = vld [vmem:[#allocation8 + $0xf4] ss:$28 sps:$4 sm:$0xff]  }
 0x674   :  { %4664 = vmatprep.subr.bf16.mxu0 %v6587_v53  ;;  %4750 = vmatprep.subr.bf16.mxu1 %v6590_v54  ;;  %v6641_v53 = vld [vmem:[#allocation8 + $0xf0] ss:$28 sps:$4 sm:$0xff]   ;;  %v6645_v54 = vld [vmem:[#allocation8 + $0xf8] ss:$28 sps:$4 sm:$0xff]  }
 0x677   :  { %4665 = vmatpush1.bf16.msra.mxu0 %v6585_v55  ;;  %4751 = vmatpush1.bf16.msra.mxu1 %v6588_v56  ;;  %v6648_v55 = vld [vmem:[#allocation8 + $0x12c] ss:$28 sps:$4 sm:$0xff]  }
 0x678   :  { %4666 = vmatprep.subr.bf16.mxu0 %v6593_v58  ;;  %4752 = vmatprep.subr.bf16.mxu1 %v6596_v59  ;;  %v6649_v56 = vld [vmem:[#allocation8 + $0x2f0] ss:$28 sps:$4 sm:$0xff]   ;;  %v6646_v58 = vld [vmem:[#allocation8 + $0x128] ss:$28 sps:$4 sm:$0xff]  }
 0x679   :  { %v6650_v59 = vld [vmem:[#allocation8 + $0x130] ss:$28 sps:$4 sm:$0xff]  }
 0x67b   :  { %4667 = vmatpush1.bf16.msra.mxu0 %v6591_v60  ;;  %4753 = vmatpush1.bf16.msra.mxu1 %v6594_v61  ;;  %v6653_v60 = vld [vmem:[#allocation8 + $0x164] ss:$28 sps:$4 sm:$0xff]  }
 0x67c   :  { %4668 = vmatprep.subr.bf16.mxu0 %v6599_v62  ;;  %4754 = vmatprep.subr.bf16.mxu1 %v6602_v63  ;;  %v6654_v61 = vld [vmem:[#allocation8 + $0x328] ss:$28 sps:$4 sm:$0xff]   ;;  %v6651_v62 = vld [vmem:[#allocation8 + $0x160] ss:$28 sps:$4 sm:$0xff]  }
 0x67d   :  { %v6655_v63 = vld [vmem:[#allocation8 + $0x168] ss:$28 sps:$4 sm:$0xff]  }
 0x67f   :  { %4669 = vmatpush1.bf16.msra.mxu0 %v6597_v0  ;;  %4755 = vmatpush1.bf16.msra.mxu1 %v6600_v1  ;;  %v6658_v0 = vld [vmem:[#allocation8 + $0x19c] ss:$28 sps:$4 sm:$0xff]  }
 0x680   :  { %4670 = vmatprep.subr.bf16.mxu0 %v6605_v18  ;;  %4756 = vmatprep.subr.bf16.mxu1 %v6608_v2  ;;  %v6659_v1 = vld [vmem:[#allocation8 + $0x360] ss:$28 sps:$4 sm:$0xff]   ;;  %v6656_v18 = vld [vmem:[#allocation8 + $0x198] ss:$28 sps:$4 sm:$0xff]  }
 0x681   :  { %v6660_v2 = vld [vmem:[#allocation8 + $0x1a0] ss:$28 sps:$4 sm:$0xff]  }
 0x683   :  { %v3135_v11 = vpop.f32.mrb[16].mxu1  ;;  %4671 = vmatpush1.bf16.msra.mxu0 %v6603_v3  ;;  %4757 = vmatpush1.bf16.msra.mxu1 %v6606_v4  ;;  %v6663_v3 = vld [vmem:[#allocation8 + $0x1d4] ss:$28 sps:$4 sm:$0xff]  }
 0x684   :  { %v3136_v14 = vadd.f32 %v3135_v11, %v2729_v5  ;;  %v3137_v15 = vpop.f32.mrb[17].mxu1  ;;  %4672 = vmatprep.subr.bf16.mxu0 %v6611_v6  ;;  %4758 = vmatprep.subr.bf16.mxu1 %v6614_v9  ;;  %v6664_v4 = vld [vmem:[#allocation8 + $0x558] ss:$28 sps:$4 sm:$0xff]   ;;  %v6668_v9 = vld [vmem:[#allocation8 + $0x20c] ss:$28 sps:$4 sm:$0xff]  }
 0x685   :  { %v3138_v19 = vadd.f32 %v3137_v15, %v2733_v10  ;;  %v3139_v20 = vpop.f32.mrb[18].mxu1  ;;  %v6665_v6 = vld [vmem:[#allocation8 + $0x398] ss:$28 sps:$4 sm:$0xff]   ;;  %v6666_v11 = vld [vmem:[#allocation8 + $0x208] ss:$28 sps:$4 sm:$0xff]  }
 0x686   :  { %v3140_v21 = vadd.f32 %v3139_v20, %v2729_v5  ;;  %v3141_v25 = vpop.f32.mrb[19].mxu1  ;;  %v3146_v30 = vmax.f32 %v3136_v14, 0.0  ;;  %v6661_v5 = vld [vmem:[#allocation8 + $0x1d0] ss:$28 sps:$4 sm:$0xff]   ;;  %v6674_v14 = vld [vmem:[#allocation8 + $0x5c8] ss:$28 sps:$4 sm:$0xff]  }
 0x687   :  { %v3142_v28 = vadd.f32 %v3141_v25, %v2733_v10  ;;  %4673 = vmatpush1.bf16.msra.mxu0 %v6609_v12  ;;  %4759 = vmatpush1.bf16.msra.mxu1 %v6612_v13  ;;  %v3147_v34 = vmax.f32 %v3138_v19, 0.0  ;;  %v6669_v10 = vld [vmem:[#allocation8 + $0x590] ss:$28 sps:$4 sm:$0xff]   ;;  %v6673_v13 = vld [vmem:[#allocation8 + $0x244] ss:$28 sps:$4 sm:$0xff]  }
 0x688   :  { %v3150_v31 = vmax.f32 %v3140_v21, 0.0  ;;  %4674 = vmatprep.subr.bf16.mxu0 %v6617_v16  ;;  %4760 = vmatprep.subr.bf16.mxu1 %v6620_v17  ;;  %v6670_v12 = vld [vmem:[#allocation8 + $0x3d0] ss:$28 sps:$4 sm:$0xff]   ;;  %v6671_v15 = vld [vmem:[#allocation8 + $0x240] ss:$28 sps:$4 sm:$0xff]  }
 0x689   :  { %v3151_v35 = vmax.f32 %v3142_v28, 0.0  ;;  %v6675_v16 = vld [vmem:[#allocation8 + $0x408] ss:$28 sps:$4 sm:$0xff]   ;;  %v6678_v17 = vld [vmem:[#allocation8 + $0x27c] ss:$28 sps:$4 sm:$0xff]  }
 0x68a   :  { %v7290_v36 = vpack.c.bf16 %v3150_v31, %v3146_v30  ;;  %v6679_v19 = vld [vmem:[#allocation8 + $0x600] ss:$28 sps:$4 sm:$0xff]   ;;  %v6676_v20 = vld [vmem:[#allocation8 + $0x278] ss:$28 sps:$4 sm:$0xff]   ;;  %v6688_v30 = vld [vmem:[#allocation8 + $0x2ec] ss:$28 sps:$4 sm:$0xff]  }
 0x68b   :  { %v7292_v37 = vpack.c.bf16 %v3151_v35, %v3147_v34  ;;  %4675 = vmatpush1.bf16.msra.mxu0 %v6615_v29  ;;  %4761 = vmatpush1.bf16.msra.mxu1 %v6618_v57  ;;  %v6680_v21 = vld [vmem:[#allocation8 + $0x440] ss:$28 sps:$4 sm:$0xff]   ;;  %v6683_v25 = vld [vmem:[#allocation8 + $0x2b4] ss:$28 sps:$4 sm:$0xff]   ;;  %v6694_v35 = vld [vmem:[#allocation8 + $0x6a8] ss:$28 sps:$4 sm:$0xff]  }
 0x68c   :  { %4773 = vmatprep.subr.bf16.mxu0 %v6623_v32  ;;  %5744 = vmatprep.subr.bf16.mxu1 %v6624_v33  ;;  %v6684_v28 = vld [vmem:[#allocation8 + $0x638] ss:$28 sps:$4 sm:$0xff]   ;;  %v6681_v29 = vld [vmem:[#allocation8 + $0x2b0] ss:$28 sps:$4 sm:$0xff]   ;;  %v6686_v32 = vld [vmem:[#allocation8 + $0x2e8] ss:$28 sps:$4 sm:$0xff]  }
 0x68d   :  { %4676 = vmatprep.mubr.bf16.mxu0 %v7292_v37  ;;  %4762 = vmatprep.mubr.bf16.mxu1 %v7292_v37  ;;  %v6685_v57 = vld [vmem:[#allocation8 + $0x478] ss:$28 sps:$4 sm:$0xff]   ;;  %v6689_v31 = vld [vmem:[#allocation8 + $0x670] ss:$28 sps:$4 sm:$0xff]   ;;  %v6693_v34 = vld [vmem:[#allocation8 + $0x324] ss:$28 sps:$4 sm:$0xff]  }
 0x68e   :  { %4677 = vmatmul.mubr.bf16.vlgmr.msra.gmra.mrb[8].mxu0 %v7290_v36  ;;  %4763 = vmatmul.mubr.bf16.vlgmr.msra.gmra.mrb[20].mxu1 %v7290_v36  ;;  %v6690_v33 = vld [vmem:[#allocation8 + $0x4b0] ss:$28 sps:$4 sm:$0xff]  }
 0x68f   :  { %4774 = vmatpush1.bf16.msra.mxu0 %v6621_v38  ;;  %4805 = vmatprep.mubr.bf16.mxu0 %v7280_v8  ;;  %v6691_v38 = vld [vmem:[#allocation8 + $0x320] ss:$28 sps:$4 sm:$0xff]  }
 0x690   :  { %5745 = vmatpush3.bf16.msra.mxu1 %v6625_v39  ;;  %4891 = vmatprep.mubr.bf16.mxu1 %v7280_v8  ;;  %v6644_v8 = vld [vmem:[#allocation8 + $0x2b8] ss:$28 sps:$4 sm:$0xff]   ;;  %v6695_v39 = vld [vmem:[#allocation8 + $0x4e8] ss:$28 sps:$4 sm:$0xff]  }
 0x691   :  { %4775 = vmatprep.subr.bf16.mxu0 %v6628_v40  ;;  %5746 = vmatprep.subr.bf16.mxu1 %v6629_v41  ;;  %v6698_v40 = vld [vmem:[#allocation8 + $0x35c] ss:$28 sps:$4 sm:$0xff]  }
 0x692   :  { %v6699_v41 = vld [vmem:[#allocation8 + $0x6e0] ss:$28 sps:$4 sm:$0xff]  }
 0x693   :  { %4776 = vmatpush1.bf16.msra.mxu0 %v6626_v42  ;;  %v6696_v42 = vld [vmem:[#allocation8 + $0x358] ss:$28 sps:$4 sm:$0xff]  }
 0x694   :  { %5747 = vmatpush3.bf16.msra.mxu1 %v6630_v43  ;;  %4777 = vmatprep.subr.bf16.mxu0 %v6633_v44  ;;  %v6700_v43 = vld [vmem:[#allocation8 + $0x520] ss:$28 sps:$4 sm:$0xff]   ;;  %v6703_v44 = vld [vmem:[#allocation8 + $0x394] ss:$28 sps:$4 sm:$0xff]  }
 0x695   :  { %5748 = vmatprep.subr.bf16.mxu1 %v6634_v45  ;;  %v6701_v45 = vld [vmem:[#allocation8 + $0x390] ss:$28 sps:$4 sm:$0xff]  }
 0x697   :  { %4778 = vmatpush1.bf16.msra.mxu0 %v6631_v46  ;;  %v6706_v46 = vld [vmem:[#allocation8 + $0x3cc] ss:$28 sps:$4 sm:$0xff]  }
 0x698   :  { %5749 = vmatpush3.bf16.msra.mxu1 %v6635_v47  ;;  %4779 = vmatprep.subr.bf16.mxu0 %v6638_v48  ;;  %v6704_v47 = vld [vmem:[#allocation8 + $0x3c8] ss:$28 sps:$4 sm:$0xff]  }
 0x699   :  { %5750 = vmatprep.subr.bf16.mxu1 %v6639_v49  ;;  %v6709_v48 = vld [vmem:[#allocation8 + $0x404] ss:$28 sps:$4 sm:$0xff]  }
 0x69a   :  { %v6707_v49 = vld [vmem:[#allocation8 + $0x400] ss:$28 sps:$4 sm:$0xff]  }
 0x69b   :  { %4780 = vmatpush1.bf16.msra.mxu0 %v6636_v50  ;;  %v6712_v50 = vld [vmem:[#allocation8 + $0x43c] ss:$28 sps:$4 sm:$0xff]  }
 0x69c   :  { %5751 = vmatpush3.bf16.msra.mxu1 %v6640_v51  ;;  %4781 = vmatprep.subr.bf16.mxu0 %v6643_v52  ;;  %v6710_v51 = vld [vmem:[#allocation8 + $0x438] ss:$28 sps:$4 sm:$0xff]  }
 0x69d   :  { %5752 = vmatprep.subr.bf16.mxu1 %v6644_v8  ;;  %v6715_v52 = vld [vmem:[#allocation8 + $0x474] ss:$28 sps:$4 sm:$0xff]  }
 0x69e   :  { %v6713_v8 = vld [vmem:[#allocation8 + $0x470] ss:$28 sps:$4 sm:$0xff]  }
 0x69f   :  { %4782 = vmatpush1.bf16.msra.mxu0 %v6641_v53  ;;  %v6716_v53 = vld [vmem:[#allocation8 + $0x4a8] ss:$28 sps:$4 sm:$0xff]  }
 0x6a0   :  { %5753 = vmatpush3.bf16.msra.mxu1 %v6645_v54  ;;  %4783 = vmatprep.subr.bf16.mxu0 %v6648_v55  ;;  %v6721_v54 = vld [vmem:[#allocation8 + $0x4e4] ss:$28 sps:$4 sm:$0xff]   ;;  %v6724_v55 = vld [vmem:[#allocation8 + $0x51c] ss:$28 sps:$4 sm:$0xff]  }
 0x6a1   :  { %5754 = vmatprep.subr.bf16.mxu1 %v6649_v56  ;;  %v6722_v56 = vld [vmem:[#allocation8 + $0x518] ss:$28 sps:$4 sm:$0xff]  }
 0x6a3   :  { %4784 = vmatpush1.bf16.msra.mxu0 %v6646_v58  ;;  %v6727_v58 = vld [vmem:[#allocation8 + $0x554] ss:$28 sps:$4 sm:$0xff]  }
 0x6a4   :  { %5755 = vmatpush3.bf16.msra.mxu1 %v6650_v59  ;;  %4785 = vmatprep.subr.bf16.mxu0 %v6653_v60  ;;  %v6725_v59 = vld [vmem:[#allocation8 + $0x550] ss:$28 sps:$4 sm:$0xff]  }
 0x6a5   :  { %5756 = vmatprep.subr.bf16.mxu1 %v6654_v61  ;;  %v6730_v60 = vld [vmem:[#allocation8 + $0x58c] ss:$28 sps:$4 sm:$0xff]  }
 0x6a6   :  { %v6728_v61 = vld [vmem:[#allocation8 + $0x588] ss:$28 sps:$4 sm:$0xff]  }
 0x6a7   :  { %4786 = vmatpush1.bf16.msra.mxu0 %v6651_v62  ;;  %v6733_v62 = vld [vmem:[#allocation8 + $0x5c4] ss:$28 sps:$4 sm:$0xff]  }
 0x6a8   :  { %5757 = vmatpush3.bf16.msra.mxu1 %v6655_v63  ;;  %4787 = vmatprep.subr.bf16.mxu0 %v6658_v0  ;;  %v6731_v63 = vld [vmem:[#allocation8 + $0x5c0] ss:$28 sps:$4 sm:$0xff]  }
 0x6a9   :  { %5758 = vmatprep.subr.bf16.mxu1 %v6659_v1  ;;  %v6736_v0 = vld [vmem:[#allocation8 + $0x5fc] ss:$28 sps:$4 sm:$0xff]  }
 0x6aa   :  { %v6734_v1 = vld [vmem:[#allocation8 + $0x5f8] ss:$28 sps:$4 sm:$0xff]  }
 0x6ab   :  { %4788 = vmatpush1.bf16.msra.mxu0 %v6656_v18  ;;  %v6739_v18 = vld [vmem:[#allocation8 + $0x634] ss:$28 sps:$4 sm:$0xff]  }
 0x6ac   :  { %5759 = vmatpush3.bf16.msra.mxu1 %v6660_v2  ;;  %4789 = vmatprep.subr.bf16.mxu0 %v6663_v3  ;;  %v6737_v2 = vld [vmem:[#allocation8 + $0x630] ss:$28 sps:$4 sm:$0xff]  }
 0x6ad   :  { %5766 = vmatprep.subr.bf16.mxu1 %v6664_v4  ;;  %v6742_v3 = vld [vmem:[#allocation8 + $0x66c] ss:$28 sps:$4 sm:$0xff]  }
 0x6ae   :  { %v6740_v4 = vld [vmem:[#allocation8 + $0x668] ss:$28 sps:$4 sm:$0xff]  }
 0x6af   :  { %4892 = vmatmul.mubr.bf16.vlgmr.msra.gmra.mrb[24].mxu1 %v7278_v7  ;;  %4790 = vmatpush1.bf16.msra.mxu0 %v6661_v5  ;;  %v6745_v5 = vld [vmem:[#allocation8 + $0x6a4] ss:$28 sps:$4 sm:$0xff]  }
 0x6b0   :  { %5767 = vmatpush3.bf16.msra.mxu1 %v6665_v6  ;;  %4932 = vmatprep.mubr.bf16.mxu1 %v7292_v37  ;;  %v6743_v6 = vld [vmem:[#allocation8 + $0x6a0] ss:$28 sps:$4 sm:$0xff]  }
 0x6b1   :  { %4791 = vmatprep.subr.bf16.mxu0 %v6668_v9  ;;  %5768 = vmatprep.subr.bf16.mxu1 %v6669_v10  ;;  %v6748_v9 = vld [vmem:[#allocation8 + $0x6dc] ss:$28 sps:$4 sm:$0xff]  }
 0x6b2   :  { %v6746_v10 = vld [vmem:[#allocation8 + $0x6d8] ss:$28 sps:$4 sm:$0xff]  }
 0x6b3   :  { %4792 = vmatpush1.bf16.msra.mxu0 %v6666_v11  ;;  %v7309_v11 = vld [vmem:[%s7380_s13] sm:$0xff]  ;;  %s6985_s13 = smov [#allocation11]  }
 0x6b4   :  { %5769 = vmatpush3.bf16.msra.mxu1 %v6670_v12  ;;  %4793 = vmatprep.subr.bf16.mxu0 %v6673_v13  ;;  %v3417_v12 = vrot.slane %v7309_v11, %v7192_v23  ;;  %v3425_v13 = vrot.slane %v7309_v11, %v7195_v24  ;;  %s5068_s18 = sshll.u32 %s6985_s13, 4  ;;  %s5069_s18 = int_to_ptr.vmem [resolvable:$true] %s5068_s18 }
 0x6b5   :  { %5770 = vmatprep.subr.bf16.mxu1 %v6674_v14  ;;  %v3421_v14 = vrot.slane %v7309_v11, %v7201_v26  ;;  %s6897_s19 = scalar_lea.vmem %s5069_s18, 256  ;;  %p6902_p5 = scmp.lt.s32.totalorder %s5069_s18, %s5069_s18 }
 0x6b6   :  { %p6898_p4 = scmp.ne.s32.totalorder %s5069_s18, %s6897_s19  ;;  %p6903_p6 = scmp.lt.s32.totalorder %s6897_s19, %s6897_s19 }
 0x6b7   :  { %4794 = vmatpush1.bf16.msra.mxu0 %v6671_v15  ;;  %v3429_v15 = vrot.slane %v7309_v11, %v7204_v27 }
 0x6b8   :  { %5771 = vmatpush3.bf16.msra.mxu1 %v6675_v16  ;;  %4795 = vmatprep.subr.bf16.mxu0 %v6678_v17  ;;  %p6904_p7 = por %p6903_p6, %p6902_p5 }
 0x6b9   :  { %5772 = vmatprep.subr.bf16.mxu1 %v6679_v19 }
 0x6ba   :  { %p6905_p8 = pnand %p6904_p7, %p6898_p4 }
 0x6bb   :  { %4796 = vmatpush1.bf16.msra.mxu0 %v6676_v20 }
 0x6bc   :  { %5773 = vmatpush3.bf16.msra.mxu1 %v6680_v21  ;;  %4797 = vmatprep.subr.bf16.mxu0 %v6683_v25 }
 0x6bd   :  { %5774 = vmatprep.subr.bf16.mxu1 %v6684_v28 }
 0x6bf   :  { %4798 = vmatpush1.bf16.msra.mxu0 %v6681_v29 }
 0x6c0   :  { %5775 = vmatpush3.bf16.msra.mxu1 %v6685_v57  ;;  %4799 = vmatprep.subr.bf16.mxu0 %v6688_v30 }
 0x6c1   :  { %5776 = vmatprep.subr.bf16.mxu1 %v6689_v31 }
 0x6c3   :  { %4800 = vmatpush1.bf16.msra.mxu0 %v6686_v32 }
 0x6c4   :  { %5777 = vmatpush3.bf16.msra.mxu1 %v6690_v33  ;;  %4801 = vmatprep.subr.bf16.mxu0 %v6693_v34 }
 0x6c5   :  { %5778 = vmatprep.subr.bf16.mxu1 %v6694_v35 }
 0x6c7   :  { %4802 = vmatpush1.bf16.msra.mxu0 %v6691_v38 }
 0x6c8   :  { %5779 = vmatpush3.bf16.msra.mxu1 %v6695_v39  ;;  %4803 = vmatprep.subr.bf16.mxu0 %v6698_v40 }
 0x6c9   :  { %5780 = vmatprep.subr.bf16.mxu1 %v6699_v41 }
 0x6cb   :  { %4804 = vmatpush1.bf16.msra.mxu0 %v6696_v42 }
 0x6cc   :  { %5781 = vmatpush3.bf16.msra.mxu1 %v6700_v43  ;;  %4816 = vmatprep.subr.bf16.mxu0 %v6703_v44 }
 0x6ce   :  { %4806 = vmatmul.mubr.bf16.vlgmr.msra.gmra.mrb[12].mxu0 %v7278_v7  ;;  %v6718_v7 = vld [vmem:[#allocation8 + $0x4ac] ss:$28 sps:$4 sm:$0xff]  }
 0x6cf   :  { %4933 = vmatmul.mubr.bf16.vlgmr.msra.gmra.mrb[28].mxu1 %v7290_v36  ;;  %4817 = vmatpush1.bf16.msra.mxu0 %v6701_v45 }
 0x6d0   :  { %4848 = vmatprep.mubr.bf16.mxu0 %v7292_v37  ;;  %4818 = vmatprep.subr.bf16.mxu0 %v6706_v46  ;;  %v6719_v37 = vld [vmem:[#allocation8 + $0x4e0] ss:$28 sps:$4 sm:$0xff]  }
 0x6d3   :  { %4819 = vmatpush1.bf16.msra.mxu0 %v6704_v47 }
 0x6d4   :  { %4820 = vmatprep.subr.bf16.mxu0 %v6709_v48 }
 0x6d7   :  { %4821 = vmatpush1.bf16.msra.mxu0 %v6707_v49 }
 0x6d8   :  { %4822 = vmatprep.subr.bf16.mxu0 %v6712_v50 }
 0x6db   :  { %4823 = vmatpush1.bf16.msra.mxu0 %v6710_v51 }
 0x6dc   :  { %4824 = vmatprep.subr.bf16.mxu0 %v6715_v52 }
 0x6df   :  { %4825 = vmatpush1.bf16.msra.mxu0 %v6713_v8 }
 0x6e0   :  { %4826 = vmatprep.subr.bf16.mxu0 %v6718_v7 }
 0x6e3   :  { %4827 = vmatpush1.bf16.msra.mxu0 %v6716_v53 }
 0x6e4   :  { %4828 = vmatprep.subr.bf16.mxu0 %v6721_v54 }
 0x6e7   :  { %4829 = vmatpush1.bf16.msra.mxu0 %v6719_v37 }
 0x6e8   :  { %4830 = vmatprep.subr.bf16.mxu0 %v6724_v55 }
 0x6eb   :  { %4831 = vmatpush1.bf16.msra.mxu0 %v6722_v56 }
 0x6ec   :  { %4832 = vmatprep.subr.bf16.mxu0 %v6727_v58 }
 0x6ef   :  { %4833 = vmatpush1.bf16.msra.mxu0 %v6725_v59 }
 0x6f0   :  { %4834 = vmatprep.subr.bf16.mxu0 %v6730_v60 }
 0x6f3   :  { %4835 = vmatpush1.bf16.msra.mxu0 %v6728_v61 }
 0x6f4   :  { %4836 = vmatprep.subr.bf16.mxu0 %v6733_v62 }
 0x6f7   :  { %4837 = vmatpush1.bf16.msra.mxu0 %v6731_v63 }
 0x6f8   :  { %4838 = vmatprep.subr.bf16.mxu0 %v6736_v0 }
 0x6fb   :  { %4839 = vmatpush1.bf16.msra.mxu0 %v6734_v1 }
 0x6fc   :  { %4840 = vmatprep.subr.bf16.mxu0 %v6739_v18 }
 0x6ff   :  { %4841 = vmatpush1.bf16.msra.mxu0 %v6737_v2 }
 0x700   :  { %4842 = vmatprep.subr.bf16.mxu0 %v6742_v3 }
 0x703   :  { %4843 = vmatpush1.bf16.msra.mxu0 %v6740_v4 }
 0x704   :  { %4844 = vmatprep.subr.bf16.mxu0 %v6745_v5 }
 0x707   :  { %4845 = vmatpush1.bf16.msra.mxu0 %v6743_v6 }
 0x708   :  { %4846 = vmatprep.subr.bf16.mxu0 %v6748_v9 }
 0x70b   :  { %4847 = vmatpush1.bf16.msra.mxu0 %v6746_v10 }
 0x70e   :  { %4849 = vmatmul.mubr.bf16.vlgmr.msra.gmra.mrb[12].mxu0 %v7290_v36 }
 0x761   :  { %v4678_v16 = vpop.f32.mrb[8].mxu0  ;;  %v4764_v17 = vpop.f32.mrb[20].mxu1 }
 0x762   :  { %v5800_v36 = vadd.f32 %v4678_v16, %v3417_v12  ;;  %v5804_v19 = vadd.f32 %v4764_v17, %v3425_v13  ;;  %v4680_v20 = vpop.f32.mrb[9].mxu0  ;;  %v4766_v21 = vpop.f32.mrb[21].mxu1 }
 0x763   :  { %v5801_v25 = vadd.f32 %v4680_v20, %v3421_v14  ;;  %v5805_v28 = vadd.f32 %v4766_v21, %v3429_v15  ;;  %v4682_v29 = vpop.f32.mrb[10].mxu0  ;;  %v4768_v57 = vpop.f32.mrb[22].mxu1 }
 0x764   :  { %v5708_v23 = vmul.f32 -1.442695, %v5800_v36  ;;  %v5710_v30 = vmul.f32 -1.442695, %v5804_v19  ;;  %v5802_v31 = vadd.f32 %v4682_v29, %v3417_v12  ;;  %v5806_v24 = vadd.f32 %v4768_v57, %v3425_v13  ;;  %v4684_v32 = vpop.f32.mrb[11].mxu0  ;;  %v4770_v33 = vpop.f32.mrb[23].mxu1 }
 0x765   :  { %v5709_v26 = vmul.f32 -1.442695, %v5801_v25  ;;  %v5711_v34 = vmul.f32 -1.442695, %v5805_v28  ;;  %v5803_v35 = vadd.f32 %v4684_v32, %v3421_v14  ;;  %v5807_v27 = vadd.f32 %v4770_v33, %v3429_v15 }
 0x766   :  { %6753 = vpow2.f32 %v5708_v23  ;;  %v5715_v38 = vmul.f32 -1.442695, %v5802_v31  ;;  %v5717_v39 = vmul.f32 -1.442695, %v5806_v24 }
 0x767   :  { %6755 = vpow2.f32 %v5710_v30  ;;  %v5716_v40 = vmul.f32 -1.442695, %v5803_v35  ;;  %v5718_v41 = vmul.f32 -1.442695, %v5807_v27 }
 0x768   :  { %6757 = vpow2.f32 %v5709_v26 }
 0x769   :  { %6759 = vpow2.f32 %v5711_v34 }
 0x76a   :  { %6761 = vpow2.f32 %v5715_v38 }
 0x76b   :  { %6763 = vpow2.f32 %v5717_v39 }
 0x76c   :  { %6765 = vpow2.f32 %v5716_v40 }
 0x76d   :  { %6767 = vpow2.f32 %v5718_v41 }
 0x770   :  { %v6754_v42 = vpop.eup %6753 }
 0x771   :  { %v6756_v43 = vpop.eup %6755  ;;  %v4983_v44 = vadd.f32 1.0, %v6754_v42 }
 0x772   :  { %v6758_v45 = vpop.eup %6757  ;;  %v4985_v46 = vadd.f32 1.0, %v6756_v43 }
 0x773   :  { %v6760_v47 = vpop.eup %6759  ;;  %6769 = vrcp.f32 %v4983_v44  ;;  %v4984_v48 = vadd.f32 1.0, %v6758_v45 }
 0x774   :  { %v6762_v49 = vpop.eup %6761  ;;  %6771 = vrcp.f32 %v4985_v46  ;;  %v4986_v50 = vadd.f32 1.0, %v6760_v47 }
 0x775   :  { %v6764_v51 = vpop.eup %6763  ;;  %6773 = vrcp.f32 %v4984_v48  ;;  %v4990_v52 = vadd.f32 1.0, %v6762_v49 }
 0x776   :  { %v6766_v8 = vpop.eup %6765  ;;  %6775 = vrcp.f32 %v4986_v50  ;;  %v4992_v7 = vadd.f32 1.0, %v6764_v51 }
 0x777   :  { %v6768_v53 = vpop.eup %6767  ;;  %6777 = vrcp.f32 %v4990_v52  ;;  %v4991_v54 = vadd.f32 1.0, %v6766_v8 }
 0x778   :  { %6779 = vrcp.f32 %v4992_v7  ;;  %v4993_v37 = vadd.f32 1.0, %v6768_v53 }
 0x779   :  { %6781 = vrcp.f32 %v4991_v54 }
 0x77a   :  { %6783 = vrcp.f32 %v4993_v37 }
 0x77d   :  { %v6770_v55 = vpop.eup %6769 }
 0x77e   :  { %v6772_v56 = vpop.eup %6771  ;;  %5025 = vst [vmem:[#allocation10] sm:$0xff] %v6770_v55 }
 0x77f   :  { %v6774_v58 = vpop.eup %6773  ;;  %5027 = vst [vmem:[#allocation10 + $0x10] sm:$0xff] %v6772_v56 }
 0x780   :  { %v6776_v59 = vpop.eup %6775  ;;  %5026 = vst [vmem:[#allocation10 + $0x8] sm:$0xff] %v6774_v58 }
 0x781   :  { %v6778_v60 = vpop.eup %6777  ;;  %5028 = vst [vmem:[#allocation10 + $0x18] sm:$0xff] %v6776_v59 }
 0x782   :  { %v6780_v61 = vpop.eup %6779  ;;  %5032 = vst [vmem:[#allocation10 + $0x38] sm:$0xff] %v6778_v60  ;;  %v5760_v62 = vpop.f32.mrb[24].mxu1 }
 0x783   :  { %v6782_v63 = vpop.eup %6781  ;;  %5034 = vst [vmem:[#allocation10 + $0x48] sm:$0xff] %v6780_v61  ;;  %v5761_v0 = vpop.f32.mrb[25].mxu1 }
 0x784   :  { %v6784_v1 = vpop.eup %6783  ;;  %5033 = vst [vmem:[#allocation10 + $0x40] sm:$0xff] %v6782_v63  ;;  %v5762_v18 = vadd.f32 %v5761_v0, %v5760_v62  ;;  %v5763_v2 = vpop.f32.mrb[26].mxu1 }
 0x785   :  { %6908 = shalt.err (!%p6905_p8)
}
 0x786   :  { %s6909_s25 = scalar_lea.hbm %s7382_s15, 256 }
 0x787   :  { %p6910_p9 = scmp.ne.s32.totalorder %s7382_s15, %s6909_s25  ;;  %p6913_p10 = scmp.lt.u32.totalorder %s6909_s25, %s7382_s15 }
 0x789   :  { %p6915_p11 = pnand %p6913_p10, %p6910_p9 }
 0x78b   :  { %6918 = shalt.err (!%p6915_p11)
}
 0x78c   :  { %s7391_s7 = smov 8   ;;  %s7392_s27 = smov 128   ;;  %5035 = vst [vmem:[#allocation10 + $0x50] sm:$0xff] %v6784_v1  ;;  %v5764_v3 = vpop.f32.mrb[27].mxu1 }
 0x78d   :  { %5074 = dma.vmem_to_hbm [thread:$0]  %s5069_s18, 256, %s7382_s15, [#allocation12], %s7392_s27, %s7392_s27, %s7391_s7   ;;  %v5765_v4 = vadd.f32 %v5764_v3, %v5763_v2 }
 0x78e   :  { %s6986_s4 = smov [#allocation13]  }
 0x78f   :  { %s5080_s22 = sshll.u32 %s6986_s4, 4  ;;  %s5081_s22 = int_to_ptr.vmem [resolvable:$true] %s5080_s22 }
 0x790   :  { %s6919_s23 = scalar_lea.vmem %s5081_s22, 256  ;;  %p6924_p13 = scmp.lt.s32.totalorder %s5081_s22, %s5081_s22 }
 0x791   :  { %p6920_p12 = scmp.ne.s32.totalorder %s5081_s22, %s6919_s23  ;;  %p6925_p0 = scmp.lt.s32.totalorder %s6919_s23, %s6919_s23 }
 0x793   :  { %p6926_p1 = por %p6925_p0, %p6924_p13 }
 0x795   :  { %p6927_p2 = pnand %p6926_p1, %p6920_p12 }
 0x797   :  { %6930 = shalt.err (!%p6927_p2)
}
 0x798   :  { %s6931_s26 = scalar_lea.hbm %s7383_s16, 256 }
 0x799   :  { %p6932_p3 = scmp.ne.s32.totalorder %s7383_s16, %s6931_s26  ;;  %p6935_p4 = scmp.lt.u32.totalorder %s6931_s26, %s7383_s16 }
 0x79b   :  { %p6937_p5 = pnand %p6935_p4, %p6932_p3 }
 0x79d   :  { %6940 = shalt.err (!%p6937_p5)
}
 0x79e   :  { %5086 = dma.vmem_to_hbm [thread:$0]  %s5081_s22, 256, %s7383_s16, [#allocation12], %s7392_s27, %s7392_s27, %s7391_s7   ;;  %v3440_v5 = vsub.s32 6, %v7189_v22  ;;  %v3432_v31 = vsub.s32 4, %v7189_v22  ;;  %v3436_v24 = vsub.s32 5, %v7189_v22 }
 0x79f   :  { %s6987_s16 = smov [#allocation10]  }
 0x7a0   :  { %v3441_v6 = vrot.slane %v7309_v11, %v3440_v5  ;;  %v3433_v32 = vrot.slane %v7309_v11, %v3432_v31  ;;  %v3437_v33 = vrot.slane %v7309_v11, %v3436_v24  ;;  %s5056_s2 = sshll.u32 %s6987_s16, 4  ;;  %s5057_s2 = int_to_ptr.vmem [resolvable:$true] %s5056_s2 }
 0x7a1   :  { %s6941_s11 = scalar_lea.vmem %s5057_s2, 1792  ;;  %p6946_p7 = scmp.lt.s32.totalorder %s5057_s2, %s5057_s2 }
 0x7a2   :  { %v5782_v9 = vpop.f32.mrb[28].mxu1  ;;  %v4894_v12 = vadd.f32 %v5762_v18, %v3441_v6  ;;  %v4897_v16 = vadd.f32 %v5765_v4, %v3441_v6  ;;  %p6942_p6 = scmp.ne.s32.totalorder %s5057_s2, %s6941_s11  ;;  %p6947_p8 = scmp.lt.s32.totalorder %s6941_s11, %s6941_s11 }
 0x7a3   :  { %v5783_v10 = vpop.f32.mrb[29].mxu1 }
 0x7a4   :  { %v5784_v13 = vadd.f32 %v5783_v10, %v5782_v9  ;;  %v5785_v14 = vpop.f32.mrb[30].mxu1  ;;  %p6948_p9 = por %p6947_p8, %p6946_p7 }
 0x7a5   :  { %v5786_v15 = vpop.f32.mrb[31].mxu1 }
 0x7a6   :  { %v4935_v17 = vadd.f32 %v5784_v13, %v4894_v12  ;;  %v5787_v36 = vadd.f32 %v5786_v15, %v5785_v14  ;;  %p6949_p10 = pnand %p6948_p9, %p6942_p6 }
 0x7a8   :  { %v5714_v19 = vmul.f32 -1.442695, %v4935_v17  ;;  %v4938_v20 = vadd.f32 %v5787_v36, %v4897_v16 }
 0x7aa   :  { %6785 = vpow2.f32 %v5714_v19  ;;  %v5721_v21 = vmul.f32 -1.442695, %v4938_v20 }
 0x7ac   :  { %6787 = vpow2.f32 %v5721_v21 }
 0x7b4   :  { %v6786_v25 = vpop.eup %6785 }
 0x7b5   :  { %v4989_v28 = vadd.f32 1.0, %v6786_v25 }
 0x7b6   :  { %v6788_v29 = vpop.eup %6787 }
 0x7b7   :  { %6789 = vrcp.f32 %v4989_v28  ;;  %v4996_v57 = vadd.f32 1.0, %v6788_v29 }
 0x7b9   :  { %6791 = vrcp.f32 %v4996_v57 }
 0x7c1   :  { %v6790_v23 = vpop.eup %6789 }
 0x7c2   :  { %5031 = vst [vmem:[#allocation10 + $0x30] sm:$0xff] %v6790_v23 }
 0x7c3   :  { %v6792_v30 = vpop.eup %6791 }
 0x7c4   :  { %5038 = vst [vmem:[#allocation10 + $0x68] sm:$0xff] %v6792_v30 }
 0x7e1   :  { %v4850_v26 = vpop.f32.mrb[12].mxu0 }
 0x7e2   :  { %v5808_v34 = vadd.f32 %v4850_v26, %v3433_v32  ;;  %v4852_v35 = vpop.f32.mrb[13].mxu0 }
 0x7e3   :  { %v5809_v27 = vadd.f32 %v4852_v35, %v3437_v33  ;;  %v4854_v38 = vpop.f32.mrb[14].mxu0 }
 0x7e4   :  { %v5712_v39 = vmul.f32 -1.442695, %v5808_v34  ;;  %v5810_v40 = vadd.f32 %v4854_v38, %v3433_v32  ;;  %v4856_v41 = vpop.f32.mrb[15].mxu0 }
 0x7e5   :  { %v5713_v42 = vmul.f32 -1.442695, %v5809_v27  ;;  %v5811_v43 = vadd.f32 %v4856_v41, %v3437_v33 }
 0x7e6   :  { %6793 = vpow2.f32 %v5712_v39  ;;  %v5719_v44 = vmul.f32 -1.442695, %v5810_v40 }
 0x7e7   :  { %6795 = vpow2.f32 %v5713_v42  ;;  %v5720_v45 = vmul.f32 -1.442695, %v5811_v43 }
 0x7e8   :  { %6797 = vpow2.f32 %v5719_v44 }
 0x7e9   :  { %6799 = vpow2.f32 %v5720_v45 }
 0x7f0   :  { %v6794_v22 = vpop.eup %6793 }
 0x7f1   :  { %v6796_v46 = vpop.eup %6795  ;;  %v4987_v47 = vadd.f32 1.0, %v6794_v22 }
 0x7f2   :  { %v6798_v11 = vpop.eup %6797  ;;  %v4988_v48 = vadd.f32 1.0, %v6796_v46 }
 0x7f3   :  { %v6800_v49 = vpop.eup %6799  ;;  %6801 = vrcp.f32 %v4987_v47  ;;  %v4994_v50 = vadd.f32 1.0, %v6798_v11 }
 0x7f4   :  { %6803 = vrcp.f32 %v4988_v48  ;;  %v4995_v51 = vadd.f32 1.0, %v6800_v49 }
 0x7f5   :  { %6805 = vrcp.f32 %v4994_v50 }
 0x7f6   :  { %6807 = vrcp.f32 %v4995_v51 }
 0x7fd   :  { %v6802_v52 = vpop.eup %6801 }
 0x7fe   :  { %v6804_v8 = vpop.eup %6803  ;;  %5029 = vst [vmem:[#allocation10 + $0x20] sm:$0xff] %v6802_v52 }
 0x7ff   :  { %v6806_v7 = vpop.eup %6805  ;;  %5030 = vst [vmem:[#allocation10 + $0x28] sm:$0xff] %v6804_v8 }
 0x800   :  { %v6808_v53 = vpop.eup %6807  ;;  %5036 = vst [vmem:[#allocation10 + $0x58] sm:$0xff] %v6806_v7 }
 0x801   :  { %5037 = vst [vmem:[#allocation10 + $0x60] sm:$0xff] %v6808_v53 }
 0x802   :  { %6952 = shalt.err (!%p6949_p10)
}
 0x803   :  { %s6953_s18 = scalar_lea.hbm %s7381_s14, 1792 }
 0x804   :  { %p6954_p11 = scmp.ne.s32.totalorder %s7381_s14, %s6953_s18  ;;  %p6957_p12 = scmp.lt.u32.totalorder %s6953_s18, %s7381_s14 }
 0x806   :  { %p6959_p13 = pnand %p6957_p12, %p6954_p11 }
 0x808   :  { %6962 = shalt.err (!%p6959_p13)
}
 0x809   :  { %s6988_s0 = smov 896   ;;  %s6989_s5 = smov 56  }
 0x80a   :  { %5062 = dma.vmem_to_hbm [thread:$0]  %s5057_s2, 1792, %s7381_s14, [#allocation4], %s6988_s0, %s6988_s0, %s6989_s5  }
 0x80b   :  { %6969 = dma.done.wait [#allocation4], 1792  }
 0x80c   :  { %6970 = vsyncadd [#allocation4], 4294965504 }
 0x80d   :  { %6971 = dma.done.wait [#allocation12], 512  }
 0x80e   :  { %6972 = vsyncadd [#allocation12], 4294966784 }
 0x80f   :  { %5096 = vsyncpa [#allocation3], 1 }
 0x810   :  { %5097 = vsyncpa [#allocation6], 1 }
 0x811   :  { %5098 = vsyncpa [#allocation9], 1 }
 0x812   :  { %5099 = vsyncpa [#allocation4], 1 }
 0x813   :  { %5100 = vsyncpa [#allocation12], 1 }

// kernel: tpu_custom_call.1
= control target key start
LH: loop header
LB: loop body
LE: loop exit
PB: predicated region body
PF: predicated region fallthrough
CT: control target
= control target key end

     0   :  { %s7367_s0 = inlined_call_operand.vmem [shape: bf16[16,896], index: 0, kind: input, shape index: {}]   ;;  %s7368_s1 = inlined_call_operand.vmem [shape: f32[16,32], index: 1, kind: input, shape index: {}]   ;;  %s7369_s2 = inlined_call_operand.hbm [shape: bf16[896,512], index: 2, kind: input, shape index: {}]   ;;  %s7370_s3 = inlined_call_operand.vmem [shape: f32[1,512], index: 3, kind: input, shape index: {}]   ;;  %s7371_s4 = inlined_call_operand.hbm [shape: bf16[512,256], index: 4, kind: input, shape index: {}]   ;;  %s7372_s5 = inlined_call_operand.vmem [shape: f32[1,256], index: 5, kind: input, shape index: {}]   ;;  %s7373_s6 = inlined_call_operand.vmem [shape: bf16[256,64], index: 6, kind: input, shape index: {}]   ;;  %s7374_s7 = inlined_call_operand.vmem [shape: f32[1,64], index: 7, kind: input, shape index: {}]   ;;  %s7375_s8 = inlined_call_operand.vmem [shape: bf16[32,256], index: 8, kind: input, shape index: {}]   ;;  %s7376_s9 = inlined_call_operand.vmem [shape: f32[1,256], index: 9, kind: input, shape index: {}]   ;;  %s7377_s10 = inlined_call_operand.hbm [shape: bf16[256,512], index: 10, kind: input, shape index: {}]   ;;  %s7378_s11 = inlined_call_operand.vmem [shape: f32[1,512], index: 11, kind: input, shape index: {}]   ;;  %s7379_s12 = inlined_call_operand.hbm [shape: bf16[512,896], index: 12, kind: input, shape index: {}]   ;;  %s7380_s13 = inlined_call_operand.vmem [shape: f32[1,896], index: 13, kind: input, shape index: {}]   ;;  %s7381_s14 = inlined_call_operand.hbm [shape: f32[16,896], index: 14, kind: output, shape index: {0}]   ;;  %s7382_s15 = inlined_call_operand.hbm [shape: f32[16,32], index: 15, kind: output, shape index: {1}]   ;;  %s7383_s16 = inlined_call_operand.hbm [shape: f32[16,32], index: 16, kind: output, shape index: {2}]  }
   0x1   :  { %7389 = sst [smem:[#allocation19_spill]] %s7367_s0 }
   0x2   :  { %22 = vsyncpa [#allocation3], 0 }
   0x3   :  { %23 = vsyncpa [#allocation6], 0 }
   0x4   :  { %24 = vsyncpa [#allocation9], 0 }
   0x5   :  { %25 = vsyncpa [#allocation4], 0 }
   0x6   :  { %26 = vsyncpa [#allocation12], 0  ;;  %s6973_s21 = smov [#allocation5]   ;;  %s6809_s25 = scalar_lea.hbm %s7371_s4, 8192 }
   0x7   :  { %s50_s22 = sshll.u32 %s6973_s21, 4  ;;  %p6810_p0 = scmp.ne.s32.totalorder %s7371_s4, %s6809_s25  ;;  %s51_s22 = int_to_ptr.vmem [resolvable:$true] %s50_s22 }
   0x8   :  { %p6813_p1 = scmp.lt.u32.totalorder %s6809_s25, %s7371_s4 }
   0xa   :  { %p6815_p2 = pnand %p6813_p1, %p6810_p0 }
   0xc   :  { %6818 = shalt.err (!%p6815_p2)
}
   0xd   :  { %s6819_s30 = scalar_lea.vmem %s51_s22, 8192  ;;  %p6824_p4 = scmp.lt.s32.totalorder %s51_s22, %s51_s22 }
   0xe   :  { %p6820_p3 = scmp.ne.s32.totalorder %s51_s22, %s6819_s30  ;;  %p6825_p5 = scmp.lt.s32.totalorder %s6819_s30, %s6819_s30 }
  0x10   :  { %p6826_p6 = por %p6825_p5, %p6824_p4 }
  0x12   :  { %p6827_p7 = pnand %p6826_p6, %p6820_p3 }
  0x14   :  { %6830 = shalt.err (!%p6827_p7)
}
  0x15   :  { %s7385_s0 = smov 128   ;;  %s7387_s17 = smov 8  }
  0x16   :  { %56 = dma.hbm_to_vmem [thread:$0]  %s7371_s4, 8192, %s51_s22, [#allocation6], %s7385_s0, %s7385_s0, %s7387_s17  }
  0x17   :  { %s6976_s20 = smov [#allocation2]   ;;  %s6831_s25 = scalar_lea.hbm %s7369_s2, 28672 }
  0x18   :  { %s36_s21 = sshll.u32 %s6976_s20, 4  ;;  %p6832_p8 = scmp.ne.s32.totalorder %s7369_s2, %s6831_s25  ;;  %s37_s21 = int_to_ptr.vmem [resolvable:$true] %s36_s21 }
  0x19   :  { %p6835_p9 = scmp.lt.u32.totalorder %s6831_s25, %s7369_s2 }
  0x1b   :  { %p6837_p10 = pnand %p6835_p9, %p6832_p8 }
  0x1d   :  { %6840 = shalt.err (!%p6837_p10)
}
  0x1e   :  { %s6841_s30 = scalar_lea.vmem %s37_s21, 28672  ;;  %p6846_p12 = scmp.lt.s32.totalorder %s37_s21, %s37_s21 }
  0x1f   :  { %p6842_p11 = scmp.ne.s32.totalorder %s37_s21, %s6841_s30  ;;  %p6847_p13 = scmp.lt.s32.totalorder %s6841_s30, %s6841_s30 }
  0x21   :  { %p6848_p0 = por %p6847_p13, %p6846_p12 }
  0x23   :  { %p6849_p1 = pnand %p6848_p0, %p6842_p11 }
  0x25   :  { %6852 = shalt.err (!%p6849_p1)
}
  0x26   :  { %s6977_s4 = smov 256   ;;  %s6978_s22 = smov 16  }
  0x27   :  { %42 = dma.hbm_to_vmem [thread:$0]  %s7369_s2, 28672, %s37_s21, [#allocation3], %s6977_s4, %s6977_s4, %s6978_s22  }
  0x28   :  { %s6979_s20 = smov [#allocation7]   ;;  %s6980_s24 = smov [#allocation8]  }
  0x29   :  { %s72_s23 = sshll.u32 %s6979_s20, 4  ;;  %s86_s26 = sshll.u32 %s6980_s24, 4  ;;  %s73_s23 = int_to_ptr.vmem [resolvable:$true] %s72_s23  ;;  %s7102_s26 = int_to_ptr.vmem [resolvable:$true] %s86_s26 }
  0x2a   :  { %s6853_s28 = scalar_lea.hbm %s7377_s10, 8192 }
  0x2b   :  { %p6854_p2 = scmp.ne.s32.totalorder %s7377_s10, %s6853_s28  ;;  %p6857_p3 = scmp.lt.u32.totalorder %s6853_s28, %s7377_s10 }
  0x2d   :  { %p6859_p4 = pnand %p6857_p3, %p6854_p2 }
  0x2f   :  { %6862 = shalt.err (!%p6859_p4)
}
  0x30   :  { %s6863_s2 = scalar_lea.vmem %s73_s23, 8192  ;;  %p6868_p6 = scmp.lt.s32.totalorder %s73_s23, %s73_s23 }
  0x31   :  { %p6864_p5 = scmp.ne.s32.totalorder %s73_s23, %s6863_s2  ;;  %p6869_p7 = scmp.lt.s32.totalorder %s6863_s2, %s6863_s2 }
  0x33   :  { %p6870_p8 = por %p6869_p7, %p6868_p6 }
  0x35   :  { %p6871_p9 = pnand %p6870_p8, %p6864_p5 }
  0x37   :  { %6874 = shalt.err (!%p6871_p9)
}
  0x38   :  { %78 = dma.hbm_to_vmem [thread:$0]  %s7377_s10, 8192, %s73_s23, [#allocation6], %s6977_s4, %s6977_s4, %s6978_s22  }
  0x39   :  { %s6875_s24 = scalar_lea.hbm %s7379_s12, 28672 }
  0x3a   :  { %p6876_p10 = scmp.ne.s32.totalorder %s7379_s12, %s6875_s24  ;;  %p6879_p11 = scmp.lt.u32.totalorder %s6875_s24, %s7379_s12 }
  0x3c   :  { %p6881_p12 = pnand %p6879_p11, %p6876_p10 }
  0x3e   :  { %6884 = shalt.err (!%p6881_p12)
}
  0x3f   :  { %s6885_s28 = scalar_lea.vmem %s7102_s26, 28672  ;;  %p6890_p0 = scmp.lt.s32.totalorder %s7102_s26, %s7102_s26 }
  0x40   :  { %p6886_p13 = scmp.ne.s32.totalorder %s7102_s26, %s6885_s28  ;;  %p6891_p1 = scmp.lt.s32.totalorder %s6885_s28, %s6885_s28 }
  0x42   :  { %p6892_p2 = por %p6891_p1, %p6890_p0 }
  0x44   :  { %p6893_p3 = pnand %p6892_p2, %p6886_p13 }
  0x46   :  { %6896 = shalt.err (!%p6893_p3)
}
  0x47   :  { %s6981_s10 = smov 448   ;;  %s6982_s4 = smov 28  }
  0x48   :  { %92 = dma.hbm_to_vmem [thread:$0]  %s7379_s12, 28672, %s7102_s26, [#allocation9], %s6981_s10, %s6981_s10, %s6982_s4  }
  0x49   :  { %6963 = dma.done.wait [#allocation3], 28672  }
  0x4a   :  { %6964 = vsyncadd [#allocation3], 4294938624 }
  0x4b   :  { %6965 = dma.done.wait [#allocation6], 16384  }
  0x4c   :  { %6966 = vsyncadd [#allocation6], 4294950912 }
  0x4d   :  { %6967 = dma.done.wait [#allocation9], 28672  }
  0x4e   :  { %6968 = vsyncadd [#allocation9], 4294938624  ;;  %v5869_v0 = vld [vmem:[#allocation2 + $0x4] ss:$16 sps:$4 sm:$0xff]   ;;  %v5871_v1 = vld [vmem:[#allocation2 + $0xc] ss:$16 sps:$4 sm:$0xff]  }
  0x4f   :  { %1518 = vmatprep.subr.bf16.mxu0 %v5869_v0  ;;  %v5873_v2 = vld [vmem:[#allocation2] ss:$16 sps:$4 sm:$0xff]   ;;  %v5874_v3 = vld [vmem:[#allocation2 + $0x8] ss:$16 sps:$4 sm:$0xff]   ;;  %1690 = vmatprep.subr.bf16.mxu1 %v5871_v1  ;;  %v5875_v4 = vld [vmem:[#allocation2 + $0x24] ss:$16 sps:$4 sm:$0xff]  }
  0x50   :  { %1519 = vmatpush1.bf16.msra.mxu0 %v5873_v2  ;;  %1691 = vmatpush1.bf16.msra.mxu1 %v5874_v3  ;;  %v5877_v5 = vld [vmem:[#allocation2 + $0x2c] ss:$16 sps:$4 sm:$0xff]   ;;  %v5879_v6 = vld [vmem:[#allocation2 + $0x20] ss:$16 sps:$4 sm:$0xff]   ;;  %v5880_v7 = vld [vmem:[#allocation2 + $0x28] ss:$16 sps:$4 sm:$0xff]  }
  0x51   :  { %1520 = vmatprep.subr.bf16.mxu0 %v5875_v4  ;;  %1692 = vmatprep.subr.bf16.mxu1 %v5877_v5  ;;  %v5881_v8 = vld [vmem:[#allocation2 + $0x44] ss:$16 sps:$4 sm:$0xff]   ;;  %v5883_v9 = vld [vmem:[#allocation2 + $0x4c] ss:$16 sps:$4 sm:$0xff]   ;;  %v5885_v10 = vld [vmem:[#allocation2 + $0x40] ss:$16 sps:$4 sm:$0xff]  }
  0x52   :  { %v5886_v11 = vld [vmem:[#allocation2 + $0x48] ss:$16 sps:$4 sm:$0xff]   ;;  %v5887_v12 = vld [vmem:[#allocation2 + $0x64] ss:$16 sps:$4 sm:$0xff]   ;;  %v5889_v13 = vld [vmem:[#allocation2 + $0x6c] ss:$16 sps:$4 sm:$0xff]  }
  0x53   :  { %v5891_v14 = vld [vmem:[#allocation2 + $0x60] ss:$16 sps:$4 sm:$0xff]   ;;  %v5892_v15 = vld [vmem:[#allocation2 + $0x68] ss:$16 sps:$4 sm:$0xff]   ;;  %v5893_v16 = vld [vmem:[#allocation2 + $0x84] ss:$16 sps:$4 sm:$0xff]  }
  0x54   :  { %1521 = vmatpush1.bf16.msra.mxu0 %v5879_v6  ;;  %1693 = vmatpush1.bf16.msra.mxu1 %v5880_v7  ;;  %v5895_v17 = vld [vmem:[#allocation2 + $0x8c] ss:$16 sps:$4 sm:$0xff]   ;;  %v5897_v18 = vld [vmem:[#allocation2 + $0x80] ss:$16 sps:$4 sm:$0xff]   ;;  %v5898_v19 = vld [vmem:[#allocation2 + $0x88] ss:$16 sps:$4 sm:$0xff]  }
  0x55   :  { %1522 = vmatprep.subr.bf16.mxu0 %v5881_v8  ;;  %1694 = vmatprep.subr.bf16.mxu1 %v5883_v9  ;;  %v5899_v20 = vld [vmem:[#allocation2 + $0xa4] ss:$16 sps:$4 sm:$0xff]   ;;  %v5901_v21 = vld [vmem:[#allocation2 + $0xac] ss:$16 sps:$4 sm:$0xff]   ;;  %v5903_v22 = vld [vmem:[#allocation2 + $0xa0] ss:$16 sps:$4 sm:$0xff]  }
  0x56   :  { %v5904_v23 = vld [vmem:[#allocation2 + $0xa8] ss:$16 sps:$4 sm:$0xff]   ;;  %v5905_v24 = vld [vmem:[#allocation2 + $0xc4] ss:$16 sps:$4 sm:$0xff]   ;;  %v5907_v25 = vld [vmem:[#allocation2 + $0xcc] ss:$16 sps:$4 sm:$0xff]  }
  0x57   :  { %v5909_v26 = vld [vmem:[#allocation2 + $0xc0] ss:$16 sps:$4 sm:$0xff]   ;;  %v5910_v27 = vld [vmem:[#allocation2 + $0xc8] ss:$16 sps:$4 sm:$0xff]   ;;  %v5911_v28 = vld [vmem:[#allocation2 + $0xe4] ss:$16 sps:$4 sm:$0xff]  }
  0x58   :  { %1523 = vmatpush1.bf16.msra.mxu0 %v5885_v10  ;;  %1695 = vmatpush1.bf16.msra.mxu1 %v5886_v11  ;;  %v5913_v29 = vld [vmem:[#allocation2 + $0xec] ss:$16 sps:$4 sm:$0xff]   ;;  %v5915_v30 = vld [vmem:[#allocation2 + $0xe0] ss:$16 sps:$4 sm:$0xff]   ;;  %v5916_v31 = vld [vmem:[#allocation2 + $0xe8] ss:$16 sps:$4 sm:$0xff]  }
  0x59   :  { %1524 = vmatprep.subr.bf16.mxu0 %v5887_v12  ;;  %1696 = vmatprep.subr.bf16.mxu1 %v5889_v13  ;;  %v5917_v32 = vld [vmem:[#allocation2 + $0x104] ss:$16 sps:$4 sm:$0xff]   ;;  %v5919_v33 = vld [vmem:[#allocation2 + $0x10c] ss:$16 sps:$4 sm:$0xff]   ;;  %v5921_v34 = vld [vmem:[#allocation2 + $0x100] ss:$16 sps:$4 sm:$0xff]  }
  0x5a   :  { %v5922_v35 = vld [vmem:[#allocation2 + $0x108] ss:$16 sps:$4 sm:$0xff]   ;;  %v5923_v36 = vld [vmem:[#allocation2 + $0x124] ss:$16 sps:$4 sm:$0xff]   ;;  %v5925_v37 = vld [vmem:[#allocation2 + $0x12c] ss:$16 sps:$4 sm:$0xff]  }
  0x5b   :  { %v5927_v38 = vld [vmem:[#allocation2 + $0x120] ss:$16 sps:$4 sm:$0xff]   ;;  %v5928_v39 = vld [vmem:[#allocation2 + $0x128] ss:$16 sps:$4 sm:$0xff]   ;;  %v5929_v40 = vld [vmem:[#allocation2 + $0x144] ss:$16 sps:$4 sm:$0xff]  }
  0x5c   :  { %1525 = vmatpush1.bf16.msra.mxu0 %v5891_v14  ;;  %1697 = vmatpush1.bf16.msra.mxu1 %v5892_v15  ;;  %v5931_v41 = vld [vmem:[#allocation2 + $0x14c] ss:$16 sps:$4 sm:$0xff]   ;;  %v5933_v42 = vld [vmem:[#allocation2 + $0x140] ss:$16 sps:$4 sm:$0xff]   ;;  %v5934_v43 = vld [vmem:[#allocation2 + $0x148] ss:$16 sps:$4 sm:$0xff]  }
  0x5d   :  { %1526 = vmatprep.subr.bf16.mxu0 %v5893_v16  ;;  %1698 = vmatprep.subr.bf16.mxu1 %v5895_v17  ;;  %v5935_v44 = vld [vmem:[#allocation2 + $0x164] ss:$16 sps:$4 sm:$0xff]   ;;  %v5937_v45 = vld [vmem:[#allocation2 + $0x16c] ss:$16 sps:$4 sm:$0xff]   ;;  %v5939_v46 = vld [vmem:[#allocation2 + $0x160] ss:$16 sps:$4 sm:$0xff]  }
  0x5e   :  { %v5940_v47 = vld [vmem:[#allocation2 + $0x168] ss:$16 sps:$4 sm:$0xff]   ;;  %s7390_s29 = sld [smem:[#allocation19_spill]]  ;;  %v5941_v49 = vld [vmem:[#allocation2 + $0x184] ss:$16 sps:$4 sm:$0xff]   ;;  %vm2599_vm0 = vcmask 261120  }
  0x5f   :  { %v5943_v50 = vld [vmem:[#allocation2 + $0x18c] ss:$16 sps:$4 sm:$0xff]   ;;  %v5945_v51 = vld [vmem:[#allocation2 + $0x180] ss:$16 sps:$4 sm:$0xff]   ;;  %v5946_v52 = vld [vmem:[#allocation2 + $0x188] ss:$16 sps:$4 sm:$0xff]  }
  0x60   :  { %1527 = vmatpush1.bf16.msra.mxu0 %v5897_v18  ;;  %1699 = vmatpush1.bf16.msra.mxu1 %v5898_v19  ;;  %v5947_v53 = vld [vmem:[#allocation2 + $0x1a4] ss:$16 sps:$4 sm:$0xff]   ;;  %v5949_v54 = vld [vmem:[#allocation2 + $0x1ac] ss:$16 sps:$4 sm:$0xff]   ;;  %v5951_v55 = vld [vmem:[#allocation2 + $0x1a0] ss:$16 sps:$4 sm:$0xff]  }
  0x61   :  { %1528 = vmatprep.subr.bf16.mxu0 %v5899_v20  ;;  %1700 = vmatprep.subr.bf16.mxu1 %v5901_v21  ;;  %v5952_v56 = vld [vmem:[#allocation2 + $0x1a8] ss:$16 sps:$4 sm:$0xff]   ;;  %v5953_v57 = vld [vmem:[#allocation2 + $0x1c4] ss:$16 sps:$4 sm:$0xff]   ;;  %v5955_v58 = vld [vmem:[#allocation2 + $0x1cc] ss:$16 sps:$4 sm:$0xff]  }
  0x62   :  { %v5957_v59 = vld [vmem:[#allocation2 + $0x1c0] ss:$16 sps:$4 sm:$0xff]   ;;  %v5958_v60 = vld [vmem:[#allocation2 + $0x1c8] ss:$16 sps:$4 sm:$0xff]   ;;  %v5959_v61 = vld [vmem:[#allocation2 + $0x1e4] ss:$16 sps:$4 sm:$0xff]  }
  0x63   :  { %v5961_v62 = vld [vmem:[#allocation2 + $0x1ec] ss:$16 sps:$4 sm:$0xff]   ;;  %v5963_v63 = vld [vmem:[#allocation2 + $0x1e0] ss:$16 sps:$4 sm:$0xff]   ;;  %v5964_v0 = vld [vmem:[#allocation2 + $0x1e8] ss:$16 sps:$4 sm:$0xff]  }
  0x64   :  { %1529 = vmatpush1.bf16.msra.mxu0 %v5903_v22  ;;  %1701 = vmatpush1.bf16.msra.mxu1 %v5904_v23  ;;  %v5967_v48 = vld [vmem:[%s7390_s29 + $0x4] ss:$28 sps:$4 sm:$0xff]   ;;  %v5973_v2 = vld [vmem:[#allocation2 + $0x20c] ss:$16 sps:$4 sm:$0xff]   ;;  %v5971_v5 = vld [vmem:[#allocation2 + $0x208] ss:$16 sps:$4 sm:$0xff]  }
  0x65   :  { %1530 = vmatprep.subr.bf16.mxu0 %v5905_v24  ;;  %1702 = vmatprep.subr.bf16.mxu1 %v5907_v25  ;;  %v5970_v1 = vld [vmem:[#allocation2 + $0x204] ss:$16 sps:$4 sm:$0xff]   ;;  %v5965_v3 = vld [vmem:[%s7390_s29] ss:$28 sps:$4 sm:$0xff]   ;;  %v5977_v9 = vld [vmem:[#allocation2 + $0x228] ss:$16 sps:$4 sm:$0xff]  }
  0x66   :  { %1550 = vmatprep.mubr.bf16.mxu0 %v5967_v48  ;;  %1722 = vmatprep.mubr.bf16.mxu1 %v5967_v48  ;;  %v5968_v4 = vld [vmem:[#allocation2 + $0x200] ss:$16 sps:$4 sm:$0xff]   ;;  %v5976_v6 = vld [vmem:[#allocation2 + $0x224] ss:$16 sps:$4 sm:$0xff]   ;;  %v5979_v7 = vld [vmem:[#allocation2 + $0x22c] ss:$16 sps:$4 sm:$0xff]  }
  0x67   :  { %v5974_v8 = vld [vmem:[#allocation2 + $0x220] ss:$16 sps:$4 sm:$0xff]   ;;  %v5982_v10 = vld [vmem:[#allocation2 + $0x244] ss:$16 sps:$4 sm:$0xff]   ;;  %v5985_v11 = vld [vmem:[#allocation2 + $0x24c] ss:$16 sps:$4 sm:$0xff]  }
  0x68   :  { %1531 = vmatpush1.bf16.msra.mxu0 %v5909_v26  ;;  %1703 = vmatpush1.bf16.msra.mxu1 %v5910_v27  ;;  %v5980_v12 = vld [vmem:[#allocation2 + $0x240] ss:$16 sps:$4 sm:$0xff]   ;;  %v5983_v13 = vld [vmem:[#allocation2 + $0x248] ss:$16 sps:$4 sm:$0xff]   ;;  %v5988_v14 = vld [vmem:[#allocation2 + $0x264] ss:$16 sps:$4 sm:$0xff]  }
  0x69   :  { %1532 = vmatprep.subr.bf16.mxu0 %v5911_v28  ;;  %1704 = vmatprep.subr.bf16.mxu1 %v5913_v29  ;;  %v5991_v15 = vld [vmem:[#allocation2 + $0x26c] ss:$16 sps:$4 sm:$0xff]   ;;  %v5986_v16 = vld [vmem:[#allocation2 + $0x260] ss:$16 sps:$4 sm:$0xff]   ;;  %v5989_v17 = vld [vmem:[#allocation2 + $0x268] ss:$16 sps:$4 sm:$0xff]  }
  0x6a   :  { %v5994_v18 = vld [vmem:[#allocation2 + $0x284] ss:$16 sps:$4 sm:$0xff]   ;;  %v5997_v19 = vld [vmem:[#allocation2 + $0x28c] ss:$16 sps:$4 sm:$0xff]   ;;  %v5992_v20 = vld [vmem:[#allocation2 + $0x280] ss:$16 sps:$4 sm:$0xff]  }
  0x6b   :  { %v5995_v21 = vld [vmem:[#allocation2 + $0x288] ss:$16 sps:$4 sm:$0xff]   ;;  %v6000_v22 = vld [vmem:[#allocation2 + $0x2a4] ss:$16 sps:$4 sm:$0xff]   ;;  %v6003_v23 = vld [vmem:[#allocation2 + $0x2ac] ss:$16 sps:$4 sm:$0xff]  }
  0x6c   :  { %1533 = vmatpush1.bf16.msra.mxu0 %v5915_v30  ;;  %1705 = vmatpush1.bf16.msra.mxu1 %v5916_v31  ;;  %v5998_v24 = vld [vmem:[#allocation2 + $0x2a0] ss:$16 sps:$4 sm:$0xff]   ;;  %v6001_v25 = vld [vmem:[#allocation2 + $0x2a8] ss:$16 sps:$4 sm:$0xff]   ;;  %v6006_v26 = vld [vmem:[#allocation2 + $0x2c4] ss:$16 sps:$4 sm:$0xff]  }
  0x6d   :  { %1534 = vmatprep.subr.bf16.mxu0 %v5917_v32  ;;  %1706 = vmatprep.subr.bf16.mxu1 %v5919_v33  ;;  %v6009_v27 = vld [vmem:[#allocation2 + $0x2cc] ss:$16 sps:$4 sm:$0xff]   ;;  %v6004_v28 = vld [vmem:[#allocation2 + $0x2c0] ss:$16 sps:$4 sm:$0xff]   ;;  %v6007_v29 = vld [vmem:[#allocation2 + $0x2c8] ss:$16 sps:$4 sm:$0xff]  }
  0x6e   :  { %v6066_v30 = vld [vmem:[%s7390_s29 + $0xc] ss:$28 sps:$4 sm:$0xff]   ;;  %v6012_v31 = vld [vmem:[#allocation2 + $0x2e4] ss:$16 sps:$4 sm:$0xff]   ;;  %v6010_v33 = vld [vmem:[#allocation2 + $0x2e0] ss:$16 sps:$4 sm:$0xff]  }
  0x6f   :  { %v6015_v32 = vld [vmem:[#allocation2 + $0x2ec] ss:$16 sps:$4 sm:$0xff]   ;;  %s6984_s17 = smov 96  }
  0x70   :  { %1535 = vmatpush1.bf16.msra.mxu0 %v5921_v34  ;;  %1707 = vmatpush1.bf16.msra.mxu1 %v5922_v35  ;;  %v6013_v34 = vld [vmem:[#allocation2 + $0x2e8] ss:$16 sps:$4 sm:$0xff]   ;;  %v6018_v35 = vld [vmem:[#allocation2 + $0x304] ss:$16 sps:$4 sm:$0xff]   ;;  %v6039_v48 = vld [vmem:[#allocation2 + $0x36c] ss:$16 sps:$4 sm:$0xff]  }
  0x71   :  { %1536 = vmatprep.subr.bf16.mxu0 %v5923_v36  ;;  %1708 = vmatprep.subr.bf16.mxu1 %v5925_v37  ;;  %v6021_v36 = vld [vmem:[#allocation2 + $0x30c] ss:$16 sps:$4 sm:$0xff]   ;;  %v6016_v37 = vld [vmem:[#allocation2 + $0x300] ss:$16 sps:$4 sm:$0xff]  }
  0x74   :  { %1537 = vmatpush1.bf16.msra.mxu0 %v5927_v38  ;;  %1709 = vmatpush1.bf16.msra.mxu1 %v5928_v39  ;;  %v6019_v38 = vld [vmem:[#allocation2 + $0x308] ss:$16 sps:$4 sm:$0xff]   ;;  %v6024_v39 = vld [vmem:[#allocation2 + $0x324] ss:$16 sps:$4 sm:$0xff]  }
  0x75   :  { %1538 = vmatprep.subr.bf16.mxu0 %v5929_v40  ;;  %1710 = vmatprep.subr.bf16.mxu1 %v5931_v41  ;;  %v6027_v40 = vld [vmem:[#allocation2 + $0x32c] ss:$16 sps:$4 sm:$0xff]   ;;  %v6022_v41 = vld [vmem:[#allocation2 + $0x320] ss:$16 sps:$4 sm:$0xff]  }
  0x78   :  { %1539 = vmatpush1.bf16.msra.mxu0 %v5933_v42  ;;  %1711 = vmatpush1.bf16.msra.mxu1 %v5934_v43  ;;  %v6025_v42 = vld [vmem:[#allocation2 + $0x328] ss:$16 sps:$4 sm:$0xff]   ;;  %v6030_v43 = vld [vmem:[#allocation2 + $0x344] ss:$16 sps:$4 sm:$0xff]  }
  0x79   :  { %1540 = vmatprep.subr.bf16.mxu0 %v5935_v44  ;;  %1712 = vmatprep.subr.bf16.mxu1 %v5937_v45  ;;  %v6033_v44 = vld [vmem:[#allocation2 + $0x34c] ss:$16 sps:$4 sm:$0xff]   ;;  %v6028_v45 = vld [vmem:[#allocation2 + $0x340] ss:$16 sps:$4 sm:$0xff]  }
  0x7c   :  { %1541 = vmatpush1.bf16.msra.mxu0 %v5939_v46  ;;  %1713 = vmatpush1.bf16.msra.mxu1 %v5940_v47  ;;  %v6031_v46 = vld [vmem:[#allocation2 + $0x348] ss:$16 sps:$4 sm:$0xff]   ;;  %v6036_v47 = vld [vmem:[#allocation2 + $0x364] ss:$16 sps:$4 sm:$0xff]  }
  0x7d   :  { %1542 = vmatprep.subr.bf16.mxu0 %v5941_v49  ;;  %1714 = vmatprep.subr.bf16.mxu1 %v5943_v50  ;;  %v6034_v49 = vld [vmem:[#allocation2 + $0x360] ss:$16 sps:$4 sm:$0xff]   ;;  %v6037_v50 = vld [vmem:[#allocation2 + $0x368] ss:$16 sps:$4 sm:$0xff]  }
  0x80   :  { %1543 = vmatpush1.bf16.msra.mxu0 %v5945_v51  ;;  %1715 = vmatpush1.bf16.msra.mxu1 %v5946_v52  ;;  %v6042_v51 = vld [vmem:[#allocation2 + $0x384] ss:$16 sps:$4 sm:$0xff]   ;;  %v6045_v52 = vld [vmem:[#allocation2 + $0x38c] ss:$16 sps:$4 sm:$0xff]  }
  0x81   :  { %1544 = vmatprep.subr.bf16.mxu0 %v5947_v53  ;;  %1716 = vmatprep.subr.bf16.mxu1 %v5949_v54  ;;  %v6040_v53 = vld [vmem:[#allocation2 + $0x380] ss:$16 sps:$4 sm:$0xff]   ;;  %v6043_v54 = vld [vmem:[#allocation2 + $0x388] ss:$16 sps:$4 sm:$0xff]  }
  0x84   :  { %1545 = vmatpush1.bf16.msra.mxu0 %v5951_v55  ;;  %1717 = vmatpush1.bf16.msra.mxu1 %v5952_v56  ;;  %v6048_v55 = vld [vmem:[#allocation2 + $0x3a4] ss:$16 sps:$4 sm:$0xff]   ;;  %v6051_v56 = vld [vmem:[#allocation2 + $0x3ac] ss:$16 sps:$4 sm:$0xff]  }
  0x85   :  { %1546 = vmatprep.subr.bf16.mxu0 %v5953_v57  ;;  %1718 = vmatprep.subr.bf16.mxu1 %v5955_v58  ;;  %v6046_v57 = vld [vmem:[#allocation2 + $0x3a0] ss:$16 sps:$4 sm:$0xff]   ;;  %v6049_v58 = vld [vmem:[#allocation2 + $0x3a8] ss:$16 sps:$4 sm:$0xff]  }
  0x88   :  { %1547 = vmatpush1.bf16.msra.mxu0 %v5957_v59  ;;  %1719 = vmatpush1.bf16.msra.mxu1 %v5958_v60  ;;  %v6054_v59 = vld [vmem:[#allocation2 + $0x3c4] ss:$16 sps:$4 sm:$0xff]   ;;  %v6057_v60 = vld [vmem:[#allocation2 + $0x3cc] ss:$16 sps:$4 sm:$0xff]  }
  0x89   :  { %1548 = vmatprep.subr.bf16.mxu0 %v5959_v61  ;;  %1720 = vmatprep.subr.bf16.mxu1 %v5961_v62  ;;  %v6052_v61 = vld [vmem:[#allocation2 + $0x3c0] ss:$16 sps:$4 sm:$0xff]   ;;  %v6055_v62 = vld [vmem:[#allocation2 + $0x3c8] ss:$16 sps:$4 sm:$0xff]  }
  0x8c   :  { %1549 = vmatpush1.bf16.msra.mxu0 %v5963_v63  ;;  %1721 = vmatpush1.bf16.msra.mxu1 %v5964_v0  ;;  %v6060_v63 = vld [vmem:[#allocation2 + $0x3e4] ss:$16 sps:$4 sm:$0xff]   ;;  %v6063_v0 = vld [vmem:[#allocation2 + $0x3ec] ss:$16 sps:$4 sm:$0xff]  }
  0x8d   :  { %1561 = vmatprep.subr.bf16.mxu0 %v5970_v1  ;;  %1733 = vmatprep.subr.bf16.mxu1 %v5973_v2  ;;  %v6058_v1 = vld [vmem:[#allocation2 + $0x3e0] ss:$16 sps:$4 sm:$0xff]   ;;  %v6061_v2 = vld [vmem:[#allocation2 + $0x3e8] ss:$16 sps:$4 sm:$0xff]  }
  0x8f   :  { %1551 = vmatmul.mubr.bf16.vlgmr.msra.gmra.mrb[0].mxu0 %v5965_v3  ;;  %1723 = vmatmul.mubr.bf16.vlgmr.msra.gmra.mrb[0].mxu1 %v5965_v3  ;;  %v6069_v3 = vld [vmem:[#allocation2 + $0x404] ss:$16 sps:$4 sm:$0xff]  }
  0x90   :  { %1562 = vmatpush1.bf16.msra.mxu0 %v5968_v4  ;;  %1734 = vmatpush1.bf16.msra.mxu1 %v5971_v5  ;;  %v6072_v4 = vld [vmem:[#allocation2 + $0x40c] ss:$16 sps:$4 sm:$0xff]   ;;  %v6064_v5 = vld [vmem:[%s7390_s29 + $0x8] ss:$28 sps:$4 sm:$0xff]  }
  0x91   :  { %1563 = vmatprep.subr.bf16.mxu0 %v5976_v6  ;;  %1735 = vmatprep.subr.bf16.mxu1 %v5979_v7  ;;  %v6067_v6 = vld [vmem:[#allocation2 + $0x400] ss:$16 sps:$4 sm:$0xff]   ;;  %v6070_v7 = vld [vmem:[#allocation2 + $0x408] ss:$16 sps:$4 sm:$0xff]  }
  0x92   :  { %1593 = vmatprep.mubr.bf16.mxu0 %v6066_v30  ;;  %1765 = vmatprep.mubr.bf16.mxu1 %v6066_v30  ;;  %v6108_v30 = vld [vmem:[#allocation2 + $0x4cc] ss:$16 sps:$4 sm:$0xff]  }
  0x94   :  { %1564 = vmatpush1.bf16.msra.mxu0 %v5974_v8  ;;  %1736 = vmatpush1.bf16.msra.mxu1 %v5977_v9  ;;  %v6075_v8 = vld [vmem:[#allocation2 + $0x424] ss:$16 sps:$4 sm:$0xff]   ;;  %v6078_v9 = vld [vmem:[#allocation2 + $0x42c] ss:$16 sps:$4 sm:$0xff]  }
  0x95   :  { %1565 = vmatprep.subr.bf16.mxu0 %v5982_v10  ;;  %1737 = vmatprep.subr.bf16.mxu1 %v5985_v11  ;;  %v6073_v10 = vld [vmem:[#allocation2 + $0x420] ss:$16 sps:$4 sm:$0xff]   ;;  %v6076_v11 = vld [vmem:[#allocation2 + $0x428] ss:$16 sps:$4 sm:$0xff]  }
  0x98   :  { %1566 = vmatpush1.bf16.msra.mxu0 %v5980_v12  ;;  %1738 = vmatpush1.bf16.msra.mxu1 %v5983_v13  ;;  %v6165_v12 = vld [vmem:[%s7390_s29 + $0x14] ss:$28 sps:$4 sm:$0xff]  }
  0x99   :  { %1567 = vmatprep.subr.bf16.mxu0 %v5988_v14  ;;  %1739 = vmatprep.subr.bf16.mxu1 %v5991_v15  ;;  %v6081_v13 = vld [vmem:[#allocation2 + $0x444] ss:$16 sps:$4 sm:$0xff]   ;;  %v6084_v14 = vld [vmem:[#allocation2 + $0x44c] ss:$16 sps:$4 sm:$0xff]   ;;  %v6079_v15 = vld [vmem:[#allocation2 + $0x440] ss:$16 sps:$4 sm:$0xff]  }
  0x9c   :  { %1568 = vmatpush1.bf16.msra.mxu0 %v5986_v16  ;;  %1740 = vmatpush1.bf16.msra.mxu1 %v5989_v17  ;;  %v6082_v16 = vld [vmem:[#allocation2 + $0x448] ss:$16 sps:$4 sm:$0xff]   ;;  %v6087_v17 = vld [vmem:[#allocation2 + $0x464] ss:$16 sps:$4 sm:$0xff]  }
  0x9d   :  { %1569 = vmatprep.subr.bf16.mxu0 %v5994_v18  ;;  %1741 = vmatprep.subr.bf16.mxu1 %v5997_v19  ;;  %v6090_v18 = vld [vmem:[#allocation2 + $0x46c] ss:$16 sps:$4 sm:$0xff]   ;;  %v6085_v19 = vld [vmem:[#allocation2 + $0x460] ss:$16 sps:$4 sm:$0xff]  }
  0xa0   :  { %1570 = vmatpush1.bf16.msra.mxu0 %v5992_v20  ;;  %1742 = vmatpush1.bf16.msra.mxu1 %v5995_v21  ;;  %v6088_v20 = vld [vmem:[#allocation2 + $0x468] ss:$16 sps:$4 sm:$0xff]   ;;  %v6093_v21 = vld [vmem:[#allocation2 + $0x484] ss:$16 sps:$4 sm:$0xff]  }
  0xa1   :  { %1571 = vmatprep.subr.bf16.mxu0 %v6000_v22  ;;  %1743 = vmatprep.subr.bf16.mxu1 %v6003_v23  ;;  %v6096_v22 = vld [vmem:[#allocation2 + $0x48c] ss:$16 sps:$4 sm:$0xff]   ;;  %v6091_v23 = vld [vmem:[#allocation2 + $0x480] ss:$16 sps:$4 sm:$0xff]  }
  0xa4   :  { %1572 = vmatpush1.bf16.msra.mxu0 %v5998_v24  ;;  %1744 = vmatpush1.bf16.msra.mxu1 %v6001_v25  ;;  %v6094_v24 = vld [vmem:[#allocation2 + $0x488] ss:$16 sps:$4 sm:$0xff]   ;;  %v6099_v25 = vld [vmem:[#allocation2 + $0x4a4] ss:$16 sps:$4 sm:$0xff]  }
  0xa5   :  { %1573 = vmatprep.subr.bf16.mxu0 %v6006_v26  ;;  %1745 = vmatprep.subr.bf16.mxu1 %v6009_v27  ;;  %v6102_v26 = vld [vmem:[#allocation2 + $0x4ac] ss:$16 sps:$4 sm:$0xff]   ;;  %v6097_v27 = vld [vmem:[#allocation2 + $0x4a0] ss:$16 sps:$4 sm:$0xff]  }
  0xa8   :  { %1574 = vmatpush1.bf16.msra.mxu0 %v6004_v28  ;;  %1746 = vmatpush1.bf16.msra.mxu1 %v6007_v29  ;;  %v6100_v28 = vld [vmem:[#allocation2 + $0x4a8] ss:$16 sps:$4 sm:$0xff]   ;;  %v6105_v29 = vld [vmem:[#allocation2 + $0x4c4] ss:$16 sps:$4 sm:$0xff]  }
  0xa9   :  { %1575 = vmatprep.subr.bf16.mxu0 %v6012_v31  ;;  %1747 = vmatprep.subr.bf16.mxu1 %v6015_v32  ;;  %v6103_v31 = vld [vmem:[#allocation2 + $0x4c0] ss:$16 sps:$4 sm:$0xff]   ;;  %v6106_v32 = vld [vmem:[#allocation2 + $0x4c8] ss:$16 sps:$4 sm:$0xff]  }
  0xac   :  { %1576 = vmatpush1.bf16.msra.mxu0 %v6010_v33  ;;  %1748 = vmatpush1.bf16.msra.mxu1 %v6013_v34  ;;  %v6111_v33 = vld [vmem:[#allocation2 + $0x4e4] ss:$16 sps:$4 sm:$0xff]   ;;  %v6114_v34 = vld [vmem:[#allocation2 + $0x4ec] ss:$16 sps:$4 sm:$0xff]  }
  0xad   :  { %1577 = vmatprep.subr.bf16.mxu0 %v6018_v35  ;;  %1749 = vmatprep.subr.bf16.mxu1 %v6021_v36  ;;  %v6109_v35 = vld [vmem:[#allocation2 + $0x4e0] ss:$16 sps:$4 sm:$0xff]   ;;  %v6112_v36 = vld [vmem:[#allocation2 + $0x4e8] ss:$16 sps:$4 sm:$0xff]  }
  0xb0   :  { %1578 = vmatpush1.bf16.msra.mxu0 %v6016_v37  ;;  %1750 = vmatpush1.bf16.msra.mxu1 %v6019_v38  ;;  %v6117_v37 = vld [vmem:[#allocation2 + $0x504] ss:$16 sps:$4 sm:$0xff]   ;;  %v6120_v38 = vld [vmem:[#allocation2 + $0x50c] ss:$16 sps:$4 sm:$0xff]  }
  0xb1   :  { %1579 = vmatprep.subr.bf16.mxu0 %v6024_v39  ;;  %1751 = vmatprep.subr.bf16.mxu1 %v6027_v40  ;;  %v6115_v39 = vld [vmem:[#allocation2 + $0x500] ss:$16 sps:$4 sm:$0xff]   ;;  %v6118_v40 = vld [vmem:[#allocation2 + $0x508] ss:$16 sps:$4 sm:$0xff]  }
  0xb4   :  { %1580 = vmatpush1.bf16.msra.mxu0 %v6022_v41  ;;  %1752 = vmatpush1.bf16.msra.mxu1 %v6025_v42  ;;  %v6123_v41 = vld [vmem:[#allocation2 + $0x524] ss:$16 sps:$4 sm:$0xff]   ;;  %v6126_v42 = vld [vmem:[#allocation2 + $0x52c] ss:$16 sps:$4 sm:$0xff]  }
  0xb5   :  { %1581 = vmatprep.subr.bf16.mxu0 %v6030_v43  ;;  %1753 = vmatprep.subr.bf16.mxu1 %v6033_v44  ;;  %v6121_v43 = vld [vmem:[#allocation2 + $0x520] ss:$16 sps:$4 sm:$0xff]   ;;  %v6124_v44 = vld [vmem:[#allocation2 + $0x528] ss:$16 sps:$4 sm:$0xff]  }
  0xb8   :  { %1582 = vmatpush1.bf16.msra.mxu0 %v6028_v45  ;;  %1754 = vmatpush1.bf16.msra.mxu1 %v6031_v46  ;;  %v6129_v45 = vld [vmem:[#allocation2 + $0x544] ss:$16 sps:$4 sm:$0xff]   ;;  %v6132_v46 = vld [vmem:[#allocation2 + $0x54c] ss:$16 sps:$4 sm:$0xff]  }
  0xb9   :  { %1583 = vmatprep.subr.bf16.mxu0 %v6036_v47  ;;  %1755 = vmatprep.subr.bf16.mxu1 %v6039_v48  ;;  %v6127_v47 = vld [vmem:[#allocation2 + $0x540] ss:$16 sps:$4 sm:$0xff]   ;;  %v6130_v48 = vld [vmem:[#allocation2 + $0x548] ss:$16 sps:$4 sm:$0xff]  }
  0xbc   :  { %1584 = vmatpush1.bf16.msra.mxu0 %v6034_v49  ;;  %1756 = vmatpush1.bf16.msra.mxu1 %v6037_v50  ;;  %v6135_v49 = vld [vmem:[#allocation2 + $0x564] ss:$16 sps:$4 sm:$0xff]   ;;  %v6138_v50 = vld [vmem:[#allocation2 + $0x56c] ss:$16 sps:$4 sm:$0xff]  }
  0xbd   :  { %1585 = vmatprep.subr.bf16.mxu0 %v6042_v51  ;;  %1757 = vmatprep.subr.bf16.mxu1 %v6045_v52  ;;  %v6133_v51 = vld [vmem:[#allocation2 + $0x560] ss:$16 sps:$4 sm:$0xff]   ;;  %v6136_v52 = vld [vmem:[#allocation2 + $0x568] ss:$16 sps:$4 sm:$0xff]  }
  0xc0   :  { %1586 = vmatpush1.bf16.msra.mxu0 %v6040_v53  ;;  %1758 = vmatpush1.bf16.msra.mxu1 %v6043_v54  ;;  %v6141_v53 = vld [vmem:[#allocation2 + $0x584] ss:$16 sps:$4 sm:$0xff]   ;;  %v6144_v54 = vld [vmem:[#allocation2 + $0x58c] ss:$16 sps:$4 sm:$0xff]  }
  0xc1   :  { %1587 = vmatprep.subr.bf16.mxu0 %v6048_v55  ;;  %1759 = vmatprep.subr.bf16.mxu1 %v6051_v56  ;;  %v6139_v55 = vld [vmem:[#allocation2 + $0x580] ss:$16 sps:$4 sm:$0xff]   ;;  %v6142_v56 = vld [vmem:[#allocation2 + $0x588] ss:$16 sps:$4 sm:$0xff]  }
  0xc4   :  { %1588 = vmatpush1.bf16.msra.mxu0 %v6046_v57  ;;  %1760 = vmatpush1.bf16.msra.mxu1 %v6049_v58  ;;  %v6147_v57 = vld [vmem:[#allocation2 + $0x5a4] ss:$16 sps:$4 sm:$0xff]   ;;  %v6150_v58 = vld [vmem:[#allocation2 + $0x5ac] ss:$16 sps:$4 sm:$0xff]  }
  0xc5   :  { %1589 = vmatprep.subr.bf16.mxu0 %v6054_v59  ;;  %1761 = vmatprep.subr.bf16.mxu1 %v6057_v60  ;;  %v6145_v59 = vld [vmem:[#allocation2 + $0x5a0] ss:$16 sps:$4 sm:$0xff]   ;;  %v6148_v60 = vld [vmem:[#allocation2 + $0x5a8] ss:$16 sps:$4 sm:$0xff]  }
  0xc8   :  { %1590 = vmatpush1.bf16.msra.mxu0 %v6052_v61  ;;  %1762 = vmatpush1.bf16.msra.mxu1 %v6055_v62  ;;  %v6153_v61 = vld [vmem:[#allocation2 + $0x5c4] ss:$16 sps:$4 sm:$0xff]   ;;  %v6156_v62 = vld [vmem:[#allocation2 + $0x5cc] ss:$16 sps:$4 sm:$0xff]  }
  0xc9   :  { %1591 = vmatprep.subr.bf16.mxu0 %v6060_v63  ;;  %1763 = vmatprep.subr.bf16.mxu1 %v6063_v0  ;;  %v6151_v63 = vld [vmem:[#allocation2 + $0x5c0] ss:$16 sps:$4 sm:$0xff]   ;;  %v6154_v0 = vld [vmem:[#allocation2 + $0x5c8] ss:$16 sps:$4 sm:$0xff]  }
  0xcc   :  { %1592 = vmatpush1.bf16.msra.mxu0 %v6058_v1  ;;  %1764 = vmatpush1.bf16.msra.mxu1 %v6061_v2  ;;  %v6159_v1 = vld [vmem:[#allocation2 + $0x5e4] ss:$16 sps:$4 sm:$0xff]   ;;  %v6162_v2 = vld [vmem:[#allocation2 + $0x5ec] ss:$16 sps:$4 sm:$0xff]  }
  0xcd   :  { %1604 = vmatprep.subr.bf16.mxu0 %v6069_v3  ;;  %1776 = vmatprep.subr.bf16.mxu1 %v6072_v4  ;;  %v6157_v3 = vld [vmem:[#allocation2 + $0x5e0] ss:$16 sps:$4 sm:$0xff]   ;;  %v6160_v4 = vld [vmem:[#allocation2 + $0x5e8] ss:$16 sps:$4 sm:$0xff]  }
  0xcf   :  { %1594 = vmatmul.mubr.bf16.vlgmr.msra.gmra.mrb[0].mxu0 %v6064_v5  ;;  %1766 = vmatmul.mubr.bf16.vlgmr.msra.gmra.mrb[0].mxu1 %v6064_v5  ;;  %v6168_v5 = vld [vmem:[#allocation2 + $0x604] ss:$16 sps:$4 sm:$0xff]  }
  0xd0   :  { %1605 = vmatpush1.bf16.msra.mxu0 %v6067_v6  ;;  %1777 = vmatpush1.bf16.msra.mxu1 %v6070_v7  ;;  %v6171_v6 = vld [vmem:[#allocation2 + $0x60c] ss:$16 sps:$4 sm:$0xff]  }
  0xd1   :  { %1606 = vmatprep.subr.bf16.mxu0 %v6075_v8  ;;  %1778 = vmatprep.subr.bf16.mxu1 %v6078_v9  ;;  %v6163_v7 = vld [vmem:[%s7390_s29 + $0x10] ss:$28 sps:$4 sm:$0xff]   ;;  %v6169_v9 = vld [vmem:[#allocation2 + $0x608] ss:$16 sps:$4 sm:$0xff]  }
  0xd2   :  { %1636 = vmatprep.mubr.bf16.mxu0 %v6165_v12  ;;  %1808 = vmatprep.mubr.bf16.mxu1 %v6165_v12  ;;  %v6166_v8 = vld [vmem:[#allocation2 + $0x600] ss:$16 sps:$4 sm:$0xff]  }
  0xd3   :  { %v6172_v12 = vld [vmem:[#allocation2 + $0x620] ss:$16 sps:$4 sm:$0xff]  }
  0xd4   :  { %1607 = vmatpush1.bf16.msra.mxu0 %v6073_v10  ;;  %1779 = vmatpush1.bf16.msra.mxu1 %v6076_v11  ;;  %v6174_v10 = vld [vmem:[#allocation2 + $0x624] ss:$16 sps:$4 sm:$0xff]   ;;  %v6177_v11 = vld [vmem:[#allocation2 + $0x62c] ss:$16 sps:$4 sm:$0xff]  }
  0xd5   :  { %1608 = vmatprep.subr.bf16.mxu0 %v6081_v13  ;;  %1780 = vmatprep.subr.bf16.mxu1 %v6084_v14  ;;  %v6175_v13 = vld [vmem:[#allocation2 + $0x628] ss:$16 sps:$4 sm:$0xff]   ;;  %v6180_v14 = vld [vmem:[#allocation2 + $0x644] ss:$16 sps:$4 sm:$0xff]  }
  0xd8   :  { %1609 = vmatpush1.bf16.msra.mxu0 %v6079_v15  ;;  %1781 = vmatpush1.bf16.msra.mxu1 %v6082_v16  ;;  %v6183_v15 = vld [vmem:[#allocation2 + $0x64c] ss:$16 sps:$4 sm:$0xff]   ;;  %v6178_v16 = vld [vmem:[#allocation2 + $0x640] ss:$16 sps:$4 sm:$0xff]  }
  0xd9   :  { %1610 = vmatprep.subr.bf16.mxu0 %v6087_v17  ;;  %1782 = vmatprep.subr.bf16.mxu1 %v6090_v18  ;;  %v6181_v17 = vld [vmem:[#allocation2 + $0x648] ss:$16 sps:$4 sm:$0xff]   ;;  %v6983_v18 = vmov 0  }
  0xdc   :  { %1611 = vmatpush1.bf16.msra.mxu0 %v6085_v19  ;;  %1783 = vmatpush1.bf16.msra.mxu1 %v6088_v20  ;;  %v6186_v19 = vld [vmem:[#allocation2 + $0x664] ss:$16 sps:$4 sm:$0xff]   ;;  %v6189_v20 = vld [vmem:[#allocation2 + $0x66c] ss:$16 sps:$4 sm:$0xff]  }
  0xdd   :  { %1612 = vmatprep.subr.bf16.mxu0 %v6093_v21  ;;  %1784 = vmatprep.subr.bf16.mxu1 %v6096_v22  ;;  %v6184_v21 = vld [vmem:[#allocation2 + $0x660] ss:$16 sps:$4 sm:$0xff]   ;;  %v6187_v22 = vld [vmem:[#allocation2 + $0x668] ss:$16 sps:$4 sm:$0xff]  }
  0xe0   :  { %1613 = vmatpush1.bf16.msra.mxu0 %v6091_v23  ;;  %1785 = vmatpush1.bf16.msra.mxu1 %v6094_v24  ;;  %v6192_v23 = vld [vmem:[#allocation2 + $0x684] ss:$16 sps:$4 sm:$0xff]   ;;  %v6195_v24 = vld [vmem:[#allocation2 + $0x68c] ss:$16 sps:$4 sm:$0xff]  }
  0xe1   :  { %1614 = vmatprep.subr.bf16.mxu0 %v6099_v25  ;;  %1786 = vmatprep.subr.bf16.mxu1 %v6102_v26  ;;  %v6190_v25 = vld [vmem:[#allocation2 + $0x680] ss:$16 sps:$4 sm:$0xff]   ;;  %v6193_v26 = vld [vmem:[#allocation2 + $0x688] ss:$16 sps:$4 sm:$0xff]  }
  0xe4   :  { %1615 = vmatpush1.bf16.msra.mxu0 %v6097_v27  ;;  %1787 = vmatpush1.bf16.msra.mxu1 %v6100_v28  ;;  %v6198_v27 = vld [vmem:[#allocation2 + $0x6a4] ss:$16 sps:$4 sm:$0xff]   ;;  %v6201_v28 = vld [vmem:[#allocation2 + $0x6ac] ss:$16 sps:$4 sm:$0xff]  }
  0xe5   :  { %1616 = vmatprep.subr.bf16.mxu0 %v6105_v29  ;;  %1788 = vmatprep.subr.bf16.mxu1 %v6108_v30  ;;  %v6196_v29 = vld [vmem:[#allocation2 + $0x6a0] ss:$16 sps:$4 sm:$0xff]   ;;  %v6199_v30 = vld [vmem:[#allocation2 + $0x6a8] ss:$16 sps:$4 sm:$0xff]  }
  0xe8   :  { %1617 = vmatpush1.bf16.msra.mxu0 %v6103_v31  ;;  %1789 = vmatpush1.bf16.msra.mxu1 %v6106_v32  ;;  %v6204_v31 = vld [vmem:[#allocation2 + $0x6c4] ss:$16 sps:$4 sm:$0xff]   ;;  %v6207_v32 = vld [vmem:[#allocation2 + $0x6cc] ss:$16 sps:$4 sm:$0xff]  }
  0xe9   :  { %1618 = vmatprep.subr.bf16.mxu0 %v6111_v33  ;;  %1790 = vmatprep.subr.bf16.mxu1 %v6114_v34  ;;  %v6202_v33 = vld [vmem:[#allocation2 + $0x6c0] ss:$16 sps:$4 sm:$0xff]   ;;  %v6205_v34 = vld [vmem:[#allocation2 + $0x6c8] ss:$16 sps:$4 sm:$0xff]  }
  0xec   :  { %1619 = vmatpush1.bf16.msra.mxu0 %v6109_v35  ;;  %1791 = vmatpush1.bf16.msra.mxu1 %v6112_v36  ;;  %v6210_v35 = vld [vmem:[#allocation2 + $0x6e4] ss:$16 sps:$4 sm:$0xff]   ;;  %v6213_v36 = vld [vmem:[#allocation2 + $0x6ec] ss:$16 sps:$4 sm:$0xff]  }
  0xed   :  { %1620 = vmatprep.subr.bf16.mxu0 %v6117_v37  ;;  %1792 = vmatprep.subr.bf16.mxu1 %v6120_v38  ;;  %v6208_v37 = vld [vmem:[#allocation2 + $0x6e0] ss:$16 sps:$4 sm:$0xff]   ;;  %v6211_v38 = vld [vmem:[#allocation2 + $0x6e8] ss:$16 sps:$4 sm:$0xff]  }
  0xf0   :  { %1621 = vmatpush1.bf16.msra.mxu0 %v6115_v39  ;;  %1793 = vmatpush1.bf16.msra.mxu1 %v6118_v40  ;;  %v6217_v39 = vld [vmem:[#allocation5 + $0x4] ss:$8 sps:$4 sm:$0xff]   ;;  %v6214_v40 = vld [vmem:[%s7390_s29 + $0x18] ss:$28 sps:$4 sm:$0xff]  }
  0xf1   :  { %1622 = vmatprep.subr.bf16.mxu0 %v6123_v41  ;;  %1794 = vmatprep.subr.bf16.mxu1 %v6126_v42  ;;  %v6215_v41 = vld [vmem:[#allocation5] ss:$8 sps:$4 sm:$0xff]   ;;  %v6220_v42 = vld [vmem:[#allocation5 + $0x14] ss:$8 sps:$4 sm:$0xff]  }
  0xf4   :  { %1623 = vmatpush1.bf16.msra.mxu0 %v6121_v43  ;;  %1795 = vmatpush1.bf16.msra.mxu1 %v6124_v44  ;;  %v6218_v43 = vld [vmem:[#allocation5 + $0x10] ss:$8 sps:$4 sm:$0xff]   ;;  %v6223_v44 = vld [vmem:[#allocation5 + $0x24] ss:$8 sps:$4 sm:$0xff]  }
  0xf5   :  { %1624 = vmatprep.subr.bf16.mxu0 %v6129_v45  ;;  %1796 = vmatprep.subr.bf16.mxu1 %v6132_v46  ;;  %v6221_v45 = vld [vmem:[#allocation5 + $0x20] ss:$8 sps:$4 sm:$0xff]   ;;  %v6226_v46 = vld [vmem:[#allocation5 + $0x34] ss:$8 sps:$4 sm:$0xff]  }
  0xf8   :  { %1625 = vmatpush1.bf16.msra.mxu0 %v6127_v47  ;;  %1797 = vmatpush1.bf16.msra.mxu1 %v6130_v48  ;;  %v6224_v47 = vld [vmem:[#allocation5 + $0x30] ss:$8 sps:$4 sm:$0xff]   ;;  %v6229_v48 = vld [vmem:[#allocation5 + $0x44] ss:$8 sps:$4 sm:$0xff]  }
  0xf9   :  { %1626 = vmatprep.subr.bf16.mxu0 %v6135_v49  ;;  %1798 = vmatprep.subr.bf16.mxu1 %v6138_v50  ;;  %v6227_v49 = vld [vmem:[#allocation5 + $0x40] ss:$8 sps:$4 sm:$0xff]   ;;  %v6232_v50 = vld [vmem:[#allocation5 + $0x54] ss:$8 sps:$4 sm:$0xff]  }
  0xfc   :  { %1627 = vmatpush1.bf16.msra.mxu0 %v6133_v51  ;;  %1799 = vmatpush1.bf16.msra.mxu1 %v6136_v52  ;;  %v6230_v51 = vld [vmem:[#allocation5 + $0x50] ss:$8 sps:$4 sm:$0xff]   ;;  %v6235_v52 = vld [vmem:[#allocation5 + $0x64] ss:$8 sps:$4 sm:$0xff]  }
  0xfd   :  { %1628 = vmatprep.subr.bf16.mxu0 %v6141_v53  ;;  %1800 = vmatprep.subr.bf16.mxu1 %v6144_v54  ;;  %v6233_v53 = vld [vmem:[#allocation5 + $0x60] ss:$8 sps:$4 sm:$0xff]   ;;  %v6238_v54 = vld [vmem:[#allocation5 + $0x74] ss:$8 sps:$4 sm:$0xff]  }
 0x100   :  { %1629 = vmatpush1.bf16.msra.mxu0 %v6139_v55  ;;  %1801 = vmatpush1.bf16.msra.mxu1 %v6142_v56  ;;  %v6236_v55 = vld [vmem:[#allocation5 + $0x70] ss:$8 sps:$4 sm:$0xff]   ;;  %v6241_v56 = vld [vmem:[#allocation5 + $0x84] ss:$8 sps:$4 sm:$0xff]  }
 0x101   :  { %1630 = vmatprep.subr.bf16.mxu0 %v6147_v57  ;;  %1802 = vmatprep.subr.bf16.mxu1 %v6150_v58  ;;  %v6239_v57 = vld [vmem:[#allocation5 + $0x80] ss:$8 sps:$4 sm:$0xff]   ;;  %v6244_v58 = vld [vmem:[#allocation5 + $0x94] ss:$8 sps:$4 sm:$0xff]  }
 0x104   :  { %1631 = vmatpush1.bf16.msra.mxu0 %v6145_v59  ;;  %1803 = vmatpush1.bf16.msra.mxu1 %v6148_v60  ;;  %v6242_v59 = vld [vmem:[#allocation5 + $0x90] ss:$8 sps:$4 sm:$0xff]   ;;  %v6247_v60 = vld [vmem:[#allocation5 + $0xa4] ss:$8 sps:$4 sm:$0xff]  }
 0x105   :  { %1632 = vmatprep.subr.bf16.mxu0 %v6153_v61  ;;  %1804 = vmatprep.subr.bf16.mxu1 %v6156_v62  ;;  %v6245_v61 = vld [vmem:[#allocation5 + $0xa0] ss:$8 sps:$4 sm:$0xff]   ;;  %v6250_v62 = vld [vmem:[#allocation5 + $0xb4] ss:$8 sps:$4 sm:$0xff]  }
 0x108   :  { %1633 = vmatpush1.bf16.msra.mxu0 %v6151_v63  ;;  %1805 = vmatpush1.bf16.msra.mxu1 %v6154_v0  ;;  %v6248_v63 = vld [vmem:[#allocation5 + $0xb0] ss:$8 sps:$4 sm:$0xff]   ;;  %v6253_v0 = vld [vmem:[#allocation5 + $0xc4] ss:$8 sps:$4 sm:$0xff]  }
 0x109   :  { %1634 = vmatprep.subr.bf16.mxu0 %v6159_v1  ;;  %1806 = vmatprep.subr.bf16.mxu1 %v6162_v2  ;;  %v6251_v1 = vld [vmem:[#allocation5 + $0xc0] ss:$8 sps:$4 sm:$0xff]   ;;  %v6256_v2 = vld [vmem:[#allocation5 + $0xd4] ss:$8 sps:$4 sm:$0xff]  }
 0x10c   :  { %1635 = vmatpush1.bf16.msra.mxu0 %v6157_v3  ;;  %1807 = vmatpush1.bf16.msra.mxu1 %v6160_v4  ;;  %v6254_v3 = vld [vmem:[#allocation5 + $0xd0] ss:$8 sps:$4 sm:$0xff]   ;;  %v6259_v4 = vld [vmem:[#allocation5 + $0xe4] ss:$8 sps:$4 sm:$0xff]  }
 0x10d   :  { %1647 = vmatprep.subr.bf16.mxu0 %v6168_v5  ;;  %1819 = vmatprep.subr.bf16.mxu1 %v6171_v6  ;;  %v6257_v5 = vld [vmem:[#allocation5 + $0xe0] ss:$8 sps:$4 sm:$0xff]   ;;  %v6262_v6 = vld [vmem:[#allocation5 + $0xf4] ss:$8 sps:$4 sm:$0xff]  }
 0x10f   :  { %1637 = vmatmul.mubr.bf16.vlgmr.msra.gmra.mrb[0].mxu0 %v6163_v7  ;;  %1809 = vmatmul.mubr.bf16.vlgmr.msra.gmra.mrb[0].mxu1 %v6163_v7  ;;  %v6260_v7 = vld [vmem:[#allocation5 + $0xf0] ss:$8 sps:$4 sm:$0xff]  }
 0x110   :  { %1648 = vmatpush1.bf16.msra.mxu0 %v6166_v8  ;;  %1820 = vmatpush1.bf16.msra.mxu1 %v6169_v9  ;;  %v6265_v8 = vld [vmem:[#allocation5 + $0x104] ss:$8 sps:$4 sm:$0xff]  }
 0x111   :  { %1649 = vmatprep.subr.bf16.mxu0 %v6174_v10  ;;  %1821 = vmatprep.subr.bf16.mxu1 %v6177_v11  ;;  %v6311_v9 = vld [vmem:[%s7373_s6 + $0x40] sm:$0xff]   ;;  %v6313_v11 = vld [vmem:[%s7373_s6 + $0x48] sm:$0xff]  }
 0x112   :  { %1679 = vmatprep.mubr.bf16.mxu0 %v6983_v18  ;;  %1851 = vmatprep.mubr.bf16.mxu1 %v6983_v18  ;;  %v6312_v10 = vld [vmem:[%s7373_s6] sm:$0xff]  }
 0x114   :  { %1650 = vmatpush1.bf16.msra.mxu0 %v6172_v12  ;;  %1822 = vmatpush1.bf16.msra.mxu1 %v6175_v13  ;;  %v6314_v12 = vld [vmem:[%s7373_s6 + $0x8] sm:$0xff]   ;;  %v6315_v13 = vld [vmem:[%s7373_s6 + $0x50] sm:$0xff]  }
 0x115   :  { %1651 = vmatprep.subr.bf16.mxu0 %v6180_v14  ;;  %1823 = vmatprep.subr.bf16.mxu1 %v6183_v15  ;;  %v6316_v14 = vld [vmem:[%s7373_s6 + $0x10] sm:$0xff]   ;;  %v6317_v15 = vld [vmem:[%s7373_s6 + $0x58] sm:$0xff]  }
 0x118   :  { %1652 = vmatpush1.bf16.msra.mxu0 %v6178_v16  ;;  %1824 = vmatpush1.bf16.msra.mxu1 %v6181_v17  ;;  %v6318_v16 = vld [vmem:[%s7373_s6 + $0x18] sm:$0xff]   ;;  %v6319_v17 = vld [vmem:[%s7373_s6 + $0x60] sm:$0xff]  }
 0x119   :  { %1653 = vmatprep.subr.bf16.mxu0 %v6186_v19  ;;  %1825 = vmatprep.subr.bf16.mxu1 %v6189_v20  ;;  %v6320_v19 = vld [vmem:[%s7373_s6 + $0x20] sm:$0xff]   ;;  %v6321_v20 = vld [vmem:[%s7373_s6 + $0x68] sm:$0xff]  }
 0x11c   :  { %1654 = vmatpush1.bf16.msra.mxu0 %v6184_v21  ;;  %1826 = vmatpush1.bf16.msra.mxu1 %v6187_v22  ;;  %v342_v21 = vlaneseq }
 0x11d   :  { %1655 = vmatprep.subr.bf16.mxu0 %v6192_v23  ;;  %1827 = vmatprep.subr.bf16.mxu1 %v6195_v24 }
 0x11e   :  { %v7189_v22 = vshrl.u32 %v342_v21, 7  ;;  %v6299_v21 = vld [vmem:[#allocation5 + $0x1c0] ss:$8 sps:$4 sm:$0xff]  }
 0x120   :  { %1656 = vmatpush1.bf16.msra.mxu0 %v6190_v25  ;;  %1828 = vmatpush1.bf16.msra.mxu1 %v6193_v26  ;;  %v7192_v23 = vsub.s32 0, %v7189_v22  ;;  %v7195_v24 = vsub.s32 2, %v7189_v22  ;;  %v340_v25 = vld [vmem:[%s7370_s3] sm:$0xf]  ;;  %v7201_v26 = vsub.s32 1, %v7189_v22 }
 0x121   :  { %1657 = vmatprep.subr.bf16.mxu0 %v6198_v27  ;;  %1829 = vmatprep.subr.bf16.mxu1 %v6201_v28  ;;  %v7204_v27 = vsub.s32 3, %v7189_v22 }
 0x122   :  { %v345_v28 = vrot.slane %v340_v25, %v7192_v23 }
 0x124   :  { %1658 = vmatpush1.bf16.msra.mxu0 %v6196_v29  ;;  %1830 = vmatpush1.bf16.msra.mxu1 %v6199_v30  ;;  %v353_v29 = vrot.slane %v340_v25, %v7195_v24  ;;  %v349_v30 = vrot.slane %v340_v25, %v7201_v26 }
 0x125   :  { %1659 = vmatprep.subr.bf16.mxu0 %v6204_v31  ;;  %1831 = vmatprep.subr.bf16.mxu1 %v6207_v32  ;;  %v357_v31 = vrot.slane %v340_v25, %v7204_v27  ;;  %v6304_v25 = vld [vmem:[#allocation5 + $0x1d4] ss:$8 sps:$4 sm:$0xff]  }
 0x128   :  { %1660 = vmatpush1.bf16.msra.mxu0 %v6202_v33  ;;  %1832 = vmatpush1.bf16.msra.mxu1 %v6205_v34 }
 0x129   :  { %1661 = vmatprep.subr.bf16.mxu0 %v6210_v35  ;;  %1833 = vmatprep.subr.bf16.mxu1 %v6213_v36 }
 0x12c   :  { %1662 = vmatpush1.bf16.msra.mxu0 %v6208_v37  ;;  %1834 = vmatpush1.bf16.msra.mxu1 %v6211_v38 }
 0x12d   :  { %2270 = vmatprep.subr.bf16.mxu0 %v6217_v39  ;;  %5722 = vmatprep.subr.bf16.mxu1 %v6311_v9  ;;  %v6286_v9 = vld [vmem:[#allocation5 + $0x174] ss:$8 sps:$4 sm:$0xff]  }
 0x12f   :  { %1680 = vmatmul.mubr.bf16.vlgmr.msra.gmra.mrb[0].mxu0 %v6214_v40  ;;  %1852 = vmatmul.mubr.bf16.vlgmr.msra.gmra.mrb[0].mxu1 %v6214_v40 }
 0x130   :  { %2271 = vmatpush1.bf16.msra.mxu0 %v6215_v41  ;;  %5723 = vmatpush3.bf16.msra.mxu1 %v6312_v10  ;;  %v6284_v10 = vld [vmem:[#allocation5 + $0x170] ss:$8 sps:$4 sm:$0xff]  }
 0x131   :  { %2272 = vmatprep.subr.bf16.mxu0 %v6220_v42  ;;  %5724 = vmatprep.subr.bf16.mxu1 %v6313_v11  ;;  %v6289_v11 = vld [vmem:[#allocation5 + $0x184] ss:$8 sps:$4 sm:$0xff]  }
 0x134   :  { %2273 = vmatpush1.bf16.msra.mxu0 %v6218_v43  ;;  %5725 = vmatpush3.bf16.msra.mxu1 %v6314_v12  ;;  %v6287_v12 = vld [vmem:[#allocation5 + $0x180] ss:$8 sps:$4 sm:$0xff]  }
 0x135   :  { %2274 = vmatprep.subr.bf16.mxu0 %v6223_v44  ;;  %5726 = vmatprep.subr.bf16.mxu1 %v6315_v13  ;;  %v6292_v13 = vld [vmem:[#allocation5 + $0x194] ss:$8 sps:$4 sm:$0xff]  }
 0x138   :  { %2275 = vmatpush1.bf16.msra.mxu0 %v6221_v45  ;;  %5727 = vmatpush3.bf16.msra.mxu1 %v6316_v14  ;;  %v6290_v14 = vld [vmem:[#allocation5 + $0x190] ss:$8 sps:$4 sm:$0xff]  }
 0x139   :  { %2276 = vmatprep.subr.bf16.mxu0 %v6226_v46  ;;  %5728 = vmatprep.subr.bf16.mxu1 %v6317_v15  ;;  %v6295_v15 = vld [vmem:[#allocation5 + $0x1a4] ss:$8 sps:$4 sm:$0xff]  }
 0x13c   :  { %2277 = vmatpush1.bf16.msra.mxu0 %v6224_v47  ;;  %5729 = vmatpush3.bf16.msra.mxu1 %v6318_v16  ;;  %v6293_v16 = vld [vmem:[#allocation5 + $0x1a0] ss:$8 sps:$4 sm:$0xff]  }
 0x13d   :  { %2278 = vmatprep.subr.bf16.mxu0 %v6229_v48  ;;  %5730 = vmatprep.subr.bf16.mxu1 %v6319_v17  ;;  %v6298_v17 = vld [vmem:[#allocation5 + $0x1b4] ss:$8 sps:$4 sm:$0xff]  }
 0x140   :  { %2279 = vmatpush1.bf16.msra.mxu0 %v6227_v49  ;;  %5731 = vmatpush3.bf16.msra.mxu1 %v6320_v19  ;;  %v6296_v19 = vld [vmem:[#allocation5 + $0x1b0] ss:$8 sps:$4 sm:$0xff]  }
 0x141   :  { %2280 = vmatprep.subr.bf16.mxu0 %v6232_v50  ;;  %5732 = vmatprep.subr.bf16.mxu1 %v6321_v20  ;;  %v6301_v20 = vld [vmem:[#allocation5 + $0x1c4] ss:$8 sps:$4 sm:$0xff]  }
 0x144   :  { %2281 = vmatpush1.bf16.msra.mxu0 %v6230_v51 }
 0x145   :  { %2282 = vmatprep.subr.bf16.mxu0 %v6235_v52 }
 0x148   :  { %2283 = vmatpush1.bf16.msra.mxu0 %v6233_v53 }
 0x149   :  { %2284 = vmatprep.subr.bf16.mxu0 %v6238_v54 }
 0x14c   :  { %2285 = vmatpush1.bf16.msra.mxu0 %v6236_v55 }
 0x14d   :  { %2286 = vmatprep.subr.bf16.mxu0 %v6241_v56 }
 0x150   :  { %2287 = vmatpush1.bf16.msra.mxu0 %v6239_v57 }
 0x151   :  { %2288 = vmatprep.subr.bf16.mxu0 %v6244_v58 }
 0x154   :  { %2289 = vmatpush1.bf16.msra.mxu0 %v6242_v59 }
 0x155   :  { %2290 = vmatprep.subr.bf16.mxu0 %v6247_v60  ;;  %v6263_v60 = vld [vmem:[#allocation5 + $0x100] ss:$8 sps:$4 sm:$0xff]  }
 0x158   :  { %2291 = vmatpush1.bf16.msra.mxu0 %v6245_v61  ;;  %v6268_v61 = vld [vmem:[#allocation5 + $0x114] ss:$8 sps:$4 sm:$0xff]  }
 0x159   :  { %2292 = vmatprep.subr.bf16.mxu0 %v6250_v62  ;;  %v6266_v62 = vld [vmem:[#allocation5 + $0x110] ss:$8 sps:$4 sm:$0xff]  }
 0x15c   :  { %2293 = vmatpush1.bf16.msra.mxu0 %v6248_v63  ;;  %v6271_v63 = vld [vmem:[#allocation5 + $0x124] ss:$8 sps:$4 sm:$0xff]  }
 0x15d   :  { %2294 = vmatprep.subr.bf16.mxu0 %v6253_v0  ;;  %v6269_v0 = vld [vmem:[#allocation5 + $0x120] ss:$8 sps:$4 sm:$0xff]  }
 0x160   :  { %2295 = vmatpush1.bf16.msra.mxu0 %v6251_v1  ;;  %v6274_v1 = vld [vmem:[#allocation5 + $0x134] ss:$8 sps:$4 sm:$0xff]  }
 0x161   :  { %2296 = vmatprep.subr.bf16.mxu0 %v6256_v2  ;;  %v6272_v2 = vld [vmem:[#allocation5 + $0x130] ss:$8 sps:$4 sm:$0xff]  }
 0x164   :  { %2297 = vmatpush1.bf16.msra.mxu0 %v6254_v3  ;;  %v6277_v3 = vld [vmem:[#allocation5 + $0x144] ss:$8 sps:$4 sm:$0xff]  }
 0x165   :  { %2298 = vmatprep.subr.bf16.mxu0 %v6259_v4  ;;  %v6275_v4 = vld [vmem:[#allocation5 + $0x140] ss:$8 sps:$4 sm:$0xff]  }
 0x168   :  { %2299 = vmatpush1.bf16.msra.mxu0 %v6257_v5  ;;  %v6280_v5 = vld [vmem:[#allocation5 + $0x154] ss:$8 sps:$4 sm:$0xff]  }
 0x169   :  { %2300 = vmatprep.subr.bf16.mxu0 %v6262_v6  ;;  %v6278_v6 = vld [vmem:[#allocation5 + $0x150] ss:$8 sps:$4 sm:$0xff]  }
 0x16c   :  { %2301 = vmatpush1.bf16.msra.mxu0 %v6260_v7  ;;  %v6283_v7 = vld [vmem:[#allocation5 + $0x164] ss:$8 sps:$4 sm:$0xff]  }
 0x16d   :  { %2313 = vmatprep.subr.bf16.mxu0 %v6265_v8  ;;  %v6281_v8 = vld [vmem:[#allocation5 + $0x160] ss:$8 sps:$4 sm:$0xff]  }
 0x202   :  { %v1681_v32 = vpop.f32.mrb[0].mxu0  ;;  %v1853_v33 = vpop.f32.mrb[0].mxu1 }
 0x203   :  { %v5788_v34 = vadd.f32 %v1681_v32, %v345_v28  ;;  %v5792_v35 = vadd.f32 %v1853_v33, %v353_v29  ;;  %v1683_v36 = vpop.f32.mrb[1].mxu0  ;;  %v1855_v37 = vpop.f32.mrb[1].mxu1  ;;  %v6308_v32 = vld [vmem:[#allocation5 + $0x1f0] ss:$8 sps:$4 sm:$0xff]   ;;  %v6322_v33 = vld [vmem:[%s7373_s6 + $0x28] sm:$0xff]  }
 0x204   :  { %v5789_v38 = vadd.f32 %v1683_v36, %v349_v30  ;;  %v5793_v39 = vadd.f32 %v1855_v37, %v357_v31  ;;  %v1685_v40 = vpop.f32.mrb[2].mxu0  ;;  %v1857_v41 = vpop.f32.mrb[2].mxu1  ;;  %5733 = vmatpush3.bf16.msra.mxu1 %v6322_v33  ;;  %v6325_v36 = vld [vmem:[%s7373_s6 + $0x78] sm:$0xff]   ;;  %v6339_v33 = vld [vmem:[#allocation7 + $0x40] ss:$16 sps:$4 sm:$0xff]  }
 0x205   :  { %v5790_v42 = vadd.f32 %v1685_v40, %v345_v28  ;;  %v5794_v43 = vadd.f32 %v1857_v41, %v353_v29  ;;  %v1687_v44 = vpop.f32.mrb[3].mxu0  ;;  %v1859_v45 = vpop.f32.mrb[3].mxu1  ;;  %v1862_v48 = vmax.f32 %v5788_v34, 0.0  ;;  %v1864_v49 = vmax.f32 %v5792_v35, 0.0  ;;  %v6302_v28 = vld [vmem:[#allocation5 + $0x1d0] ss:$8 sps:$4 sm:$0xff]  }
 0x206   :  { %v5791_v46 = vadd.f32 %v1687_v44, %v349_v30  ;;  %v5795_v47 = vadd.f32 %v1859_v45, %v357_v31  ;;  %v1863_v52 = vmax.f32 %v5789_v38, 0.0  ;;  %v1865_v53 = vmax.f32 %v5793_v39, 0.0  ;;  %v6307_v29 = vld [vmem:[#allocation5 + $0x1e4] ss:$8 sps:$4 sm:$0xff]   ;;  %v6305_v30 = vld [vmem:[#allocation5 + $0x1e0] ss:$8 sps:$4 sm:$0xff]  }
 0x207   :  { %v1866_v50 = vmax.f32 %v5790_v42, 0.0  ;;  %v1868_v51 = vmax.f32 %v5794_v43, 0.0  ;;  %v6310_v31 = vld [vmem:[#allocation5 + $0x1f4] ss:$8 sps:$4 sm:$0xff]   ;;  %v1938_v38 = vld [vmem:[%s7372_s5] sm:$0x3] }
 0x208   :  { %v1867_v54 = vmax.f32 %v5791_v46, 0.0  ;;  %v1869_v55 = vmax.f32 %v5795_v47, 0.0  ;;  %v6323_v34 = vld [vmem:[%s7373_s6 + $0x70] sm:$0xff]   ;;  %v6326_v37 = vld [vmem:[%s7373_s6 + $0x38] sm:$0xff]   ;;  %v1943_v39 = vrot.slane %v1938_v38, %v7192_v23  ;;  %v1947_v40 = vrot.slane %v1938_v38, %v7201_v26 }
 0x209   :  { %v1870_v56 = vpack.c.bf16 %v1866_v50, %v1862_v48  ;;  %v7210_v57 = vpack.c.bf16 %v1868_v51, %v1864_v49  ;;  %v6324_v35 = vld [vmem:[%s7373_s6 + $0x30] sm:$0xff]   ;;  %5734 = vmatprep.subr.bf16.mxu1 %v6323_v34 }
 0x20a   :  { %v1871_v58 = vpack.c.bf16 %v1867_v54, %v1863_v52  ;;  %v1873_v59 = vpack.c.bf16 %v1869_v55, %v1865_v53  ;;  %5735 = vmatpush3.bf16.msra.mxu1 %v6324_v35  ;;  %v6344_v34 = vld [vmem:[#allocation7 + $0x64] ss:$16 sps:$4 sm:$0xff]   ;;  %v6342_v35 = vld [vmem:[#allocation7 + $0x60] ss:$16 sps:$4 sm:$0xff]  }
 0x20b   :  { %5736 = vmatprep.subr.bf16.mxu1 %v6325_v36  ;;  %v6347_v36 = vld [vmem:[#allocation7 + $0x84] ss:$16 sps:$4 sm:$0xff]  }
 0x20c   :  { %2302 = vmatprep.mubr.bf16.mxu0 %v1871_v58  ;;  %v6350_v38 = vld [vmem:[#allocation7 + $0xa4] ss:$16 sps:$4 sm:$0xff]  }
 0x20d   :  { %2303 = vmatmul.mubr.bf16.vlgmr.msra.gmra.mrb[4].mxu0 %v1870_v56  ;;  %v5396_v56 = vld [vmem:[%s7374_s7] ss:$0 sm:$0xff] }
 0x20e   :  { %2314 = vmatpush1.bf16.msra.mxu0 %v6263_v60  ;;  %2345 = vmatprep.mubr.bf16.mxu0 %v1873_v59 }
 0x20f   :  { %2315 = vmatprep.subr.bf16.mxu0 %v6268_v61  ;;  %5737 = vmatpush3.bf16.msra.mxu1 %v6326_v37  ;;  %v6345_v37 = vld [vmem:[#allocation7 + $0x80] ss:$16 sps:$4 sm:$0xff]  }
 0x212   :  { %2316 = vmatpush1.bf16.msra.mxu0 %v6266_v62 }
 0x213   :  { %2317 = vmatprep.subr.bf16.mxu0 %v6271_v63 }
 0x216   :  { %2318 = vmatpush1.bf16.msra.mxu0 %v6269_v0 }
 0x217   :  { %2319 = vmatprep.subr.bf16.mxu0 %v6274_v1 }
 0x21a   :  { %2320 = vmatpush1.bf16.msra.mxu0 %v6272_v2 }
 0x21b   :  { %2321 = vmatprep.subr.bf16.mxu0 %v6277_v3 }
 0x21e   :  { %2322 = vmatpush1.bf16.msra.mxu0 %v6275_v4  ;;  %v6329_v4 = vld [vmem:[%s7375_s8 + $0x4] ss:$8 sps:$4 sm:$0xff]  }
 0x21f   :  { %2323 = vmatprep.subr.bf16.mxu0 %v6280_v5  ;;  %v6327_v5 = vld [vmem:[%s7375_s8] ss:$8 sps:$4 sm:$0xff]   ;;  %2603 = vmatprep.subr.bf16.mxu1 %v6329_v4 }
 0x220   :  { %v6455_v4 = vld [vmem:[#allocation8 + $0xe4] ss:$28 sps:$4 sm:$0xff]  }
 0x222   :  { %2324 = vmatpush1.bf16.msra.mxu0 %v6278_v6 }
 0x223   :  { %2325 = vmatprep.subr.bf16.mxu0 %v6283_v7  ;;  %v6332_v7 = vld [vmem:[%s7375_s8 + $0x14] ss:$8 sps:$4 sm:$0xff]  }
 0x226   :  { %2326 = vmatpush1.bf16.msra.mxu0 %v6281_v8  ;;  %v6330_v8 = vld [vmem:[%s7375_s8 + $0x10] ss:$8 sps:$4 sm:$0xff]  }
 0x227   :  { %2327 = vmatprep.subr.bf16.mxu0 %v6286_v9  ;;  %v6335_v9 = vld [vmem:[#allocation7 + $0x4] ss:$16 sps:$4 sm:$0xff]  }
 0x22a   :  { %2328 = vmatpush1.bf16.msra.mxu0 %v6284_v10 }
 0x22b   :  { %2329 = vmatprep.subr.bf16.mxu0 %v6289_v11 }
 0x22e   :  { %2330 = vmatpush1.bf16.msra.mxu0 %v6287_v12 }
 0x22f   :  { %2331 = vmatprep.subr.bf16.mxu0 %v6292_v13 }
 0x232   :  { %2332 = vmatpush1.bf16.msra.mxu0 %v6290_v14  ;;  %v2542_v14 = vld [vmem:[%s7368_s1] sm:$0xff] }
 0x233   :  { %2333 = vmatprep.subr.bf16.mxu0 %v6295_v15 }
 0x236   :  { %2334 = vmatpush1.bf16.msra.mxu0 %v6293_v16  ;;  %v2543_v16 = vld [vmem:[%s7368_s1 + $0x8] sm:$0xff] }
 0x237   :  { %2335 = vmatprep.subr.bf16.mxu0 %v6298_v17 }
 0x23a   :  { %2336 = vmatpush1.bf16.msra.mxu0 %v6296_v19 }
 0x23b   :  { %2337 = vmatprep.subr.bf16.mxu0 %v6301_v20 }
 0x23e   :  { %2338 = vmatpush1.bf16.msra.mxu0 %v6299_v21 }
 0x23f   :  { %2339 = vmatprep.subr.bf16.mxu0 %v6304_v25 }
 0x242   :  { %2340 = vmatpush1.bf16.msra.mxu0 %v6302_v28  ;;  %v6333_v28 = vld [vmem:[#allocation7] ss:$16 sps:$4 sm:$0xff]  }
 0x243   :  { %2341 = vmatprep.subr.bf16.mxu0 %v6307_v29 }
 0x246   :  { %2342 = vmatpush1.bf16.msra.mxu0 %v6305_v30  ;;  %v6338_v30 = vld [vmem:[#allocation7 + $0x24] ss:$16 sps:$4 sm:$0xff]  }
 0x247   :  { %2343 = vmatprep.subr.bf16.mxu0 %v6310_v31  ;;  %v6336_v31 = vld [vmem:[#allocation7 + $0x20] ss:$16 sps:$4 sm:$0xff]  }
 0x24a   :  { %2344 = vmatpush1.bf16.msra.mxu0 %v6308_v32  ;;  %v6341_v32 = vld [vmem:[#allocation7 + $0x44] ss:$16 sps:$4 sm:$0xff]  }
 0x24d   :  { %2346 = vmatmul.mubr.bf16.vlgmr.msra.gmra.mrb[4].mxu0 %v7210_v57 }
 0x320   :  { %v2347_v41 = vpop.f32.mrb[4].mxu0 }
 0x321   :  { %v5796_v42 = vadd.f32 %v2347_v41, %v1943_v39  ;;  %v2349_v43 = vpop.f32.mrb[5].mxu0  ;;  %v6351_v41 = vld [vmem:[#allocation7 + $0xc0] ss:$16 sps:$4 sm:$0xff]  }
 0x322   :  { %v5797_v44 = vadd.f32 %v2349_v43, %v1947_v40  ;;  %v2351_v45 = vpop.f32.mrb[6].mxu0  ;;  %v6354_v43 = vld [vmem:[#allocation7 + $0xe0] ss:$16 sps:$4 sm:$0xff]  }
 0x323   :  { %v5798_v46 = vadd.f32 %v2351_v45, %v1943_v39  ;;  %v2353_v47 = vpop.f32.mrb[7].mxu0  ;;  %v2356_v49 = vmax.f32 %v5796_v42, 0.0  ;;  %v6348_v39 = vld [vmem:[#allocation7 + $0xa0] ss:$16 sps:$4 sm:$0xff]   ;;  %v6356_v42 = vld [vmem:[#allocation7 + $0xe4] ss:$16 sps:$4 sm:$0xff]  }
 0x324   :  { %v5799_v48 = vadd.f32 %v2353_v47, %v1947_v40  ;;  %v2357_v51 = vmax.f32 %v5797_v44, 0.0  ;;  %v6353_v40 = vld [vmem:[#allocation7 + $0xc4] ss:$16 sps:$4 sm:$0xff]   ;;  %v6357_v45 = vld [vmem:[#allocation7 + $0x100] ss:$16 sps:$4 sm:$0xff]  }
 0x325   :  { %v2358_v50 = vmax.f32 %v5798_v46, 0.0  ;;  %v6359_v44 = vld [vmem:[#allocation7 + $0x104] ss:$16 sps:$4 sm:$0xff]   ;;  %v6360_v47 = vld [vmem:[#allocation7 + $0x120] ss:$16 sps:$4 sm:$0xff]  }
 0x326   :  { %v2359_v52 = vmax.f32 %v5799_v48, 0.0  ;;  %v6362_v46 = vld [vmem:[#allocation7 + $0x124] ss:$16 sps:$4 sm:$0xff]  }
 0x327   :  { %v2360_v53 = vpack.c.bf16 %v2358_v50, %v2356_v49  ;;  %v6365_v48 = vld [vmem:[#allocation7 + $0x144] ss:$16 sps:$4 sm:$0xff]   ;;  %v6363_v49 = vld [vmem:[#allocation7 + $0x140] ss:$16 sps:$4 sm:$0xff]  }
 0x328   :  { %v2361_v54 = vpack.c.bf16 %v2359_v52, %v2357_v51  ;;  %v6368_v50 = vld [vmem:[#allocation7 + $0x164] ss:$16 sps:$4 sm:$0xff]   ;;  %v6366_v51 = vld [vmem:[#allocation7 + $0x160] ss:$16 sps:$4 sm:$0xff]  }
 0x329   :  { %v6371_v52 = vld [vmem:[#allocation7 + $0x184] ss:$16 sps:$4 sm:$0xff]  }
 0x32a   :  { %2529 = vmatprep.mubr.bf16.mxu1 %v2361_v54  ;;  %v6374_v54 = vld [vmem:[#allocation7 + $0x1a4] ss:$16 sps:$4 sm:$0xff]  }
 0x32b   :  { %2530 = vmatmul.mubr.bf16.vlgmr.msra.gmra.mrb[4].mxu1 %v2360_v53  ;;  %v6369_v53 = vld [vmem:[#allocation7 + $0x180] ss:$16 sps:$4 sm:$0xff]  }
 0x32c   :  { %2635 = vmatprep.mubr.bf16.mxu1 %v6983_v18  ;;  %2604 = vmatpush1.bf16.msra.mxu1 %v6327_v5  ;;  %v6453_v5 = vld [vmem:[#allocation8 + $0xe0] ss:$28 sps:$4 sm:$0xff]  }
 0x32d   :  { %2605 = vmatprep.subr.bf16.mxu1 %v6332_v7  ;;  %v6459_v7 = vld [vmem:[#allocation8 + $0x118] ss:$28 sps:$4 sm:$0xff]  }
 0x330   :  { %2606 = vmatpush1.bf16.msra.mxu1 %v6330_v8  ;;  %v6467_v8 = vld [vmem:[#allocation8 + $0x154] ss:$28 sps:$4 sm:$0xff]  }
 0x331   :  { %3058 = vmatprep.subr.bf16.mxu1 %v6335_v9  ;;  %v6465_v9 = vld [vmem:[#allocation8 + $0x150] ss:$28 sps:$4 sm:$0xff]  }
 0x3fe   :  { %v5738_v55 = vpop.f32.mrb[4].mxu1 }
 0x3ff   :  { %v5739_v57 = vpop.f32.mrb[5].mxu1 }
 0x400   :  { %v5740_v58 = vadd.f32 %v5739_v57, %v5738_v55  ;;  %v5741_v59 = vpop.f32.mrb[6].mxu1  ;;  %v6372_v55 = vld [vmem:[#allocation7 + $0x1a0] ss:$16 sps:$4 sm:$0xff]  }
 0x401   :  { %v5742_v60 = vpop.f32.mrb[7].mxu1  ;;  %v6375_v57 = vld [vmem:[#allocation7 + $0x1c0] ss:$16 sps:$4 sm:$0xff]  }
 0x402   :  { %v2532_v61 = vadd.f32 %v5740_v58, %v5396_v56  ;;  %v5743_v62 = vadd.f32 %v5742_v60, %v5741_v59  ;;  %v6380_v58 = vld [vmem:[#allocation7 + $0x1e4] ss:$16 sps:$4 sm:$0xff]   ;;  %v6378_v59 = vld [vmem:[#allocation7 + $0x1e0] ss:$16 sps:$4 sm:$0xff]   ;;  %v6383_v60 = vld [vmem:[#allocation7 + $0xc] ss:$16 sps:$4 sm:$0xff]  }
 0x404   :  { %v2535_v63 = vadd.f32 %v5743_v62, %v5396_v56  ;;  %v5413_v0 = vclamps-f32 %v2532_v61, 10.0  ;;  %5039 = vst.msk [vmem:[#allocation11] sm:$0xff] %vm2599_vm0, %v2532_v61  ;;  %v6377_v56 = vld [vmem:[#allocation7 + $0x1c4] ss:$16 sps:$4 sm:$0xff]  }
 0x405   :  { %v6431_v62 = vld [vmem:[#allocation8 + $0x4] ss:$28 sps:$4 sm:$0xff]  }
 0x406   :  { %5043 = vrot.lane.b32.xlu1 %v5413_v0, %s6984_s17  ;;  %v2544_v1 = vmul.f32 0.5, %v5413_v0  ;;  %v5414_v18 = vclamps-f32 %v2535_v63, 10.0  ;;  %5040 = vst.msk [vmem:[#allocation11 + $0x8] sm:$0xff] %vm2599_vm0, %v2535_v63  ;;  %4601 = vmatprep.subr.bf16.mxu0 %v6431_v62  ;;  %v6435_v0 = vld [vmem:[#allocation8 + $0x38] ss:$28 sps:$4 sm:$0xff]  }
 0x407   :  { %v6407_v62 = vld [vmem:[#allocation7 + $0x10c] ss:$16 sps:$4 sm:$0xff]  }
 0x408   :  { %v2546_v2 = vmul.f32 1.442695, %v2544_v1  ;;  %v2545_v3 = vmul.f32 0.5, %v5414_v18  ;;  %v6443_v1 = vld [vmem:[#allocation8 + $0x74] ss:$28 sps:$4 sm:$0xff]  }
 0x40a   :  { %6749 = vpow2.f32 %v2546_v2  ;;  %v2548_v6 = vmul.f32 1.442695, %v2545_v3  ;;  %5045 = vrot.lane.b32.xlu1 %v5414_v18, %s6984_s17  ;;  %v6441_v18 = vld [vmem:[#allocation8 + $0x70] ss:$28 sps:$4 sm:$0xff]   ;;  %v6447_v3 = vld [vmem:[#allocation8 + $0xa8] ss:$28 sps:$4 sm:$0xff]  }
 0x40b   :  { %v6449_v2 = vld [vmem:[#allocation8 + $0xac] ss:$28 sps:$4 sm:$0xff]  }
 0x40c   :  { %6751 = vpow2.f32 %v2548_v6  ;;  %v6461_v6 = vld [vmem:[#allocation8 + $0x11c] ss:$28 sps:$4 sm:$0xff]  }
 0x414   :  { %v6750_v10 = vpop.eup %6749 }
 0x415   :  { %2552 = vrot.lane.b32.xlu0 %v6750_v10, %s6984_s17  ;;  %v6473_v10 = vld [vmem:[#allocation8 + $0x18c] ss:$28 sps:$4 sm:$0xff]  }
 0x416   :  { %v6752_v11 = vpop.eup %6751 }
 0x419   :  { %2554 = vrot.lane.b32.xlu0 %v6752_v11, %s6984_s17  ;;  %v6471_v11 = vld [vmem:[#allocation8 + $0x188] ss:$28 sps:$4 sm:$0xff]  }
 0x478   :  { %v5044_v12 = vpop.permute.xlu1 %5043 }
 0x479   :  { %5049 = vst.msk [vmem:[#allocation13] sm:$0xff] %vm2599_vm0, %v5044_v12  ;;  %v6479_v12 = vld [vmem:[#allocation8 + $0x1c4] ss:$28 sps:$4 sm:$0xff]  }
 0x47c   :  { %v5046_v13 = vpop.permute.xlu1 %5045 }
 0x47d   :  { %5050 = vst.msk [vmem:[#allocation13 + $0x8] sm:$0xff] %vm2599_vm0, %v5046_v13  ;;  %v6477_v13 = vld [vmem:[#allocation8 + $0x1c0] ss:$28 sps:$4 sm:$0xff]  }
 0x487   :  { %v2553_v15 = vpop.permute.xlu0 %2552 }
 0x488   :  { %v2558_v17 = vmul.f32 %v2553_v15, %v2542_v14  ;;  %v6485_v14 = vld [vmem:[#allocation8 + $0x1fc] ss:$28 sps:$4 sm:$0xff]  }
 0x489   :  { %v6483_v15 = vld [vmem:[#allocation8 + $0x1f8] ss:$28 sps:$4 sm:$0xff]  }
 0x48a   :  { %v2560_v21 = vadd.f32 %v2558_v17, %v2532_v61  ;;  %v6429_v61 = vld [vmem:[#allocation8] ss:$28 sps:$4 sm:$0xff]   ;;  %v6489_v17 = vld [vmem:[#allocation8 + $0x230] ss:$28 sps:$4 sm:$0xff]  }
 0x48b   :  { %v2555_v19 = vpop.permute.xlu0 %2554  ;;  %4602 = vmatpush1.bf16.msra.mxu0 %v6429_v61  ;;  %v6402_v61 = vld [vmem:[#allocation7 + $0xe8] ss:$16 sps:$4 sm:$0xff]  }
 0x48c   :  { %v2559_v20 = vmul.f32 %v2555_v19, %v2543_v16  ;;  %v6491_v16 = vld [vmem:[#allocation8 + $0x234] ss:$28 sps:$4 sm:$0xff]   ;;  %v6497_v19 = vld [vmem:[#allocation8 + $0x26c] ss:$28 sps:$4 sm:$0xff]  }
 0x48e   :  { %v2561_v25 = vadd.f32 %v2559_v20, %v2535_v63  ;;  %v6437_v63 = vld [vmem:[#allocation8 + $0x3c] ss:$28 sps:$4 sm:$0xff]   ;;  %v6495_v20 = vld [vmem:[#allocation8 + $0x268] ss:$28 sps:$4 sm:$0xff]  }
 0x48f   :  { %4603 = vmatprep.subr.bf16.mxu0 %v6437_v63  ;;  %v6405_v63 = vld [vmem:[#allocation7 + $0x108] ss:$16 sps:$4 sm:$0xff]  }
 0x490   :  { %v2562_v29 = vpack.c.bf16 %v2561_v25, %v2560_v21  ;;  %4604 = vmatpush1.bf16.msra.mxu0 %v6435_v0  ;;  %v6503_v21 = vld [vmem:[#allocation8 + $0x2a4] ss:$28 sps:$4 sm:$0xff]   ;;  %v6410_v0 = vld [vmem:[#allocation7 + $0x12c] ss:$16 sps:$4 sm:$0xff]  }
 0x491   :  { %4605 = vmatprep.subr.bf16.mxu0 %v6443_v1  ;;  %v2567_v25 = vld [vmem:[%s7376_s9] sm:$0x3]  ;;  %v6408_v1 = vld [vmem:[#allocation7 + $0x128] ss:$16 sps:$4 sm:$0xff]  }
 0x492   :  { %5419 = vmatmul.mubr.msk.bf16.vlgmr.msra.gmra.mrb[8].mxu1 %vm2599_vm0, %v2562_v29  ;;  %v6509_v29 = vld [vmem:[#allocation8 + $0x2dc] ss:$28 sps:$4 sm:$0xff]  }
 0x493   :  { %3059 = vmatpush1.bf16.msra.mxu1 %v6333_v28  ;;  %v6501_v28 = vld [vmem:[#allocation8 + $0x2a0] ss:$28 sps:$4 sm:$0xff]  }
 0x494   :  { %3060 = vmatprep.subr.bf16.mxu1 %v6338_v30  ;;  %4606 = vmatpush1.bf16.msra.mxu0 %v6441_v18  ;;  %v2572_v30 = vrot.slane %v2567_v25, %v7192_v23  ;;  %v6413_v18 = vld [vmem:[#allocation7 + $0x14c] ss:$16 sps:$4 sm:$0xff]  }
 0x495   :  { %4607 = vmatprep.subr.bf16.mxu0 %v6449_v2  ;;  %v6411_v2 = vld [vmem:[#allocation7 + $0x148] ss:$16 sps:$4 sm:$0xff]  }
 0x497   :  { %3061 = vmatpush1.bf16.msra.mxu1 %v6336_v31  ;;  %v2576_v31 = vrot.slane %v2567_v25, %v7201_v26  ;;  %v6458_v25 = vld [vmem:[#allocation8 + $0xec] ss:$28 sps:$4 sm:$0xff]  }
 0x498   :  { %3062 = vmatprep.subr.bf16.mxu1 %v6341_v32  ;;  %4608 = vmatpush1.bf16.msra.mxu0 %v6447_v3  ;;  %v6507_v32 = vld [vmem:[#allocation8 + $0x2d8] ss:$28 sps:$4 sm:$0xff]   ;;  %v6416_v3 = vld [vmem:[#allocation7 + $0x16c] ss:$16 sps:$4 sm:$0xff]  }
 0x499   :  { %4609 = vmatprep.subr.bf16.mxu0 %v6455_v4  ;;  %v6414_v4 = vld [vmem:[#allocation7 + $0x168] ss:$16 sps:$4 sm:$0xff]  }
 0x49b   :  { %3063 = vmatpush1.bf16.msra.mxu1 %v6339_v33 }
 0x49c   :  { %3064 = vmatprep.subr.bf16.mxu1 %v6344_v34  ;;  %4610 = vmatpush1.bf16.msra.mxu0 %v6453_v5  ;;  %v6419_v5 = vld [vmem:[#allocation7 + $0x18c] ss:$16 sps:$4 sm:$0xff]  }
 0x49d   :  { %4611 = vmatprep.subr.bf16.mxu0 %v6461_v6  ;;  %v6417_v6 = vld [vmem:[#allocation7 + $0x188] ss:$16 sps:$4 sm:$0xff]  }
 0x49f   :  { %3065 = vmatpush1.bf16.msra.mxu1 %v6342_v35 }
 0x4a0   :  { %3066 = vmatprep.subr.bf16.mxu1 %v6347_v36  ;;  %4612 = vmatpush1.bf16.msra.mxu0 %v6459_v7  ;;  %v6422_v7 = vld [vmem:[#allocation7 + $0x1ac] ss:$16 sps:$4 sm:$0xff]  }
 0x4a1   :  { %4613 = vmatprep.subr.bf16.mxu0 %v6467_v8  ;;  %v6420_v8 = vld [vmem:[#allocation7 + $0x1a8] ss:$16 sps:$4 sm:$0xff]  }
 0x4a3   :  { %3067 = vmatpush1.bf16.msra.mxu1 %v6345_v37 }
 0x4a4   :  { %3068 = vmatprep.subr.bf16.mxu1 %v6350_v38  ;;  %4614 = vmatpush1.bf16.msra.mxu0 %v6465_v9  ;;  %v6425_v9 = vld [vmem:[#allocation7 + $0x1cc] ss:$16 sps:$4 sm:$0xff]  }
 0x4a5   :  { %4615 = vmatprep.subr.bf16.mxu0 %v6473_v10  ;;  %v6423_v10 = vld [vmem:[#allocation7 + $0x1c8] ss:$16 sps:$4 sm:$0xff]  }
 0x4a7   :  { %3069 = vmatpush1.bf16.msra.mxu1 %v6348_v39 }
 0x4a8   :  { %3070 = vmatprep.subr.bf16.mxu1 %v6353_v40  ;;  %4616 = vmatpush1.bf16.msra.mxu0 %v6471_v11  ;;  %v6428_v11 = vld [vmem:[#allocation7 + $0x1ec] ss:$16 sps:$4 sm:$0xff]  }
 0x4a9   :  { %4617 = vmatprep.subr.bf16.mxu0 %v6479_v12  ;;  %v6426_v12 = vld [vmem:[#allocation7 + $0x1e8] ss:$16 sps:$4 sm:$0xff]  }
 0x4ab   :  { %3071 = vmatpush1.bf16.msra.mxu1 %v6351_v41 }
 0x4ac   :  { %3072 = vmatprep.subr.bf16.mxu1 %v6356_v42  ;;  %4618 = vmatpush1.bf16.msra.mxu0 %v6477_v13  ;;  %v6434_v13 = vld [vmem:[#allocation8 + $0xc] ss:$28 sps:$4 sm:$0xff]  }
 0x4ad   :  { %4619 = vmatprep.subr.bf16.mxu0 %v6485_v14  ;;  %v6432_v14 = vld [vmem:[#allocation8 + $0x8] ss:$28 sps:$4 sm:$0xff]  }
 0x4af   :  { %3073 = vmatpush1.bf16.msra.mxu1 %v6354_v43 }
 0x4b0   :  { %3074 = vmatprep.subr.bf16.mxu1 %v6359_v44  ;;  %4620 = vmatpush1.bf16.msra.mxu0 %v6483_v15  ;;  %v6440_v15 = vld [vmem:[#allocation8 + $0x44] ss:$28 sps:$4 sm:$0xff]  }
 0x4b1   :  { %4621 = vmatprep.subr.bf16.mxu0 %v6491_v16  ;;  %v6438_v16 = vld [vmem:[#allocation8 + $0x40] ss:$28 sps:$4 sm:$0xff]  }
 0x4b3   :  { %3075 = vmatpush1.bf16.msra.mxu1 %v6357_v45 }
 0x4b4   :  { %3076 = vmatprep.subr.bf16.mxu1 %v6362_v46  ;;  %4622 = vmatpush1.bf16.msra.mxu0 %v6489_v17  ;;  %v6446_v17 = vld [vmem:[#allocation8 + $0x7c] ss:$28 sps:$4 sm:$0xff]  }
 0x4b5   :  { %4623 = vmatprep.subr.bf16.mxu0 %v6497_v19  ;;  %v6444_v19 = vld [vmem:[#allocation8 + $0x78] ss:$28 sps:$4 sm:$0xff]  }
 0x4b7   :  { %3077 = vmatpush1.bf16.msra.mxu1 %v6360_v47  ;;  %v6381_v47 = vld [vmem:[#allocation7 + $0x8] ss:$16 sps:$4 sm:$0xff]  }
 0x4b8   :  { %3078 = vmatprep.subr.bf16.mxu1 %v6365_v48  ;;  %4624 = vmatpush1.bf16.msra.mxu0 %v6495_v20  ;;  %v6386_v48 = vld [vmem:[#allocation7 + $0x2c] ss:$16 sps:$4 sm:$0xff]   ;;  %v6452_v20 = vld [vmem:[#allocation8 + $0xb4] ss:$28 sps:$4 sm:$0xff]  }
 0x4b9   :  { %4625 = vmatprep.subr.bf16.mxu0 %v6503_v21  ;;  %v6450_v21 = vld [vmem:[#allocation8 + $0xb0] ss:$28 sps:$4 sm:$0xff]  }
 0x4bb   :  { %3079 = vmatpush1.bf16.msra.mxu1 %v6363_v49  ;;  %v6384_v49 = vld [vmem:[#allocation7 + $0x28] ss:$16 sps:$4 sm:$0xff]  }
 0x4bc   :  { %3080 = vmatprep.subr.bf16.mxu1 %v6368_v50  ;;  %4626 = vmatpush1.bf16.msra.mxu0 %v6501_v28  ;;  %v6389_v50 = vld [vmem:[#allocation7 + $0x4c] ss:$16 sps:$4 sm:$0xff]   ;;  %v6456_v28 = vld [vmem:[#allocation8 + $0xe8] ss:$28 sps:$4 sm:$0xff]  }
 0x4bd   :  { %4627 = vmatprep.subr.bf16.mxu0 %v6509_v29  ;;  %v6464_v29 = vld [vmem:[#allocation8 + $0x124] ss:$28 sps:$4 sm:$0xff]  }
 0x4bf   :  { %3081 = vmatpush1.bf16.msra.mxu1 %v6366_v51  ;;  %v6387_v51 = vld [vmem:[#allocation7 + $0x48] ss:$16 sps:$4 sm:$0xff]  }
 0x4c0   :  { %3082 = vmatprep.subr.bf16.mxu1 %v6371_v52  ;;  %4628 = vmatpush1.bf16.msra.mxu0 %v6507_v32  ;;  %v6392_v52 = vld [vmem:[#allocation7 + $0x6c] ss:$16 sps:$4 sm:$0xff]   ;;  %v6515_v32 = vld [vmem:[#allocation8 + $0x314] ss:$28 sps:$4 sm:$0xff]  }
 0x4c1   :  { %4629 = vmatprep.subr.bf16.mxu0 %v6515_v32  ;;  %v6552_v32 = vld [vmem:[#allocation8 + $0x468] ss:$28 sps:$4 sm:$0xff]  }
 0x4c3   :  { %3083 = vmatpush1.bf16.msra.mxu1 %v6369_v53  ;;  %v6390_v53 = vld [vmem:[#allocation7 + $0x68] ss:$16 sps:$4 sm:$0xff]  }
 0x4c4   :  { %3084 = vmatprep.subr.bf16.mxu1 %v6374_v54  ;;  %v6395_v54 = vld [vmem:[#allocation7 + $0x8c] ss:$16 sps:$4 sm:$0xff]  }
 0x4c7   :  { %3085 = vmatpush1.bf16.msra.mxu1 %v6372_v55  ;;  %v6393_v55 = vld [vmem:[#allocation7 + $0x88] ss:$16 sps:$4 sm:$0xff]  }
 0x4c8   :  { %3086 = vmatprep.subr.bf16.mxu1 %v6377_v56  ;;  %v6398_v56 = vld [vmem:[#allocation7 + $0xac] ss:$16 sps:$4 sm:$0xff]  }
 0x4cb   :  { %3087 = vmatpush1.bf16.msra.mxu1 %v6375_v57  ;;  %v6396_v57 = vld [vmem:[#allocation7 + $0xa8] ss:$16 sps:$4 sm:$0xff]  }
 0x4cc   :  { %3088 = vmatprep.subr.bf16.mxu1 %v6380_v58  ;;  %v6401_v58 = vld [vmem:[#allocation7 + $0xcc] ss:$16 sps:$4 sm:$0xff]  }
 0x4cf   :  { %3089 = vmatpush1.bf16.msra.mxu1 %v6378_v59  ;;  %v6399_v59 = vld [vmem:[#allocation7 + $0xc8] ss:$16 sps:$4 sm:$0xff]  }
 0x4d0   :  { %3101 = vmatprep.subr.bf16.mxu1 %v6383_v60  ;;  %v6404_v60 = vld [vmem:[#allocation7 + $0xec] ss:$16 sps:$4 sm:$0xff]  }
 0x565   :  { %v2637_v33 = vpop.f32.mrb[8].mxu1 }
 0x566   :  { %v2638_v34 = vadd.f32 %v2637_v33, %v2572_v30  ;;  %v2639_v35 = vpop.f32.mrb[9].mxu1  ;;  %v6468_v33 = vld [vmem:[#allocation8 + $0x158] ss:$28 sps:$4 sm:$0xff]  }
 0x567   :  { %v2640_v36 = vadd.f32 %v2639_v35, %v2576_v31  ;;  %v2641_v37 = vpop.f32.mrb[10].mxu1  ;;  %v6476_v35 = vld [vmem:[#allocation8 + $0x194] ss:$28 sps:$4 sm:$0xff]  }
 0x568   :  { %v2642_v38 = vadd.f32 %v2641_v37, %v2572_v30  ;;  %v2643_v39 = vpop.f32.mrb[11].mxu1  ;;  %v2646_v41 = vmax.f32 %v2638_v34, 0.0  ;;  %v6462_v30 = vld [vmem:[#allocation8 + $0x120] ss:$28 sps:$4 sm:$0xff]   ;;  %v6513_v34 = vld [vmem:[#allocation8 + $0x310] ss:$28 sps:$4 sm:$0xff]  }
 0x569   :  { %v2644_v40 = vadd.f32 %v2643_v39, %v2576_v31  ;;  %v2647_v43 = vmax.f32 %v2640_v36, 0.0  ;;  %v6470_v31 = vld [vmem:[#allocation8 + $0x15c] ss:$28 sps:$4 sm:$0xff]   ;;  %4630 = vmatpush1.bf16.msra.mxu0 %v6513_v34  ;;  %v6521_v36 = vld [vmem:[#allocation8 + $0x34c] ss:$28 sps:$4 sm:$0xff]  }
 0x56a   :  { %v2648_v42 = vmax.f32 %v2642_v38, 0.0  ;;  %v6474_v37 = vld [vmem:[#allocation8 + $0x190] ss:$28 sps:$4 sm:$0xff]   ;;  %v6519_v38 = vld [vmem:[#allocation8 + $0x348] ss:$28 sps:$4 sm:$0xff]   ;;  %4631 = vmatprep.subr.bf16.mxu0 %v6521_v36 }
 0x56b   :  { %v2649_v44 = vmax.f32 %v2644_v40, 0.0  ;;  %v6482_v39 = vld [vmem:[#allocation8 + $0x1cc] ss:$28 sps:$4 sm:$0xff]   ;;  %v6527_v40 = vld [vmem:[#allocation8 + $0x384] ss:$28 sps:$4 sm:$0xff]  }
 0x56c   :  { %v7265_v45 = vpack.c.bf16 %v2648_v42, %v2646_v41  ;;  %v6480_v41 = vld [vmem:[#allocation8 + $0x1c8] ss:$28 sps:$4 sm:$0xff]   ;;  %v6558_v36 = vld [vmem:[#allocation8 + $0x4a0] ss:$28 sps:$4 sm:$0xff]  }
 0x56d   :  { %v2651_v46 = vpack.c.bf16 %v2649_v44, %v2647_v43  ;;  %4632 = vmatpush1.bf16.msra.mxu0 %v6519_v38  ;;  %v6488_v42 = vld [vmem:[#allocation8 + $0x204] ss:$28 sps:$4 sm:$0xff]   ;;  %v6494_v44 = vld [vmem:[#allocation8 + $0x23c] ss:$28 sps:$4 sm:$0xff]  }
 0x56e   :  { %4644 = vmatprep.subr.bf16.mxu0 %v6527_v40  ;;  %v6486_v43 = vld [vmem:[#allocation8 + $0x200] ss:$28 sps:$4 sm:$0xff]   ;;  %v6564_v40 = vld [vmem:[#allocation8 + $0x4d8] ss:$28 sps:$4 sm:$0xff]  }
 0x56f   :  { %3090 = vmatprep.mubr.bf16.mxu1 %v2651_v46  ;;  %v6560_v34 = vld [vmem:[#allocation8 + $0x4a4] ss:$28 sps:$4 sm:$0xff]   ;;  %v6566_v38 = vld [vmem:[#allocation8 + $0x4dc] ss:$28 sps:$4 sm:$0xff]  }
 0x570   :  { %3091 = vmatmul.mubr.bf16.vlgmr.msra.gmra.mrb[12].mxu1 %v7265_v45 }
 0x571   :  { %3102 = vmatpush1.bf16.msra.mxu1 %v6381_v47  ;;  %3133 = vmatprep.mubr.bf16.mxu1 %v2651_v46  ;;  %v6500_v46 = vld [vmem:[#allocation8 + $0x274] ss:$28 sps:$4 sm:$0xff]  }
 0x572   :  { %3103 = vmatprep.subr.bf16.mxu1 %v6386_v48  ;;  %v6498_v47 = vld [vmem:[#allocation8 + $0x270] ss:$28 sps:$4 sm:$0xff]  }
 0x573   :  { %v6506_v48 = vld [vmem:[#allocation8 + $0x2ac] ss:$28 sps:$4 sm:$0xff]  }
 0x575   :  { %3104 = vmatpush1.bf16.msra.mxu1 %v6384_v49  ;;  %v6504_v49 = vld [vmem:[#allocation8 + $0x2a8] ss:$28 sps:$4 sm:$0xff]  }
 0x576   :  { %3105 = vmatprep.subr.bf16.mxu1 %v6389_v50  ;;  %v6512_v50 = vld [vmem:[#allocation8 + $0x2e4] ss:$28 sps:$4 sm:$0xff]  }
 0x579   :  { %3106 = vmatpush1.bf16.msra.mxu1 %v6387_v51  ;;  %v6510_v51 = vld [vmem:[#allocation8 + $0x2e0] ss:$28 sps:$4 sm:$0xff]  }
 0x57a   :  { %3107 = vmatprep.subr.bf16.mxu1 %v6392_v52  ;;  %v6518_v52 = vld [vmem:[#allocation8 + $0x31c] ss:$28 sps:$4 sm:$0xff]  }
 0x57d   :  { %3108 = vmatpush1.bf16.msra.mxu1 %v6390_v53  ;;  %v6516_v53 = vld [vmem:[#allocation8 + $0x318] ss:$28 sps:$4 sm:$0xff]  }
 0x57e   :  { %3109 = vmatprep.subr.bf16.mxu1 %v6395_v54  ;;  %v6524_v54 = vld [vmem:[#allocation8 + $0x354] ss:$28 sps:$4 sm:$0xff]  }
 0x581   :  { %3110 = vmatpush1.bf16.msra.mxu1 %v6393_v55  ;;  %v6522_v55 = vld [vmem:[#allocation8 + $0x350] ss:$28 sps:$4 sm:$0xff]  }
 0x582   :  { %3111 = vmatprep.subr.bf16.mxu1 %v6398_v56  ;;  %v6530_v56 = vld [vmem:[#allocation8 + $0x38c] ss:$28 sps:$4 sm:$0xff]  }
 0x585   :  { %3112 = vmatpush1.bf16.msra.mxu1 %v6396_v57  ;;  %v7272_v57 = vld [vmem:[%s7378_s11] sm:$0xf] }
 0x586   :  { %3113 = vmatprep.subr.bf16.mxu1 %v6401_v58  ;;  %v2721_v58 = vrot.slane %v7272_v57, %v7192_v23 }
 0x589   :  { %3114 = vmatpush1.bf16.msra.mxu1 %v6399_v59  ;;  %v2725_v59 = vrot.slane %v7272_v57, %v7201_v26 }
 0x58a   :  { %3115 = vmatprep.subr.bf16.mxu1 %v6404_v60 }
 0x58d   :  { %3116 = vmatpush1.bf16.msra.mxu1 %v6402_v61 }
 0x58e   :  { %3117 = vmatprep.subr.bf16.mxu1 %v6407_v62 }
 0x591   :  { %3118 = vmatpush1.bf16.msra.mxu1 %v6405_v63 }
 0x592   :  { %3119 = vmatprep.subr.bf16.mxu1 %v6410_v0 }
 0x595   :  { %3120 = vmatpush1.bf16.msra.mxu1 %v6408_v1 }
 0x596   :  { %3121 = vmatprep.subr.bf16.mxu1 %v6413_v18 }
 0x599   :  { %3122 = vmatpush1.bf16.msra.mxu1 %v6411_v2 }
 0x59a   :  { %3123 = vmatprep.subr.bf16.mxu1 %v6416_v3 }
 0x59d   :  { %3124 = vmatpush1.bf16.msra.mxu1 %v6414_v4 }
 0x59e   :  { %3125 = vmatprep.subr.bf16.mxu1 %v6419_v5 }
 0x5a1   :  { %3126 = vmatpush1.bf16.msra.mxu1 %v6417_v6 }
 0x5a2   :  { %3127 = vmatprep.subr.bf16.mxu1 %v6422_v7 }
 0x5a5   :  { %3128 = vmatpush1.bf16.msra.mxu1 %v6420_v8 }
 0x5a6   :  { %3129 = vmatprep.subr.bf16.mxu1 %v6425_v9  ;;  %v6525_v9 = vld [vmem:[#allocation8 + $0x380] ss:$28 sps:$4 sm:$0xff]  }
 0x5a9   :  { %3130 = vmatpush1.bf16.msra.mxu1 %v6423_v10  ;;  %v6528_v10 = vld [vmem:[#allocation8 + $0x388] ss:$28 sps:$4 sm:$0xff]  }
 0x5aa   :  { %3131 = vmatprep.subr.bf16.mxu1 %v6428_v11  ;;  %v6533_v11 = vld [vmem:[#allocation8 + $0x3bc] ss:$28 sps:$4 sm:$0xff]  }
 0x5ad   :  { %3132 = vmatpush1.bf16.msra.mxu1 %v6426_v12  ;;  %v6536_v12 = vld [vmem:[#allocation8 + $0x3c4] ss:$28 sps:$4 sm:$0xff]  }
 0x5ae   :  { %4687 = vmatprep.subr.bf16.mxu1 %v6434_v13  ;;  %v6531_v13 = vld [vmem:[#allocation8 + $0x3b8] ss:$28 sps:$4 sm:$0xff]  }
 0x5b0   :  { %3134 = vmatmul.mubr.bf16.vlgmr.msra.gmra.mrb[16].mxu1 %v7265_v45  ;;  %v6492_v45 = vld [vmem:[#allocation8 + $0x238] ss:$28 sps:$4 sm:$0xff]  }
 0x5b1   :  { %4688 = vmatpush1.bf16.msra.mxu1 %v6432_v14  ;;  %v6534_v14 = vld [vmem:[#allocation8 + $0x3c0] ss:$28 sps:$4 sm:$0xff]  }
 0x5b2   :  { %4689 = vmatprep.subr.bf16.mxu1 %v6440_v15  ;;  %v6539_v15 = vld [vmem:[#allocation8 + $0x3f4] ss:$28 sps:$4 sm:$0xff]  }
 0x5b5   :  { %4690 = vmatpush1.bf16.msra.mxu1 %v6438_v16  ;;  %v6542_v16 = vld [vmem:[#allocation8 + $0x3fc] ss:$28 sps:$4 sm:$0xff]  }
 0x5b6   :  { %4691 = vmatprep.subr.bf16.mxu1 %v6446_v17  ;;  %v6537_v17 = vld [vmem:[#allocation8 + $0x3f0] ss:$28 sps:$4 sm:$0xff]  }
 0x5b9   :  { %4692 = vmatpush1.bf16.msra.mxu1 %v6444_v19  ;;  %v6540_v19 = vld [vmem:[#allocation8 + $0x3f8] ss:$28 sps:$4 sm:$0xff]  }
 0x5ba   :  { %4693 = vmatprep.subr.bf16.mxu1 %v6452_v20  ;;  %v6545_v20 = vld [vmem:[#allocation8 + $0x42c] ss:$28 sps:$4 sm:$0xff]  }
 0x5bd   :  { %4694 = vmatpush1.bf16.msra.mxu1 %v6450_v21  ;;  %v6548_v21 = vld [vmem:[#allocation8 + $0x434] ss:$28 sps:$4 sm:$0xff]  }
 0x5be   :  { %4695 = vmatprep.subr.bf16.mxu1 %v6458_v25  ;;  %v6543_v25 = vld [vmem:[#allocation8 + $0x428] ss:$28 sps:$4 sm:$0xff]  }
 0x5c1   :  { %4696 = vmatpush1.bf16.msra.mxu1 %v6456_v28  ;;  %v6546_v28 = vld [vmem:[#allocation8 + $0x430] ss:$28 sps:$4 sm:$0xff]  }
 0x5c2   :  { %4697 = vmatprep.subr.bf16.mxu1 %v6464_v29  ;;  %v6551_v29 = vld [vmem:[#allocation8 + $0x464] ss:$28 sps:$4 sm:$0xff]  }
 0x5c5   :  { %4698 = vmatpush1.bf16.msra.mxu1 %v6462_v30  ;;  %v6554_v30 = vld [vmem:[#allocation8 + $0x46c] ss:$28 sps:$4 sm:$0xff]  }
 0x5c6   :  { %4699 = vmatprep.subr.bf16.mxu1 %v6470_v31  ;;  %v6549_v31 = vld [vmem:[#allocation8 + $0x460] ss:$28 sps:$4 sm:$0xff]  }
 0x5c9   :  { %4700 = vmatpush1.bf16.msra.mxu1 %v6468_v33  ;;  %v6557_v33 = vld [vmem:[#allocation8 + $0x49c] ss:$28 sps:$4 sm:$0xff]  }
 0x5ca   :  { %4701 = vmatprep.subr.bf16.mxu1 %v6476_v35  ;;  %v6555_v35 = vld [vmem:[#allocation8 + $0x498] ss:$28 sps:$4 sm:$0xff]  }
 0x5cd   :  { %4702 = vmatpush1.bf16.msra.mxu1 %v6474_v37  ;;  %v6563_v37 = vld [vmem:[#allocation8 + $0x4d4] ss:$28 sps:$4 sm:$0xff]  }
 0x5ce   :  { %4703 = vmatprep.subr.bf16.mxu1 %v6482_v39  ;;  %v6561_v39 = vld [vmem:[#allocation8 + $0x4d0] ss:$28 sps:$4 sm:$0xff]  }
 0x5d1   :  { %4704 = vmatpush1.bf16.msra.mxu1 %v6480_v41  ;;  %v6569_v41 = vld [vmem:[#allocation8 + $0x50c] ss:$28 sps:$4 sm:$0xff]  }
 0x5d2   :  { %4705 = vmatprep.subr.bf16.mxu1 %v6488_v42  ;;  %v6572_v42 = vld [vmem:[#allocation8 + $0x514] ss:$28 sps:$4 sm:$0xff]  }
 0x5d5   :  { %4706 = vmatpush1.bf16.msra.mxu1 %v6486_v43  ;;  %v6567_v43 = vld [vmem:[#allocation8 + $0x508] ss:$28 sps:$4 sm:$0xff]  }
 0x5d6   :  { %4707 = vmatprep.subr.bf16.mxu1 %v6494_v44  ;;  %v6570_v44 = vld [vmem:[#allocation8 + $0x510] ss:$28 sps:$4 sm:$0xff]  }
 0x5d9   :  { %4708 = vmatpush1.bf16.msra.mxu1 %v6492_v45  ;;  %v6575_v45 = vld [vmem:[#allocation8 + $0x544] ss:$28 sps:$4 sm:$0xff]  }
 0x5da   :  { %4709 = vmatprep.subr.bf16.mxu1 %v6500_v46  ;;  %v6578_v46 = vld [vmem:[#allocation8 + $0x54c] ss:$28 sps:$4 sm:$0xff]  }
 0x5dd   :  { %4710 = vmatpush1.bf16.msra.mxu1 %v6498_v47  ;;  %v6573_v47 = vld [vmem:[#allocation8 + $0x540] ss:$28 sps:$4 sm:$0xff]  }
 0x5de   :  { %4711 = vmatprep.subr.bf16.mxu1 %v6506_v48  ;;  %v6576_v48 = vld [vmem:[#allocation8 + $0x548] ss:$28 sps:$4 sm:$0xff]  }
 0x5e1   :  { %4712 = vmatpush1.bf16.msra.mxu1 %v6504_v49  ;;  %v6581_v49 = vld [vmem:[#allocation8 + $0x57c] ss:$28 sps:$4 sm:$0xff]  }
 0x5e2   :  { %4713 = vmatprep.subr.bf16.mxu1 %v6512_v50  ;;  %v6584_v50 = vld [vmem:[#allocation8 + $0x584] ss:$28 sps:$4 sm:$0xff]  }
 0x5e5   :  { %4714 = vmatpush1.bf16.msra.mxu1 %v6510_v51  ;;  %v6579_v51 = vld [vmem:[#allocation8 + $0x578] ss:$28 sps:$4 sm:$0xff]  }
 0x5e6   :  { %4715 = vmatprep.subr.bf16.mxu1 %v6518_v52  ;;  %v6582_v52 = vld [vmem:[#allocation8 + $0x580] ss:$28 sps:$4 sm:$0xff]  }
 0x5e9   :  { %4716 = vmatpush1.bf16.msra.mxu1 %v6516_v53  ;;  %v6587_v53 = vld [vmem:[#allocation8 + $0x5b4] ss:$28 sps:$4 sm:$0xff]  }
 0x5ea   :  { %4717 = vmatprep.subr.bf16.mxu1 %v6524_v54  ;;  %v6590_v54 = vld [vmem:[#allocation8 + $0x5bc] ss:$28 sps:$4 sm:$0xff]  }
 0x5ed   :  { %4718 = vmatpush1.bf16.msra.mxu1 %v6522_v55  ;;  %v6585_v55 = vld [vmem:[#allocation8 + $0x5b0] ss:$28 sps:$4 sm:$0xff]  }
 0x5ee   :  { %4730 = vmatprep.subr.bf16.mxu1 %v6530_v56  ;;  %v6588_v56 = vld [vmem:[#allocation8 + $0x5b8] ss:$28 sps:$4 sm:$0xff]  }
 0x643   :  { %v3092_v60 = vpop.f32.mrb[12].mxu1 }
 0x644   :  { %v3093_v61 = vadd.f32 %v3092_v60, %v2721_v58  ;;  %v3094_v62 = vpop.f32.mrb[13].mxu1  ;;  %v6591_v60 = vld [vmem:[#allocation8 + $0x5e8] ss:$28 sps:$4 sm:$0xff]  }
 0x645   :  { %v3095_v63 = vadd.f32 %v3094_v62, %v2725_v59  ;;  %v3096_v0 = vpop.f32.mrb[14].mxu1  ;;  %v6599_v62 = vld [vmem:[#allocation8 + $0x624] ss:$28 sps:$4 sm:$0xff]  }
 0x646   :  { %v3097_v1 = vadd.f32 %v3096_v0, %v2721_v58  ;;  %v3098_v18 = vpop.f32.mrb[15].mxu1  ;;  %v3144_v3 = vmax.f32 %v3093_v61, 0.0  ;;  %v6593_v58 = vld [vmem:[#allocation8 + $0x5ec] ss:$28 sps:$4 sm:$0xff]   ;;  %v6597_v0 = vld [vmem:[#allocation8 + $0x620] ss:$28 sps:$4 sm:$0xff]  }
 0x647   :  { %v3099_v2 = vadd.f32 %v3098_v18, %v2725_v59  ;;  %v3145_v5 = vmax.f32 %v3095_v63, 0.0  ;;  %v6596_v59 = vld [vmem:[#allocation8 + $0x5f4] ss:$28 sps:$4 sm:$0xff]   ;;  %v6602_v63 = vld [vmem:[#allocation8 + $0x62c] ss:$28 sps:$4 sm:$0xff]  }
 0x648   :  { %v3148_v4 = vmax.f32 %v3097_v1, 0.0  ;;  %v6594_v61 = vld [vmem:[#allocation8 + $0x5f0] ss:$28 sps:$4 sm:$0xff]   ;;  %v6600_v1 = vld [vmem:[#allocation8 + $0x628] ss:$28 sps:$4 sm:$0xff]  }
 0x649   :  { %v3149_v6 = vmax.f32 %v3099_v2, 0.0  ;;  %v6605_v18 = vld [vmem:[#allocation8 + $0x65c] ss:$28 sps:$4 sm:$0xff]   ;;  %v6608_v2 = vld [vmem:[#allocation8 + $0x664] ss:$28 sps:$4 sm:$0xff]  }
 0x64a   :  { %v7278_v7 = vpack.c.bf16 %v3148_v4, %v3144_v3  ;;  %v6603_v3 = vld [vmem:[#allocation8 + $0x658] ss:$28 sps:$4 sm:$0xff]   ;;  %v6606_v4 = vld [vmem:[#allocation8 + $0x660] ss:$28 sps:$4 sm:$0xff]  }
 0x64b   :  { %v7280_v8 = vpack.c.bf16 %v3149_v6, %v3145_v5  ;;  %v2729_v5 = vrot.slane %v7272_v57, %v7195_v24  ;;  %v6611_v6 = vld [vmem:[#allocation8 + $0x694] ss:$28 sps:$4 sm:$0xff]  }
 0x64d   :  { %4633 = vmatprep.mubr.bf16.mxu0 %v7280_v8  ;;  %4719 = vmatprep.mubr.bf16.mxu1 %v7280_v8 }
 0x64e   :  { %4634 = vmatmul.mubr.bf16.vlgmr.msra.gmra.mrb[8].mxu0 %v7278_v7  ;;  %4720 = vmatmul.mubr.bf16.vlgmr.msra.gmra.mrb[20].mxu1 %v7278_v7 }
 0x64f   :  { %4645 = vmatpush1.bf16.msra.mxu0 %v6525_v9  ;;  %4731 = vmatpush1.bf16.msra.mxu1 %v6528_v10  ;;  %v6614_v9 = vld [vmem:[#allocation8 + $0x69c] ss:$28 sps:$4 sm:$0xff]   ;;  %v2733_v10 = vrot.slane %v7272_v57, %v7204_v27  ;;  %v6618_v57 = vld [vmem:[#allocation8 + $0x6d0] ss:$28 sps:$4 sm:$0xff]  }
 0x650   :  { %4646 = vmatprep.subr.bf16.mxu0 %v6533_v11  ;;  %4732 = vmatprep.subr.bf16.mxu1 %v6536_v12  ;;  %v6609_v12 = vld [vmem:[#allocation8 + $0x690] ss:$28 sps:$4 sm:$0xff]  }
 0x653   :  { %4647 = vmatpush1.bf16.msra.mxu0 %v6531_v13  ;;  %4733 = vmatpush1.bf16.msra.mxu1 %v6534_v14  ;;  %v6612_v13 = vld [vmem:[#allocation8 + $0x698] ss:$28 sps:$4 sm:$0xff]  }
 0x654   :  { %4648 = vmatprep.subr.bf16.mxu0 %v6539_v15  ;;  %4734 = vmatprep.subr.bf16.mxu1 %v6542_v16  ;;  %v6617_v16 = vld [vmem:[#allocation8 + $0x6cc] ss:$28 sps:$4 sm:$0xff]  }
 0x657   :  { %4649 = vmatpush1.bf16.msra.mxu0 %v6537_v17  ;;  %4735 = vmatpush1.bf16.msra.mxu1 %v6540_v19  ;;  %v6620_v17 = vld [vmem:[#allocation8 + $0x6d4] ss:$28 sps:$4 sm:$0xff]  }
 0x658   :  { %4650 = vmatprep.subr.bf16.mxu0 %v6545_v20  ;;  %4736 = vmatprep.subr.bf16.mxu1 %v6548_v21 }
 0x65b   :  { %4651 = vmatpush1.bf16.msra.mxu0 %v6543_v25  ;;  %4737 = vmatpush1.bf16.msra.mxu1 %v6546_v28 }
 0x65c   :  { %4652 = vmatprep.subr.bf16.mxu0 %v6551_v29  ;;  %4738 = vmatprep.subr.bf16.mxu1 %v6554_v30  ;;  %v6615_v29 = vld [vmem:[#allocation8 + $0x6c8] ss:$28 sps:$4 sm:$0xff]  }
 0x65f   :  { %4653 = vmatpush1.bf16.msra.mxu0 %v6549_v31  ;;  %4739 = vmatpush1.bf16.msra.mxu1 %v6552_v32  ;;  %v6623_v32 = vld [vmem:[#allocation8 + $0x14] ss:$28 sps:$4 sm:$0xff]  }
 0x660   :  { %4654 = vmatprep.subr.bf16.mxu0 %v6557_v33  ;;  %4740 = vmatprep.subr.bf16.mxu1 %v6560_v34  ;;  %v6624_v33 = vld [vmem:[#allocation8 + $0x1d8] ss:$28 sps:$4 sm:$0xff]  }
 0x663   :  { %4655 = vmatpush1.bf16.msra.mxu0 %v6555_v35  ;;  %4741 = vmatpush1.bf16.msra.mxu1 %v6558_v36 }
 0x664   :  { %4656 = vmatprep.subr.bf16.mxu0 %v6563_v37  ;;  %4742 = vmatprep.subr.bf16.mxu1 %v6566_v38  ;;  %v6621_v38 = vld [vmem:[#allocation8 + $0x10] ss:$28 sps:$4 sm:$0xff]  }
 0x667   :  { %4657 = vmatpush1.bf16.msra.mxu0 %v6561_v39  ;;  %4743 = vmatpush1.bf16.msra.mxu1 %v6564_v40  ;;  %v6625_v39 = vld [vmem:[#allocation8 + $0x18] ss:$28 sps:$4 sm:$0xff]   ;;  %v6628_v40 = vld [vmem:[#allocation8 + $0x4c] ss:$28 sps:$4 sm:$0xff]  }
 0x668   :  { %4658 = vmatprep.subr.bf16.mxu0 %v6569_v41  ;;  %4744 = vmatprep.subr.bf16.mxu1 %v6572_v42  ;;  %v6629_v41 = vld [vmem:[#allocation8 + $0x210] ss:$28 sps:$4 sm:$0xff]   ;;  %v6626_v42 = vld [vmem:[#allocation8 + $0x48] ss:$28 sps:$4 sm:$0xff]  }
 0x66b   :  { %4659 = vmatpush1.bf16.msra.mxu0 %v6567_v43  ;;  %4745 = vmatpush1.bf16.msra.mxu1 %v6570_v44  ;;  %v6630_v43 = vld [vmem:[#allocation8 + $0x50] ss:$28 sps:$4 sm:$0xff]   ;;  %v6633_v44 = vld [vmem:[#allocation8 + $0x84] ss:$28 sps:$4 sm:$0xff]  }
 0x66c   :  { %4660 = vmatprep.subr.bf16.mxu0 %v6575_v45  ;;  %4746 = vmatprep.subr.bf16.mxu1 %v6578_v46  ;;  %v6634_v45 = vld [vmem:[#allocation8 + $0x248] ss:$28 sps:$4 sm:$0xff]   ;;  %v6631_v46 = vld [vmem:[#allocation8 + $0x80] ss:$28 sps:$4 sm:$0xff]  }
 0x66f   :  { %4661 = vmatpush1.bf16.msra.mxu0 %v6573_v47  ;;  %4747 = vmatpush1.bf16.msra.mxu1 %v6576_v48  ;;  %v6635_v47 = vld [vmem:[#allocation8 + $0x88] ss:$28 sps:$4 sm:$0xff]   ;;  %v6638_v48 = vld [vmem:[#allocation8 + $0xbc] ss:$28 sps:$4 sm:$0xff]  }
 0x670   :  { %4662 = vmatprep.subr.bf16.mxu0 %v6581_v49  ;;  %4748 = vmatprep.subr.bf16.mxu1 %v6584_v50  ;;  %v6639_v49 = vld [vmem:[#allocation8 + $0x280] ss:$28 sps:$4 sm:$0xff]   ;;  %v6636_v50 = vld [vmem:[#allocation8 + $0xb8] ss:$28 sps:$4 sm:$0xff]  }
 0x673   :  { %4663 = vmatpush1.bf16.msra.mxu0 %v6579_v51  ;;  %4749 = vmatpush1.bf16.msra.mxu1 %v6582_v52  ;;  %v6640_v51 = vld [vmem:[#allocation8 + $0xc0] ss:$28 sps:$4 sm:$0xff]   ;;  %v6643_v52 = vld [vmem:[#allocation8 + $0xf4] ss:$28 sps:$4 sm:$0xff]  }
 0x674   :  { %4664 = vmatprep.subr.bf16.mxu0 %v6587_v53  ;;  %4750 = vmatprep.subr.bf16.mxu1 %v6590_v54  ;;  %v6641_v53 = vld [vmem:[#allocation8 + $0xf0] ss:$28 sps:$4 sm:$0xff]   ;;  %v6645_v54 = vld [vmem:[#allocation8 + $0xf8] ss:$28 sps:$4 sm:$0xff]  }
 0x677   :  { %4665 = vmatpush1.bf16.msra.mxu0 %v6585_v55  ;;  %4751 = vmatpush1.bf16.msra.mxu1 %v6588_v56  ;;  %v6648_v55 = vld [vmem:[#allocation8 + $0x12c] ss:$28 sps:$4 sm:$0xff]  }
 0x678   :  { %4666 = vmatprep.subr.bf16.mxu0 %v6593_v58  ;;  %4752 = vmatprep.subr.bf16.mxu1 %v6596_v59  ;;  %v6649_v56 = vld [vmem:[#allocation8 + $0x2f0] ss:$28 sps:$4 sm:$0xff]   ;;  %v6646_v58 = vld [vmem:[#allocation8 + $0x128] ss:$28 sps:$4 sm:$0xff]  }
 0x679   :  { %v6650_v59 = vld [vmem:[#allocation8 + $0x130] ss:$28 sps:$4 sm:$0xff]  }
 0x67b   :  { %4667 = vmatpush1.bf16.msra.mxu0 %v6591_v60  ;;  %4753 = vmatpush1.bf16.msra.mxu1 %v6594_v61  ;;  %v6653_v60 = vld [vmem:[#allocation8 + $0x164] ss:$28 sps:$4 sm:$0xff]  }
 0x67c   :  { %4668 = vmatprep.subr.bf16.mxu0 %v6599_v62  ;;  %4754 = vmatprep.subr.bf16.mxu1 %v6602_v63  ;;  %v6654_v61 = vld [vmem:[#allocation8 + $0x328] ss:$28 sps:$4 sm:$0xff]   ;;  %v6651_v62 = vld [vmem:[#allocation8 + $0x160] ss:$28 sps:$4 sm:$0xff]  }
 0x67d   :  { %v6655_v63 = vld [vmem:[#allocation8 + $0x168] ss:$28 sps:$4 sm:$0xff]  }
 0x67f   :  { %4669 = vmatpush1.bf16.msra.mxu0 %v6597_v0  ;;  %4755 = vmatpush1.bf16.msra.mxu1 %v6600_v1  ;;  %v6658_v0 = vld [vmem:[#allocation8 + $0x19c] ss:$28 sps:$4 sm:$0xff]  }
 0x680   :  { %4670 = vmatprep.subr.bf16.mxu0 %v6605_v18  ;;  %4756 = vmatprep.subr.bf16.mxu1 %v6608_v2  ;;  %v6659_v1 = vld [vmem:[#allocation8 + $0x360] ss:$28 sps:$4 sm:$0xff]   ;;  %v6656_v18 = vld [vmem:[#allocation8 + $0x198] ss:$28 sps:$4 sm:$0xff]  }
 0x681   :  { %v6660_v2 = vld [vmem:[#allocation8 + $0x1a0] ss:$28 sps:$4 sm:$0xff]  }
 0x683   :  { %v3135_v11 = vpop.f32.mrb[16].mxu1  ;;  %4671 = vmatpush1.bf16.msra.mxu0 %v6603_v3  ;;  %4757 = vmatpush1.bf16.msra.mxu1 %v6606_v4  ;;  %v6663_v3 = vld [vmem:[#allocation8 + $0x1d4] ss:$28 sps:$4 sm:$0xff]  }
 0x684   :  { %v3136_v14 = vadd.f32 %v3135_v11, %v2729_v5  ;;  %v3137_v15 = vpop.f32.mrb[17].mxu1  ;;  %4672 = vmatprep.subr.bf16.mxu0 %v6611_v6  ;;  %4758 = vmatprep.subr.bf16.mxu1 %v6614_v9  ;;  %v6664_v4 = vld [vmem:[#allocation8 + $0x558] ss:$28 sps:$4 sm:$0xff]   ;;  %v6668_v9 = vld [vmem:[#allocation8 + $0x20c] ss:$28 sps:$4 sm:$0xff]  }
 0x685   :  { %v3138_v19 = vadd.f32 %v3137_v15, %v2733_v10  ;;  %v3139_v20 = vpop.f32.mrb[18].mxu1  ;;  %v6665_v6 = vld [vmem:[#allocation8 + $0x398] ss:$28 sps:$4 sm:$0xff]   ;;  %v6666_v11 = vld [vmem:[#allocation8 + $0x208] ss:$28 sps:$4 sm:$0xff]  }
 0x686   :  { %v3140_v21 = vadd.f32 %v3139_v20, %v2729_v5  ;;  %v3141_v25 = vpop.f32.mrb[19].mxu1  ;;  %v3146_v30 = vmax.f32 %v3136_v14, 0.0  ;;  %v6661_v5 = vld [vmem:[#allocation8 + $0x1d0] ss:$28 sps:$4 sm:$0xff]   ;;  %v6674_v14 = vld [vmem:[#allocation8 + $0x5c8] ss:$28 sps:$4 sm:$0xff]  }
 0x687   :  { %v3142_v28 = vadd.f32 %v3141_v25, %v2733_v10  ;;  %4673 = vmatpush1.bf16.msra.mxu0 %v6609_v12  ;;  %4759 = vmatpush1.bf16.msra.mxu1 %v6612_v13  ;;  %v3147_v34 = vmax.f32 %v3138_v19, 0.0  ;;  %v6669_v10 = vld [vmem:[#allocation8 + $0x590] ss:$28 sps:$4 sm:$0xff]   ;;  %v6673_v13 = vld [vmem:[#allocation8 + $0x244] ss:$28 sps:$4 sm:$0xff]  }
 0x688   :  { %v3150_v31 = vmax.f32 %v3140_v21, 0.0  ;;  %4674 = vmatprep.subr.bf16.mxu0 %v6617_v16  ;;  %4760 = vmatprep.subr.bf16.mxu1 %v6620_v17  ;;  %v6670_v12 = vld [vmem:[#allocation8 + $0x3d0] ss:$28 sps:$4 sm:$0xff]   ;;  %v6671_v15 = vld [vmem:[#allocation8 + $0x240] ss:$28 sps:$4 sm:$0xff]  }
 0x689   :  { %v3151_v35 = vmax.f32 %v3142_v28, 0.0  ;;  %v6675_v16 = vld [vmem:[#allocation8 + $0x408] ss:$28 sps:$4 sm:$0xff]   ;;  %v6678_v17 = vld [vmem:[#allocation8 + $0x27c] ss:$28 sps:$4 sm:$0xff]  }
 0x68a   :  { %v7290_v36 = vpack.c.bf16 %v3150_v31, %v3146_v30  ;;  %v6679_v19 = vld [vmem:[#allocation8 + $0x600] ss:$28 sps:$4 sm:$0xff]   ;;  %v6676_v20 = vld [vmem:[#allocation8 + $0x278] ss:$28 sps:$4 sm:$0xff]   ;;  %v6688_v30 = vld [vmem:[#allocation8 + $0x2ec] ss:$28 sps:$4 sm:$0xff]  }
 0x68b   :  { %v7292_v37 = vpack.c.bf16 %v3151_v35, %v3147_v34  ;;  %4675 = vmatpush1.bf16.msra.mxu0 %v6615_v29  ;;  %4761 = vmatpush1.bf16.msra.mxu1 %v6618_v57  ;;  %v6680_v21 = vld [vmem:[#allocation8 + $0x440] ss:$28 sps:$4 sm:$0xff]   ;;  %v6683_v25 = vld [vmem:[#allocation8 + $0x2b4] ss:$28 sps:$4 sm:$0xff]   ;;  %v6694_v35 = vld [vmem:[#allocation8 + $0x6a8] ss:$28 sps:$4 sm:$0xff]  }
 0x68c   :  { %4773 = vmatprep.subr.bf16.mxu0 %v6623_v32  ;;  %5744 = vmatprep.subr.bf16.mxu1 %v6624_v33  ;;  %v6684_v28 = vld [vmem:[#allocation8 + $0x638] ss:$28 sps:$4 sm:$0xff]   ;;  %v6681_v29 = vld [vmem:[#allocation8 + $0x2b0] ss:$28 sps:$4 sm:$0xff]   ;;  %v6686_v32 = vld [vmem:[#allocation8 + $0x2e8] ss:$28 sps:$4 sm:$0xff]  }
 0x68d   :  { %4676 = vmatprep.mubr.bf16.mxu0 %v7292_v37  ;;  %4762 = vmatprep.mubr.bf16.mxu1 %v7292_v37  ;;  %v6685_v57 = vld [vmem:[#allocation8 + $0x478] ss:$28 sps:$4 sm:$0xff]   ;;  %v6689_v31 = vld [vmem:[#allocation8 + $0x670] ss:$28 sps:$4 sm:$0xff]   ;;  %v6693_v34 = vld [vmem:[#allocation8 + $0x324] ss:$28 sps:$4 sm:$0xff]  }
 0x68e   :  { %4677 = vmatmul.mubr.bf16.vlgmr.msra.gmra.mrb[8].mxu0 %v7290_v36  ;;  %4763 = vmatmul.mubr.bf16.vlgmr.msra.gmra.mrb[20].mxu1 %v7290_v36  ;;  %v6690_v33 = vld [vmem:[#allocation8 + $0x4b0] ss:$28 sps:$4 sm:$0xff]  }
 0x68f   :  { %4774 = vmatpush1.bf16.msra.mxu0 %v6621_v38  ;;  %4805 = vmatprep.mubr.bf16.mxu0 %v7280_v8  ;;  %v6691_v38 = vld [vmem:[#allocation8 + $0x320] ss:$28 sps:$4 sm:$0xff]  }
 0x690   :  { %5745 = vmatpush3.bf16.msra.mxu1 %v6625_v39  ;;  %4891 = vmatprep.mubr.bf16.mxu1 %v7280_v8  ;;  %v6644_v8 = vld [vmem:[#allocation8 + $0x2b8] ss:$28 sps:$4 sm:$0xff]   ;;  %v6695_v39 = vld [vmem:[#allocation8 + $0x4e8] ss:$28 sps:$4 sm:$0xff]  }
 0x691   :  { %4775 = vmatprep.subr.bf16.mxu0 %v6628_v40  ;;  %5746 = vmatprep.subr.bf16.mxu1 %v6629_v41  ;;  %v6698_v40 = vld [vmem:[#allocation8 + $0x35c] ss:$28 sps:$4 sm:$0xff]  }
 0x692   :  { %v6699_v41 = vld [vmem:[#allocation8 + $0x6e0] ss:$28 sps:$4 sm:$0xff]  }
 0x693   :  { %4776 = vmatpush1.bf16.msra.mxu0 %v6626_v42  ;;  %v6696_v42 = vld [vmem:[#allocation8 + $0x358] ss:$28 sps:$4 sm:$0xff]  }
 0x694   :  { %5747 = vmatpush3.bf16.msra.mxu1 %v6630_v43  ;;  %4777 = vmatprep.subr.bf16.mxu0 %v6633_v44  ;;  %v6700_v43 = vld [vmem:[#allocation8 + $0x520] ss:$28 sps:$4 sm:$0xff]   ;;  %v6703_v44 = vld [vmem:[#allocation8 + $0x394] ss:$28 sps:$4 sm:$0xff]  }
 0x695   :  { %5748 = vmatprep.subr.bf16.mxu1 %v6634_v45  ;;  %v6701_v45 = vld [vmem:[#allocation8 + $0x390] ss:$28 sps:$4 sm:$0xff]  }
 0x697   :  { %4778 = vmatpush1.bf16.msra.mxu0 %v6631_v46  ;;  %v6706_v46 = vld [vmem:[#allocation8 + $0x3cc] ss:$28 sps:$4 sm:$0xff]  }
 0x698   :  { %5749 = vmatpush3.bf16.msra.mxu1 %v6635_v47  ;;  %4779 = vmatprep.subr.bf16.mxu0 %v6638_v48  ;;  %v6704_v47 = vld [vmem:[#allocation8 + $0x3c8] ss:$28 sps:$4 sm:$0xff]  }
 0x699   :  { %5750 = vmatprep.subr.bf16.mxu1 %v6639_v49  ;;  %v6709_v48 = vld [vmem:[#allocation8 + $0x404] ss:$28 sps:$4 sm:$0xff]  }
 0x69a   :  { %v6707_v49 = vld [vmem:[#allocation8 + $0x400] ss:$28 sps:$4 sm:$0xff]  }
 0x69b   :  { %4780 = vmatpush1.bf16.msra.mxu0 %v6636_v50  ;;  %v6712_v50 = vld [vmem:[#allocation8 + $0x43c] ss:$28 sps:$4 sm:$0xff]  }
 0x69c   :  { %5751 = vmatpush3.bf16.msra.mxu1 %v6640_v51  ;;  %4781 = vmatprep.subr.bf16.mxu0 %v6643_v52  ;;  %v6710_v51 = vld [vmem:[#allocation8 + $0x438] ss:$28 sps:$4 sm:$0xff]  }
 0x69d   :  { %5752 = vmatprep.subr.bf16.mxu1 %v6644_v8  ;;  %v6715_v52 = vld [vmem:[#allocation8 + $0x474] ss:$28 sps:$4 sm:$0xff]  }
 0x69e   :  { %v6713_v8 = vld [vmem:[#allocation8 + $0x470] ss:$28 sps:$4 sm:$0xff]  }
 0x69f   :  { %4782 = vmatpush1.bf16.msra.mxu0 %v6641_v53  ;;  %v6716_v53 = vld [vmem:[#allocation8 + $0x4a8] ss:$28 sps:$4 sm:$0xff]  }
 0x6a0   :  { %5753 = vmatpush3.bf16.msra.mxu1 %v6645_v54  ;;  %4783 = vmatprep.subr.bf16.mxu0 %v6648_v55  ;;  %v6721_v54 = vld [vmem:[#allocation8 + $0x4e4] ss:$28 sps:$4 sm:$0xff]   ;;  %v6724_v55 = vld [vmem:[#allocation8 + $0x51c] ss:$28 sps:$4 sm:$0xff]  }
 0x6a1   :  { %5754 = vmatprep.subr.bf16.mxu1 %v6649_v56  ;;  %v6722_v56 = vld [vmem:[#allocation8 + $0x518] ss:$28 sps:$4 sm:$0xff]  }
 0x6a3   :  { %4784 = vmatpush1.bf16.msra.mxu0 %v6646_v58  ;;  %v6727_v58 = vld [vmem:[#allocation8 + $0x554] ss:$28 sps:$4 sm:$0xff]  }
 0x6a4   :  { %5755 = vmatpush3.bf16.msra.mxu1 %v6650_v59  ;;  %4785 = vmatprep.subr.bf16.mxu0 %v6653_v60  ;;  %v6725_v59 = vld [vmem:[#allocation8 + $0x550] ss:$28 sps:$4 sm:$0xff]  }
 0x6a5   :  { %5756 = vmatprep.subr.bf16.mxu1 %v6654_v61  ;;  %v6730_v60 = vld [vmem:[#allocation8 + $0x58c] ss:$28 sps:$4 sm:$0xff]  }
 0x6a6   :  { %v6728_v61 = vld [vmem:[#allocation8 + $0x588] ss:$28 sps:$4 sm:$0xff]  }
 0x6a7   :  { %4786 = vmatpush1.bf16.msra.mxu0 %v6651_v62  ;;  %v6733_v62 = vld [vmem:[#allocation8 + $0x5c4] ss:$28 sps:$4 sm:$0xff]  }
 0x6a8   :  { %5757 = vmatpush3.bf16.msra.mxu1 %v6655_v63  ;;  %4787 = vmatprep.subr.bf16.mxu0 %v6658_v0  ;;  %v6731_v63 = vld [vmem:[#allocation8 + $0x5c0] ss:$28 sps:$4 sm:$0xff]  }
 0x6a9   :  { %5758 = vmatprep.subr.bf16.mxu1 %v6659_v1  ;;  %v6736_v0 = vld [vmem:[#allocation8 + $0x5fc] ss:$28 sps:$4 sm:$0xff]  }
 0x6aa   :  { %v6734_v1 = vld [vmem:[#allocation8 + $0x5f8] ss:$28 sps:$4 sm:$0xff]  }
 0x6ab   :  { %4788 = vmatpush1.bf16.msra.mxu0 %v6656_v18  ;;  %v6739_v18 = vld [vmem:[#allocation8 + $0x634] ss:$28 sps:$4 sm:$0xff]  }
 0x6ac   :  { %5759 = vmatpush3.bf16.msra.mxu1 %v6660_v2  ;;  %4789 = vmatprep.subr.bf16.mxu0 %v6663_v3  ;;  %v6737_v2 = vld [vmem:[#allocation8 + $0x630] ss:$28 sps:$4 sm:$0xff]  }
 0x6ad   :  { %5766 = vmatprep.subr.bf16.mxu1 %v6664_v4  ;;  %v6742_v3 = vld [vmem:[#allocation8 + $0x66c] ss:$28 sps:$4 sm:$0xff]  }
 0x6ae   :  { %v6740_v4 = vld [vmem:[#allocation8 + $0x668] ss:$28 sps:$4 sm:$0xff]  }
 0x6af   :  { %4892 = vmatmul.mubr.bf16.vlgmr.msra.gmra.mrb[24].mxu1 %v7278_v7  ;;  %4790 = vmatpush1.bf16.msra.mxu0 %v6661_v5  ;;  %v6745_v5 = vld [vmem:[#allocation8 + $0x6a4] ss:$28 sps:$4 sm:$0xff]  }
 0x6b0   :  { %5767 = vmatpush3.bf16.msra.mxu1 %v6665_v6  ;;  %4932 = vmatprep.mubr.bf16.mxu1 %v7292_v37  ;;  %v6743_v6 = vld [vmem:[#allocation8 + $0x6a0] ss:$28 sps:$4 sm:$0xff]  }
 0x6b1   :  { %4791 = vmatprep.subr.bf16.mxu0 %v6668_v9  ;;  %5768 = vmatprep.subr.bf16.mxu1 %v6669_v10  ;;  %v6748_v9 = vld [vmem:[#allocation8 + $0x6dc] ss:$28 sps:$4 sm:$0xff]  }
 0x6b2   :  { %v6746_v10 = vld [vmem:[#allocation8 + $0x6d8] ss:$28 sps:$4 sm:$0xff]  }
 0x6b3   :  { %4792 = vmatpush1.bf16.msra.mxu0 %v6666_v11  ;;  %v7309_v11 = vld [vmem:[%s7380_s13] sm:$0xff]  ;;  %s6985_s13 = smov [#allocation11]  }
 0x6b4   :  { %5769 = vmatpush3.bf16.msra.mxu1 %v6670_v12  ;;  %4793 = vmatprep.subr.bf16.mxu0 %v6673_v13  ;;  %v3417_v12 = vrot.slane %v7309_v11, %v7192_v23  ;;  %v3425_v13 = vrot.slane %v7309_v11, %v7195_v24  ;;  %s5068_s18 = sshll.u32 %s6985_s13, 4  ;;  %s5069_s18 = int_to_ptr.vmem [resolvable:$true] %s5068_s18 }
 0x6b5   :  { %5770 = vmatprep.subr.bf16.mxu1 %v6674_v14  ;;  %v3421_v14 = vrot.slane %v7309_v11, %v7201_v26  ;;  %s6897_s19 = scalar_lea.vmem %s5069_s18, 256  ;;  %p6902_p5 = scmp.lt.s32.totalorder %s5069_s18, %s5069_s18 }
 0x6b6   :  { %p6898_p4 = scmp.ne.s32.totalorder %s5069_s18, %s6897_s19  ;;  %p6903_p6 = scmp.lt.s32.totalorder %s6897_s19, %s6897_s19 }
 0x6b7   :  { %4794 = vmatpush1.bf16.msra.mxu0 %v6671_v15  ;;  %v3429_v15 = vrot.slane %v7309_v11, %v7204_v27 }
 0x6b8   :  { %5771 = vmatpush3.bf16.msra.mxu1 %v6675_v16  ;;  %4795 = vmatprep.subr.bf16.mxu0 %v6678_v17  ;;  %p6904_p7 = por %p6903_p6, %p6902_p5 }
 0x6b9   :  { %5772 = vmatprep.subr.bf16.mxu1 %v6679_v19 }
 0x6ba   :  { %p6905_p8 = pnand %p6904_p7, %p6898_p4 }
 0x6bb   :  { %4796 = vmatpush1.bf16.msra.mxu0 %v6676_v20 }
 0x6bc   :  { %5773 = vmatpush3.bf16.msra.mxu1 %v6680_v21  ;;  %4797 = vmatprep.subr.bf16.mxu0 %v6683_v25 }
 0x6bd   :  { %5774 = vmatprep.subr.bf16.mxu1 %v6684_v28 }
 0x6bf   :  { %4798 = vmatpush1.bf16.msra.mxu0 %v6681_v29 }
 0x6c0   :  { %5775 = vmatpush3.bf16.msra.mxu1 %v6685_v57  ;;  %4799 = vmatprep.subr.bf16.mxu0 %v6688_v30 }
 0x6c1   :  { %5776 = vmatprep.subr.bf16.mxu1 %v6689_v31 }
 0x6c3   :  { %4800 = vmatpush1.bf16.msra.mxu0 %v6686_v32 }
 0x6c4   :  { %5777 = vmatpush3.bf16.msra.mxu1 %v6690_v33  ;;  %4801 = vmatprep.subr.bf16.mxu0 %v6693_v34 }
 0x6c5   :  { %5778 = vmatprep.subr.bf16.mxu1 %v6694_v35 }
 0x6c7   :  { %4802 = vmatpush1.bf16.msra.mxu0 %v6691_v38 }
 0x6c8   :  { %5779 = vmatpush3.bf16.msra.mxu1 %v6695_v39  ;;  %4803 = vmatprep.subr.bf16.mxu0 %v6698_v40 }
 0x6c9   :  { %5780 = vmatprep.subr.bf16.mxu1 %v6699_v41 }
 0x6cb   :  { %4804 = vmatpush1.bf16.msra.mxu0 %v6696_v42 }
 0x6cc   :  { %5781 = vmatpush3.bf16.msra.mxu1 %v6700_v43  ;;  %4816 = vmatprep.subr.bf16.mxu0 %v6703_v44 }
 0x6ce   :  { %4806 = vmatmul.mubr.bf16.vlgmr.msra.gmra.mrb[12].mxu0 %v7278_v7  ;;  %v6718_v7 = vld [vmem:[#allocation8 + $0x4ac] ss:$28 sps:$4 sm:$0xff]  }
 0x6cf   :  { %4933 = vmatmul.mubr.bf16.vlgmr.msra.gmra.mrb[28].mxu1 %v7290_v36  ;;  %4817 = vmatpush1.bf16.msra.mxu0 %v6701_v45 }
 0x6d0   :  { %4848 = vmatprep.mubr.bf16.mxu0 %v7292_v37  ;;  %4818 = vmatprep.subr.bf16.mxu0 %v6706_v46  ;;  %v6719_v37 = vld [vmem:[#allocation8 + $0x4e0] ss:$28 sps:$4 sm:$0xff]  }
 0x6d3   :  { %4819 = vmatpush1.bf16.msra.mxu0 %v6704_v47 }
 0x6d4   :  { %4820 = vmatprep.subr.bf16.mxu0 %v6709_v48 }
 0x6d7   :  { %4821 = vmatpush1.bf16.msra.mxu0 %v6707_v49 }
 0x6d8   :  { %4822 = vmatprep.subr.bf16.mxu0 %v6712_v50 }
 0x6db   :  { %4823 = vmatpush1.bf16.msra.mxu0 %v6710_v51 }
 0x6dc   :  { %4824 = vmatprep.subr.bf16.mxu0 %v6715_v52 }
 0x6df   :  { %4825 = vmatpush1.bf16.msra.mxu0 %v6713_v8 }
 0x6e0   :  { %4826 = vmatprep.subr.bf16.mxu0 %v6718_v7 }
 0x6e3   :  { %4827 = vmatpush1.bf16.msra.mxu0 %v6716_v53 }
 0x6e4   :  { %4828 = vmatprep.subr.bf16.mxu0 %v6721_v54 }
 0x6e7   :  { %4829 = vmatpush1.bf16.msra.mxu0 %v6719_v37 }
 0x6e8   :  { %4830 = vmatprep.subr.bf16.mxu0 %v6724_v55 }
 0x6eb   :  { %4831 = vmatpush1.bf16.msra.mxu0 %v6722_v56 }
 0x6ec   :  { %4832 = vmatprep.subr.bf16.mxu0 %v6727_v58 }
 0x6ef   :  { %4833 = vmatpush1.bf16.msra.mxu0 %v6725_v59 }
 0x6f0   :  { %4834 = vmatprep.subr.bf16.mxu0 %v6730_v60 }
 0x6f3   :  { %4835 = vmatpush1.bf16.msra.mxu0 %v6728_v61 }
 0x6f4   :  { %4836 = vmatprep.subr.bf16.mxu0 %v6733_v62 }
 0x6f7   :  { %4837 = vmatpush1.bf16.msra.mxu0 %v6731_v63 }
 0x6f8   :  { %4838 = vmatprep.subr.bf16.mxu0 %v6736_v0 }
 0x6fb   :  { %4839 = vmatpush1.bf16.msra.mxu0 %v6734_v1 }
 0x6fc   :  { %4840 = vmatprep.subr.bf16.mxu0 %v6739_v18 }
 0x6ff   :  { %4841 = vmatpush1.bf16.msra.mxu0 %v6737_v2 }
 0x700   :  { %4842 = vmatprep.subr.bf16.mxu0 %v6742_v3 }
 0x703   :  { %4843 = vmatpush1.bf16.msra.mxu0 %v6740_v4 }
 0x704   :  { %4844 = vmatprep.subr.bf16.mxu0 %v6745_v5 }
 0x707   :  { %4845 = vmatpush1.bf16.msra.mxu0 %v6743_v6 }
 0x708   :  { %4846 = vmatprep.subr.bf16.mxu0 %v6748_v9 }
 0x70b   :  { %4847 = vmatpush1.bf16.msra.mxu0 %v6746_v10 }
 0x70e   :  { %4849 = vmatmul.mubr.bf16.vlgmr.msra.gmra.mrb[12].mxu0 %v7290_v36 }
 0x761   :  { %v4678_v16 = vpop.f32.mrb[8].mxu0  ;;  %v4764_v17 = vpop.f32.mrb[20].mxu1 }
 0x762   :  { %v5800_v36 = vadd.f32 %v4678_v16, %v3417_v12  ;;  %v5804_v19 = vadd.f32 %v4764_v17, %v3425_v13  ;;  %v4680_v20 = vpop.f32.mrb[9].mxu0  ;;  %v4766_v21 = vpop.f32.mrb[21].mxu1 }
 0x763   :  { %v5801_v25 = vadd.f32 %v4680_v20, %v3421_v14  ;;  %v5805_v28 = vadd.f32 %v4766_v21, %v3429_v15  ;;  %v4682_v29 = vpop.f32.mrb[10].mxu0  ;;  %v4768_v57 = vpop.f32.mrb[22].mxu1 }
 0x764   :  { %v5708_v23 = vmul.f32 -1.442695, %v5800_v36  ;;  %v5710_v30 = vmul.f32 -1.442695, %v5804_v19  ;;  %v5802_v31 = vadd.f32 %v4682_v29, %v3417_v12  ;;  %v5806_v24 = vadd.f32 %v4768_v57, %v3425_v13  ;;  %v4684_v32 = vpop.f32.mrb[11].mxu0  ;;  %v4770_v33 = vpop.f32.mrb[23].mxu1 }
 0x765   :  { %v5709_v26 = vmul.f32 -1.442695, %v5801_v25  ;;  %v5711_v34 = vmul.f32 -1.442695, %v5805_v28  ;;  %v5803_v35 = vadd.f32 %v4684_v32, %v3421_v14  ;;  %v5807_v27 = vadd.f32 %v4770_v33, %v3429_v15 }
 0x766   :  { %6753 = vpow2.f32 %v5708_v23  ;;  %v5715_v38 = vmul.f32 -1.442695, %v5802_v31  ;;  %v5717_v39 = vmul.f32 -1.442695, %v5806_v24 }
 0x767   :  { %6755 = vpow2.f32 %v5710_v30  ;;  %v5716_v40 = vmul.f32 -1.442695, %v5803_v35  ;;  %v5718_v41 = vmul.f32 -1.442695, %v5807_v27 }
 0x768   :  { %6757 = vpow2.f32 %v5709_v26 }
 0x769   :  { %6759 = vpow2.f32 %v5711_v34 }
 0x76a   :  { %6761 = vpow2.f32 %v5715_v38 }
 0x76b   :  { %6763 = vpow2.f32 %v5717_v39 }
 0x76c   :  { %6765 = vpow2.f32 %v5716_v40 }
 0x76d   :  { %6767 = vpow2.f32 %v5718_v41 }
 0x770   :  { %v6754_v42 = vpop.eup %6753 }
 0x771   :  { %v6756_v43 = vpop.eup %6755  ;;  %v4983_v44 = vadd.f32 1.0, %v6754_v42 }
 0x772   :  { %v6758_v45 = vpop.eup %6757  ;;  %v4985_v46 = vadd.f32 1.0, %v6756_v43 }
 0x773   :  { %v6760_v47 = vpop.eup %6759  ;;  %6769 = vrcp.f32 %v4983_v44  ;;  %v4984_v48 = vadd.f32 1.0, %v6758_v45 }
 0x774   :  { %v6762_v49 = vpop.eup %6761  ;;  %6771 = vrcp.f32 %v4985_v46  ;;  %v4986_v50 = vadd.f32 1.0, %v6760_v47 }
 0x775   :  { %v6764_v51 = vpop.eup %6763  ;;  %6773 = vrcp.f32 %v4984_v48  ;;  %v4990_v52 = vadd.f32 1.0, %v6762_v49 }
 0x776   :  { %v6766_v8 = vpop.eup %6765  ;;  %6775 = vrcp.f32 %v4986_v50  ;;  %v4992_v7 = vadd.f32 1.0, %v6764_v51 }
 0x777   :  { %v6768_v53 = vpop.eup %6767  ;;  %6777 = vrcp.f32 %v4990_v52  ;;  %v4991_v54 = vadd.f32 1.0, %v6766_v8 }
 0x778   :  { %6779 = vrcp.f32 %v4992_v7  ;;  %v4993_v37 = vadd.f32 1.0, %v6768_v53 }
 0x779   :  { %6781 = vrcp.f32 %v4991_v54 }
 0x77a   :  { %6783 = vrcp.f32 %v4993_v37 }
 0x77d   :  { %v6770_v55 = vpop.eup %6769 }
 0x77e   :  { %v6772_v56 = vpop.eup %6771  ;;  %5025 = vst [vmem:[#allocation10] sm:$0xff] %v6770_v55 }
 0x77f   :  { %v6774_v58 = vpop.eup %6773  ;;  %5027 = vst [vmem:[#allocation10 + $0x10] sm:$0xff] %v6772_v56 }
 0x780   :  { %v6776_v59 = vpop.eup %6775  ;;  %5026 = vst [vmem:[#allocation10 + $0x8] sm:$0xff] %v6774_v58 }
 0x781   :  { %v6778_v60 = vpop.eup %6777  ;;  %5028 = vst [vmem:[#allocation10 + $0x18] sm:$0xff] %v6776_v59 }
 0x782   :  { %v6780_v61 = vpop.eup %6779  ;;  %5032 = vst [vmem:[#allocation10 + $0x38] sm:$0xff] %v6778_v60  ;;  %v5760_v62 = vpop.f32.mrb[24].mxu1 }
 0x783   :  { %v6782_v63 = vpop.eup %6781  ;;  %5034 = vst [vmem:[#allocation10 + $0x48] sm:$0xff] %v6780_v61  ;;  %v5761_v0 = vpop.f32.mrb[25].mxu1 }
 0x784   :  { %v6784_v1 = vpop.eup %6783  ;;  %5033 = vst [vmem:[#allocation10 + $0x40] sm:$0xff] %v6782_v63  ;;  %v5762_v18 = vadd.f32 %v5761_v0, %v5760_v62  ;;  %v5763_v2 = vpop.f32.mrb[26].mxu1 }
 0x785   :  { %6908 = shalt.err (!%p6905_p8)
}
 0x786   :  { %s6909_s25 = scalar_lea.hbm %s7382_s15, 256 }
 0x787   :  { %p6910_p9 = scmp.ne.s32.totalorder %s7382_s15, %s6909_s25  ;;  %p6913_p10 = scmp.lt.u32.totalorder %s6909_s25, %s7382_s15 }
 0x789   :  { %p6915_p11 = pnand %p6913_p10, %p6910_p9 }
 0x78b   :  { %6918 = shalt.err (!%p6915_p11)
}
 0x78c   :  { %s7391_s7 = smov 8   ;;  %s7392_s27 = smov 128   ;;  %5035 = vst [vmem:[#allocation10 + $0x50] sm:$0xff] %v6784_v1  ;;  %v5764_v3 = vpop.f32.mrb[27].mxu1 }
 0x78d   :  { %5074 = dma.vmem_to_hbm [thread:$0]  %s5069_s18, 256, %s7382_s15, [#allocation12], %s7392_s27, %s7392_s27, %s7391_s7   ;;  %v5765_v4 = vadd.f32 %v5764_v3, %v5763_v2 }
 0x78e   :  { %s6986_s4 = smov [#allocation13]  }
 0x78f   :  { %s5080_s22 = sshll.u32 %s6986_s4, 4  ;;  %s5081_s22 = int_to_ptr.vmem [resolvable:$true] %s5080_s22 }
 0x790   :  { %s6919_s23 = scalar_lea.vmem %s5081_s22, 256  ;;  %p6924_p13 = scmp.lt.s32.totalorder %s5081_s22, %s5081_s22 }
 0x791   :  { %p6920_p12 = scmp.ne.s32.totalorder %s5081_s22, %s6919_s23  ;;  %p6925_p0 = scmp.lt.s32.totalorder %s6919_s23, %s6919_s23 }
 0x793   :  { %p6926_p1 = por %p6925_p0, %p6924_p13 }
 0x795   :  { %p6927_p2 = pnand %p6926_p1, %p6920_p12 }
 0x797   :  { %6930 = shalt.err (!%p6927_p2)
}
 0x798   :  { %s6931_s26 = scalar_lea.hbm %s7383_s16, 256 }
 0x799   :  { %p6932_p3 = scmp.ne.s32.totalorder %s7383_s16, %s6931_s26  ;;  %p6935_p4 = scmp.lt.u32.totalorder %s6931_s26, %s7383_s16 }
 0x79b   :  { %p6937_p5 = pnand %p6935_p4, %p6932_p3 }
 0x79d   :  { %6940 = shalt.err (!%p6937_p5)
}
 0x79e   :  { %5086 = dma.vmem_to_hbm [thread:$0]  %s5081_s22, 256, %s7383_s16, [#allocation12], %s7392_s27, %s7392_s27, %s7391_s7   ;;  %v3440_v5 = vsub.s32 6, %v7189_v22  ;;  %v3432_v31 = vsub.s32 4, %v7189_v22  ;;  %v3436_v24 = vsub.s32 5, %v7189_v22 }
 0x79f   :  { %s6987_s16 = smov [#allocation10]  }
 0x7a0   :  { %v3441_v6 = vrot.slane %v7309_v11, %v3440_v5  ;;  %v3433_v32 = vrot.slane %v7309_v11, %v3432_v31  ;;  %v3437_v33 = vrot.slane %v7309_v11, %v3436_v24  ;;  %s5056_s2 = sshll.u32 %s6987_s16, 4  ;;  %s5057_s2 = int_to_ptr.vmem [resolvable:$true] %s5056_s2 }
 0x7a1   :  { %s6941_s11 = scalar_lea.vmem %s5057_s2, 1792  ;;  %p6946_p7 = scmp.lt.s32.totalorder %s5057_s2, %s5057_s2 }
 0x7a2   :  { %v5782_v9 = vpop.f32.mrb[28].mxu1  ;;  %v4894_v12 = vadd.f32 %v5762_v18, %v3441_v6  ;;  %v4897_v16 = vadd.f32 %v5765_v4, %v3441_v6  ;;  %p6942_p6 = scmp.ne.s32.totalorder %s5057_s2, %s6941_s11  ;;  %p6947_p8 = scmp.lt.s32.totalorder %s6941_s11, %s6941_s11 }
 0x7a3   :  { %v5783_v10 = vpop.f32.mrb[29].mxu1 }
 0x7a4   :  { %v5784_v13 = vadd.f32 %v5783_v10, %v5782_v9  ;;  %v5785_v14 = vpop.f32.mrb[30].mxu1  ;;  %p6948_p9 = por %p6947_p8, %p6946_p7 }
 0x7a5   :  { %v5786_v15 = vpop.f32.mrb[31].mxu1 }
 0x7a6   :  { %v4935_v17 = vadd.f32 %v5784_v13, %v4894_v12  ;;  %v5787_v36 = vadd.f32 %v5786_v15, %v5785_v14  ;;  %p6949_p10 = pnand %p6948_p9, %p6942_p6 }
 0x7a8   :  { %v5714_v19 = vmul.f32 -1.442695, %v4935_v17  ;;  %v4938_v20 = vadd.f32 %v5787_v36, %v4897_v16 }
 0x7aa   :  { %6785 = vpow2.f32 %v5714_v19  ;;  %v5721_v21 = vmul.f32 -1.442695, %v4938_v20 }
 0x7ac   :  { %6787 = vpow2.f32 %v5721_v21 }
 0x7b4   :  { %v6786_v25 = vpop.eup %6785 }
 0x7b5   :  { %v4989_v28 = vadd.f32 1.0, %v6786_v25 }
 0x7b6   :  { %v6788_v29 = vpop.eup %6787 }
 0x7b7   :  { %6789 = vrcp.f32 %v4989_v28  ;;  %v4996_v57 = vadd.f32 1.0, %v6788_v29 }
 0x7b9   :  { %6791 = vrcp.f32 %v4996_v57 }
 0x7c1   :  { %v6790_v23 = vpop.eup %6789 }
 0x7c2   :  { %5031 = vst [vmem:[#allocation10 + $0x30] sm:$0xff] %v6790_v23 }
 0x7c3   :  { %v6792_v30 = vpop.eup %6791 }
 0x7c4   :  { %5038 = vst [vmem:[#allocation10 + $0x68] sm:$0xff] %v6792_v30 }
 0x7e1   :  { %v4850_v26 = vpop.f32.mrb[12].mxu0 }
 0x7e2   :  { %v5808_v34 = vadd.f32 %v4850_v26, %v3433_v32  ;;  %v4852_v35 = vpop.f32.mrb[13].mxu0 }
 0x7e3   :  { %v5809_v27 = vadd.f32 %v4852_v35, %v3437_v33  ;;  %v4854_v38 = vpop.f32.mrb[14].mxu0 }
 0x7e4   :  { %v5712_v39 = vmul.f32 -1.442695, %v5808_v34  ;;  %v5810_v40 = vadd.f32 %v4854_v38, %v3433_v32  ;;  %v4856_v41 = vpop.f32.mrb[15].mxu0 }
 0x7e5   :  { %v5713_v42 = vmul.f32 -1.442695, %v5809_v27  ;;  %v5811_v43 = vadd.f32 %v4856_v41, %v3437_v33 }
 0x7e6   :  { %6793 = vpow2.f32 %v5712_v39  ;;  %v5719_v44 = vmul.f32 -1.442695, %v5810_v40 }
 0x7e7   :  { %6795 = vpow2.f32 %v5713_v42  ;;  %v5720_v45 = vmul.f32 -1.442695, %v5811_v43 }
 0x7e8   :  { %6797 = vpow2.f32 %v5719_v44 }
 0x7e9   :  { %6799 = vpow2.f32 %v5720_v45 }
 0x7f0   :  { %v6794_v22 = vpop.eup %6793 }
 0x7f1   :  { %v6796_v46 = vpop.eup %6795  ;;  %v4987_v47 = vadd.f32 1.0, %v6794_v22 }
 0x7f2   :  { %v6798_v11 = vpop.eup %6797  ;;  %v4988_v48 = vadd.f32 1.0, %v6796_v46 }
 0x7f3   :  { %v6800_v49 = vpop.eup %6799  ;;  %6801 = vrcp.f32 %v4987_v47  ;;  %v4994_v50 = vadd.f32 1.0, %v6798_v11 }
 0x7f4   :  { %6803 = vrcp.f32 %v4988_v48  ;;  %v4995_v51 = vadd.f32 1.0, %v6800_v49 }
 0x7f5   :  { %6805 = vrcp.f32 %v4994_v50 }
 0x7f6   :  { %6807 = vrcp.f32 %v4995_v51 }
 0x7fd   :  { %v6802_v52 = vpop.eup %6801 }
 0x7fe   :  { %v6804_v8 = vpop.eup %6803  ;;  %5029 = vst [vmem:[#allocation10 + $0x20] sm:$0xff] %v6802_v52 }
 0x7ff   :  { %v6806_v7 = vpop.eup %6805  ;;  %5030 = vst [vmem:[#allocation10 + $0x28] sm:$0xff] %v6804_v8 }
 0x800   :  { %v6808_v53 = vpop.eup %6807  ;;  %5036 = vst [vmem:[#allocation10 + $0x58] sm:$0xff] %v6806_v7 }
 0x801   :  { %5037 = vst [vmem:[#allocation10 + $0x60] sm:$0xff] %v6808_v53 }
 0x802   :  { %6952 = shalt.err (!%p6949_p10)
}
 0x803   :  { %s6953_s18 = scalar_lea.hbm %s7381_s14, 1792 }
 0x804   :  { %p6954_p11 = scmp.ne.s32.totalorder %s7381_s14, %s6953_s18  ;;  %p6957_p12 = scmp.lt.u32.totalorder %s6953_s18, %s7381_s14 }
 0x806   :  { %p6959_p13 = pnand %p6957_p12, %p6954_p11 }
 0x808   :  { %6962 = shalt.err (!%p6959_p13)
}
 0x809   :  { %s6988_s0 = smov 896   ;;  %s6989_s5 = smov 56  }
 0x80a   :  { %5062 = dma.vmem_to_hbm [thread:$0]  %s5057_s2, 1792, %s7381_s14, [#allocation4], %s6988_s0, %s6988_s0, %s6989_s5  }
 0x80b   :  { %6969 = dma.done.wait [#allocation4], 1792  }
 0x80c   :  { %6970 = vsyncadd [#allocation4], 4294965504 }
 0x80d   :  { %6971 = dma.done.wait [#allocation12], 512  }
 0x80e   :  { %6972 = vsyncadd [#allocation12], 4294966784 }
 0x80f   :  { %5096 = vsyncpa [#allocation3], 1 }
 0x810   :  { %5097 = vsyncpa [#allocation6], 1 }
 0x811   :  { %5098 = vsyncpa [#allocation9], 1 }
 0x812   :  { %5099 = vsyncpa [#allocation4], 1 }
 0x813   :  { %5100 = vsyncpa [#allocation12], 1 }

</bundles_post_ra>
